<compile_context>
chip_gen: v7x
topology: tpu7x:2x2x1
jax: 0.10.0
libtpu: 0.0.40
codegen_flags: <defaults>
</compile_context>

<pallas_src>
import functools
import math

import jax
import jax.numpy as jnp
from jax.experimental import pallas as pl
from jax.experimental.pallas import tpu as pltpu


# -----------------------------------------------------------------------------
# small in-kernel helpers (everything keeps the flattened pixel axis on lanes)
# -----------------------------------------------------------------------------
def _smooth_l1(d):
    a = jnp.abs(d)
    return jnp.where(a < 1.0, 0.5 * a * a, a - 0.5)


def _shift(t, k, p):
    """t'[..., i] = t[..., (i + k) % p]  -- cyclic lane roll on the XLU."""
    if k == 0:
        return t
    return pltpu.roll(t, p - k, axis=1)


def _pool3x3_flat(t, w, p):
    """AvgPool2d(kernel=3, stride=1, valid) on a row-major flattened band."""
    t1 = t + _shift(t, 1, p) + _shift(t, 2, p)
    t2 = t1 + _shift(t1, w, p) + _shift(t1, 2 * w, p)
    return t2 * (1.0 / 9.0)


# -----------------------------------------------------------------------------
# fused kernel: inverse warp + photometric / gradient / SSIM sums + mask histogram
# grid = (B, T) over batches and row tiles, both parallel.
# -----------------------------------------------------------------------------
def _unsup_kernel(cam_ref, depth_ref, ref_ref, src_ref, out_ref,
                  *, H, W, C, Vs, TR, HALO):
    b = pl.program_id(0)
    t = pl.program_id(1)
    P = (TR + HALO) * W                     # lanes computed this step (halo recompute)
    fW = float(W)
    max_x = float(W - 1)
    max_y = float(H - 1)
    c1 = 0.01 ** 2
    c2 = 0.03 ** 2

    row0 = t * TR                           # first global image row of this tile
    start = pl.multiple_of(row0 * W, 128)   # lane offset into the padded flat image

    # ---- per-tile pixel coordinates, (1, P) lane-dense -----------------------
    lane_f = jax.lax.broadcasted_iota(jnp.int32, (1, P), 1).astype(jnp.float32)
    lr = jnp.floor((lane_f + 0.5) * (1.0 / fW))       # local row (exact small ints)
    gx = lane_f - lr * fW                             # column
    gy = lr + row0.astype(jnp.float32)                # global row

    own = lr < float(TR)                              # tile-owned (non-halo) pixels
    ownf = own.astype(jnp.float32)
    dx_valid = jnp.where(own & (gx <= float(W - 2)), 1.0, 0.0)
    dy_valid = jnp.where(own & (gy <= float(H - 2)), 1.0, 0.0)
    ssim_valid = own & (gx <= float(W - 3)) & (gy <= float(H - 3))

    d_tile = depth_ref[0, :, pl.ds(start, P)]         # (1, P)
    ref_tile = ref_ref[0, :, pl.ds(start, P)]         # (C, P)

    row_i = jax.lax.broadcasted_iota(jnp.int32, (H, P), 0)
    col_i = jax.lax.broadcasted_iota(jnp.int32, (W, P), 0)

    pattern = jnp.zeros((1, P), jnp.float32)          # per-pixel Vs-bit validity code
    stats = []                                        # (photo, dx, dy, ssim) per view

    for v in range(Vs):
        base = (b * Vs + v) * 16

        def cam(r, i, _base=base):                    # scalar from SMEM
            return cam_ref[_base + 4 * r + i]

        def proj(r):
            return d_tile * (cam(r, 0) * gx + cam(r, 1) * gy + cam(r, 2)) + cam(r, 3)

        px = proj(0)
        py = proj(1)
        pz = proj(2) + 1e-10
        inv_z = pl.reciprocal(pz, approx=True)        # EUP slot
        inv_z = inv_z * (2.0 - pz * inv_z)            # one Newton step
        x = px * inv_z
        y = py * inv_z

        x0 = jnp.floor(x)
        y0 = jnp.floor(y)
        maskb = (x0 >= 0.0) & (x0 + 1.0 <= max_x) & (y0 >= 0.0) & (y0 + 1.0 <= max_y)
        mask = maskb.astype(jnp.float32)              # (1, P)

        # clamped coords -> bounded bilinear weights (identical for valid pixels)
        xcl = jnp.clip(x, 0.0, max_x)
        ycl = jnp.clip(y, 0.0, max_y)
        x0c = jnp.clip(x0, 0.0, max_x)
        x1c = jnp.clip(x0 + 1.0, 0.0, max_x)
        y0c = jnp.clip(y0, 0.0, max_y)
        y1c = jnp.clip(y0 + 1.0, 0.0, max_y)
        wx0 = x1c - xcl
        wx1 = xcl - x0c
        wy0 = y1c - ycl
        wy1 = ycl - y0c
        x0i = x0c.astype(jnp.int32)
        x1i = x1c.astype(jnp.int32)
        y0i = y0c.astype(jnp.int32)
        y1i = y1c.astype(jnp.int32)

        # two-hot column weights (W, P) -> bf16 MXU operand
        wxT = (jnp.where(col_i == x0i, wx0, 0.0)
               + jnp.where(col_i == x1i, wx1, 0.0)).astype(jnp.bfloat16)
        # two-hot row weights (H, P), kept f32 for the y-lerp mul + reduce
        wyT = jnp.where(row_i == y0i, wy0, 0.0) + jnp.where(row_i == y1i, wy1, 0.0)

        do_ssim = v < 2                               # original: views 1 and 2 only
        if do_ssim:
            mask_pool = _pool3x3_flat(mask, W, P)

        photo_s = 0.0
        dx_s = 0.0
        dy_s = 0.0
        ssim_s = 0.0

        for c in range(C):                            # per-channel (small peak live set)
            src_c = src_ref[0, v, c * H:(c + 1) * H, :]                    # (H, W) bf16
            colmix = jnp.dot(src_c, wxT, preferred_element_type=jnp.float32)  # (H, P)
            warped = jnp.sum(colmix * wyT, axis=0, keepdims=True)          # (1, P)
            ref_c = ref_tile[c:c + 1, :]                                   # (1, P)

            rm = ref_c * mask
            wm = warped * mask
            photo_s = photo_s + jnp.sum(_smooth_l1(wm - rm) * ownf)

            rm_dx = _shift(rm, 1, P) - rm
            wm_dx = _shift(wm, 1, P) - wm
            rm_dy = _shift(rm, W, P) - rm
            wm_dy = _shift(wm, W, P) - wm
            dx_s = dx_s + jnp.sum(_smooth_l1(wm_dx - rm_dx) * dx_valid)
            dy_s = dy_s + jnp.sum(_smooth_l1(wm_dy - rm_dy) * dy_valid)

            if do_ssim:
                xs = ref_c
                ys = warped
                mu_x = _pool3x3_flat(xs, W, P)
                mu_y = _pool3x3_flat(ys, W, P)
                sig_x = _pool3x3_flat(xs * xs, W, P) - mu_x * mu_x
                sig_y = _pool3x3_flat(ys * ys, W, P) - mu_y * mu_y
                sig_xy = _pool3x3_flat(xs * ys, W, P) - mu_x * mu_y
                ssim_n = (2.0 * mu_x * mu_y + c1) * (2.0 * sig_xy + c2)
                ssim_d = (mu_x * mu_x + mu_y * mu_y + c1) * (sig_x + sig_y + c2)
                inv_d = pl.reciprocal(ssim_d, approx=True)                 # EUP divide
                inv_d = inv_d * (2.0 - ssim_d * inv_d)
                smap = mask_pool * jnp.clip((1.0 - ssim_n * inv_d) * 0.5, 0.0, 1.0)
                ssim_s = ssim_s + jnp.sum(jnp.where(ssim_valid, smap, 0.0))

        pattern = pattern + mask * float(1 << v)
        stats.append((photo_s, dx_s, dy_s, ssim_s))

    # ---- per-pixel validity pattern histogram (exact min-over-views on host) --
    counts = []
    for j in range(1 << Vs):
        counts.append(jnp.sum(jnp.where(own & (pattern == float(j)), 1.0, 0.0)))

    # ---- assemble the (8, 128) stats block, single store ----------------------
    row_id = jax.lax.broadcasted_iota(jnp.int32, (8, 128), 0)
    lane_id = jax.lax.broadcasted_iota(jnp.int32, (8, 128), 1)
    acc = jnp.zeros((8, 128), jnp.float32)
    for v, (p_s, dx_s, dy_s, ss_s) in enumerate(stats):
        acc = acc + jnp.where((row_id == 0) & (lane_id == v), p_s, 0.0)
        acc = acc + jnp.where((row_id == 1) & (lane_id == v), dx_s, 0.0)
        acc = acc + jnp.where((row_id == 2) & (lane_id == v), dy_s, 0.0)
        acc = acc + jnp.where((row_id == 3) & (lane_id == v), ss_s, 0.0)
    for j, cnt in enumerate(counts):
        acc = acc + jnp.where((row_id == 4) & (lane_id == j), cnt, 0.0)
    out_ref[...] = acc.reshape(out_ref.shape)


# -----------------------------------------------------------------------------
# host glue
# -----------------------------------------------------------------------------
def _nearest_downsample_nchw(x, scale):
    # F.interpolate(mode='nearest', recompute_scale_factor=True) equivalent.
    n, c, h, w = x.shape
    out_h = int(math.floor(h * scale))
    out_w = int(math.floor(w * scale))
    if h % out_h == 0 and w % out_w == 0:
        return x[:, :, ::(h // out_h), ::(w // out_w)]        # cheap strided slice
    idx_h = jnp.floor(jnp.arange(out_h) * (h / out_h)).astype(jnp.int32)
    idx_w = jnp.floor(jnp.arange(out_w) * (w / out_w)).astype(jnp.int32)
    return x[:, :, idx_h, :][:, :, :, idx_w]


def _pick_tile_rows(H, W, tile_lanes):
    """Rows per tile (divides H, lane-aligned band) and halo rows (lane-aligned P)."""
    divs = [d for d in range(1, H + 1) if H % d == 0]
    cand = [d for d in divs if (d * W) % 128 == 0]
    ok = [d for d in cand if d * W <= tile_lanes]
    if ok:
        tr = max(ok)
    elif cand:
        tr = min(cand)
    else:
        tr = H                       # single tile; slice start is always 0
    halo = 2
    while ((tr + halo) * W) % 128 != 0:
        halo += 1
        if halo > 2 + 128:
            raise ValueError("could not find a lane-aligned halo")
    return tr, halo


def unsup_loss_no_smooth(imgs, cams, depth, stage_idx, *, tile_lanes=2048):
    imgs = imgs.astype(jnp.float32)
    cams = cams.astype(jnp.float32)
    depth = depth.astype(jnp.float32)

    B, V, C, H0, W0 = imgs.shape
    assert cams.shape[:2] == (B, V), "Different number of images and projection matrices"
    Vs = V - 1
    assert 1 <= Vs <= 7, "source-view count must fit the 2^Vs histogram lanes"

    scale = {0: 0.25, 1: 0.5}.get(stage_idx, None)

    def prep(im):
        return _nearest_downsample_nchw(im, scale) if scale is not None else im

    ref_nchw = prep(imgs[:, 0])                                    # (B, C, H, W)
    _, _, H, W = ref_nchw.shape
    src_nchw = prep(imgs[:, 1:].reshape(B * Vs, C, H0, W0)).reshape(B, Vs, C, H, W)

    TR, HALO = _pick_tile_rows(H, W, tile_lanes)
    T = H // TR
    HPW = (H + HALO) * W

    # halo-padded, row-major flattened reference image & depth (padded rows are masked)
    ref_pad = jnp.concatenate(
        [ref_nchw, jnp.zeros((B, C, HALO, W), jnp.float32)], axis=2).reshape(B, C, HPW)
    depth_pad = jnp.concatenate(
        [depth.reshape(B, 1, H, W), jnp.ones((B, 1, HALO, W), jnp.float32)],
        axis=2).reshape(B, 1, HPW)

    # source views in natural NCHW layout (no transpose), bf16 for the MXU
    src_bf = src_nchw.reshape(B, Vs, C * H, W).astype(jnp.bfloat16)

    # relative pose / projection matrices (tiny 3x3/4x4 algebra stays in JAX glue)
    ref_cam = cams[:, 0]
    R_l = ref_cam[:, 0, :3, :3]
    t_l = ref_cam[:, 0, :3, 3:4]
    K_l = ref_cam[:, 1, :3, :3]
    K_l_inv = jnp.linalg.inv(K_l)
    bottom = jnp.tile(jnp.array([[[0.0, 0.0, 0.0, 1.0]]], jnp.float32), (B, 1, 1))
    K_hom = jnp.concatenate(
        [jnp.concatenate([K_l, jnp.zeros((B, 3, 1), jnp.float32)], axis=2), bottom], axis=1)

    Ms = []
    for v in range(1, V):
        view_cam = cams[:, v]
        R_r = view_cam[:, 0, :3, :3]
        t_r = view_cam[:, 0, :3, 3:4]
        R = jnp.matmul(R_r, jnp.swapaxes(R_l, -1, -2))
        tt = t_r - jnp.matmul(R, t_l)
        transform = jnp.concatenate([jnp.concatenate([R, tt], axis=2), bottom], axis=1)
        P4 = jnp.matmul(K_hom, transform)                          # (B, 4, 4)
        A = jnp.matmul(P4[:, :, 0:3], K_l_inv)                     # (B, 4, 3)
        Ms.append(jnp.concatenate([A, P4[:, :, 3:4]], axis=2))     # (B, 4, 4)
    cam_flat = jnp.stack(Ms, axis=1).reshape(-1)                   # (B*Vs*16,) -> SMEM

    out = pl.pallas_call(
        functools.partial(_unsup_kernel, H=H, W=W, C=C, Vs=Vs, TR=TR, HALO=HALO),
        out_shape=jax.ShapeDtypeStruct((B, T, 8, 128), jnp.float32),
        grid=(B, T),
        in_specs=[
            pl.BlockSpec(memory_space=pltpu.MemorySpace.SMEM),            # camera scalars
            pl.BlockSpec((1, 1, HPW), lambda b, t: (b, 0, 0)),            # padded depth
            pl.BlockSpec((1, C, HPW), lambda b, t: (b, 0, 0)),            # padded ref image
            pl.BlockSpec((1, Vs, C * H, W), lambda b, t: (b, 0, 0, 0)),   # all source views
        ],
        out_specs=pl.BlockSpec((1, 1, 8, 128), lambda b, t: (b, t, 0, 0)),
        compiler_params=pltpu.CompilerParams(
            dimension_semantics=("parallel", "parallel")),
    )(cam_flat, depth_pad, ref_pad, src_bf)

    tot = jnp.sum(out, axis=(0, 1))                                # (8, 128)
    photo_v = tot[0, :Vs] / float(B * C * H * W)
    dx_v = tot[1, :Vs] / float(B * C * H * (W - 1))
    dy_v = tot[2, :Vs] / float(B * C * (H - 1) * W)
    ssim_loss = jnp.sum(tot[3, :Vs]) / float(B * C * (H - 2) * (W - 2))
    recon_v = 0.5 * photo_v + 0.5 * (dx_v + dy_v)                  # (Vs,)

    # exact min-over-views reprojection loss from the validity-pattern histogram
    n_pat = 1 << Vs
    hist = tot[4, :n_pat]                                          # pixel counts / pattern
    bits = ((jnp.arange(n_pat)[:, None] >> jnp.arange(Vs)[None, :]) & 1).astype(jnp.float32)
    vals = recon_v[None, :] + 10000.0 * (1.0 - bits)               # (n_pat, Vs)
    top = jnp.min(vals, axis=1)
    top = jnp.where(top < 10000.0, top, 0.0)
    reconstr_loss = jnp.sum(hist * top) / float(B * H * W)

    return 12.0 * reconstr_loss + 6.0 * ssim_loss


if __name__ == "__main__":
    key = jax.random.PRNGKey(0)
    k_img, k_depth, k_t = jax.random.split(key, 3)

    B, V, C, H, W = 2, 4, 3, 16, 16
    stage_idx = 2   # 'else: pass' branch (no interpolation); depth matches full H, W

    imgs = jax.random.uniform(k_img, (B, V, C, H, W), dtype=jnp.float32)
    depth = 1.0 + jax.random.uniform(k_depth, (B, H, W), dtype=jnp.float32)   # in [1, 2)

    # deterministic synthetic cameras: identity rotation, small random translation,
    # pinhole intrinsics fx=W, fy=H, cx=W/2, cy=H/2
    t = 0.2 * jax.random.normal(k_t, (B, V, 3, 1), dtype=jnp.float32)
    eye3 = jnp.eye(3, dtype=jnp.float32)
    extr = jnp.zeros((B, V, 4, 4), jnp.float32)
    extr = extr.at[:, :, :3, :3].set(eye3)
    extr = extr.at[:, :, :3, 3:4].set(t)
    extr = extr.at[:, :, 3, 3].set(1.0)
    K = jnp.array([[float(W), 0.0, W / 2.0],
                   [0.0, float(H), H / 2.0],
                   [0.0, 0.0, 1.0]], jnp.float32)
    intr = jnp.zeros((B, V, 4, 4), jnp.float32)
    intr = intr.at[:, :, :3, :3].set(K)
    intr = intr.at[:, :, 3, 3].set(1.0)
    cams = jnp.stack([extr, intr], axis=2)     # (B, V, 2, 4, 4)

    # small tile target so the demo exercises the multi-tile (halo-recompute) path
    fwd = jax.jit(lambda im, cm, dp: unsup_loss_no_smooth(im, cm, dp, stage_idx,
                                                          tile_lanes=128))
    loss = fwd(imgs, cams, depth)
    jax.block_until_ready(loss)
    print("KERNEL_OK")
</pallas_src>

<mosaic_0001>
module attributes {stable_mosaic.version = 11 : i64} {
  func.func @_unsup_kernel(%arg0: i32, %arg1: i32, %arg2: memref<96xf32, #tpu.memory_space<smem>>, %arg3: memref<1x1x384xf32, #tpu.memory_space<vmem>>, %arg4: memref<1x3x384xf32, #tpu.memory_space<vmem>>, %arg5: memref<1x3x48x16xbf16, #tpu.memory_space<vmem>>, %arg6: memref<1x1x8x128xf32, #tpu.memory_space<vmem>>) attributes {dimension_semantics = [#tpu.dimension_semantics<parallel>, #tpu.dimension_semantics<parallel>], iteration_bounds = array<i64: 2, 2>, scalar_prefetch = 0 : i64, scratch_operands = 0 : i64, tpu.core_type = #tpu.core_type<tc>, window_params = [{transform_indices = @transform_0, window_bounds = array<i64: 96>}, {transform_indices = @transform_1, window_bounds = array<i64: 1, 1, 384>}, {transform_indices = @transform_2, window_bounds = array<i64: 1, 3, 384>}, {transform_indices = @transform_3, window_bounds = array<i64: 1, 3, 48, 16>}, {transform_indices = @transform_4, window_bounds = array<i64: 1, 1, 8, 128>}]} {
    %c8_i32 = arith.constant 8 : i32
    %0 = arith.muli %arg1, %c8_i32 : i32
    %c16_i32 = arith.constant 16 : i32
    %1 = arith.muli %0, %c16_i32 : i32
    %2 = tpu.assume_multiple %1, 128 : i32
    %3 = tpu.iota {dimensions = array<i32: 1>} : vector<1x256xi32>
    %4 = arith.sitofp %3 : vector<1x256xi32> to vector<1x256xf32>
    %cst = arith.constant 5.000000e-01 : f32
    %5 = vector.broadcast %cst : f32 to vector<1x256xf32>
    %6 = arith.addf %4, %5 : vector<1x256xf32>
    %cst_0 = arith.constant 6.250000e-02 : f32
    %7 = vector.broadcast %cst_0 : f32 to vector<1x256xf32>
    %8 = arith.mulf %6, %7 : vector<1x256xf32>
    %9 = math.floor %8 : vector<1x256xf32>
    %cst_1 = arith.constant 1.600000e+01 : f32
    %10 = vector.broadcast %cst_1 : f32 to vector<1x256xf32>
    %11 = arith.mulf %9, %10 : vector<1x256xf32>
    %12 = arith.subf %4, %11 : vector<1x256xf32>
    %13 = arith.sitofp %0 : i32 to f32
    %14 = vector.broadcast %13 : f32 to vector<1x256xf32>
    %15 = arith.addf %9, %14 : vector<1x256xf32>
    %cst_2 = arith.constant 8.000000e+00 : f32
    %16 = vector.broadcast %cst_2 : f32 to vector<1x256xf32>
    %17 = arith.cmpf olt, %9, %16 : vector<1x256xf32>
    %18 = arith.extui %17 : vector<1x256xi1> to vector<1x256xi32>
    %19 = arith.sitofp %18 : vector<1x256xi32> to vector<1x256xf32>
    %cst_3 = arith.constant 1.400000e+01 : f32
    %20 = vector.broadcast %cst_3 : f32 to vector<1x256xf32>
    %21 = arith.cmpf ole, %12, %20 : vector<1x256xf32>
    %22 = arith.andi %17, %21 : vector<1x256xi1>
    %cst_4 = arith.constant 1.000000e+00 : f32
    %cst_5 = arith.constant 0.000000e+00 : f32
    %23 = vector.broadcast %cst_4 : f32 to vector<1x256xf32>
    %24 = vector.broadcast %cst_5 : f32 to vector<1x256xf32>
    %25 = arith.select %22, %23, %24 : vector<1x256xi1>, vector<1x256xf32>
    %cst_6 = arith.constant 1.400000e+01 : f32
    %26 = vector.broadcast %cst_6 : f32 to vector<1x256xf32>
    %27 = arith.cmpf ole, %15, %26 : vector<1x256xf32>
    %28 = arith.andi %17, %27 : vector<1x256xi1>
    %cst_7 = arith.constant 1.000000e+00 : f32
    %cst_8 = arith.constant 0.000000e+00 : f32
    %29 = vector.broadcast %cst_7 : f32 to vector<1x256xf32>
    %30 = vector.broadcast %cst_8 : f32 to vector<1x256xf32>
    %31 = arith.select %28, %29, %30 : vector<1x256xi1>, vector<1x256xf32>
    %cst_9 = arith.constant 1.300000e+01 : f32
    %32 = vector.broadcast %cst_9 : f32 to vector<1x256xf32>
    %33 = arith.cmpf ole, %12, %32 : vector<1x256xf32>
    %34 = arith.andi %17, %33 : vector<1x256xi1>
    %cst_10 = arith.constant 1.300000e+01 : f32
    %35 = vector.broadcast %cst_10 : f32 to vector<1x256xf32>
    %36 = arith.cmpf ole, %15, %35 : vector<1x256xf32>
    %37 = arith.andi %34, %36 : vector<1x256xi1>
    %c0 = arith.constant 0 : index
    %c0_11 = arith.constant 0 : index
    %38 = arith.index_cast %2 : i32 to index
    %39 = vector.load %arg3[%c0, %c0_11, %38] : memref<1x1x384xf32, #tpu.memory_space<vmem>>, vector<1x1x256xf32>
    %40 = vector.shape_cast %39 : vector<1x1x256xf32> to vector<1x256xf32>
    %c0_12 = arith.constant 0 : index
    %c0_13 = arith.constant 0 : index
    %41 = arith.index_cast %2 : i32 to index
    %42 = vector.load %arg4[%c0_12, %c0_13, %41] : memref<1x3x384xf32, #tpu.memory_space<vmem>>, vector<1x3x256xf32>
    %43 = vector.shape_cast %42 : vector<1x3x256xf32> to vector<3x256xf32>
    %44 = tpu.iota {dimensions = array<i32: 0>} : vector<16x256xi32>
    %45 = tpu.iota {dimensions = array<i32: 0>} : vector<16x256xi32>
    %cst_14 = arith.constant 0.000000e+00 : f32
    %46 = vector.broadcast %cst_14 : f32 to vector<1x256xf32>
    %c3_i32 = arith.constant 3 : i32
    %47 = arith.muli %arg0, %c3_i32 : i32
    %c0_i32 = arith.constant 0 : i32
    %48 = arith.addi %47, %c0_i32 : i32
    %c16_i32_15 = arith.constant 16 : i32
    %49 = arith.muli %48, %c16_i32_15 : i32
    %c0_i32_16 = arith.constant 0 : i32
    %50 = arith.addi %49, %c0_i32_16 : i32
    %c0_i32_17 = arith.constant 0 : i32
    %51 = arith.addi %50, %c0_i32_17 : i32
    %52 = arith.index_cast %51 : i32 to index
    %53 = memref.load %arg2[%52] : memref<96xf32, #tpu.memory_space<smem>>
    %54 = vector.broadcast %53 : f32 to vector<1x256xf32>
    %55 = arith.mulf %54, %12 : vector<1x256xf32>
    %c0_i32_18 = arith.constant 0 : i32
    %56 = arith.addi %49, %c0_i32_18 : i32
    %c1_i32 = arith.constant 1 : i32
    %57 = arith.addi %56, %c1_i32 : i32
    %58 = arith.index_cast %57 : i32 to index
    %59 = memref.load %arg2[%58] : memref<96xf32, #tpu.memory_space<smem>>
    %60 = vector.broadcast %59 : f32 to vector<1x256xf32>
    %61 = arith.mulf %60, %15 : vector<1x256xf32>
    %62 = arith.addf %55, %61 : vector<1x256xf32>
    %c0_i32_19 = arith.constant 0 : i32
    %63 = arith.addi %49, %c0_i32_19 : i32
    %c2_i32 = arith.constant 2 : i32
    %64 = arith.addi %63, %c2_i32 : i32
    %65 = arith.index_cast %64 : i32 to index
    %66 = memref.load %arg2[%65] : memref<96xf32, #tpu.memory_space<smem>>
    %67 = vector.broadcast %66 : f32 to vector<1x256xf32>
    %68 = arith.addf %62, %67 : vector<1x256xf32>
    %69 = arith.mulf %40, %68 : vector<1x256xf32>
    %c0_i32_20 = arith.constant 0 : i32
    %70 = arith.addi %49, %c0_i32_20 : i32
    %c3_i32_21 = arith.constant 3 : i32
    %71 = arith.addi %70, %c3_i32_21 : i32
    %72 = arith.index_cast %71 : i32 to index
    %73 = memref.load %arg2[%72] : memref<96xf32, #tpu.memory_space<smem>>
    %74 = vector.broadcast %73 : f32 to vector<1x256xf32>
    %75 = arith.addf %69, %74 : vector<1x256xf32>
    %c4_i32 = arith.constant 4 : i32
    %76 = arith.addi %49, %c4_i32 : i32
    %c0_i32_22 = arith.constant 0 : i32
    %77 = arith.addi %76, %c0_i32_22 : i32
    %78 = arith.index_cast %77 : i32 to index
    %79 = memref.load %arg2[%78] : memref<96xf32, #tpu.memory_space<smem>>
    %80 = vector.broadcast %79 : f32 to vector<1x256xf32>
    %81 = arith.mulf %80, %12 : vector<1x256xf32>
    %c4_i32_23 = arith.constant 4 : i32
    %82 = arith.addi %49, %c4_i32_23 : i32
    %c1_i32_24 = arith.constant 1 : i32
    %83 = arith.addi %82, %c1_i32_24 : i32
    %84 = arith.index_cast %83 : i32 to index
    %85 = memref.load %arg2[%84] : memref<96xf32, #tpu.memory_space<smem>>
    %86 = vector.broadcast %85 : f32 to vector<1x256xf32>
    %87 = arith.mulf %86, %15 : vector<1x256xf32>
    %88 = arith.addf %81, %87 : vector<1x256xf32>
    %c4_i32_25 = arith.constant 4 : i32
    %89 = arith.addi %49, %c4_i32_25 : i32
    %c2_i32_26 = arith.constant 2 : i32
    %90 = arith.addi %89, %c2_i32_26 : i32
    %91 = arith.index_cast %90 : i32 to index
    %92 = memref.load %arg2[%91] : memref<96xf32, #tpu.memory_space<smem>>
    %93 = vector.broadcast %92 : f32 to vector<1x256xf32>
    %94 = arith.addf %88, %93 : vector<1x256xf32>
    %95 = arith.mulf %40, %94 : vector<1x256xf32>
    %c4_i32_27 = arith.constant 4 : i32
    %96 = arith.addi %49, %c4_i32_27 : i32
    %c3_i32_28 = arith.constant 3 : i32
    %97 = arith.addi %96, %c3_i32_28 : i32
    %98 = arith.index_cast %97 : i32 to index
    %99 = memref.load %arg2[%98] : memref<96xf32, #tpu.memory_space<smem>>
    %100 = vector.broadcast %99 : f32 to vector<1x256xf32>
    %101 = arith.addf %95, %100 : vector<1x256xf32>
    %c8_i32_29 = arith.constant 8 : i32
    %102 = arith.addi %49, %c8_i32_29 : i32
    %c0_i32_30 = arith.constant 0 : i32
    %103 = arith.addi %102, %c0_i32_30 : i32
    %104 = arith.index_cast %103 : i32 to index
    %105 = memref.load %arg2[%104] : memref<96xf32, #tpu.memory_space<smem>>
    %106 = vector.broadcast %105 : f32 to vector<1x256xf32>
    %107 = arith.mulf %106, %12 : vector<1x256xf32>
    %c8_i32_31 = arith.constant 8 : i32
    %108 = arith.addi %49, %c8_i32_31 : i32
    %c1_i32_32 = arith.constant 1 : i32
    %109 = arith.addi %108, %c1_i32_32 : i32
    %110 = arith.index_cast %109 : i32 to index
    %111 = memref.load %arg2[%110] : memref<96xf32, #tpu.memory_space<smem>>
    %112 = vector.broadcast %111 : f32 to vector<1x256xf32>
    %113 = arith.mulf %112, %15 : vector<1x256xf32>
    %114 = arith.addf %107, %113 : vector<1x256xf32>
    %c8_i32_33 = arith.constant 8 : i32
    %115 = arith.addi %49, %c8_i32_33 : i32
    %c2_i32_34 = arith.constant 2 : i32
    %116 = arith.addi %115, %c2_i32_34 : i32
    %117 = arith.index_cast %116 : i32 to index
    %118 = memref.load %arg2[%117] : memref<96xf32, #tpu.memory_space<smem>>
    %119 = vector.broadcast %118 : f32 to vector<1x256xf32>
    %120 = arith.addf %114, %119 : vector<1x256xf32>
    %121 = arith.mulf %40, %120 : vector<1x256xf32>
    %c8_i32_35 = arith.constant 8 : i32
    %122 = arith.addi %49, %c8_i32_35 : i32
    %c3_i32_36 = arith.constant 3 : i32
    %123 = arith.addi %122, %c3_i32_36 : i32
    %124 = arith.index_cast %123 : i32 to index
    %125 = memref.load %arg2[%124] : memref<96xf32, #tpu.memory_space<smem>>
    %126 = vector.broadcast %125 : f32 to vector<1x256xf32>
    %127 = arith.addf %121, %126 : vector<1x256xf32>
    %cst_37 = arith.constant 1.000000e-10 : f32
    %128 = vector.broadcast %cst_37 : f32 to vector<1x256xf32>
    %129 = arith.addf %127, %128 : vector<1x256xf32>
    %130 = tpu.reciprocal %129 {approx = true} : vector<1x256xf32> -> vector<1x256xf32>
    %131 = arith.mulf %129, %130 : vector<1x256xf32>
    %cst_38 = arith.constant 2.000000e+00 : f32
    %132 = vector.broadcast %cst_38 : f32 to vector<1x256xf32>
    %133 = arith.subf %132, %131 : vector<1x256xf32>
    %134 = arith.mulf %130, %133 : vector<1x256xf32>
    %135 = arith.mulf %75, %134 : vector<1x256xf32>
    %136 = arith.mulf %101, %134 : vector<1x256xf32>
    %137 = math.floor %135 : vector<1x256xf32>
    %138 = math.floor %136 : vector<1x256xf32>
    %cst_39 = arith.constant 0.000000e+00 : f32
    %139 = vector.broadcast %cst_39 : f32 to vector<1x256xf32>
    %140 = arith.cmpf oge, %137, %139 : vector<1x256xf32>
    %cst_40 = arith.constant 1.000000e+00 : f32
    %141 = vector.broadcast %cst_40 : f32 to vector<1x256xf32>
    %142 = arith.addf %137, %141 : vector<1x256xf32>
    %cst_41 = arith.constant 1.500000e+01 : f32
    %143 = vector.broadcast %cst_41 : f32 to vector<1x256xf32>
    %144 = arith.cmpf ole, %142, %143 : vector<1x256xf32>
    %145 = arith.andi %140, %144 : vector<1x256xi1>
    %cst_42 = arith.constant 0.000000e+00 : f32
    %146 = vector.broadcast %cst_42 : f32 to vector<1x256xf32>
    %147 = arith.cmpf oge, %138, %146 : vector<1x256xf32>
    %148 = arith.andi %145, %147 : vector<1x256xi1>
    %cst_43 = arith.constant 1.000000e+00 : f32
    %149 = vector.broadcast %cst_43 : f32 to vector<1x256xf32>
    %150 = arith.addf %138, %149 : vector<1x256xf32>
    %cst_44 = arith.constant 1.500000e+01 : f32
    %151 = vector.broadcast %cst_44 : f32 to vector<1x256xf32>
    %152 = arith.cmpf ole, %150, %151 : vector<1x256xf32>
    %153 = arith.andi %148, %152 : vector<1x256xi1>
    %154 = arith.extui %153 : vector<1x256xi1> to vector<1x256xi32>
    %155 = arith.sitofp %154 : vector<1x256xi32> to vector<1x256xf32>
    %cst_45 = arith.constant 0.000000e+00 : f32
    %cst_46 = arith.constant 1.500000e+01 : f32
    %156 = vector.broadcast %cst_45 : f32 to vector<1x256xf32>
    %157 = arith.maximumf %156, %135 : vector<1x256xf32>
    %158 = vector.broadcast %cst_46 : f32 to vector<1x256xf32>
    %159 = arith.minimumf %158, %157 : vector<1x256xf32>
    %cst_47 = arith.constant 0.000000e+00 : f32
    %cst_48 = arith.constant 1.500000e+01 : f32
    %160 = vector.broadcast %cst_47 : f32 to vector<1x256xf32>
    %161 = arith.maximumf %160, %136 : vector<1x256xf32>
    %162 = vector.broadcast %cst_48 : f32 to vector<1x256xf32>
    %163 = arith.minimumf %162, %161 : vector<1x256xf32>
    %cst_49 = arith.constant 0.000000e+00 : f32
    %cst_50 = arith.constant 1.500000e+01 : f32
    %164 = vector.broadcast %cst_49 : f32 to vector<1x256xf32>
    %165 = arith.maximumf %164, %137 : vector<1x256xf32>
    %166 = vector.broadcast %cst_50 : f32 to vector<1x256xf32>
    %167 = arith.minimumf %166, %165 : vector<1x256xf32>
    %cst_51 = arith.constant 1.000000e+00 : f32
    %168 = vector.broadcast %cst_51 : f32 to vector<1x256xf32>
    %169 = arith.addf %137, %168 : vector<1x256xf32>
    %cst_52 = arith.constant 0.000000e+00 : f32
    %cst_53 = arith.constant 1.500000e+01 : f32
    %170 = vector.broadcast %cst_52 : f32 to vector<1x256xf32>
    %171 = arith.maximumf %170, %169 : vector<1x256xf32>
    %172 = vector.broadcast %cst_53 : f32 to vector<1x256xf32>
    %173 = arith.minimumf %172, %171 : vector<1x256xf32>
    %cst_54 = arith.constant 0.000000e+00 : f32
    %cst_55 = arith.constant 1.500000e+01 : f32
    %174 = vector.broadcast %cst_54 : f32 to vector<1x256xf32>
    %175 = arith.maximumf %174, %138 : vector<1x256xf32>
    %176 = vector.broadcast %cst_55 : f32 to vector<1x256xf32>
    %177 = arith.minimumf %176, %175 : vector<1x256xf32>
    %cst_56 = arith.constant 1.000000e+00 : f32
    %178 = vector.broadcast %cst_56 : f32 to vector<1x256xf32>
    %179 = arith.addf %138, %178 : vector<1x256xf32>
    %cst_57 = arith.constant 0.000000e+00 : f32
    %cst_58 = arith.constant 1.500000e+01 : f32
    %180 = vector.broadcast %cst_57 : f32 to vector<1x256xf32>
    %181 = arith.maximumf %180, %179 : vector<1x256xf32>
    %182 = vector.broadcast %cst_58 : f32 to vector<1x256xf32>
    %183 = arith.minimumf %182, %181 : vector<1x256xf32>
    %184 = arith.subf %173, %159 : vector<1x256xf32>
    %185 = arith.subf %159, %167 : vector<1x256xf32>
    %186 = arith.subf %183, %163 : vector<1x256xf32>
    %187 = arith.subf %163, %177 : vector<1x256xf32>
    %188 = arith.fptosi %167 : vector<1x256xf32> to vector<1x256xi32>
    %189 = arith.fptosi %173 : vector<1x256xf32> to vector<1x256xi32>
    %190 = arith.fptosi %177 : vector<1x256xf32> to vector<1x256xi32>
    %191 = arith.fptosi %183 : vector<1x256xf32> to vector<1x256xi32>
    %192 = vector.broadcast %188 : vector<1x256xi32> to vector<16x256xi32>
    %193 = arith.cmpi eq, %45, %192 : vector<16x256xi32>
    %cst_59 = arith.constant 0.000000e+00 : f32
    %194 = vector.shape_cast %184 : vector<1x256xf32> to vector<1x256xf32>
    %195 = vector.broadcast %194 : vector<1x256xf32> to vector<16x256xf32>
    %196 = vector.broadcast %cst_59 : f32 to vector<16x256xf32>
    %197 = arith.select %193, %195, %196 : vector<16x256xi1>, vector<16x256xf32>
    %198 = vector.broadcast %189 : vector<1x256xi32> to vector<16x256xi32>
    %199 = arith.cmpi eq, %45, %198 : vector<16x256xi32>
    %cst_60 = arith.constant 0.000000e+00 : f32
    %200 = vector.shape_cast %185 : vector<1x256xf32> to vector<1x256xf32>
    %201 = vector.broadcast %200 : vector<1x256xf32> to vector<16x256xf32>
    %202 = vector.broadcast %cst_60 : f32 to vector<16x256xf32>
    %203 = arith.select %199, %201, %202 : vector<16x256xi1>, vector<16x256xf32>
    %204 = arith.addf %197, %203 : vector<16x256xf32>
    %205 = arith.truncf %204 : vector<16x256xf32> to vector<16x256xbf16>
    %206 = vector.broadcast %190 : vector<1x256xi32> to vector<16x256xi32>
    %207 = arith.cmpi eq, %44, %206 : vector<16x256xi32>
    %cst_61 = arith.constant 0.000000e+00 : f32
    %208 = vector.shape_cast %186 : vector<1x256xf32> to vector<1x256xf32>
    %209 = vector.broadcast %208 : vector<1x256xf32> to vector<16x256xf32>
    %210 = vector.broadcast %cst_61 : f32 to vector<16x256xf32>
    %211 = arith.select %207, %209, %210 : vector<16x256xi1>, vector<16x256xf32>
    %212 = vector.broadcast %191 : vector<1x256xi32> to vector<16x256xi32>
    %213 = arith.cmpi eq, %44, %212 : vector<16x256xi32>
    %cst_62 = arith.constant 0.000000e+00 : f32
    %214 = vector.shape_cast %187 : vector<1x256xf32> to vector<1x256xf32>
    %215 = vector.broadcast %214 : vector<1x256xf32> to vector<16x256xf32>
    %216 = vector.broadcast %cst_62 : f32 to vector<16x256xf32>
    %217 = arith.select %213, %215, %216 : vector<16x256xi1>, vector<16x256xf32>
    %218 = arith.addf %211, %217 : vector<16x256xf32>
    %c255_i32 = arith.constant 255 : i32
    %219 = tpu.dynamic_rotate %155 by %c255_i32 dim 1 : vector<1x256xf32>, i32 -> vector<1x256xf32>
    %220 = arith.addf %155, %219 : vector<1x256xf32>
    %c254_i32 = arith.constant 254 : i32
    %221 = tpu.dynamic_rotate %155 by %c254_i32 dim 1 : vector<1x256xf32>, i32 -> vector<1x256xf32>
    %222 = arith.addf %220, %221 : vector<1x256xf32>
    %c240_i32 = arith.constant 240 : i32
    %223 = tpu.dynamic_rotate %222 by %c240_i32 dim 1 : vector<1x256xf32>, i32 -> vector<1x256xf32>
    %224 = arith.addf %222, %223 : vector<1x256xf32>
    %c224_i32 = arith.constant 224 : i32
    %225 = tpu.dynamic_rotate %222 by %c224_i32 dim 1 : vector<1x256xf32>, i32 -> vector<1x256xf32>
    %226 = arith.addf %224, %225 : vector<1x256xf32>
    %cst_63 = arith.constant 0.111111112 : f32
    %227 = vector.broadcast %cst_63 : f32 to vector<1x256xf32>
    %228 = arith.mulf %226, %227 : vector<1x256xf32>
    %c0_64 = arith.constant 0 : index
    %c0_65 = arith.constant 0 : index
    %c0_66 = arith.constant 0 : index
    %c0_67 = arith.constant 0 : index
    %229 = vector.load %arg5[%c0_64, %c0_65, %c0_66, %c0_67] : memref<1x3x48x16xbf16, #tpu.memory_space<vmem>>, vector<1x1x16x16xbf16>
    %230 = vector.shape_cast %229 : vector<1x1x16x16xbf16> to vector<16x16xbf16>
    %cst_68 = arith.constant dense<0.000000e+00> : vector<16x256xf32>
    %231 = tpu.matmul %230, %205, %cst_68 {dimension_numbers = #tpu.dot_dimension_numbers<[1], [0], [0], [1], [0, 0, 1, 1], [], []>} : vector<16x16xbf16>, vector<16x256xbf16>, vector<16x256xf32> -> vector<16x256xf32>
    %232 = arith.mulf %231, %218 : vector<16x256xf32>
    %cst_69 = arith.constant dense<0.000000e+00> : vector<256xf32>
    %233 = vector.multi_reduction <add>, %232, %cst_69 [0] : vector<16x256xf32> to vector<256xf32>
    %234 = vector.shape_cast %233 : vector<256xf32> to vector<1x256xf32>
    %235 = vector.extract_strided_slice %43 {offsets = [0, 0], sizes = [1, 256], strides = [1, 1]} : vector<3x256xf32> to vector<1x256xf32>
    %236 = arith.mulf %235, %155 : vector<1x256xf32>
    %237 = arith.mulf %234, %155 : vector<1x256xf32>
    %238 = arith.subf %237, %236 : vector<1x256xf32>
    %239 = math.absf %238 : vector<1x256xf32>
    %cst_70 = arith.constant 1.000000e+00 : f32
    %240 = vector.broadcast %cst_70 : f32 to vector<1x256xf32>
    %241 = arith.cmpf olt, %239, %240 : vector<1x256xf32>
    %cst_71 = arith.constant 5.000000e-01 : f32
    %242 = vector.broadcast %cst_71 : f32 to vector<1x256xf32>
    %243 = arith.mulf %242, %239 : vector<1x256xf32>
    %244 = arith.mulf %243, %239 : vector<1x256xf32>
    %cst_72 = arith.constant 5.000000e-01 : f32
    %245 = vector.broadcast %cst_72 : f32 to vector<1x256xf32>
    %246 = arith.subf %239, %245 : vector<1x256xf32>
    %247 = arith.select %241, %244, %246 : vector<1x256xi1>, vector<1x256xf32>
    %248 = arith.mulf %247, %19 : vector<1x256xf32>
    %249 = vector.shape_cast %248 : vector<1x256xf32> to vector<1x1x256xf32>
    %cst_73 = arith.constant dense<0.000000e+00> : vector<1xf32>
    %250 = vector.multi_reduction <add>, %249, %cst_73 [1, 2] : vector<1x1x256xf32> to vector<1xf32>
    %251 = vector.shape_cast %250 : vector<1xf32> to vector<1x1x1xf32>
    %252 = vector.extract %251[0, 0, 0] : f32 from vector<1x1x1xf32>
    %cst_74 = arith.constant 0.000000e+00 : f32
    %253 = arith.addf %cst_74, %252 : f32
    %c255_i32_75 = arith.constant 255 : i32
    %254 = tpu.dynamic_rotate %236 by %c255_i32_75 dim 1 : vector<1x256xf32>, i32 -> vector<1x256xf32>
    %255 = arith.subf %254, %236 : vector<1x256xf32>
    %c255_i32_76 = arith.constant 255 : i32
    %256 = tpu.dynamic_rotate %237 by %c255_i32_76 dim 1 : vector<1x256xf32>, i32 -> vector<1x256xf32>
    %257 = arith.subf %256, %237 : vector<1x256xf32>
    %c240_i32_77 = arith.constant 240 : i32
    %258 = tpu.dynamic_rotate %236 by %c240_i32_77 dim 1 : vector<1x256xf32>, i32 -> vector<1x256xf32>
    %259 = arith.subf %258, %236 : vector<1x256xf32>
    %c240_i32_78 = arith.constant 240 : i32
    %260 = tpu.dynamic_rotate %237 by %c240_i32_78 dim 1 : vector<1x256xf32>, i32 -> vector<1x256xf32>
    %261 = arith.subf %260, %237 : vector<1x256xf32>
    %262 = arith.subf %257, %255 : vector<1x256xf32>
    %263 = math.absf %262 : vector<1x256xf32>
    %cst_79 = arith.constant 1.000000e+00 : f32
    %264 = vector.broadcast %cst_79 : f32 to vector<1x256xf32>
    %265 = arith.cmpf olt, %263, %264 : vector<1x256xf32>
    %cst_80 = arith.constant 5.000000e-01 : f32
    %266 = vector.broadcast %cst_80 : f32 to vector<1x256xf32>
    %267 = arith.mulf %266, %263 : vector<1x256xf32>
    %268 = arith.mulf %267, %263 : vector<1x256xf32>
    %cst_81 = arith.constant 5.000000e-01 : f32
    %269 = vector.broadcast %cst_81 : f32 to vector<1x256xf32>
    %270 = arith.subf %263, %269 : vector<1x256xf32>
    %271 = arith.select %265, %268, %270 : vector<1x256xi1>, vector<1x256xf32>
    %272 = arith.mulf %271, %25 : vector<1x256xf32>
    %273 = vector.shape_cast %272 : vector<1x256xf32> to vector<1x1x256xf32>
    %cst_82 = arith.constant dense<0.000000e+00> : vector<1xf32>
    %274 = vector.multi_reduction <add>, %273, %cst_82 [1, 2] : vector<1x1x256xf32> to vector<1xf32>
    %275 = vector.shape_cast %274 : vector<1xf32> to vector<1x1x1xf32>
    %276 = vector.extract %275[0, 0, 0] : f32 from vector<1x1x1xf32>
    %cst_83 = arith.constant 0.000000e+00 : f32
    %277 = arith.addf %cst_83, %276 : f32
    %278 = arith.subf %261, %259 : vector<1x256xf32>
    %279 = math.absf %278 : vector<1x256xf32>
    %cst_84 = arith.constant 1.000000e+00 : f32
    %280 = vector.broadcast %cst_84 : f32 to vector<1x256xf32>
    %281 = arith.cmpf olt, %279, %280 : vector<1x256xf32>
    %cst_85 = arith.constant 5.000000e-01 : f32
    %282 = vector.broadcast %cst_85 : f32 to vector<1x256xf32>
    %283 = arith.mulf %282, %279 : vector<1x256xf32>
    %284 = arith.mulf %283, %279 : vector<1x256xf32>
    %cst_86 = arith.constant 5.000000e-01 : f32
    %285 = vector.broadcast %cst_86 : f32 to vector<1x256xf32>
    %286 = arith.subf %279, %285 : vector<1x256xf32>
    %287 = arith.select %281, %284, %286 : vector<1x256xi1>, vector<1x256xf32>
    %288 = arith.mulf %287, %31 : vector<1x256xf32>
    %289 = vector.shape_cast %288 : vector<1x256xf32> to vector<1x1x256xf32>
    %cst_87 = arith.constant dense<0.000000e+00> : vector<1xf32>
    %290 = vector.multi_reduction <add>, %289, %cst_87 [1, 2] : vector<1x1x256xf32> to vector<1xf32>
    %291 = vector.shape_cast %290 : vector<1xf32> to vector<1x1x1xf32>
    %292 = vector.extract %291[0, 0, 0] : f32 from vector<1x1x1xf32>
    %cst_88 = arith.constant 0.000000e+00 : f32
    %293 = arith.addf %cst_88, %292 : f32
    %c255_i32_89 = arith.constant 255 : i32
    %294 = tpu.dynamic_rotate %235 by %c255_i32_89 dim 1 : vector<1x256xf32>, i32 -> vector<1x256xf32>
    %295 = arith.addf %235, %294 : vector<1x256xf32>
    %c254_i32_90 = arith.constant 254 : i32
    %296 = tpu.dynamic_rotate %235 by %c254_i32_90 dim 1 : vector<1x256xf32>, i32 -> vector<1x256xf32>
    %297 = arith.addf %295, %296 : vector<1x256xf32>
    %c240_i32_91 = arith.constant 240 : i32
    %298 = tpu.dynamic_rotate %297 by %c240_i32_91 dim 1 : vector<1x256xf32>, i32 -> vector<1x256xf32>
    %299 = arith.addf %297, %298 : vector<1x256xf32>
    %c224_i32_92 = arith.constant 224 : i32
    %300 = tpu.dynamic_rotate %297 by %c224_i32_92 dim 1 : vector<1x256xf32>, i32 -> vector<1x256xf32>
    %301 = arith.addf %299, %300 : vector<1x256xf32>
    %cst_93 = arith.constant 0.111111112 : f32
    %302 = vector.broadcast %cst_93 : f32 to vector<1x256xf32>
    %303 = arith.mulf %301, %302 : vector<1x256xf32>
    %c255_i32_94 = arith.constant 255 : i32
    %304 = tpu.dynamic_rotate %234 by %c255_i32_94 dim 1 : vector<1x256xf32>, i32 -> vector<1x256xf32>
    %305 = arith.addf %234, %304 : vector<1x256xf32>
    %c254_i32_95 = arith.constant 254 : i32
    %306 = tpu.dynamic_rotate %234 by %c254_i32_95 dim 1 : vector<1x256xf32>, i32 -> vector<1x256xf32>
    %307 = arith.addf %305, %306 : vector<1x256xf32>
    %c240_i32_96 = arith.constant 240 : i32
    %308 = tpu.dynamic_rotate %307 by %c240_i32_96 dim 1 : vector<1x256xf32>, i32 -> vector<1x256xf32>
    %309 = arith.addf %307, %308 : vector<1x256xf32>
    %c224_i32_97 = arith.constant 224 : i32
    %310 = tpu.dynamic_rotate %307 by %c224_i32_97 dim 1 : vector<1x256xf32>, i32 -> vector<1x256xf32>
    %311 = arith.addf %309, %310 : vector<1x256xf32>
    %cst_98 = arith.constant 0.111111112 : f32
    %312 = vector.broadcast %cst_98 : f32 to vector<1x256xf32>
    %313 = arith.mulf %311, %312 : vector<1x256xf32>
    %314 = arith.mulf %235, %235 : vector<1x256xf32>
    %c255_i32_99 = arith.constant 255 : i32
    %315 = tpu.dynamic_rotate %314 by %c255_i32_99 dim 1 : vector<1x256xf32>, i32 -> vector<1x256xf32>
    %316 = arith.addf %314, %315 : vector<1x256xf32>
    %c254_i32_100 = arith.constant 254 : i32
    %317 = tpu.dynamic_rotate %314 by %c254_i32_100 dim 1 : vector<1x256xf32>, i32 -> vector<1x256xf32>
    %318 = arith.addf %316, %317 : vector<1x256xf32>
    %c240_i32_101 = arith.constant 240 : i32
    %319 = tpu.dynamic_rotate %318 by %c240_i32_101 dim 1 : vector<1x256xf32>, i32 -> vector<1x256xf32>
    %320 = arith.addf %318, %319 : vector<1x256xf32>
    %c224_i32_102 = arith.constant 224 : i32
    %321 = tpu.dynamic_rotate %318 by %c224_i32_102 dim 1 : vector<1x256xf32>, i32 -> vector<1x256xf32>
    %322 = arith.addf %320, %321 : vector<1x256xf32>
    %cst_103 = arith.constant 0.111111112 : f32
    %323 = vector.broadcast %cst_103 : f32 to vector<1x256xf32>
    %324 = arith.mulf %322, %323 : vector<1x256xf32>
    %325 = arith.mulf %303, %303 : vector<1x256xf32>
    %326 = arith.subf %324, %325 : vector<1x256xf32>
    %327 = arith.mulf %234, %234 : vector<1x256xf32>
    %c255_i32_104 = arith.constant 255 : i32
    %328 = tpu.dynamic_rotate %327 by %c255_i32_104 dim 1 : vector<1x256xf32>, i32 -> vector<1x256xf32>
    %329 = arith.addf %327, %328 : vector<1x256xf32>
    %c254_i32_105 = arith.constant 254 : i32
    %330 = tpu.dynamic_rotate %327 by %c254_i32_105 dim 1 : vector<1x256xf32>, i32 -> vector<1x256xf32>
    %331 = arith.addf %329, %330 : vector<1x256xf32>
    %c240_i32_106 = arith.constant 240 : i32
    %332 = tpu.dynamic_rotate %331 by %c240_i32_106 dim 1 : vector<1x256xf32>, i32 -> vector<1x256xf32>
    %333 = arith.addf %331, %332 : vector<1x256xf32>
    %c224_i32_107 = arith.constant 224 : i32
    %334 = tpu.dynamic_rotate %331 by %c224_i32_107 dim 1 : vector<1x256xf32>, i32 -> vector<1x256xf32>
    %335 = arith.addf %333, %334 : vector<1x256xf32>
    %cst_108 = arith.constant 0.111111112 : f32
    %336 = vector.broadcast %cst_108 : f32 to vector<1x256xf32>
    %337 = arith.mulf %335, %336 : vector<1x256xf32>
    %338 = arith.mulf %313, %313 : vector<1x256xf32>
    %339 = arith.subf %337, %338 : vector<1x256xf32>
    %340 = arith.mulf %235, %234 : vector<1x256xf32>
    %c255_i32_109 = arith.constant 255 : i32
    %341 = tpu.dynamic_rotate %340 by %c255_i32_109 dim 1 : vector<1x256xf32>, i32 -> vector<1x256xf32>
    %342 = arith.addf %340, %341 : vector<1x256xf32>
    %c254_i32_110 = arith.constant 254 : i32
    %343 = tpu.dynamic_rotate %340 by %c254_i32_110 dim 1 : vector<1x256xf32>, i32 -> vector<1x256xf32>
    %344 = arith.addf %342, %343 : vector<1x256xf32>
    %c240_i32_111 = arith.constant 240 : i32
    %345 = tpu.dynamic_rotate %344 by %c240_i32_111 dim 1 : vector<1x256xf32>, i32 -> vector<1x256xf32>
    %346 = arith.addf %344, %345 : vector<1x256xf32>
    %c224_i32_112 = arith.constant 224 : i32
    %347 = tpu.dynamic_rotate %344 by %c224_i32_112 dim 1 : vector<1x256xf32>, i32 -> vector<1x256xf32>
    %348 = arith.addf %346, %347 : vector<1x256xf32>
    %cst_113 = arith.constant 0.111111112 : f32
    %349 = vector.broadcast %cst_113 : f32 to vector<1x256xf32>
    %350 = arith.mulf %348, %349 : vector<1x256xf32>
    %351 = arith.mulf %303, %313 : vector<1x256xf32>
    %352 = arith.subf %350, %351 : vector<1x256xf32>
    %cst_114 = arith.constant 2.000000e+00 : f32
    %353 = vector.broadcast %cst_114 : f32 to vector<1x256xf32>
    %354 = arith.mulf %353, %303 : vector<1x256xf32>
    %355 = arith.mulf %354, %313 : vector<1x256xf32>
    %cst_115 = arith.constant 9.99999974E-5 : f32
    %356 = vector.broadcast %cst_115 : f32 to vector<1x256xf32>
    %357 = arith.addf %355, %356 : vector<1x256xf32>
    %cst_116 = arith.constant 2.000000e+00 : f32
    %358 = vector.broadcast %cst_116 : f32 to vector<1x256xf32>
    %359 = arith.mulf %358, %352 : vector<1x256xf32>
    %cst_117 = arith.constant 8.99999984E-4 : f32
    %360 = vector.broadcast %cst_117 : f32 to vector<1x256xf32>
    %361 = arith.addf %359, %360 : vector<1x256xf32>
    %362 = arith.mulf %357, %361 : vector<1x256xf32>
    %363 = arith.mulf %303, %303 : vector<1x256xf32>
    %364 = arith.mulf %313, %313 : vector<1x256xf32>
    %365 = arith.addf %363, %364 : vector<1x256xf32>
    %cst_118 = arith.constant 9.99999974E-5 : f32
    %366 = vector.broadcast %cst_118 : f32 to vector<1x256xf32>
    %367 = arith.addf %365, %366 : vector<1x256xf32>
    %368 = arith.addf %326, %339 : vector<1x256xf32>
    %cst_119 = arith.constant 8.99999984E-4 : f32
    %369 = vector.broadcast %cst_119 : f32 to vector<1x256xf32>
    %370 = arith.addf %368, %369 : vector<1x256xf32>
    %371 = arith.mulf %367, %370 : vector<1x256xf32>
    %372 = tpu.reciprocal %371 {approx = true} : vector<1x256xf32> -> vector<1x256xf32>
    %373 = arith.mulf %371, %372 : vector<1x256xf32>
    %cst_120 = arith.constant 2.000000e+00 : f32
    %374 = vector.broadcast %cst_120 : f32 to vector<1x256xf32>
    %375 = arith.subf %374, %373 : vector<1x256xf32>
    %376 = arith.mulf %372, %375 : vector<1x256xf32>
    %377 = arith.mulf %362, %376 : vector<1x256xf32>
    %cst_121 = arith.constant 1.000000e+00 : f32
    %378 = vector.broadcast %cst_121 : f32 to vector<1x256xf32>
    %379 = arith.subf %378, %377 : vector<1x256xf32>
    %cst_122 = arith.constant 5.000000e-01 : f32
    %380 = vector.broadcast %cst_122 : f32 to vector<1x256xf32>
    %381 = arith.mulf %379, %380 : vector<1x256xf32>
    %cst_123 = arith.constant 0.000000e+00 : f32
    %cst_124 = arith.constant 1.000000e+00 : f32
    %382 = vector.broadcast %cst_123 : f32 to vector<1x256xf32>
    %383 = arith.maximumf %382, %381 : vector<1x256xf32>
    %384 = vector.broadcast %cst_124 : f32 to vector<1x256xf32>
    %385 = arith.minimumf %384, %383 : vector<1x256xf32>
    %386 = arith.mulf %228, %385 : vector<1x256xf32>
    %cst_125 = arith.constant 0.000000e+00 : f32
    %387 = vector.broadcast %cst_125 : f32 to vector<1x256xf32>
    %388 = arith.select %37, %386, %387 : vector<1x256xi1>, vector<1x256xf32>
    %389 = vector.shape_cast %388 : vector<1x256xf32> to vector<1x1x256xf32>
    %cst_126 = arith.constant dense<0.000000e+00> : vector<1xf32>
    %390 = vector.multi_reduction <add>, %389, %cst_126 [1, 2] : vector<1x1x256xf32> to vector<1xf32>
    %391 = vector.shape_cast %390 : vector<1xf32> to vector<1x1x1xf32>
    %392 = vector.extract %391[0, 0, 0] : f32 from vector<1x1x1xf32>
    %cst_127 = arith.constant 0.000000e+00 : f32
    %393 = arith.addf %cst_127, %392 : f32
    %c0_128 = arith.constant 0 : index
    %c0_129 = arith.constant 0 : index
    %c16 = arith.constant 16 : index
    %c0_130 = arith.constant 0 : index
    %394 = vector.load %arg5[%c0_128, %c0_129, %c16, %c0_130] : memref<1x3x48x16xbf16, #tpu.memory_space<vmem>>, vector<1x1x16x16xbf16>
    %395 = vector.shape_cast %394 : vector<1x1x16x16xbf16> to vector<16x16xbf16>
    %cst_131 = arith.constant dense<0.000000e+00> : vector<16x256xf32>
    %396 = tpu.matmul %395, %205, %cst_131 {dimension_numbers = #tpu.dot_dimension_numbers<[1], [0], [0], [1], [0, 0, 1, 1], [], []>} : vector<16x16xbf16>, vector<16x256xbf16>, vector<16x256xf32> -> vector<16x256xf32>
    %397 = arith.mulf %396, %218 : vector<16x256xf32>
    %cst_132 = arith.constant dense<0.000000e+00> : vector<256xf32>
    %398 = vector.multi_reduction <add>, %397, %cst_132 [0] : vector<16x256xf32> to vector<256xf32>
    %399 = vector.shape_cast %398 : vector<256xf32> to vector<1x256xf32>
    %400 = vector.extract_strided_slice %43 {offsets = [1, 0], sizes = [1, 256], strides = [1, 1]} : vector<3x256xf32> to vector<1x256xf32>
    %401 = arith.mulf %400, %155 : vector<1x256xf32>
    %402 = arith.mulf %399, %155 : vector<1x256xf32>
    %403 = arith.subf %402, %401 : vector<1x256xf32>
    %404 = math.absf %403 : vector<1x256xf32>
    %cst_133 = arith.constant 1.000000e+00 : f32
    %405 = vector.broadcast %cst_133 : f32 to vector<1x256xf32>
    %406 = arith.cmpf olt, %404, %405 : vector<1x256xf32>
    %cst_134 = arith.constant 5.000000e-01 : f32
    %407 = vector.broadcast %cst_134 : f32 to vector<1x256xf32>
    %408 = arith.mulf %407, %404 : vector<1x256xf32>
    %409 = arith.mulf %408, %404 : vector<1x256xf32>
    %cst_135 = arith.constant 5.000000e-01 : f32
    %410 = vector.broadcast %cst_135 : f32 to vector<1x256xf32>
    %411 = arith.subf %404, %410 : vector<1x256xf32>
    %412 = arith.select %406, %409, %411 : vector<1x256xi1>, vector<1x256xf32>
    %413 = arith.mulf %412, %19 : vector<1x256xf32>
    %414 = vector.shape_cast %413 : vector<1x256xf32> to vector<1x1x256xf32>
    %cst_136 = arith.constant dense<0.000000e+00> : vector<1xf32>
    %415 = vector.multi_reduction <add>, %414, %cst_136 [1, 2] : vector<1x1x256xf32> to vector<1xf32>
    %416 = vector.shape_cast %415 : vector<1xf32> to vector<1x1x1xf32>
    %417 = vector.extract %416[0, 0, 0] : f32 from vector<1x1x1xf32>
    %418 = arith.addf %253, %417 : f32
    %c255_i32_137 = arith.constant 255 : i32
    %419 = tpu.dynamic_rotate %401 by %c255_i32_137 dim 1 : vector<1x256xf32>, i32 -> vector<1x256xf32>
    %420 = arith.subf %419, %401 : vector<1x256xf32>
    %c255_i32_138 = arith.constant 255 : i32
    %421 = tpu.dynamic_rotate %402 by %c255_i32_138 dim 1 : vector<1x256xf32>, i32 -> vector<1x256xf32>
    %422 = arith.subf %421, %402 : vector<1x256xf32>
    %c240_i32_139 = arith.constant 240 : i32
    %423 = tpu.dynamic_rotate %401 by %c240_i32_139 dim 1 : vector<1x256xf32>, i32 -> vector<1x256xf32>
    %424 = arith.subf %423, %401 : vector<1x256xf32>
    %c240_i32_140 = arith.constant 240 : i32
    %425 = tpu.dynamic_rotate %402 by %c240_i32_140 dim 1 : vector<1x256xf32>, i32 -> vector<1x256xf32>
    %426 = arith.subf %425, %402 : vector<1x256xf32>
    %427 = arith.subf %422, %420 : vector<1x256xf32>
    %428 = math.absf %427 : vector<1x256xf32>
    %cst_141 = arith.constant 1.000000e+00 : f32
    %429 = vector.broadcast %cst_141 : f32 to vector<1x256xf32>
    %430 = arith.cmpf olt, %428, %429 : vector<1x256xf32>
    %cst_142 = arith.constant 5.000000e-01 : f32
    %431 = vector.broadcast %cst_142 : f32 to vector<1x256xf32>
    %432 = arith.mulf %431, %428 : vector<1x256xf32>
    %433 = arith.mulf %432, %428 : vector<1x256xf32>
    %cst_143 = arith.constant 5.000000e-01 : f32
    %434 = vector.broadcast %cst_143 : f32 to vector<1x256xf32>
    %435 = arith.subf %428, %434 : vector<1x256xf32>
    %436 = arith.select %430, %433, %435 : vector<1x256xi1>, vector<1x256xf32>
    %437 = arith.mulf %436, %25 : vector<1x256xf32>
    %438 = vector.shape_cast %437 : vector<1x256xf32> to vector<1x1x256xf32>
    %cst_144 = arith.constant dense<0.000000e+00> : vector<1xf32>
    %439 = vector.multi_reduction <add>, %438, %cst_144 [1, 2] : vector<1x1x256xf32> to vector<1xf32>
    %440 = vector.shape_cast %439 : vector<1xf32> to vector<1x1x1xf32>
    %441 = vector.extract %440[0, 0, 0] : f32 from vector<1x1x1xf32>
    %442 = arith.addf %277, %441 : f32
    %443 = arith.subf %426, %424 : vector<1x256xf32>
    %444 = math.absf %443 : vector<1x256xf32>
    %cst_145 = arith.constant 1.000000e+00 : f32
    %445 = vector.broadcast %cst_145 : f32 to vector<1x256xf32>
    %446 = arith.cmpf olt, %444, %445 : vector<1x256xf32>
    %cst_146 = arith.constant 5.000000e-01 : f32
    %447 = vector.broadcast %cst_146 : f32 to vector<1x256xf32>
    %448 = arith.mulf %447, %444 : vector<1x256xf32>
    %449 = arith.mulf %448, %444 : vector<1x256xf32>
    %cst_147 = arith.constant 5.000000e-01 : f32
    %450 = vector.broadcast %cst_147 : f32 to vector<1x256xf32>
    %451 = arith.subf %444, %450 : vector<1x256xf32>
    %452 = arith.select %446, %449, %451 : vector<1x256xi1>, vector<1x256xf32>
    %453 = arith.mulf %452, %31 : vector<1x256xf32>
    %454 = vector.shape_cast %453 : vector<1x256xf32> to vector<1x1x256xf32>
    %cst_148 = arith.constant dense<0.000000e+00> : vector<1xf32>
    %455 = vector.multi_reduction <add>, %454, %cst_148 [1, 2] : vector<1x1x256xf32> to vector<1xf32>
    %456 = vector.shape_cast %455 : vector<1xf32> to vector<1x1x1xf32>
    %457 = vector.extract %456[0, 0, 0] : f32 from vector<1x1x1xf32>
    %458 = arith.addf %293, %457 : f32
    %c255_i32_149 = arith.constant 255 : i32
    %459 = tpu.dynamic_rotate %400 by %c255_i32_149 dim 1 : vector<1x256xf32>, i32 -> vector<1x256xf32>
    %460 = arith.addf %400, %459 : vector<1x256xf32>
    %c254_i32_150 = arith.constant 254 : i32
    %461 = tpu.dynamic_rotate %400 by %c254_i32_150 dim 1 : vector<1x256xf32>, i32 -> vector<1x256xf32>
    %462 = arith.addf %460, %461 : vector<1x256xf32>
    %c240_i32_151 = arith.constant 240 : i32
    %463 = tpu.dynamic_rotate %462 by %c240_i32_151 dim 1 : vector<1x256xf32>, i32 -> vector<1x256xf32>
    %464 = arith.addf %462, %463 : vector<1x256xf32>
    %c224_i32_152 = arith.constant 224 : i32
    %465 = tpu.dynamic_rotate %462 by %c224_i32_152 dim 1 : vector<1x256xf32>, i32 -> vector<1x256xf32>
    %466 = arith.addf %464, %465 : vector<1x256xf32>
    %cst_153 = arith.constant 0.111111112 : f32
    %467 = vector.broadcast %cst_153 : f32 to vector<1x256xf32>
    %468 = arith.mulf %466, %467 : vector<1x256xf32>
    %c255_i32_154 = arith.constant 255 : i32
    %469 = tpu.dynamic_rotate %399 by %c255_i32_154 dim 1 : vector<1x256xf32>, i32 -> vector<1x256xf32>
    %470 = arith.addf %399, %469 : vector<1x256xf32>
    %c254_i32_155 = arith.constant 254 : i32
    %471 = tpu.dynamic_rotate %399 by %c254_i32_155 dim 1 : vector<1x256xf32>, i32 -> vector<1x256xf32>
    %472 = arith.addf %470, %471 : vector<1x256xf32>
    %c240_i32_156 = arith.constant 240 : i32
    %473 = tpu.dynamic_rotate %472 by %c240_i32_156 dim 1 : vector<1x256xf32>, i32 -> vector<1x256xf32>
    %474 = arith.addf %472, %473 : vector<1x256xf32>
    %c224_i32_157 = arith.constant 224 : i32
    %475 = tpu.dynamic_rotate %472 by %c224_i32_157 dim 1 : vector<1x256xf32>, i32 -> vector<1x256xf32>
    %476 = arith.addf %474, %475 : vector<1x256xf32>
    %cst_158 = arith.constant 0.111111112 : f32
    %477 = vector.broadcast %cst_158 : f32 to vector<1x256xf32>
    %478 = arith.mulf %476, %477 : vector<1x256xf32>
    %479 = arith.mulf %400, %400 : vector<1x256xf32>
    %c255_i32_159 = arith.constant 255 : i32
    %480 = tpu.dynamic_rotate %479 by %c255_i32_159 dim 1 : vector<1x256xf32>, i32 -> vector<1x256xf32>
    %481 = arith.addf %479, %480 : vector<1x256xf32>
    %c254_i32_160 = arith.constant 254 : i32
    %482 = tpu.dynamic_rotate %479 by %c254_i32_160 dim 1 : vector<1x256xf32>, i32 -> vector<1x256xf32>
    %483 = arith.addf %481, %482 : vector<1x256xf32>
    %c240_i32_161 = arith.constant 240 : i32
    %484 = tpu.dynamic_rotate %483 by %c240_i32_161 dim 1 : vector<1x256xf32>, i32 -> vector<1x256xf32>
    %485 = arith.addf %483, %484 : vector<1x256xf32>
    %c224_i32_162 = arith.constant 224 : i32
    %486 = tpu.dynamic_rotate %483 by %c224_i32_162 dim 1 : vector<1x256xf32>, i32 -> vector<1x256xf32>
    %487 = arith.addf %485, %486 : vector<1x256xf32>
    %cst_163 = arith.constant 0.111111112 : f32
    %488 = vector.broadcast %cst_163 : f32 to vector<1x256xf32>
    %489 = arith.mulf %487, %488 : vector<1x256xf32>
    %490 = arith.mulf %468, %468 : vector<1x256xf32>
    %491 = arith.subf %489, %490 : vector<1x256xf32>
    %492 = arith.mulf %399, %399 : vector<1x256xf32>
    %c255_i32_164 = arith.constant 255 : i32
    %493 = tpu.dynamic_rotate %492 by %c255_i32_164 dim 1 : vector<1x256xf32>, i32 -> vector<1x256xf32>
    %494 = arith.addf %492, %493 : vector<1x256xf32>
    %c254_i32_165 = arith.constant 254 : i32
    %495 = tpu.dynamic_rotate %492 by %c254_i32_165 dim 1 : vector<1x256xf32>, i32 -> vector<1x256xf32>
    %496 = arith.addf %494, %495 : vector<1x256xf32>
    %c240_i32_166 = arith.constant 240 : i32
    %497 = tpu.dynamic_rotate %496 by %c240_i32_166 dim 1 : vector<1x256xf32>, i32 -> vector<1x256xf32>
    %498 = arith.addf %496, %497 : vector<1x256xf32>
    %c224_i32_167 = arith.constant 224 : i32
    %499 = tpu.dynamic_rotate %496 by %c224_i32_167 dim 1 : vector<1x256xf32>, i32 -> vector<1x256xf32>
    %500 = arith.addf %498, %499 : vector<1x256xf32>
    %cst_168 = arith.constant 0.111111112 : f32
    %501 = vector.broadcast %cst_168 : f32 to vector<1x256xf32>
    %502 = arith.mulf %500, %501 : vector<1x256xf32>
    %503 = arith.mulf %478, %478 : vector<1x256xf32>
    %504 = arith.subf %502, %503 : vector<1x256xf32>
    %505 = arith.mulf %400, %399 : vector<1x256xf32>
    %c255_i32_169 = arith.constant 255 : i32
    %506 = tpu.dynamic_rotate %505 by %c255_i32_169 dim 1 : vector<1x256xf32>, i32 -> vector<1x256xf32>
    %507 = arith.addf %505, %506 : vector<1x256xf32>
    %c254_i32_170 = arith.constant 254 : i32
    %508 = tpu.dynamic_rotate %505 by %c254_i32_170 dim 1 : vector<1x256xf32>, i32 -> vector<1x256xf32>
    %509 = arith.addf %507, %508 : vector<1x256xf32>
    %c240_i32_171 = arith.constant 240 : i32
    %510 = tpu.dynamic_rotate %509 by %c240_i32_171 dim 1 : vector<1x256xf32>, i32 -> vector<1x256xf32>
    %511 = arith.addf %509, %510 : vector<1x256xf32>
    %c224_i32_172 = arith.constant 224 : i32
    %512 = tpu.dynamic_rotate %509 by %c224_i32_172 dim 1 : vector<1x256xf32>, i32 -> vector<1x256xf32>
    %513 = arith.addf %511, %512 : vector<1x256xf32>
    %cst_173 = arith.constant 0.111111112 : f32
    %514 = vector.broadcast %cst_173 : f32 to vector<1x256xf32>
    %515 = arith.mulf %513, %514 : vector<1x256xf32>
    %516 = arith.mulf %468, %478 : vector<1x256xf32>
    %517 = arith.subf %515, %516 : vector<1x256xf32>
    %cst_174 = arith.constant 2.000000e+00 : f32
    %518 = vector.broadcast %cst_174 : f32 to vector<1x256xf32>
    %519 = arith.mulf %518, %468 : vector<1x256xf32>
    %520 = arith.mulf %519, %478 : vector<1x256xf32>
    %cst_175 = arith.constant 9.99999974E-5 : f32
    %521 = vector.broadcast %cst_175 : f32 to vector<1x256xf32>
    %522 = arith.addf %520, %521 : vector<1x256xf32>
    %cst_176 = arith.constant 2.000000e+00 : f32
    %523 = vector.broadcast %cst_176 : f32 to vector<1x256xf32>
    %524 = arith.mulf %523, %517 : vector<1x256xf32>
    %cst_177 = arith.constant 8.99999984E-4 : f32
    %525 = vector.broadcast %cst_177 : f32 to vector<1x256xf32>
    %526 = arith.addf %524, %525 : vector<1x256xf32>
    %527 = arith.mulf %522, %526 : vector<1x256xf32>
    %528 = arith.mulf %468, %468 : vector<1x256xf32>
    %529 = arith.mulf %478, %478 : vector<1x256xf32>
    %530 = arith.addf %528, %529 : vector<1x256xf32>
    %cst_178 = arith.constant 9.99999974E-5 : f32
    %531 = vector.broadcast %cst_178 : f32 to vector<1x256xf32>
    %532 = arith.addf %530, %531 : vector<1x256xf32>
    %533 = arith.addf %491, %504 : vector<1x256xf32>
    %cst_179 = arith.constant 8.99999984E-4 : f32
    %534 = vector.broadcast %cst_179 : f32 to vector<1x256xf32>
    %535 = arith.addf %533, %534 : vector<1x256xf32>
    %536 = arith.mulf %532, %535 : vector<1x256xf32>
    %537 = tpu.reciprocal %536 {approx = true} : vector<1x256xf32> -> vector<1x256xf32>
    %538 = arith.mulf %536, %537 : vector<1x256xf32>
    %cst_180 = arith.constant 2.000000e+00 : f32
    %539 = vector.broadcast %cst_180 : f32 to vector<1x256xf32>
    %540 = arith.subf %539, %538 : vector<1x256xf32>
    %541 = arith.mulf %537, %540 : vector<1x256xf32>
    %542 = arith.mulf %527, %541 : vector<1x256xf32>
    %cst_181 = arith.constant 1.000000e+00 : f32
    %543 = vector.broadcast %cst_181 : f32 to vector<1x256xf32>
    %544 = arith.subf %543, %542 : vector<1x256xf32>
    %cst_182 = arith.constant 5.000000e-01 : f32
    %545 = vector.broadcast %cst_182 : f32 to vector<1x256xf32>
    %546 = arith.mulf %544, %545 : vector<1x256xf32>
    %cst_183 = arith.constant 0.000000e+00 : f32
    %cst_184 = arith.constant 1.000000e+00 : f32
    %547 = vector.broadcast %cst_183 : f32 to vector<1x256xf32>
    %548 = arith.maximumf %547, %546 : vector<1x256xf32>
    %549 = vector.broadcast %cst_184 : f32 to vector<1x256xf32>
    %550 = arith.minimumf %549, %548 : vector<1x256xf32>
    %551 = arith.mulf %228, %550 : vector<1x256xf32>
    %cst_185 = arith.constant 0.000000e+00 : f32
    %552 = vector.broadcast %cst_185 : f32 to vector<1x256xf32>
    %553 = arith.select %37, %551, %552 : vector<1x256xi1>, vector<1x256xf32>
    %554 = vector.shape_cast %553 : vector<1x256xf32> to vector<1x1x256xf32>
    %cst_186 = arith.constant dense<0.000000e+00> : vector<1xf32>
    %555 = vector.multi_reduction <add>, %554, %cst_186 [1, 2] : vector<1x1x256xf32> to vector<1xf32>
    %556 = vector.shape_cast %555 : vector<1xf32> to vector<1x1x1xf32>
    %557 = vector.extract %556[0, 0, 0] : f32 from vector<1x1x1xf32>
    %558 = arith.addf %393, %557 : f32
    %c0_187 = arith.constant 0 : index
    %c0_188 = arith.constant 0 : index
    %c32 = arith.constant 32 : index
    %c0_189 = arith.constant 0 : index
    %559 = vector.load %arg5[%c0_187, %c0_188, %c32, %c0_189] : memref<1x3x48x16xbf16, #tpu.memory_space<vmem>>, vector<1x1x16x16xbf16>
    %560 = vector.shape_cast %559 : vector<1x1x16x16xbf16> to vector<16x16xbf16>
    %cst_190 = arith.constant dense<0.000000e+00> : vector<16x256xf32>
    %561 = tpu.matmul %560, %205, %cst_190 {dimension_numbers = #tpu.dot_dimension_numbers<[1], [0], [0], [1], [0, 0, 1, 1], [], []>} : vector<16x16xbf16>, vector<16x256xbf16>, vector<16x256xf32> -> vector<16x256xf32>
    %562 = arith.mulf %561, %218 : vector<16x256xf32>
    %cst_191 = arith.constant dense<0.000000e+00> : vector<256xf32>
    %563 = vector.multi_reduction <add>, %562, %cst_191 [0] : vector<16x256xf32> to vector<256xf32>
    %564 = vector.shape_cast %563 : vector<256xf32> to vector<1x256xf32>
    %565 = vector.extract_strided_slice %43 {offsets = [2, 0], sizes = [1, 256], strides = [1, 1]} : vector<3x256xf32> to vector<1x256xf32>
    %566 = arith.mulf %565, %155 : vector<1x256xf32>
    %567 = arith.mulf %564, %155 : vector<1x256xf32>
    %568 = arith.subf %567, %566 : vector<1x256xf32>
    %569 = math.absf %568 : vector<1x256xf32>
    %cst_192 = arith.constant 1.000000e+00 : f32
    %570 = vector.broadcast %cst_192 : f32 to vector<1x256xf32>
    %571 = arith.cmpf olt, %569, %570 : vector<1x256xf32>
    %cst_193 = arith.constant 5.000000e-01 : f32
    %572 = vector.broadcast %cst_193 : f32 to vector<1x256xf32>
    %573 = arith.mulf %572, %569 : vector<1x256xf32>
    %574 = arith.mulf %573, %569 : vector<1x256xf32>
    %cst_194 = arith.constant 5.000000e-01 : f32
    %575 = vector.broadcast %cst_194 : f32 to vector<1x256xf32>
    %576 = arith.subf %569, %575 : vector<1x256xf32>
    %577 = arith.select %571, %574, %576 : vector<1x256xi1>, vector<1x256xf32>
    %578 = arith.mulf %577, %19 : vector<1x256xf32>
    %579 = vector.shape_cast %578 : vector<1x256xf32> to vector<1x1x256xf32>
    %cst_195 = arith.constant dense<0.000000e+00> : vector<1xf32>
    %580 = vector.multi_reduction <add>, %579, %cst_195 [1, 2] : vector<1x1x256xf32> to vector<1xf32>
    %581 = vector.shape_cast %580 : vector<1xf32> to vector<1x1x1xf32>
    %582 = vector.extract %581[0, 0, 0] : f32 from vector<1x1x1xf32>
    %583 = arith.addf %418, %582 : f32
    %c255_i32_196 = arith.constant 255 : i32
    %584 = tpu.dynamic_rotate %566 by %c255_i32_196 dim 1 : vector<1x256xf32>, i32 -> vector<1x256xf32>
    %585 = arith.subf %584, %566 : vector<1x256xf32>
    %c255_i32_197 = arith.constant 255 : i32
    %586 = tpu.dynamic_rotate %567 by %c255_i32_197 dim 1 : vector<1x256xf32>, i32 -> vector<1x256xf32>
    %587 = arith.subf %586, %567 : vector<1x256xf32>
    %c240_i32_198 = arith.constant 240 : i32
    %588 = tpu.dynamic_rotate %566 by %c240_i32_198 dim 1 : vector<1x256xf32>, i32 -> vector<1x256xf32>
    %589 = arith.subf %588, %566 : vector<1x256xf32>
    %c240_i32_199 = arith.constant 240 : i32
    %590 = tpu.dynamic_rotate %567 by %c240_i32_199 dim 1 : vector<1x256xf32>, i32 -> vector<1x256xf32>
    %591 = arith.subf %590, %567 : vector<1x256xf32>
    %592 = arith.subf %587, %585 : vector<1x256xf32>
    %593 = math.absf %592 : vector<1x256xf32>
    %cst_200 = arith.constant 1.000000e+00 : f32
    %594 = vector.broadcast %cst_200 : f32 to vector<1x256xf32>
    %595 = arith.cmpf olt, %593, %594 : vector<1x256xf32>
    %cst_201 = arith.constant 5.000000e-01 : f32
    %596 = vector.broadcast %cst_201 : f32 to vector<1x256xf32>
    %597 = arith.mulf %596, %593 : vector<1x256xf32>
    %598 = arith.mulf %597, %593 : vector<1x256xf32>
    %cst_202 = arith.constant 5.000000e-01 : f32
    %599 = vector.broadcast %cst_202 : f32 to vector<1x256xf32>
    %600 = arith.subf %593, %599 : vector<1x256xf32>
    %601 = arith.select %595, %598, %600 : vector<1x256xi1>, vector<1x256xf32>
    %602 = arith.mulf %601, %25 : vector<1x256xf32>
    %603 = vector.shape_cast %602 : vector<1x256xf32> to vector<1x1x256xf32>
    %cst_203 = arith.constant dense<0.000000e+00> : vector<1xf32>
    %604 = vector.multi_reduction <add>, %603, %cst_203 [1, 2] : vector<1x1x256xf32> to vector<1xf32>
    %605 = vector.shape_cast %604 : vector<1xf32> to vector<1x1x1xf32>
    %606 = vector.extract %605[0, 0, 0] : f32 from vector<1x1x1xf32>
    %607 = arith.addf %442, %606 : f32
    %608 = arith.subf %591, %589 : vector<1x256xf32>
    %609 = math.absf %608 : vector<1x256xf32>
    %cst_204 = arith.constant 1.000000e+00 : f32
    %610 = vector.broadcast %cst_204 : f32 to vector<1x256xf32>
    %611 = arith.cmpf olt, %609, %610 : vector<1x256xf32>
    %cst_205 = arith.constant 5.000000e-01 : f32
    %612 = vector.broadcast %cst_205 : f32 to vector<1x256xf32>
    %613 = arith.mulf %612, %609 : vector<1x256xf32>
    %614 = arith.mulf %613, %609 : vector<1x256xf32>
    %cst_206 = arith.constant 5.000000e-01 : f32
    %615 = vector.broadcast %cst_206 : f32 to vector<1x256xf32>
    %616 = arith.subf %609, %615 : vector<1x256xf32>
    %617 = arith.select %611, %614, %616 : vector<1x256xi1>, vector<1x256xf32>
    %618 = arith.mulf %617, %31 : vector<1x256xf32>
    %619 = vector.shape_cast %618 : vector<1x256xf32> to vector<1x1x256xf32>
    %cst_207 = arith.constant dense<0.000000e+00> : vector<1xf32>
    %620 = vector.multi_reduction <add>, %619, %cst_207 [1, 2] : vector<1x1x256xf32> to vector<1xf32>
    %621 = vector.shape_cast %620 : vector<1xf32> to vector<1x1x1xf32>
    %622 = vector.extract %621[0, 0, 0] : f32 from vector<1x1x1xf32>
    %623 = arith.addf %458, %622 : f32
    %c255_i32_208 = arith.constant 255 : i32
    %624 = tpu.dynamic_rotate %565 by %c255_i32_208 dim 1 : vector<1x256xf32>, i32 -> vector<1x256xf32>
    %625 = arith.addf %565, %624 : vector<1x256xf32>
    %c254_i32_209 = arith.constant 254 : i32
    %626 = tpu.dynamic_rotate %565 by %c254_i32_209 dim 1 : vector<1x256xf32>, i32 -> vector<1x256xf32>
    %627 = arith.addf %625, %626 : vector<1x256xf32>
    %c240_i32_210 = arith.constant 240 : i32
    %628 = tpu.dynamic_rotate %627 by %c240_i32_210 dim 1 : vector<1x256xf32>, i32 -> vector<1x256xf32>
    %629 = arith.addf %627, %628 : vector<1x256xf32>
    %c224_i32_211 = arith.constant 224 : i32
    %630 = tpu.dynamic_rotate %627 by %c224_i32_211 dim 1 : vector<1x256xf32>, i32 -> vector<1x256xf32>
    %631 = arith.addf %629, %630 : vector<1x256xf32>
    %cst_212 = arith.constant 0.111111112 : f32
    %632 = vector.broadcast %cst_212 : f32 to vector<1x256xf32>
    %633 = arith.mulf %631, %632 : vector<1x256xf32>
    %c255_i32_213 = arith.constant 255 : i32
    %634 = tpu.dynamic_rotate %564 by %c255_i32_213 dim 1 : vector<1x256xf32>, i32 -> vector<1x256xf32>
    %635 = arith.addf %564, %634 : vector<1x256xf32>
    %c254_i32_214 = arith.constant 254 : i32
    %636 = tpu.dynamic_rotate %564 by %c254_i32_214 dim 1 : vector<1x256xf32>, i32 -> vector<1x256xf32>
    %637 = arith.addf %635, %636 : vector<1x256xf32>
    %c240_i32_215 = arith.constant 240 : i32
    %638 = tpu.dynamic_rotate %637 by %c240_i32_215 dim 1 : vector<1x256xf32>, i32 -> vector<1x256xf32>
    %639 = arith.addf %637, %638 : vector<1x256xf32>
    %c224_i32_216 = arith.constant 224 : i32
    %640 = tpu.dynamic_rotate %637 by %c224_i32_216 dim 1 : vector<1x256xf32>, i32 -> vector<1x256xf32>
    %641 = arith.addf %639, %640 : vector<1x256xf32>
    %cst_217 = arith.constant 0.111111112 : f32
    %642 = vector.broadcast %cst_217 : f32 to vector<1x256xf32>
    %643 = arith.mulf %641, %642 : vector<1x256xf32>
    %644 = arith.mulf %565, %565 : vector<1x256xf32>
    %c255_i32_218 = arith.constant 255 : i32
    %645 = tpu.dynamic_rotate %644 by %c255_i32_218 dim 1 : vector<1x256xf32>, i32 -> vector<1x256xf32>
    %646 = arith.addf %644, %645 : vector<1x256xf32>
    %c254_i32_219 = arith.constant 254 : i32
    %647 = tpu.dynamic_rotate %644 by %c254_i32_219 dim 1 : vector<1x256xf32>, i32 -> vector<1x256xf32>
    %648 = arith.addf %646, %647 : vector<1x256xf32>
    %c240_i32_220 = arith.constant 240 : i32
    %649 = tpu.dynamic_rotate %648 by %c240_i32_220 dim 1 : vector<1x256xf32>, i32 -> vector<1x256xf32>
    %650 = arith.addf %648, %649 : vector<1x256xf32>
    %c224_i32_221 = arith.constant 224 : i32
    %651 = tpu.dynamic_rotate %648 by %c224_i32_221 dim 1 : vector<1x256xf32>, i32 -> vector<1x256xf32>
    %652 = arith.addf %650, %651 : vector<1x256xf32>
    %cst_222 = arith.constant 0.111111112 : f32
    %653 = vector.broadcast %cst_222 : f32 to vector<1x256xf32>
    %654 = arith.mulf %652, %653 : vector<1x256xf32>
    %655 = arith.mulf %633, %633 : vector<1x256xf32>
    %656 = arith.subf %654, %655 : vector<1x256xf32>
    %657 = arith.mulf %564, %564 : vector<1x256xf32>
    %c255_i32_223 = arith.constant 255 : i32
    %658 = tpu.dynamic_rotate %657 by %c255_i32_223 dim 1 : vector<1x256xf32>, i32 -> vector<1x256xf32>
    %659 = arith.addf %657, %658 : vector<1x256xf32>
    %c254_i32_224 = arith.constant 254 : i32
    %660 = tpu.dynamic_rotate %657 by %c254_i32_224 dim 1 : vector<1x256xf32>, i32 -> vector<1x256xf32>
    %661 = arith.addf %659, %660 : vector<1x256xf32>
    %c240_i32_225 = arith.constant 240 : i32
    %662 = tpu.dynamic_rotate %661 by %c240_i32_225 dim 1 : vector<1x256xf32>, i32 -> vector<1x256xf32>
    %663 = arith.addf %661, %662 : vector<1x256xf32>
    %c224_i32_226 = arith.constant 224 : i32
    %664 = tpu.dynamic_rotate %661 by %c224_i32_226 dim 1 : vector<1x256xf32>, i32 -> vector<1x256xf32>
    %665 = arith.addf %663, %664 : vector<1x256xf32>
    %cst_227 = arith.constant 0.111111112 : f32
    %666 = vector.broadcast %cst_227 : f32 to vector<1x256xf32>
    %667 = arith.mulf %665, %666 : vector<1x256xf32>
    %668 = arith.mulf %643, %643 : vector<1x256xf32>
    %669 = arith.subf %667, %668 : vector<1x256xf32>
    %670 = arith.mulf %565, %564 : vector<1x256xf32>
    %c255_i32_228 = arith.constant 255 : i32
    %671 = tpu.dynamic_rotate %670 by %c255_i32_228 dim 1 : vector<1x256xf32>, i32 -> vector<1x256xf32>
    %672 = arith.addf %670, %671 : vector<1x256xf32>
    %c254_i32_229 = arith.constant 254 : i32
    %673 = tpu.dynamic_rotate %670 by %c254_i32_229 dim 1 : vector<1x256xf32>, i32 -> vector<1x256xf32>
    %674 = arith.addf %672, %673 : vector<1x256xf32>
    %c240_i32_230 = arith.constant 240 : i32
    %675 = tpu.dynamic_rotate %674 by %c240_i32_230 dim 1 : vector<1x256xf32>, i32 -> vector<1x256xf32>
    %676 = arith.addf %674, %675 : vector<1x256xf32>
    %c224_i32_231 = arith.constant 224 : i32
    %677 = tpu.dynamic_rotate %674 by %c224_i32_231 dim 1 : vector<1x256xf32>, i32 -> vector<1x256xf32>
    %678 = arith.addf %676, %677 : vector<1x256xf32>
    %cst_232 = arith.constant 0.111111112 : f32
    %679 = vector.broadcast %cst_232 : f32 to vector<1x256xf32>
    %680 = arith.mulf %678, %679 : vector<1x256xf32>
    %681 = arith.mulf %633, %643 : vector<1x256xf32>
    %682 = arith.subf %680, %681 : vector<1x256xf32>
    %cst_233 = arith.constant 2.000000e+00 : f32
    %683 = vector.broadcast %cst_233 : f32 to vector<1x256xf32>
    %684 = arith.mulf %683, %633 : vector<1x256xf32>
    %685 = arith.mulf %684, %643 : vector<1x256xf32>
    %cst_234 = arith.constant 9.99999974E-5 : f32
    %686 = vector.broadcast %cst_234 : f32 to vector<1x256xf32>
    %687 = arith.addf %685, %686 : vector<1x256xf32>
    %cst_235 = arith.constant 2.000000e+00 : f32
    %688 = vector.broadcast %cst_235 : f32 to vector<1x256xf32>
    %689 = arith.mulf %688, %682 : vector<1x256xf32>
    %cst_236 = arith.constant 8.99999984E-4 : f32
    %690 = vector.broadcast %cst_236 : f32 to vector<1x256xf32>
    %691 = arith.addf %689, %690 : vector<1x256xf32>
    %692 = arith.mulf %687, %691 : vector<1x256xf32>
    %693 = arith.mulf %633, %633 : vector<1x256xf32>
    %694 = arith.mulf %643, %643 : vector<1x256xf32>
    %695 = arith.addf %693, %694 : vector<1x256xf32>
    %cst_237 = arith.constant 9.99999974E-5 : f32
    %696 = vector.broadcast %cst_237 : f32 to vector<1x256xf32>
    %697 = arith.addf %695, %696 : vector<1x256xf32>
    %698 = arith.addf %656, %669 : vector<1x256xf32>
    %cst_238 = arith.constant 8.99999984E-4 : f32
    %699 = vector.broadcast %cst_238 : f32 to vector<1x256xf32>
    %700 = arith.addf %698, %699 : vector<1x256xf32>
    %701 = arith.mulf %697, %700 : vector<1x256xf32>
    %702 = tpu.reciprocal %701 {approx = true} : vector<1x256xf32> -> vector<1x256xf32>
    %703 = arith.mulf %701, %702 : vector<1x256xf32>
    %cst_239 = arith.constant 2.000000e+00 : f32
    %704 = vector.broadcast %cst_239 : f32 to vector<1x256xf32>
    %705 = arith.subf %704, %703 : vector<1x256xf32>
    %706 = arith.mulf %702, %705 : vector<1x256xf32>
    %707 = arith.mulf %692, %706 : vector<1x256xf32>
    %cst_240 = arith.constant 1.000000e+00 : f32
    %708 = vector.broadcast %cst_240 : f32 to vector<1x256xf32>
    %709 = arith.subf %708, %707 : vector<1x256xf32>
    %cst_241 = arith.constant 5.000000e-01 : f32
    %710 = vector.broadcast %cst_241 : f32 to vector<1x256xf32>
    %711 = arith.mulf %709, %710 : vector<1x256xf32>
    %cst_242 = arith.constant 0.000000e+00 : f32
    %cst_243 = arith.constant 1.000000e+00 : f32
    %712 = vector.broadcast %cst_242 : f32 to vector<1x256xf32>
    %713 = arith.maximumf %712, %711 : vector<1x256xf32>
    %714 = vector.broadcast %cst_243 : f32 to vector<1x256xf32>
    %715 = arith.minimumf %714, %713 : vector<1x256xf32>
    %716 = arith.mulf %228, %715 : vector<1x256xf32>
    %cst_244 = arith.constant 0.000000e+00 : f32
    %717 = vector.broadcast %cst_244 : f32 to vector<1x256xf32>
    %718 = arith.select %37, %716, %717 : vector<1x256xi1>, vector<1x256xf32>
    %719 = vector.shape_cast %718 : vector<1x256xf32> to vector<1x1x256xf32>
    %cst_245 = arith.constant dense<0.000000e+00> : vector<1xf32>
    %720 = vector.multi_reduction <add>, %719, %cst_245 [1, 2] : vector<1x1x256xf32> to vector<1xf32>
    %721 = vector.shape_cast %720 : vector<1xf32> to vector<1x1x1xf32>
    %722 = vector.extract %721[0, 0, 0] : f32 from vector<1x1x1xf32>
    %723 = arith.addf %558, %722 : f32
    %cst_246 = arith.constant 1.000000e+00 : f32
    %724 = vector.broadcast %cst_246 : f32 to vector<1x256xf32>
    %725 = arith.mulf %155, %724 : vector<1x256xf32>
    %726 = arith.addf %46, %725 : vector<1x256xf32>
    %c3_i32_247 = arith.constant 3 : i32
    %727 = arith.muli %arg0, %c3_i32_247 : i32
    %c1_i32_248 = arith.constant 1 : i32
    %728 = arith.addi %727, %c1_i32_248 : i32
    %c16_i32_249 = arith.constant 16 : i32
    %729 = arith.muli %728, %c16_i32_249 : i32
    %c0_i32_250 = arith.constant 0 : i32
    %730 = arith.addi %729, %c0_i32_250 : i32
    %c0_i32_251 = arith.constant 0 : i32
    %731 = arith.addi %730, %c0_i32_251 : i32
    %732 = arith.index_cast %731 : i32 to index
    %733 = memref.load %arg2[%732] : memref<96xf32, #tpu.memory_space<smem>>
    %734 = vector.broadcast %733 : f32 to vector<1x256xf32>
    %735 = arith.mulf %734, %12 : vector<1x256xf32>
    %c0_i32_252 = arith.constant 0 : i32
    %736 = arith.addi %729, %c0_i32_252 : i32
    %c1_i32_253 = arith.constant 1 : i32
    %737 = arith.addi %736, %c1_i32_253 : i32
    %738 = arith.index_cast %737 : i32 to index
    %739 = memref.load %arg2[%738] : memref<96xf32, #tpu.memory_space<smem>>
    %740 = vector.broadcast %739 : f32 to vector<1x256xf32>
    %741 = arith.mulf %740, %15 : vector<1x256xf32>
    %742 = arith.addf %735, %741 : vector<1x256xf32>
    %c0_i32_254 = arith.constant 0 : i32
    %743 = arith.addi %729, %c0_i32_254 : i32
    %c2_i32_255 = arith.constant 2 : i32
    %744 = arith.addi %743, %c2_i32_255 : i32
    %745 = arith.index_cast %744 : i32 to index
    %746 = memref.load %arg2[%745] : memref<96xf32, #tpu.memory_space<smem>>
    %747 = vector.broadcast %746 : f32 to vector<1x256xf32>
    %748 = arith.addf %742, %747 : vector<1x256xf32>
    %749 = arith.mulf %40, %748 : vector<1x256xf32>
    %c0_i32_256 = arith.constant 0 : i32
    %750 = arith.addi %729, %c0_i32_256 : i32
    %c3_i32_257 = arith.constant 3 : i32
    %751 = arith.addi %750, %c3_i32_257 : i32
    %752 = arith.index_cast %751 : i32 to index
    %753 = memref.load %arg2[%752] : memref<96xf32, #tpu.memory_space<smem>>
    %754 = vector.broadcast %753 : f32 to vector<1x256xf32>
    %755 = arith.addf %749, %754 : vector<1x256xf32>
    %c4_i32_258 = arith.constant 4 : i32
    %756 = arith.addi %729, %c4_i32_258 : i32
    %c0_i32_259 = arith.constant 0 : i32
    %757 = arith.addi %756, %c0_i32_259 : i32
    %758 = arith.index_cast %757 : i32 to index
    %759 = memref.load %arg2[%758] : memref<96xf32, #tpu.memory_space<smem>>
    %760 = vector.broadcast %759 : f32 to vector<1x256xf32>
    %761 = arith.mulf %760, %12 : vector<1x256xf32>
    %c4_i32_260 = arith.constant 4 : i32
    %762 = arith.addi %729, %c4_i32_260 : i32
    %c1_i32_261 = arith.constant 1 : i32
    %763 = arith.addi %762, %c1_i32_261 : i32
    %764 = arith.index_cast %763 : i32 to index
    %765 = memref.load %arg2[%764] : memref<96xf32, #tpu.memory_space<smem>>
    %766 = vector.broadcast %765 : f32 to vector<1x256xf32>
    %767 = arith.mulf %766, %15 : vector<1x256xf32>
    %768 = arith.addf %761, %767 : vector<1x256xf32>
    %c4_i32_262 = arith.constant 4 : i32
    %769 = arith.addi %729, %c4_i32_262 : i32
    %c2_i32_263 = arith.constant 2 : i32
    %770 = arith.addi %769, %c2_i32_263 : i32
    %771 = arith.index_cast %770 : i32 to index
    %772 = memref.load %arg2[%771] : memref<96xf32, #tpu.memory_space<smem>>
    %773 = vector.broadcast %772 : f32 to vector<1x256xf32>
    %774 = arith.addf %768, %773 : vector<1x256xf32>
    %775 = arith.mulf %40, %774 : vector<1x256xf32>
    %c4_i32_264 = arith.constant 4 : i32
    %776 = arith.addi %729, %c4_i32_264 : i32
    %c3_i32_265 = arith.constant 3 : i32
    %777 = arith.addi %776, %c3_i32_265 : i32
    %778 = arith.index_cast %777 : i32 to index
    %779 = memref.load %arg2[%778] : memref<96xf32, #tpu.memory_space<smem>>
    %780 = vector.broadcast %779 : f32 to vector<1x256xf32>
    %781 = arith.addf %775, %780 : vector<1x256xf32>
    %c8_i32_266 = arith.constant 8 : i32
    %782 = arith.addi %729, %c8_i32_266 : i32
    %c0_i32_267 = arith.constant 0 : i32
    %783 = arith.addi %782, %c0_i32_267 : i32
    %784 = arith.index_cast %783 : i32 to index
    %785 = memref.load %arg2[%784] : memref<96xf32, #tpu.memory_space<smem>>
    %786 = vector.broadcast %785 : f32 to vector<1x256xf32>
    %787 = arith.mulf %786, %12 : vector<1x256xf32>
    %c8_i32_268 = arith.constant 8 : i32
    %788 = arith.addi %729, %c8_i32_268 : i32
    %c1_i32_269 = arith.constant 1 : i32
    %789 = arith.addi %788, %c1_i32_269 : i32
    %790 = arith.index_cast %789 : i32 to index
    %791 = memref.load %arg2[%790] : memref<96xf32, #tpu.memory_space<smem>>
    %792 = vector.broadcast %791 : f32 to vector<1x256xf32>
    %793 = arith.mulf %792, %15 : vector<1x256xf32>
    %794 = arith.addf %787, %793 : vector<1x256xf32>
    %c8_i32_270 = arith.constant 8 : i32
    %795 = arith.addi %729, %c8_i32_270 : i32
    %c2_i32_271 = arith.constant 2 : i32
    %796 = arith.addi %795, %c2_i32_271 : i32
    %797 = arith.index_cast %796 : i32 to index
    %798 = memref.load %arg2[%797] : memref<96xf32, #tpu.memory_space<smem>>
    %799 = vector.broadcast %798 : f32 to vector<1x256xf32>
    %800 = arith.addf %794, %799 : vector<1x256xf32>
    %801 = arith.mulf %40, %800 : vector<1x256xf32>
    %c8_i32_272 = arith.constant 8 : i32
    %802 = arith.addi %729, %c8_i32_272 : i32
    %c3_i32_273 = arith.constant 3 : i32
    %803 = arith.addi %802, %c3_i32_273 : i32
    %804 = arith.index_cast %803 : i32 to index
    %805 = memref.load %arg2[%804] : memref<96xf32, #tpu.memory_space<smem>>
    %806 = vector.broadcast %805 : f32 to vector<1x256xf32>
    %807 = arith.addf %801, %806 : vector<1x256xf32>
    %cst_274 = arith.constant 1.000000e-10 : f32
    %808 = vector.broadcast %cst_274 : f32 to vector<1x256xf32>
    %809 = arith.addf %807, %808 : vector<1x256xf32>
    %810 = tpu.reciprocal %809 {approx = true} : vector<1x256xf32> -> vector<1x256xf32>
    %811 = arith.mulf %809, %810 : vector<1x256xf32>
    %cst_275 = arith.constant 2.000000e+00 : f32
    %812 = vector.broadcast %cst_275 : f32 to vector<1x256xf32>
    %813 = arith.subf %812, %811 : vector<1x256xf32>
    %814 = arith.mulf %810, %813 : vector<1x256xf32>
    %815 = arith.mulf %755, %814 : vector<1x256xf32>
    %816 = arith.mulf %781, %814 : vector<1x256xf32>
    %817 = math.floor %815 : vector<1x256xf32>
    %818 = math.floor %816 : vector<1x256xf32>
    %cst_276 = arith.constant 0.000000e+00 : f32
    %819 = vector.broadcast %cst_276 : f32 to vector<1x256xf32>
    %820 = arith.cmpf oge, %817, %819 : vector<1x256xf32>
    %cst_277 = arith.constant 1.000000e+00 : f32
    %821 = vector.broadcast %cst_277 : f32 to vector<1x256xf32>
    %822 = arith.addf %817, %821 : vector<1x256xf32>
    %cst_278 = arith.constant 1.500000e+01 : f32
    %823 = vector.broadcast %cst_278 : f32 to vector<1x256xf32>
    %824 = arith.cmpf ole, %822, %823 : vector<1x256xf32>
    %825 = arith.andi %820, %824 : vector<1x256xi1>
    %cst_279 = arith.constant 0.000000e+00 : f32
    %826 = vector.broadcast %cst_279 : f32 to vector<1x256xf32>
    %827 = arith.cmpf oge, %818, %826 : vector<1x256xf32>
    %828 = arith.andi %825, %827 : vector<1x256xi1>
    %cst_280 = arith.constant 1.000000e+00 : f32
    %829 = vector.broadcast %cst_280 : f32 to vector<1x256xf32>
    %830 = arith.addf %818, %829 : vector<1x256xf32>
    %cst_281 = arith.constant 1.500000e+01 : f32
    %831 = vector.broadcast %cst_281 : f32 to vector<1x256xf32>
    %832 = arith.cmpf ole, %830, %831 : vector<1x256xf32>
    %833 = arith.andi %828, %832 : vector<1x256xi1>
    %834 = arith.extui %833 : vector<1x256xi1> to vector<1x256xi32>
    %835 = arith.sitofp %834 : vector<1x256xi32> to vector<1x256xf32>
    %cst_282 = arith.constant 0.000000e+00 : f32
    %cst_283 = arith.constant 1.500000e+01 : f32
    %836 = vector.broadcast %cst_282 : f32 to vector<1x256xf32>
    %837 = arith.maximumf %836, %815 : vector<1x256xf32>
    %838 = vector.broadcast %cst_283 : f32 to vector<1x256xf32>
    %839 = arith.minimumf %838, %837 : vector<1x256xf32>
    %cst_284 = arith.constant 0.000000e+00 : f32
    %cst_285 = arith.constant 1.500000e+01 : f32
    %840 = vector.broadcast %cst_284 : f32 to vector<1x256xf32>
    %841 = arith.maximumf %840, %816 : vector<1x256xf32>
    %842 = vector.broadcast %cst_285 : f32 to vector<1x256xf32>
    %843 = arith.minimumf %842, %841 : vector<1x256xf32>
    %cst_286 = arith.constant 0.000000e+00 : f32
    %cst_287 = arith.constant 1.500000e+01 : f32
    %844 = vector.broadcast %cst_286 : f32 to vector<1x256xf32>
    %845 = arith.maximumf %844, %817 : vector<1x256xf32>
    %846 = vector.broadcast %cst_287 : f32 to vector<1x256xf32>
    %847 = arith.minimumf %846, %845 : vector<1x256xf32>
    %cst_288 = arith.constant 1.000000e+00 : f32
    %848 = vector.broadcast %cst_288 : f32 to vector<1x256xf32>
    %849 = arith.addf %817, %848 : vector<1x256xf32>
    %cst_289 = arith.constant 0.000000e+00 : f32
    %cst_290 = arith.constant 1.500000e+01 : f32
    %850 = vector.broadcast %cst_289 : f32 to vector<1x256xf32>
    %851 = arith.maximumf %850, %849 : vector<1x256xf32>
    %852 = vector.broadcast %cst_290 : f32 to vector<1x256xf32>
    %853 = arith.minimumf %852, %851 : vector<1x256xf32>
    %cst_291 = arith.constant 0.000000e+00 : f32
    %cst_292 = arith.constant 1.500000e+01 : f32
    %854 = vector.broadcast %cst_291 : f32 to vector<1x256xf32>
    %855 = arith.maximumf %854, %818 : vector<1x256xf32>
    %856 = vector.broadcast %cst_292 : f32 to vector<1x256xf32>
    %857 = arith.minimumf %856, %855 : vector<1x256xf32>
    %cst_293 = arith.constant 1.000000e+00 : f32
    %858 = vector.broadcast %cst_293 : f32 to vector<1x256xf32>
    %859 = arith.addf %818, %858 : vector<1x256xf32>
    %cst_294 = arith.constant 0.000000e+00 : f32
    %cst_295 = arith.constant 1.500000e+01 : f32
    %860 = vector.broadcast %cst_294 : f32 to vector<1x256xf32>
    %861 = arith.maximumf %860, %859 : vector<1x256xf32>
    %862 = vector.broadcast %cst_295 : f32 to vector<1x256xf32>
    %863 = arith.minimumf %862, %861 : vector<1x256xf32>
    %864 = arith.subf %853, %839 : vector<1x256xf32>
    %865 = arith.subf %839, %847 : vector<1x256xf32>
    %866 = arith.subf %863, %843 : vector<1x256xf32>
    %867 = arith.subf %843, %857 : vector<1x256xf32>
    %868 = arith.fptosi %847 : vector<1x256xf32> to vector<1x256xi32>
    %869 = arith.fptosi %853 : vector<1x256xf32> to vector<1x256xi32>
    %870 = arith.fptosi %857 : vector<1x256xf32> to vector<1x256xi32>
    %871 = arith.fptosi %863 : vector<1x256xf32> to vector<1x256xi32>
    %872 = vector.broadcast %868 : vector<1x256xi32> to vector<16x256xi32>
    %873 = arith.cmpi eq, %45, %872 : vector<16x256xi32>
    %cst_296 = arith.constant 0.000000e+00 : f32
    %874 = vector.shape_cast %864 : vector<1x256xf32> to vector<1x256xf32>
    %875 = vector.broadcast %874 : vector<1x256xf32> to vector<16x256xf32>
    %876 = vector.broadcast %cst_296 : f32 to vector<16x256xf32>
    %877 = arith.select %873, %875, %876 : vector<16x256xi1>, vector<16x256xf32>
    %878 = vector.broadcast %869 : vector<1x256xi32> to vector<16x256xi32>
    %879 = arith.cmpi eq, %45, %878 : vector<16x256xi32>
    %cst_297 = arith.constant 0.000000e+00 : f32
    %880 = vector.shape_cast %865 : vector<1x256xf32> to vector<1x256xf32>
    %881 = vector.broadcast %880 : vector<1x256xf32> to vector<16x256xf32>
    %882 = vector.broadcast %cst_297 : f32 to vector<16x256xf32>
    %883 = arith.select %879, %881, %882 : vector<16x256xi1>, vector<16x256xf32>
    %884 = arith.addf %877, %883 : vector<16x256xf32>
    %885 = arith.truncf %884 : vector<16x256xf32> to vector<16x256xbf16>
    %886 = vector.broadcast %870 : vector<1x256xi32> to vector<16x256xi32>
    %887 = arith.cmpi eq, %44, %886 : vector<16x256xi32>
    %cst_298 = arith.constant 0.000000e+00 : f32
    %888 = vector.shape_cast %866 : vector<1x256xf32> to vector<1x256xf32>
    %889 = vector.broadcast %888 : vector<1x256xf32> to vector<16x256xf32>
    %890 = vector.broadcast %cst_298 : f32 to vector<16x256xf32>
    %891 = arith.select %887, %889, %890 : vector<16x256xi1>, vector<16x256xf32>
    %892 = vector.broadcast %871 : vector<1x256xi32> to vector<16x256xi32>
    %893 = arith.cmpi eq, %44, %892 : vector<16x256xi32>
    %cst_299 = arith.constant 0.000000e+00 : f32
    %894 = vector.shape_cast %867 : vector<1x256xf32> to vector<1x256xf32>
    %895 = vector.broadcast %894 : vector<1x256xf32> to vector<16x256xf32>
    %896 = vector.broadcast %cst_299 : f32 to vector<16x256xf32>
    %897 = arith.select %893, %895, %896 : vector<16x256xi1>, vector<16x256xf32>
    %898 = arith.addf %891, %897 : vector<16x256xf32>
    %c255_i32_300 = arith.constant 255 : i32
    %899 = tpu.dynamic_rotate %835 by %c255_i32_300 dim 1 : vector<1x256xf32>, i32 -> vector<1x256xf32>
    %900 = arith.addf %835, %899 : vector<1x256xf32>
    %c254_i32_301 = arith.constant 254 : i32
    %901 = tpu.dynamic_rotate %835 by %c254_i32_301 dim 1 : vector<1x256xf32>, i32 -> vector<1x256xf32>
    %902 = arith.addf %900, %901 : vector<1x256xf32>
    %c240_i32_302 = arith.constant 240 : i32
    %903 = tpu.dynamic_rotate %902 by %c240_i32_302 dim 1 : vector<1x256xf32>, i32 -> vector<1x256xf32>
    %904 = arith.addf %902, %903 : vector<1x256xf32>
    %c224_i32_303 = arith.constant 224 : i32
    %905 = tpu.dynamic_rotate %902 by %c224_i32_303 dim 1 : vector<1x256xf32>, i32 -> vector<1x256xf32>
    %906 = arith.addf %904, %905 : vector<1x256xf32>
    %cst_304 = arith.constant 0.111111112 : f32
    %907 = vector.broadcast %cst_304 : f32 to vector<1x256xf32>
    %908 = arith.mulf %906, %907 : vector<1x256xf32>
    %c0_305 = arith.constant 0 : index
    %c1 = arith.constant 1 : index
    %c0_306 = arith.constant 0 : index
    %c0_307 = arith.constant 0 : index
    %909 = vector.load %arg5[%c0_305, %c1, %c0_306, %c0_307] : memref<1x3x48x16xbf16, #tpu.memory_space<vmem>>, vector<1x1x16x16xbf16>
    %910 = vector.shape_cast %909 : vector<1x1x16x16xbf16> to vector<16x16xbf16>
    %cst_308 = arith.constant dense<0.000000e+00> : vector<16x256xf32>
    %911 = tpu.matmul %910, %885, %cst_308 {dimension_numbers = #tpu.dot_dimension_numbers<[1], [0], [0], [1], [0, 0, 1, 1], [], []>} : vector<16x16xbf16>, vector<16x256xbf16>, vector<16x256xf32> -> vector<16x256xf32>
    %912 = arith.mulf %911, %898 : vector<16x256xf32>
    %cst_309 = arith.constant dense<0.000000e+00> : vector<256xf32>
    %913 = vector.multi_reduction <add>, %912, %cst_309 [0] : vector<16x256xf32> to vector<256xf32>
    %914 = vector.shape_cast %913 : vector<256xf32> to vector<1x256xf32>
    %915 = vector.extract_strided_slice %43 {offsets = [0, 0], sizes = [1, 256], strides = [1, 1]} : vector<3x256xf32> to vector<1x256xf32>
    %916 = arith.mulf %915, %835 : vector<1x256xf32>
    %917 = arith.mulf %914, %835 : vector<1x256xf32>
    %918 = arith.subf %917, %916 : vector<1x256xf32>
    %919 = math.absf %918 : vector<1x256xf32>
    %cst_310 = arith.constant 1.000000e+00 : f32
    %920 = vector.broadcast %cst_310 : f32 to vector<1x256xf32>
    %921 = arith.cmpf olt, %919, %920 : vector<1x256xf32>
    %cst_311 = arith.constant 5.000000e-01 : f32
    %922 = vector.broadcast %cst_311 : f32 to vector<1x256xf32>
    %923 = arith.mulf %922, %919 : vector<1x256xf32>
    %924 = arith.mulf %923, %919 : vector<1x256xf32>
    %cst_312 = arith.constant 5.000000e-01 : f32
    %925 = vector.broadcast %cst_312 : f32 to vector<1x256xf32>
    %926 = arith.subf %919, %925 : vector<1x256xf32>
    %927 = arith.select %921, %924, %926 : vector<1x256xi1>, vector<1x256xf32>
    %928 = arith.mulf %927, %19 : vector<1x256xf32>
    %929 = vector.shape_cast %928 : vector<1x256xf32> to vector<1x1x256xf32>
    %cst_313 = arith.constant dense<0.000000e+00> : vector<1xf32>
    %930 = vector.multi_reduction <add>, %929, %cst_313 [1, 2] : vector<1x1x256xf32> to vector<1xf32>
    %931 = vector.shape_cast %930 : vector<1xf32> to vector<1x1x1xf32>
    %932 = vector.extract %931[0, 0, 0] : f32 from vector<1x1x1xf32>
    %cst_314 = arith.constant 0.000000e+00 : f32
    %933 = arith.addf %cst_314, %932 : f32
    %c255_i32_315 = arith.constant 255 : i32
    %934 = tpu.dynamic_rotate %916 by %c255_i32_315 dim 1 : vector<1x256xf32>, i32 -> vector<1x256xf32>
    %935 = arith.subf %934, %916 : vector<1x256xf32>
    %c255_i32_316 = arith.constant 255 : i32
    %936 = tpu.dynamic_rotate %917 by %c255_i32_316 dim 1 : vector<1x256xf32>, i32 -> vector<1x256xf32>
    %937 = arith.subf %936, %917 : vector<1x256xf32>
    %c240_i32_317 = arith.constant 240 : i32
    %938 = tpu.dynamic_rotate %916 by %c240_i32_317 dim 1 : vector<1x256xf32>, i32 -> vector<1x256xf32>
    %939 = arith.subf %938, %916 : vector<1x256xf32>
    %c240_i32_318 = arith.constant 240 : i32
    %940 = tpu.dynamic_rotate %917 by %c240_i32_318 dim 1 : vector<1x256xf32>, i32 -> vector<1x256xf32>
    %941 = arith.subf %940, %917 : vector<1x256xf32>
    %942 = arith.subf %937, %935 : vector<1x256xf32>
    %943 = math.absf %942 : vector<1x256xf32>
    %cst_319 = arith.constant 1.000000e+00 : f32
    %944 = vector.broadcast %cst_319 : f32 to vector<1x256xf32>
    %945 = arith.cmpf olt, %943, %944 : vector<1x256xf32>
    %cst_320 = arith.constant 5.000000e-01 : f32
    %946 = vector.broadcast %cst_320 : f32 to vector<1x256xf32>
    %947 = arith.mulf %946, %943 : vector<1x256xf32>
    %948 = arith.mulf %947, %943 : vector<1x256xf32>
    %cst_321 = arith.constant 5.000000e-01 : f32
    %949 = vector.broadcast %cst_321 : f32 to vector<1x256xf32>
    %950 = arith.subf %943, %949 : vector<1x256xf32>
    %951 = arith.select %945, %948, %950 : vector<1x256xi1>, vector<1x256xf32>
    %952 = arith.mulf %951, %25 : vector<1x256xf32>
    %953 = vector.shape_cast %952 : vector<1x256xf32> to vector<1x1x256xf32>
    %cst_322 = arith.constant dense<0.000000e+00> : vector<1xf32>
    %954 = vector.multi_reduction <add>, %953, %cst_322 [1, 2] : vector<1x1x256xf32> to vector<1xf32>
    %955 = vector.shape_cast %954 : vector<1xf32> to vector<1x1x1xf32>
    %956 = vector.extract %955[0, 0, 0] : f32 from vector<1x1x1xf32>
    %cst_323 = arith.constant 0.000000e+00 : f32
    %957 = arith.addf %cst_323, %956 : f32
    %958 = arith.subf %941, %939 : vector<1x256xf32>
    %959 = math.absf %958 : vector<1x256xf32>
    %cst_324 = arith.constant 1.000000e+00 : f32
    %960 = vector.broadcast %cst_324 : f32 to vector<1x256xf32>
    %961 = arith.cmpf olt, %959, %960 : vector<1x256xf32>
    %cst_325 = arith.constant 5.000000e-01 : f32
    %962 = vector.broadcast %cst_325 : f32 to vector<1x256xf32>
    %963 = arith.mulf %962, %959 : vector<1x256xf32>
    %964 = arith.mulf %963, %959 : vector<1x256xf32>
    %cst_326 = arith.constant 5.000000e-01 : f32
    %965 = vector.broadcast %cst_326 : f32 to vector<1x256xf32>
    %966 = arith.subf %959, %965 : vector<1x256xf32>
    %967 = arith.select %961, %964, %966 : vector<1x256xi1>, vector<1x256xf32>
    %968 = arith.mulf %967, %31 : vector<1x256xf32>
    %969 = vector.shape_cast %968 : vector<1x256xf32> to vector<1x1x256xf32>
    %cst_327 = arith.constant dense<0.000000e+00> : vector<1xf32>
    %970 = vector.multi_reduction <add>, %969, %cst_327 [1, 2] : vector<1x1x256xf32> to vector<1xf32>
    %971 = vector.shape_cast %970 : vector<1xf32> to vector<1x1x1xf32>
    %972 = vector.extract %971[0, 0, 0] : f32 from vector<1x1x1xf32>
    %cst_328 = arith.constant 0.000000e+00 : f32
    %973 = arith.addf %cst_328, %972 : f32
    %c255_i32_329 = arith.constant 255 : i32
    %974 = tpu.dynamic_rotate %915 by %c255_i32_329 dim 1 : vector<1x256xf32>, i32 -> vector<1x256xf32>
    %975 = arith.addf %915, %974 : vector<1x256xf32>
    %c254_i32_330 = arith.constant 254 : i32
    %976 = tpu.dynamic_rotate %915 by %c254_i32_330 dim 1 : vector<1x256xf32>, i32 -> vector<1x256xf32>
    %977 = arith.addf %975, %976 : vector<1x256xf32>
    %c240_i32_331 = arith.constant 240 : i32
    %978 = tpu.dynamic_rotate %977 by %c240_i32_331 dim 1 : vector<1x256xf32>, i32 -> vector<1x256xf32>
    %979 = arith.addf %977, %978 : vector<1x256xf32>
    %c224_i32_332 = arith.constant 224 : i32
    %980 = tpu.dynamic_rotate %977 by %c224_i32_332 dim 1 : vector<1x256xf32>, i32 -> vector<1x256xf32>
    %981 = arith.addf %979, %980 : vector<1x256xf32>
    %cst_333 = arith.constant 0.111111112 : f32
    %982 = vector.broadcast %cst_333 : f32 to vector<1x256xf32>
    %983 = arith.mulf %981, %982 : vector<1x256xf32>
    %c255_i32_334 = arith.constant 255 : i32
    %984 = tpu.dynamic_rotate %914 by %c255_i32_334 dim 1 : vector<1x256xf32>, i32 -> vector<1x256xf32>
    %985 = arith.addf %914, %984 : vector<1x256xf32>
    %c254_i32_335 = arith.constant 254 : i32
    %986 = tpu.dynamic_rotate %914 by %c254_i32_335 dim 1 : vector<1x256xf32>, i32 -> vector<1x256xf32>
    %987 = arith.addf %985, %986 : vector<1x256xf32>
    %c240_i32_336 = arith.constant 240 : i32
    %988 = tpu.dynamic_rotate %987 by %c240_i32_336 dim 1 : vector<1x256xf32>, i32 -> vector<1x256xf32>
    %989 = arith.addf %987, %988 : vector<1x256xf32>
    %c224_i32_337 = arith.constant 224 : i32
    %990 = tpu.dynamic_rotate %987 by %c224_i32_337 dim 1 : vector<1x256xf32>, i32 -> vector<1x256xf32>
    %991 = arith.addf %989, %990 : vector<1x256xf32>
    %cst_338 = arith.constant 0.111111112 : f32
    %992 = vector.broadcast %cst_338 : f32 to vector<1x256xf32>
    %993 = arith.mulf %991, %992 : vector<1x256xf32>
    %994 = arith.mulf %915, %915 : vector<1x256xf32>
    %c255_i32_339 = arith.constant 255 : i32
    %995 = tpu.dynamic_rotate %994 by %c255_i32_339 dim 1 : vector<1x256xf32>, i32 -> vector<1x256xf32>
    %996 = arith.addf %994, %995 : vector<1x256xf32>
    %c254_i32_340 = arith.constant 254 : i32
    %997 = tpu.dynamic_rotate %994 by %c254_i32_340 dim 1 : vector<1x256xf32>, i32 -> vector<1x256xf32>
    %998 = arith.addf %996, %997 : vector<1x256xf32>
    %c240_i32_341 = arith.constant 240 : i32
    %999 = tpu.dynamic_rotate %998 by %c240_i32_341 dim 1 : vector<1x256xf32>, i32 -> vector<1x256xf32>
    %1000 = arith.addf %998, %999 : vector<1x256xf32>
    %c224_i32_342 = arith.constant 224 : i32
    %1001 = tpu.dynamic_rotate %998 by %c224_i32_342 dim 1 : vector<1x256xf32>, i32 -> vector<1x256xf32>
    %1002 = arith.addf %1000, %1001 : vector<1x256xf32>
    %cst_343 = arith.constant 0.111111112 : f32
    %1003 = vector.broadcast %cst_343 : f32 to vector<1x256xf32>
    %1004 = arith.mulf %1002, %1003 : vector<1x256xf32>
    %1005 = arith.mulf %983, %983 : vector<1x256xf32>
    %1006 = arith.subf %1004, %1005 : vector<1x256xf32>
    %1007 = arith.mulf %914, %914 : vector<1x256xf32>
    %c255_i32_344 = arith.constant 255 : i32
    %1008 = tpu.dynamic_rotate %1007 by %c255_i32_344 dim 1 : vector<1x256xf32>, i32 -> vector<1x256xf32>
    %1009 = arith.addf %1007, %1008 : vector<1x256xf32>
    %c254_i32_345 = arith.constant 254 : i32
    %1010 = tpu.dynamic_rotate %1007 by %c254_i32_345 dim 1 : vector<1x256xf32>, i32 -> vector<1x256xf32>
    %1011 = arith.addf %1009, %1010 : vector<1x256xf32>
    %c240_i32_346 = arith.constant 240 : i32
    %1012 = tpu.dynamic_rotate %1011 by %c240_i32_346 dim 1 : vector<1x256xf32>, i32 -> vector<1x256xf32>
    %1013 = arith.addf %1011, %1012 : vector<1x256xf32>
    %c224_i32_347 = arith.constant 224 : i32
    %1014 = tpu.dynamic_rotate %1011 by %c224_i32_347 dim 1 : vector<1x256xf32>, i32 -> vector<1x256xf32>
    %1015 = arith.addf %1013, %1014 : vector<1x256xf32>
    %cst_348 = arith.constant 0.111111112 : f32
    %1016 = vector.broadcast %cst_348 : f32 to vector<1x256xf32>
    %1017 = arith.mulf %1015, %1016 : vector<1x256xf32>
    %1018 = arith.mulf %993, %993 : vector<1x256xf32>
    %1019 = arith.subf %1017, %1018 : vector<1x256xf32>
    %1020 = arith.mulf %915, %914 : vector<1x256xf32>
    %c255_i32_349 = arith.constant 255 : i32
    %1021 = tpu.dynamic_rotate %1020 by %c255_i32_349 dim 1 : vector<1x256xf32>, i32 -> vector<1x256xf32>
    %1022 = arith.addf %1020, %1021 : vector<1x256xf32>
    %c254_i32_350 = arith.constant 254 : i32
    %1023 = tpu.dynamic_rotate %1020 by %c254_i32_350 dim 1 : vector<1x256xf32>, i32 -> vector<1x256xf32>
    %1024 = arith.addf %1022, %1023 : vector<1x256xf32>
    %c240_i32_351 = arith.constant 240 : i32
    %1025 = tpu.dynamic_rotate %1024 by %c240_i32_351 dim 1 : vector<1x256xf32>, i32 -> vector<1x256xf32>
    %1026 = arith.addf %1024, %1025 : vector<1x256xf32>
    %c224_i32_352 = arith.constant 224 : i32
    %1027 = tpu.dynamic_rotate %1024 by %c224_i32_352 dim 1 : vector<1x256xf32>, i32 -> vector<1x256xf32>
    %1028 = arith.addf %1026, %1027 : vector<1x256xf32>
    %cst_353 = arith.constant 0.111111112 : f32
    %1029 = vector.broadcast %cst_353 : f32 to vector<1x256xf32>
    %1030 = arith.mulf %1028, %1029 : vector<1x256xf32>
    %1031 = arith.mulf %983, %993 : vector<1x256xf32>
    %1032 = arith.subf %1030, %1031 : vector<1x256xf32>
    %cst_354 = arith.constant 2.000000e+00 : f32
    %1033 = vector.broadcast %cst_354 : f32 to vector<1x256xf32>
    %1034 = arith.mulf %1033, %983 : vector<1x256xf32>
    %1035 = arith.mulf %1034, %993 : vector<1x256xf32>
    %cst_355 = arith.constant 9.99999974E-5 : f32
    %1036 = vector.broadcast %cst_355 : f32 to vector<1x256xf32>
    %1037 = arith.addf %1035, %1036 : vector<1x256xf32>
    %cst_356 = arith.constant 2.000000e+00 : f32
    %1038 = vector.broadcast %cst_356 : f32 to vector<1x256xf32>
    %1039 = arith.mulf %1038, %1032 : vector<1x256xf32>
    %cst_357 = arith.constant 8.99999984E-4 : f32
    %1040 = vector.broadcast %cst_357 : f32 to vector<1x256xf32>
    %1041 = arith.addf %1039, %1040 : vector<1x256xf32>
    %1042 = arith.mulf %1037, %1041 : vector<1x256xf32>
    %1043 = arith.mulf %983, %983 : vector<1x256xf32>
    %1044 = arith.mulf %993, %993 : vector<1x256xf32>
    %1045 = arith.addf %1043, %1044 : vector<1x256xf32>
    %cst_358 = arith.constant 9.99999974E-5 : f32
    %1046 = vector.broadcast %cst_358 : f32 to vector<1x256xf32>
    %1047 = arith.addf %1045, %1046 : vector<1x256xf32>
    %1048 = arith.addf %1006, %1019 : vector<1x256xf32>
    %cst_359 = arith.constant 8.99999984E-4 : f32
    %1049 = vector.broadcast %cst_359 : f32 to vector<1x256xf32>
    %1050 = arith.addf %1048, %1049 : vector<1x256xf32>
    %1051 = arith.mulf %1047, %1050 : vector<1x256xf32>
    %1052 = tpu.reciprocal %1051 {approx = true} : vector<1x256xf32> -> vector<1x256xf32>
    %1053 = arith.mulf %1051, %1052 : vector<1x256xf32>
    %cst_360 = arith.constant 2.000000e+00 : f32
    %1054 = vector.broadcast %cst_360 : f32 to vector<1x256xf32>
    %1055 = arith.subf %1054, %1053 : vector<1x256xf32>
    %1056 = arith.mulf %1052, %1055 : vector<1x256xf32>
    %1057 = arith.mulf %1042, %1056 : vector<1x256xf32>
    %cst_361 = arith.constant 1.000000e+00 : f32
    %1058 = vector.broadcast %cst_361 : f32 to vector<1x256xf32>
    %1059 = arith.subf %1058, %1057 : vector<1x256xf32>
    %cst_362 = arith.constant 5.000000e-01 : f32
    %1060 = vector.broadcast %cst_362 : f32 to vector<1x256xf32>
    %1061 = arith.mulf %1059, %1060 : vector<1x256xf32>
    %cst_363 = arith.constant 0.000000e+00 : f32
    %cst_364 = arith.constant 1.000000e+00 : f32
    %1062 = vector.broadcast %cst_363 : f32 to vector<1x256xf32>
    %1063 = arith.maximumf %1062, %1061 : vector<1x256xf32>
    %1064 = vector.broadcast %cst_364 : f32 to vector<1x256xf32>
    %1065 = arith.minimumf %1064, %1063 : vector<1x256xf32>
    %1066 = arith.mulf %908, %1065 : vector<1x256xf32>
    %cst_365 = arith.constant 0.000000e+00 : f32
    %1067 = vector.broadcast %cst_365 : f32 to vector<1x256xf32>
    %1068 = arith.select %37, %1066, %1067 : vector<1x256xi1>, vector<1x256xf32>
    %1069 = vector.shape_cast %1068 : vector<1x256xf32> to vector<1x1x256xf32>
    %cst_366 = arith.constant dense<0.000000e+00> : vector<1xf32>
    %1070 = vector.multi_reduction <add>, %1069, %cst_366 [1, 2] : vector<1x1x256xf32> to vector<1xf32>
    %1071 = vector.shape_cast %1070 : vector<1xf32> to vector<1x1x1xf32>
    %1072 = vector.extract %1071[0, 0, 0] : f32 from vector<1x1x1xf32>
    %cst_367 = arith.constant 0.000000e+00 : f32
    %1073 = arith.addf %cst_367, %1072 : f32
    %c0_368 = arith.constant 0 : index
    %c1_369 = arith.constant 1 : index
    %c16_370 = arith.constant 16 : index
    %c0_371 = arith.constant 0 : index
    %1074 = vector.load %arg5[%c0_368, %c1_369, %c16_370, %c0_371] : memref<1x3x48x16xbf16, #tpu.memory_space<vmem>>, vector<1x1x16x16xbf16>
    %1075 = vector.shape_cast %1074 : vector<1x1x16x16xbf16> to vector<16x16xbf16>
    %cst_372 = arith.constant dense<0.000000e+00> : vector<16x256xf32>
    %1076 = tpu.matmul %1075, %885, %cst_372 {dimension_numbers = #tpu.dot_dimension_numbers<[1], [0], [0], [1], [0, 0, 1, 1], [], []>} : vector<16x16xbf16>, vector<16x256xbf16>, vector<16x256xf32> -> vector<16x256xf32>
    %1077 = arith.mulf %1076, %898 : vector<16x256xf32>
    %cst_373 = arith.constant dense<0.000000e+00> : vector<256xf32>
    %1078 = vector.multi_reduction <add>, %1077, %cst_373 [0] : vector<16x256xf32> to vector<256xf32>
    %1079 = vector.shape_cast %1078 : vector<256xf32> to vector<1x256xf32>
    %1080 = vector.extract_strided_slice %43 {offsets = [1, 0], sizes = [1, 256], strides = [1, 1]} : vector<3x256xf32> to vector<1x256xf32>
    %1081 = arith.mulf %1080, %835 : vector<1x256xf32>
    %1082 = arith.mulf %1079, %835 : vector<1x256xf32>
    %1083 = arith.subf %1082, %1081 : vector<1x256xf32>
    %1084 = math.absf %1083 : vector<1x256xf32>
    %cst_374 = arith.constant 1.000000e+00 : f32
    %1085 = vector.broadcast %cst_374 : f32 to vector<1x256xf32>
    %1086 = arith.cmpf olt, %1084, %1085 : vector<1x256xf32>
    %cst_375 = arith.constant 5.000000e-01 : f32
    %1087 = vector.broadcast %cst_375 : f32 to vector<1x256xf32>
    %1088 = arith.mulf %1087, %1084 : vector<1x256xf32>
    %1089 = arith.mulf %1088, %1084 : vector<1x256xf32>
    %cst_376 = arith.constant 5.000000e-01 : f32
    %1090 = vector.broadcast %cst_376 : f32 to vector<1x256xf32>
    %1091 = arith.subf %1084, %1090 : vector<1x256xf32>
    %1092 = arith.select %1086, %1089, %1091 : vector<1x256xi1>, vector<1x256xf32>
    %1093 = arith.mulf %1092, %19 : vector<1x256xf32>
    %1094 = vector.shape_cast %1093 : vector<1x256xf32> to vector<1x1x256xf32>
    %cst_377 = arith.constant dense<0.000000e+00> : vector<1xf32>
    %1095 = vector.multi_reduction <add>, %1094, %cst_377 [1, 2] : vector<1x1x256xf32> to vector<1xf32>
    %1096 = vector.shape_cast %1095 : vector<1xf32> to vector<1x1x1xf32>
    %1097 = vector.extract %1096[0, 0, 0] : f32 from vector<1x1x1xf32>
    %1098 = arith.addf %933, %1097 : f32
    %c255_i32_378 = arith.constant 255 : i32
    %1099 = tpu.dynamic_rotate %1081 by %c255_i32_378 dim 1 : vector<1x256xf32>, i32 -> vector<1x256xf32>
    %1100 = arith.subf %1099, %1081 : vector<1x256xf32>
    %c255_i32_379 = arith.constant 255 : i32
    %1101 = tpu.dynamic_rotate %1082 by %c255_i32_379 dim 1 : vector<1x256xf32>, i32 -> vector<1x256xf32>
    %1102 = arith.subf %1101, %1082 : vector<1x256xf32>
    %c240_i32_380 = arith.constant 240 : i32
    %1103 = tpu.dynamic_rotate %1081 by %c240_i32_380 dim 1 : vector<1x256xf32>, i32 -> vector<1x256xf32>
    %1104 = arith.subf %1103, %1081 : vector<1x256xf32>
    %c240_i32_381 = arith.constant 240 : i32
    %1105 = tpu.dynamic_rotate %1082 by %c240_i32_381 dim 1 : vector<1x256xf32>, i32 -> vector<1x256xf32>
    %1106 = arith.subf %1105, %1082 : vector<1x256xf32>
    %1107 = arith.subf %1102, %1100 : vector<1x256xf32>
    %1108 = math.absf %1107 : vector<1x256xf32>
    %cst_382 = arith.constant 1.000000e+00 : f32
    %1109 = vector.broadcast %cst_382 : f32 to vector<1x256xf32>
    %1110 = arith.cmpf olt, %1108, %1109 : vector<1x256xf32>
    %cst_383 = arith.constant 5.000000e-01 : f32
    %1111 = vector.broadcast %cst_383 : f32 to vector<1x256xf32>
    %1112 = arith.mulf %1111, %1108 : vector<1x256xf32>
    %1113 = arith.mulf %1112, %1108 : vector<1x256xf32>
    %cst_384 = arith.constant 5.000000e-01 : f32
    %1114 = vector.broadcast %cst_384 : f32 to vector<1x256xf32>
    %1115 = arith.subf %1108, %1114 : vector<1x256xf32>
    %1116 = arith.select %1110, %1113, %1115 : vector<1x256xi1>, vector<1x256xf32>
    %1117 = arith.mulf %1116, %25 : vector<1x256xf32>
    %1118 = vector.shape_cast %1117 : vector<1x256xf32> to vector<1x1x256xf32>
    %cst_385 = arith.constant dense<0.000000e+00> : vector<1xf32>
    %1119 = vector.multi_reduction <add>, %1118, %cst_385 [1, 2] : vector<1x1x256xf32> to vector<1xf32>
    %1120 = vector.shape_cast %1119 : vector<1xf32> to vector<1x1x1xf32>
    %1121 = vector.extract %1120[0, 0, 0] : f32 from vector<1x1x1xf32>
    %1122 = arith.addf %957, %1121 : f32
    %1123 = arith.subf %1106, %1104 : vector<1x256xf32>
    %1124 = math.absf %1123 : vector<1x256xf32>
    %cst_386 = arith.constant 1.000000e+00 : f32
    %1125 = vector.broadcast %cst_386 : f32 to vector<1x256xf32>
    %1126 = arith.cmpf olt, %1124, %1125 : vector<1x256xf32>
    %cst_387 = arith.constant 5.000000e-01 : f32
    %1127 = vector.broadcast %cst_387 : f32 to vector<1x256xf32>
    %1128 = arith.mulf %1127, %1124 : vector<1x256xf32>
    %1129 = arith.mulf %1128, %1124 : vector<1x256xf32>
    %cst_388 = arith.constant 5.000000e-01 : f32
    %1130 = vector.broadcast %cst_388 : f32 to vector<1x256xf32>
    %1131 = arith.subf %1124, %1130 : vector<1x256xf32>
    %1132 = arith.select %1126, %1129, %1131 : vector<1x256xi1>, vector<1x256xf32>
    %1133 = arith.mulf %1132, %31 : vector<1x256xf32>
    %1134 = vector.shape_cast %1133 : vector<1x256xf32> to vector<1x1x256xf32>
    %cst_389 = arith.constant dense<0.000000e+00> : vector<1xf32>
    %1135 = vector.multi_reduction <add>, %1134, %cst_389 [1, 2] : vector<1x1x256xf32> to vector<1xf32>
    %1136 = vector.shape_cast %1135 : vector<1xf32> to vector<1x1x1xf32>
    %1137 = vector.extract %1136[0, 0, 0] : f32 from vector<1x1x1xf32>
    %1138 = arith.addf %973, %1137 : f32
    %c255_i32_390 = arith.constant 255 : i32
    %1139 = tpu.dynamic_rotate %1080 by %c255_i32_390 dim 1 : vector<1x256xf32>, i32 -> vector<1x256xf32>
    %1140 = arith.addf %1080, %1139 : vector<1x256xf32>
    %c254_i32_391 = arith.constant 254 : i32
    %1141 = tpu.dynamic_rotate %1080 by %c254_i32_391 dim 1 : vector<1x256xf32>, i32 -> vector<1x256xf32>
    %1142 = arith.addf %1140, %1141 : vector<1x256xf32>
    %c240_i32_392 = arith.constant 240 : i32
    %1143 = tpu.dynamic_rotate %1142 by %c240_i32_392 dim 1 : vector<1x256xf32>, i32 -> vector<1x256xf32>
    %1144 = arith.addf %1142, %1143 : vector<1x256xf32>
    %c224_i32_393 = arith.constant 224 : i32
    %1145 = tpu.dynamic_rotate %1142 by %c224_i32_393 dim 1 : vector<1x256xf32>, i32 -> vector<1x256xf32>
    %1146 = arith.addf %1144, %1145 : vector<1x256xf32>
    %cst_394 = arith.constant 0.111111112 : f32
    %1147 = vector.broadcast %cst_394 : f32 to vector<1x256xf32>
    %1148 = arith.mulf %1146, %1147 : vector<1x256xf32>
    %c255_i32_395 = arith.constant 255 : i32
    %1149 = tpu.dynamic_rotate %1079 by %c255_i32_395 dim 1 : vector<1x256xf32>, i32 -> vector<1x256xf32>
    %1150 = arith.addf %1079, %1149 : vector<1x256xf32>
    %c254_i32_396 = arith.constant 254 : i32
    %1151 = tpu.dynamic_rotate %1079 by %c254_i32_396 dim 1 : vector<1x256xf32>, i32 -> vector<1x256xf32>
    %1152 = arith.addf %1150, %1151 : vector<1x256xf32>
    %c240_i32_397 = arith.constant 240 : i32
    %1153 = tpu.dynamic_rotate %1152 by %c240_i32_397 dim 1 : vector<1x256xf32>, i32 -> vector<1x256xf32>
    %1154 = arith.addf %1152, %1153 : vector<1x256xf32>
    %c224_i32_398 = arith.constant 224 : i32
    %1155 = tpu.dynamic_rotate %1152 by %c224_i32_398 dim 1 : vector<1x256xf32>, i32 -> vector<1x256xf32>
    %1156 = arith.addf %1154, %1155 : vector<1x256xf32>
    %cst_399 = arith.constant 0.111111112 : f32
    %1157 = vector.broadcast %cst_399 : f32 to vector<1x256xf32>
    %1158 = arith.mulf %1156, %1157 : vector<1x256xf32>
    %1159 = arith.mulf %1080, %1080 : vector<1x256xf32>
    %c255_i32_400 = arith.constant 255 : i32
    %1160 = tpu.dynamic_rotate %1159 by %c255_i32_400 dim 1 : vector<1x256xf32>, i32 -> vector<1x256xf32>
    %1161 = arith.addf %1159, %1160 : vector<1x256xf32>
    %c254_i32_401 = arith.constant 254 : i32
    %1162 = tpu.dynamic_rotate %1159 by %c254_i32_401 dim 1 : vector<1x256xf32>, i32 -> vector<1x256xf32>
    %1163 = arith.addf %1161, %1162 : vector<1x256xf32>
    %c240_i32_402 = arith.constant 240 : i32
    %1164 = tpu.dynamic_rotate %1163 by %c240_i32_402 dim 1 : vector<1x256xf32>, i32 -> vector<1x256xf32>
    %1165 = arith.addf %1163, %1164 : vector<1x256xf32>
    %c224_i32_403 = arith.constant 224 : i32
    %1166 = tpu.dynamic_rotate %1163 by %c224_i32_403 dim 1 : vector<1x256xf32>, i32 -> vector<1x256xf32>
    %1167 = arith.addf %1165, %1166 : vector<1x256xf32>
    %cst_404 = arith.constant 0.111111112 : f32
    %1168 = vector.broadcast %cst_404 : f32 to vector<1x256xf32>
    %1169 = arith.mulf %1167, %1168 : vector<1x256xf32>
    %1170 = arith.mulf %1148, %1148 : vector<1x256xf32>
    %1171 = arith.subf %1169, %1170 : vector<1x256xf32>
    %1172 = arith.mulf %1079, %1079 : vector<1x256xf32>
    %c255_i32_405 = arith.constant 255 : i32
    %1173 = tpu.dynamic_rotate %1172 by %c255_i32_405 dim 1 : vector<1x256xf32>, i32 -> vector<1x256xf32>
    %1174 = arith.addf %1172, %1173 : vector<1x256xf32>
    %c254_i32_406 = arith.constant 254 : i32
    %1175 = tpu.dynamic_rotate %1172 by %c254_i32_406 dim 1 : vector<1x256xf32>, i32 -> vector<1x256xf32>
    %1176 = arith.addf %1174, %1175 : vector<1x256xf32>
    %c240_i32_407 = arith.constant 240 : i32
    %1177 = tpu.dynamic_rotate %1176 by %c240_i32_407 dim 1 : vector<1x256xf32>, i32 -> vector<1x256xf32>
    %1178 = arith.addf %1176, %1177 : vector<1x256xf32>
    %c224_i32_408 = arith.constant 224 : i32
    %1179 = tpu.dynamic_rotate %1176 by %c224_i32_408 dim 1 : vector<1x256xf32>, i32 -> vector<1x256xf32>
    %1180 = arith.addf %1178, %1179 : vector<1x256xf32>
    %cst_409 = arith.constant 0.111111112 : f32
    %1181 = vector.broadcast %cst_409 : f32 to vector<1x256xf32>
    %1182 = arith.mulf %1180, %1181 : vector<1x256xf32>
    %1183 = arith.mulf %1158, %1158 : vector<1x256xf32>
    %1184 = arith.subf %1182, %1183 : vector<1x256xf32>
    %1185 = arith.mulf %1080, %1079 : vector<1x256xf32>
    %c255_i32_410 = arith.constant 255 : i32
    %1186 = tpu.dynamic_rotate %1185 by %c255_i32_410 dim 1 : vector<1x256xf32>, i32 -> vector<1x256xf32>
    %1187 = arith.addf %1185, %1186 : vector<1x256xf32>
    %c254_i32_411 = arith.constant 254 : i32
    %1188 = tpu.dynamic_rotate %1185 by %c254_i32_411 dim 1 : vector<1x256xf32>, i32 -> vector<1x256xf32>
    %1189 = arith.addf %1187, %1188 : vector<1x256xf32>
    %c240_i32_412 = arith.constant 240 : i32
    %1190 = tpu.dynamic_rotate %1189 by %c240_i32_412 dim 1 : vector<1x256xf32>, i32 -> vector<1x256xf32>
    %1191 = arith.addf %1189, %1190 : vector<1x256xf32>
    %c224_i32_413 = arith.constant 224 : i32
    %1192 = tpu.dynamic_rotate %1189 by %c224_i32_413 dim 1 : vector<1x256xf32>, i32 -> vector<1x256xf32>
    %1193 = arith.addf %1191, %1192 : vector<1x256xf32>
    %cst_414 = arith.constant 0.111111112 : f32
    %1194 = vector.broadcast %cst_414 : f32 to vector<1x256xf32>
    %1195 = arith.mulf %1193, %1194 : vector<1x256xf32>
    %1196 = arith.mulf %1148, %1158 : vector<1x256xf32>
    %1197 = arith.subf %1195, %1196 : vector<1x256xf32>
    %cst_415 = arith.constant 2.000000e+00 : f32
    %1198 = vector.broadcast %cst_415 : f32 to vector<1x256xf32>
    %1199 = arith.mulf %1198, %1148 : vector<1x256xf32>
    %1200 = arith.mulf %1199, %1158 : vector<1x256xf32>
    %cst_416 = arith.constant 9.99999974E-5 : f32
    %1201 = vector.broadcast %cst_416 : f32 to vector<1x256xf32>
    %1202 = arith.addf %1200, %1201 : vector<1x256xf32>
    %cst_417 = arith.constant 2.000000e+00 : f32
    %1203 = vector.broadcast %cst_417 : f32 to vector<1x256xf32>
    %1204 = arith.mulf %1203, %1197 : vector<1x256xf32>
    %cst_418 = arith.constant 8.99999984E-4 : f32
    %1205 = vector.broadcast %cst_418 : f32 to vector<1x256xf32>
    %1206 = arith.addf %1204, %1205 : vector<1x256xf32>
    %1207 = arith.mulf %1202, %1206 : vector<1x256xf32>
    %1208 = arith.mulf %1148, %1148 : vector<1x256xf32>
    %1209 = arith.mulf %1158, %1158 : vector<1x256xf32>
    %1210 = arith.addf %1208, %1209 : vector<1x256xf32>
    %cst_419 = arith.constant 9.99999974E-5 : f32
    %1211 = vector.broadcast %cst_419 : f32 to vector<1x256xf32>
    %1212 = arith.addf %1210, %1211 : vector<1x256xf32>
    %1213 = arith.addf %1171, %1184 : vector<1x256xf32>
    %cst_420 = arith.constant 8.99999984E-4 : f32
    %1214 = vector.broadcast %cst_420 : f32 to vector<1x256xf32>
    %1215 = arith.addf %1213, %1214 : vector<1x256xf32>
    %1216 = arith.mulf %1212, %1215 : vector<1x256xf32>
    %1217 = tpu.reciprocal %1216 {approx = true} : vector<1x256xf32> -> vector<1x256xf32>
    %1218 = arith.mulf %1216, %1217 : vector<1x256xf32>
    %cst_421 = arith.constant 2.000000e+00 : f32
    %1219 = vector.broadcast %cst_421 : f32 to vector<1x256xf32>
    %1220 = arith.subf %1219, %1218 : vector<1x256xf32>
    %1221 = arith.mulf %1217, %1220 : vector<1x256xf32>
    %1222 = arith.mulf %1207, %1221 : vector<1x256xf32>
    %cst_422 = arith.constant 1.000000e+00 : f32
    %1223 = vector.broadcast %cst_422 : f32 to vector<1x256xf32>
    %1224 = arith.subf %1223, %1222 : vector<1x256xf32>
    %cst_423 = arith.constant 5.000000e-01 : f32
    %1225 = vector.broadcast %cst_423 : f32 to vector<1x256xf32>
    %1226 = arith.mulf %1224, %1225 : vector<1x256xf32>
    %cst_424 = arith.constant 0.000000e+00 : f32
    %cst_425 = arith.constant 1.000000e+00 : f32
    %1227 = vector.broadcast %cst_424 : f32 to vector<1x256xf32>
    %1228 = arith.maximumf %1227, %1226 : vector<1x256xf32>
    %1229 = vector.broadcast %cst_425 : f32 to vector<1x256xf32>
    %1230 = arith.minimumf %1229, %1228 : vector<1x256xf32>
    %1231 = arith.mulf %908, %1230 : vector<1x256xf32>
    %cst_426 = arith.constant 0.000000e+00 : f32
    %1232 = vector.broadcast %cst_426 : f32 to vector<1x256xf32>
    %1233 = arith.select %37, %1231, %1232 : vector<1x256xi1>, vector<1x256xf32>
    %1234 = vector.shape_cast %1233 : vector<1x256xf32> to vector<1x1x256xf32>
    %cst_427 = arith.constant dense<0.000000e+00> : vector<1xf32>
    %1235 = vector.multi_reduction <add>, %1234, %cst_427 [1, 2] : vector<1x1x256xf32> to vector<1xf32>
    %1236 = vector.shape_cast %1235 : vector<1xf32> to vector<1x1x1xf32>
    %1237 = vector.extract %1236[0, 0, 0] : f32 from vector<1x1x1xf32>
    %1238 = arith.addf %1073, %1237 : f32
    %c0_428 = arith.constant 0 : index
    %c1_429 = arith.constant 1 : index
    %c32_430 = arith.constant 32 : index
    %c0_431 = arith.constant 0 : index
    %1239 = vector.load %arg5[%c0_428, %c1_429, %c32_430, %c0_431] : memref<1x3x48x16xbf16, #tpu.memory_space<vmem>>, vector<1x1x16x16xbf16>
    %1240 = vector.shape_cast %1239 : vector<1x1x16x16xbf16> to vector<16x16xbf16>
    %cst_432 = arith.constant dense<0.000000e+00> : vector<16x256xf32>
    %1241 = tpu.matmul %1240, %885, %cst_432 {dimension_numbers = #tpu.dot_dimension_numbers<[1], [0], [0], [1], [0, 0, 1, 1], [], []>} : vector<16x16xbf16>, vector<16x256xbf16>, vector<16x256xf32> -> vector<16x256xf32>
    %1242 = arith.mulf %1241, %898 : vector<16x256xf32>
    %cst_433 = arith.constant dense<0.000000e+00> : vector<256xf32>
    %1243 = vector.multi_reduction <add>, %1242, %cst_433 [0] : vector<16x256xf32> to vector<256xf32>
    %1244 = vector.shape_cast %1243 : vector<256xf32> to vector<1x256xf32>
    %1245 = vector.extract_strided_slice %43 {offsets = [2, 0], sizes = [1, 256], strides = [1, 1]} : vector<3x256xf32> to vector<1x256xf32>
    %1246 = arith.mulf %1245, %835 : vector<1x256xf32>
    %1247 = arith.mulf %1244, %835 : vector<1x256xf32>
    %1248 = arith.subf %1247, %1246 : vector<1x256xf32>
    %1249 = math.absf %1248 : vector<1x256xf32>
    %cst_434 = arith.constant 1.000000e+00 : f32
    %1250 = vector.broadcast %cst_434 : f32 to vector<1x256xf32>
    %1251 = arith.cmpf olt, %1249, %1250 : vector<1x256xf32>
    %cst_435 = arith.constant 5.000000e-01 : f32
    %1252 = vector.broadcast %cst_435 : f32 to vector<1x256xf32>
    %1253 = arith.mulf %1252, %1249 : vector<1x256xf32>
    %1254 = arith.mulf %1253, %1249 : vector<1x256xf32>
    %cst_436 = arith.constant 5.000000e-01 : f32
    %1255 = vector.broadcast %cst_436 : f32 to vector<1x256xf32>
    %1256 = arith.subf %1249, %1255 : vector<1x256xf32>
    %1257 = arith.select %1251, %1254, %1256 : vector<1x256xi1>, vector<1x256xf32>
    %1258 = arith.mulf %1257, %19 : vector<1x256xf32>
    %1259 = vector.shape_cast %1258 : vector<1x256xf32> to vector<1x1x256xf32>
    %cst_437 = arith.constant dense<0.000000e+00> : vector<1xf32>
    %1260 = vector.multi_reduction <add>, %1259, %cst_437 [1, 2] : vector<1x1x256xf32> to vector<1xf32>
    %1261 = vector.shape_cast %1260 : vector<1xf32> to vector<1x1x1xf32>
    %1262 = vector.extract %1261[0, 0, 0] : f32 from vector<1x1x1xf32>
    %1263 = arith.addf %1098, %1262 : f32
    %c255_i32_438 = arith.constant 255 : i32
    %1264 = tpu.dynamic_rotate %1246 by %c255_i32_438 dim 1 : vector<1x256xf32>, i32 -> vector<1x256xf32>
    %1265 = arith.subf %1264, %1246 : vector<1x256xf32>
    %c255_i32_439 = arith.constant 255 : i32
    %1266 = tpu.dynamic_rotate %1247 by %c255_i32_439 dim 1 : vector<1x256xf32>, i32 -> vector<1x256xf32>
    %1267 = arith.subf %1266, %1247 : vector<1x256xf32>
    %c240_i32_440 = arith.constant 240 : i32
    %1268 = tpu.dynamic_rotate %1246 by %c240_i32_440 dim 1 : vector<1x256xf32>, i32 -> vector<1x256xf32>
    %1269 = arith.subf %1268, %1246 : vector<1x256xf32>
    %c240_i32_441 = arith.constant 240 : i32
    %1270 = tpu.dynamic_rotate %1247 by %c240_i32_441 dim 1 : vector<1x256xf32>, i32 -> vector<1x256xf32>
    %1271 = arith.subf %1270, %1247 : vector<1x256xf32>
    %1272 = arith.subf %1267, %1265 : vector<1x256xf32>
    %1273 = math.absf %1272 : vector<1x256xf32>
    %cst_442 = arith.constant 1.000000e+00 : f32
    %1274 = vector.broadcast %cst_442 : f32 to vector<1x256xf32>
    %1275 = arith.cmpf olt, %1273, %1274 : vector<1x256xf32>
    %cst_443 = arith.constant 5.000000e-01 : f32
    %1276 = vector.broadcast %cst_443 : f32 to vector<1x256xf32>
    %1277 = arith.mulf %1276, %1273 : vector<1x256xf32>
    %1278 = arith.mulf %1277, %1273 : vector<1x256xf32>
    %cst_444 = arith.constant 5.000000e-01 : f32
    %1279 = vector.broadcast %cst_444 : f32 to vector<1x256xf32>
    %1280 = arith.subf %1273, %1279 : vector<1x256xf32>
    %1281 = arith.select %1275, %1278, %1280 : vector<1x256xi1>, vector<1x256xf32>
    %1282 = arith.mulf %1281, %25 : vector<1x256xf32>
    %1283 = vector.shape_cast %1282 : vector<1x256xf32> to vector<1x1x256xf32>
    %cst_445 = arith.constant dense<0.000000e+00> : vector<1xf32>
    %1284 = vector.multi_reduction <add>, %1283, %cst_445 [1, 2] : vector<1x1x256xf32> to vector<1xf32>
    %1285 = vector.shape_cast %1284 : vector<1xf32> to vector<1x1x1xf32>
    %1286 = vector.extract %1285[0, 0, 0] : f32 from vector<1x1x1xf32>
    %1287 = arith.addf %1122, %1286 : f32
    %1288 = arith.subf %1271, %1269 : vector<1x256xf32>
    %1289 = math.absf %1288 : vector<1x256xf32>
    %cst_446 = arith.constant 1.000000e+00 : f32
    %1290 = vector.broadcast %cst_446 : f32 to vector<1x256xf32>
    %1291 = arith.cmpf olt, %1289, %1290 : vector<1x256xf32>
    %cst_447 = arith.constant 5.000000e-01 : f32
    %1292 = vector.broadcast %cst_447 : f32 to vector<1x256xf32>
    %1293 = arith.mulf %1292, %1289 : vector<1x256xf32>
    %1294 = arith.mulf %1293, %1289 : vector<1x256xf32>
    %cst_448 = arith.constant 5.000000e-01 : f32
    %1295 = vector.broadcast %cst_448 : f32 to vector<1x256xf32>
    %1296 = arith.subf %1289, %1295 : vector<1x256xf32>
    %1297 = arith.select %1291, %1294, %1296 : vector<1x256xi1>, vector<1x256xf32>
    %1298 = arith.mulf %1297, %31 : vector<1x256xf32>
    %1299 = vector.shape_cast %1298 : vector<1x256xf32> to vector<1x1x256xf32>
    %cst_449 = arith.constant dense<0.000000e+00> : vector<1xf32>
    %1300 = vector.multi_reduction <add>, %1299, %cst_449 [1, 2] : vector<1x1x256xf32> to vector<1xf32>
    %1301 = vector.shape_cast %1300 : vector<1xf32> to vector<1x1x1xf32>
    %1302 = vector.extract %1301[0, 0, 0] : f32 from vector<1x1x1xf32>
    %1303 = arith.addf %1138, %1302 : f32
    %c255_i32_450 = arith.constant 255 : i32
    %1304 = tpu.dynamic_rotate %1245 by %c255_i32_450 dim 1 : vector<1x256xf32>, i32 -> vector<1x256xf32>
    %1305 = arith.addf %1245, %1304 : vector<1x256xf32>
    %c254_i32_451 = arith.constant 254 : i32
    %1306 = tpu.dynamic_rotate %1245 by %c254_i32_451 dim 1 : vector<1x256xf32>, i32 -> vector<1x256xf32>
    %1307 = arith.addf %1305, %1306 : vector<1x256xf32>
    %c240_i32_452 = arith.constant 240 : i32
    %1308 = tpu.dynamic_rotate %1307 by %c240_i32_452 dim 1 : vector<1x256xf32>, i32 -> vector<1x256xf32>
    %1309 = arith.addf %1307, %1308 : vector<1x256xf32>
    %c224_i32_453 = arith.constant 224 : i32
    %1310 = tpu.dynamic_rotate %1307 by %c224_i32_453 dim 1 : vector<1x256xf32>, i32 -> vector<1x256xf32>
    %1311 = arith.addf %1309, %1310 : vector<1x256xf32>
    %cst_454 = arith.constant 0.111111112 : f32
    %1312 = vector.broadcast %cst_454 : f32 to vector<1x256xf32>
    %1313 = arith.mulf %1311, %1312 : vector<1x256xf32>
    %c255_i32_455 = arith.constant 255 : i32
    %1314 = tpu.dynamic_rotate %1244 by %c255_i32_455 dim 1 : vector<1x256xf32>, i32 -> vector<1x256xf32>
    %1315 = arith.addf %1244, %1314 : vector<1x256xf32>
    %c254_i32_456 = arith.constant 254 : i32
    %1316 = tpu.dynamic_rotate %1244 by %c254_i32_456 dim 1 : vector<1x256xf32>, i32 -> vector<1x256xf32>
    %1317 = arith.addf %1315, %1316 : vector<1x256xf32>
    %c240_i32_457 = arith.constant 240 : i32
    %1318 = tpu.dynamic_rotate %1317 by %c240_i32_457 dim 1 : vector<1x256xf32>, i32 -> vector<1x256xf32>
    %1319 = arith.addf %1317, %1318 : vector<1x256xf32>
    %c224_i32_458 = arith.constant 224 : i32
    %1320 = tpu.dynamic_rotate %1317 by %c224_i32_458 dim 1 : vector<1x256xf32>, i32 -> vector<1x256xf32>
    %1321 = arith.addf %1319, %1320 : vector<1x256xf32>
    %cst_459 = arith.constant 0.111111112 : f32
    %1322 = vector.broadcast %cst_459 : f32 to vector<1x256xf32>
    %1323 = arith.mulf %1321, %1322 : vector<1x256xf32>
    %1324 = arith.mulf %1245, %1245 : vector<1x256xf32>
    %c255_i32_460 = arith.constant 255 : i32
    %1325 = tpu.dynamic_rotate %1324 by %c255_i32_460 dim 1 : vector<1x256xf32>, i32 -> vector<1x256xf32>
    %1326 = arith.addf %1324, %1325 : vector<1x256xf32>
    %c254_i32_461 = arith.constant 254 : i32
    %1327 = tpu.dynamic_rotate %1324 by %c254_i32_461 dim 1 : vector<1x256xf32>, i32 -> vector<1x256xf32>
    %1328 = arith.addf %1326, %1327 : vector<1x256xf32>
    %c240_i32_462 = arith.constant 240 : i32
    %1329 = tpu.dynamic_rotate %1328 by %c240_i32_462 dim 1 : vector<1x256xf32>, i32 -> vector<1x256xf32>
    %1330 = arith.addf %1328, %1329 : vector<1x256xf32>
    %c224_i32_463 = arith.constant 224 : i32
    %1331 = tpu.dynamic_rotate %1328 by %c224_i32_463 dim 1 : vector<1x256xf32>, i32 -> vector<1x256xf32>
    %1332 = arith.addf %1330, %1331 : vector<1x256xf32>
    %cst_464 = arith.constant 0.111111112 : f32
    %1333 = vector.broadcast %cst_464 : f32 to vector<1x256xf32>
    %1334 = arith.mulf %1332, %1333 : vector<1x256xf32>
    %1335 = arith.mulf %1313, %1313 : vector<1x256xf32>
    %1336 = arith.subf %1334, %1335 : vector<1x256xf32>
    %1337 = arith.mulf %1244, %1244 : vector<1x256xf32>
    %c255_i32_465 = arith.constant 255 : i32
    %1338 = tpu.dynamic_rotate %1337 by %c255_i32_465 dim 1 : vector<1x256xf32>, i32 -> vector<1x256xf32>
    %1339 = arith.addf %1337, %1338 : vector<1x256xf32>
    %c254_i32_466 = arith.constant 254 : i32
    %1340 = tpu.dynamic_rotate %1337 by %c254_i32_466 dim 1 : vector<1x256xf32>, i32 -> vector<1x256xf32>
    %1341 = arith.addf %1339, %1340 : vector<1x256xf32>
    %c240_i32_467 = arith.constant 240 : i32
    %1342 = tpu.dynamic_rotate %1341 by %c240_i32_467 dim 1 : vector<1x256xf32>, i32 -> vector<1x256xf32>
    %1343 = arith.addf %1341, %1342 : vector<1x256xf32>
    %c224_i32_468 = arith.constant 224 : i32
    %1344 = tpu.dynamic_rotate %1341 by %c224_i32_468 dim 1 : vector<1x256xf32>, i32 -> vector<1x256xf32>
    %1345 = arith.addf %1343, %1344 : vector<1x256xf32>
    %cst_469 = arith.constant 0.111111112 : f32
    %1346 = vector.broadcast %cst_469 : f32 to vector<1x256xf32>
    %1347 = arith.mulf %1345, %1346 : vector<1x256xf32>
    %1348 = arith.mulf %1323, %1323 : vector<1x256xf32>
    %1349 = arith.subf %1347, %1348 : vector<1x256xf32>
    %1350 = arith.mulf %1245, %1244 : vector<1x256xf32>
    %c255_i32_470 = arith.constant 255 : i32
    %1351 = tpu.dynamic_rotate %1350 by %c255_i32_470 dim 1 : vector<1x256xf32>, i32 -> vector<1x256xf32>
    %1352 = arith.addf %1350, %1351 : vector<1x256xf32>
    %c254_i32_471 = arith.constant 254 : i32
    %1353 = tpu.dynamic_rotate %1350 by %c254_i32_471 dim 1 : vector<1x256xf32>, i32 -> vector<1x256xf32>
    %1354 = arith.addf %1352, %1353 : vector<1x256xf32>
    %c240_i32_472 = arith.constant 240 : i32
    %1355 = tpu.dynamic_rotate %1354 by %c240_i32_472 dim 1 : vector<1x256xf32>, i32 -> vector<1x256xf32>
    %1356 = arith.addf %1354, %1355 : vector<1x256xf32>
    %c224_i32_473 = arith.constant 224 : i32
    %1357 = tpu.dynamic_rotate %1354 by %c224_i32_473 dim 1 : vector<1x256xf32>, i32 -> vector<1x256xf32>
    %1358 = arith.addf %1356, %1357 : vector<1x256xf32>
    %cst_474 = arith.constant 0.111111112 : f32
    %1359 = vector.broadcast %cst_474 : f32 to vector<1x256xf32>
    %1360 = arith.mulf %1358, %1359 : vector<1x256xf32>
    %1361 = arith.mulf %1313, %1323 : vector<1x256xf32>
    %1362 = arith.subf %1360, %1361 : vector<1x256xf32>
    %cst_475 = arith.constant 2.000000e+00 : f32
    %1363 = vector.broadcast %cst_475 : f32 to vector<1x256xf32>
    %1364 = arith.mulf %1363, %1313 : vector<1x256xf32>
    %1365 = arith.mulf %1364, %1323 : vector<1x256xf32>
    %cst_476 = arith.constant 9.99999974E-5 : f32
    %1366 = vector.broadcast %cst_476 : f32 to vector<1x256xf32>
    %1367 = arith.addf %1365, %1366 : vector<1x256xf32>
    %cst_477 = arith.constant 2.000000e+00 : f32
    %1368 = vector.broadcast %cst_477 : f32 to vector<1x256xf32>
    %1369 = arith.mulf %1368, %1362 : vector<1x256xf32>
    %cst_478 = arith.constant 8.99999984E-4 : f32
    %1370 = vector.broadcast %cst_478 : f32 to vector<1x256xf32>
    %1371 = arith.addf %1369, %1370 : vector<1x256xf32>
    %1372 = arith.mulf %1367, %1371 : vector<1x256xf32>
    %1373 = arith.mulf %1313, %1313 : vector<1x256xf32>
    %1374 = arith.mulf %1323, %1323 : vector<1x256xf32>
    %1375 = arith.addf %1373, %1374 : vector<1x256xf32>
    %cst_479 = arith.constant 9.99999974E-5 : f32
    %1376 = vector.broadcast %cst_479 : f32 to vector<1x256xf32>
    %1377 = arith.addf %1375, %1376 : vector<1x256xf32>
    %1378 = arith.addf %1336, %1349 : vector<1x256xf32>
    %cst_480 = arith.constant 8.99999984E-4 : f32
    %1379 = vector.broadcast %cst_480 : f32 to vector<1x256xf32>
    %1380 = arith.addf %1378, %1379 : vector<1x256xf32>
    %1381 = arith.mulf %1377, %1380 : vector<1x256xf32>
    %1382 = tpu.reciprocal %1381 {approx = true} : vector<1x256xf32> -> vector<1x256xf32>
    %1383 = arith.mulf %1381, %1382 : vector<1x256xf32>
    %cst_481 = arith.constant 2.000000e+00 : f32
    %1384 = vector.broadcast %cst_481 : f32 to vector<1x256xf32>
    %1385 = arith.subf %1384, %1383 : vector<1x256xf32>
    %1386 = arith.mulf %1382, %1385 : vector<1x256xf32>
    %1387 = arith.mulf %1372, %1386 : vector<1x256xf32>
    %cst_482 = arith.constant 1.000000e+00 : f32
    %1388 = vector.broadcast %cst_482 : f32 to vector<1x256xf32>
    %1389 = arith.subf %1388, %1387 : vector<1x256xf32>
    %cst_483 = arith.constant 5.000000e-01 : f32
    %1390 = vector.broadcast %cst_483 : f32 to vector<1x256xf32>
    %1391 = arith.mulf %1389, %1390 : vector<1x256xf32>
    %cst_484 = arith.constant 0.000000e+00 : f32
    %cst_485 = arith.constant 1.000000e+00 : f32
    %1392 = vector.broadcast %cst_484 : f32 to vector<1x256xf32>
    %1393 = arith.maximumf %1392, %1391 : vector<1x256xf32>
    %1394 = vector.broadcast %cst_485 : f32 to vector<1x256xf32>
    %1395 = arith.minimumf %1394, %1393 : vector<1x256xf32>
    %1396 = arith.mulf %908, %1395 : vector<1x256xf32>
    %cst_486 = arith.constant 0.000000e+00 : f32
    %1397 = vector.broadcast %cst_486 : f32 to vector<1x256xf32>
    %1398 = arith.select %37, %1396, %1397 : vector<1x256xi1>, vector<1x256xf32>
    %1399 = vector.shape_cast %1398 : vector<1x256xf32> to vector<1x1x256xf32>
    %cst_487 = arith.constant dense<0.000000e+00> : vector<1xf32>
    %1400 = vector.multi_reduction <add>, %1399, %cst_487 [1, 2] : vector<1x1x256xf32> to vector<1xf32>
    %1401 = vector.shape_cast %1400 : vector<1xf32> to vector<1x1x1xf32>
    %1402 = vector.extract %1401[0, 0, 0] : f32 from vector<1x1x1xf32>
    %1403 = arith.addf %1238, %1402 : f32
    %cst_488 = arith.constant 2.000000e+00 : f32
    %1404 = vector.broadcast %cst_488 : f32 to vector<1x256xf32>
    %1405 = arith.mulf %835, %1404 : vector<1x256xf32>
    %1406 = arith.addf %726, %1405 : vector<1x256xf32>
    %c3_i32_489 = arith.constant 3 : i32
    %1407 = arith.muli %arg0, %c3_i32_489 : i32
    %c2_i32_490 = arith.constant 2 : i32
    %1408 = arith.addi %1407, %c2_i32_490 : i32
    %c16_i32_491 = arith.constant 16 : i32
    %1409 = arith.muli %1408, %c16_i32_491 : i32
    %c0_i32_492 = arith.constant 0 : i32
    %1410 = arith.addi %1409, %c0_i32_492 : i32
    %c0_i32_493 = arith.constant 0 : i32
    %1411 = arith.addi %1410, %c0_i32_493 : i32
    %1412 = arith.index_cast %1411 : i32 to index
    %1413 = memref.load %arg2[%1412] : memref<96xf32, #tpu.memory_space<smem>>
    %1414 = vector.broadcast %1413 : f32 to vector<1x256xf32>
    %1415 = arith.mulf %1414, %12 : vector<1x256xf32>
    %c0_i32_494 = arith.constant 0 : i32
    %1416 = arith.addi %1409, %c0_i32_494 : i32
    %c1_i32_495 = arith.constant 1 : i32
    %1417 = arith.addi %1416, %c1_i32_495 : i32
    %1418 = arith.index_cast %1417 : i32 to index
    %1419 = memref.load %arg2[%1418] : memref<96xf32, #tpu.memory_space<smem>>
    %1420 = vector.broadcast %1419 : f32 to vector<1x256xf32>
    %1421 = arith.mulf %1420, %15 : vector<1x256xf32>
    %1422 = arith.addf %1415, %1421 : vector<1x256xf32>
    %c0_i32_496 = arith.constant 0 : i32
    %1423 = arith.addi %1409, %c0_i32_496 : i32
    %c2_i32_497 = arith.constant 2 : i32
    %1424 = arith.addi %1423, %c2_i32_497 : i32
    %1425 = arith.index_cast %1424 : i32 to index
    %1426 = memref.load %arg2[%1425] : memref<96xf32, #tpu.memory_space<smem>>
    %1427 = vector.broadcast %1426 : f32 to vector<1x256xf32>
    %1428 = arith.addf %1422, %1427 : vector<1x256xf32>
    %1429 = arith.mulf %40, %1428 : vector<1x256xf32>
    %c0_i32_498 = arith.constant 0 : i32
    %1430 = arith.addi %1409, %c0_i32_498 : i32
    %c3_i32_499 = arith.constant 3 : i32
    %1431 = arith.addi %1430, %c3_i32_499 : i32
    %1432 = arith.index_cast %1431 : i32 to index
    %1433 = memref.load %arg2[%1432] : memref<96xf32, #tpu.memory_space<smem>>
    %1434 = vector.broadcast %1433 : f32 to vector<1x256xf32>
    %1435 = arith.addf %1429, %1434 : vector<1x256xf32>
    %c4_i32_500 = arith.constant 4 : i32
    %1436 = arith.addi %1409, %c4_i32_500 : i32
    %c0_i32_501 = arith.constant 0 : i32
    %1437 = arith.addi %1436, %c0_i32_501 : i32
    %1438 = arith.index_cast %1437 : i32 to index
    %1439 = memref.load %arg2[%1438] : memref<96xf32, #tpu.memory_space<smem>>
    %1440 = vector.broadcast %1439 : f32 to vector<1x256xf32>
    %1441 = arith.mulf %1440, %12 : vector<1x256xf32>
    %c4_i32_502 = arith.constant 4 : i32
    %1442 = arith.addi %1409, %c4_i32_502 : i32
    %c1_i32_503 = arith.constant 1 : i32
    %1443 = arith.addi %1442, %c1_i32_503 : i32
    %1444 = arith.index_cast %1443 : i32 to index
    %1445 = memref.load %arg2[%1444] : memref<96xf32, #tpu.memory_space<smem>>
    %1446 = vector.broadcast %1445 : f32 to vector<1x256xf32>
    %1447 = arith.mulf %1446, %15 : vector<1x256xf32>
    %1448 = arith.addf %1441, %1447 : vector<1x256xf32>
    %c4_i32_504 = arith.constant 4 : i32
    %1449 = arith.addi %1409, %c4_i32_504 : i32
    %c2_i32_505 = arith.constant 2 : i32
    %1450 = arith.addi %1449, %c2_i32_505 : i32
    %1451 = arith.index_cast %1450 : i32 to index
    %1452 = memref.load %arg2[%1451] : memref<96xf32, #tpu.memory_space<smem>>
    %1453 = vector.broadcast %1452 : f32 to vector<1x256xf32>
    %1454 = arith.addf %1448, %1453 : vector<1x256xf32>
    %1455 = arith.mulf %40, %1454 : vector<1x256xf32>
    %c4_i32_506 = arith.constant 4 : i32
    %1456 = arith.addi %1409, %c4_i32_506 : i32
    %c3_i32_507 = arith.constant 3 : i32
    %1457 = arith.addi %1456, %c3_i32_507 : i32
    %1458 = arith.index_cast %1457 : i32 to index
    %1459 = memref.load %arg2[%1458] : memref<96xf32, #tpu.memory_space<smem>>
    %1460 = vector.broadcast %1459 : f32 to vector<1x256xf32>
    %1461 = arith.addf %1455, %1460 : vector<1x256xf32>
    %c8_i32_508 = arith.constant 8 : i32
    %1462 = arith.addi %1409, %c8_i32_508 : i32
    %c0_i32_509 = arith.constant 0 : i32
    %1463 = arith.addi %1462, %c0_i32_509 : i32
    %1464 = arith.index_cast %1463 : i32 to index
    %1465 = memref.load %arg2[%1464] : memref<96xf32, #tpu.memory_space<smem>>
    %1466 = vector.broadcast %1465 : f32 to vector<1x256xf32>
    %1467 = arith.mulf %1466, %12 : vector<1x256xf32>
    %c8_i32_510 = arith.constant 8 : i32
    %1468 = arith.addi %1409, %c8_i32_510 : i32
    %c1_i32_511 = arith.constant 1 : i32
    %1469 = arith.addi %1468, %c1_i32_511 : i32
    %1470 = arith.index_cast %1469 : i32 to index
    %1471 = memref.load %arg2[%1470] : memref<96xf32, #tpu.memory_space<smem>>
    %1472 = vector.broadcast %1471 : f32 to vector<1x256xf32>
    %1473 = arith.mulf %1472, %15 : vector<1x256xf32>
    %1474 = arith.addf %1467, %1473 : vector<1x256xf32>
    %c8_i32_512 = arith.constant 8 : i32
    %1475 = arith.addi %1409, %c8_i32_512 : i32
    %c2_i32_513 = arith.constant 2 : i32
    %1476 = arith.addi %1475, %c2_i32_513 : i32
    %1477 = arith.index_cast %1476 : i32 to index
    %1478 = memref.load %arg2[%1477] : memref<96xf32, #tpu.memory_space<smem>>
    %1479 = vector.broadcast %1478 : f32 to vector<1x256xf32>
    %1480 = arith.addf %1474, %1479 : vector<1x256xf32>
    %1481 = arith.mulf %40, %1480 : vector<1x256xf32>
    %c8_i32_514 = arith.constant 8 : i32
    %1482 = arith.addi %1409, %c8_i32_514 : i32
    %c3_i32_515 = arith.constant 3 : i32
    %1483 = arith.addi %1482, %c3_i32_515 : i32
    %1484 = arith.index_cast %1483 : i32 to index
    %1485 = memref.load %arg2[%1484] : memref<96xf32, #tpu.memory_space<smem>>
    %1486 = vector.broadcast %1485 : f32 to vector<1x256xf32>
    %1487 = arith.addf %1481, %1486 : vector<1x256xf32>
    %cst_516 = arith.constant 1.000000e-10 : f32
    %1488 = vector.broadcast %cst_516 : f32 to vector<1x256xf32>
    %1489 = arith.addf %1487, %1488 : vector<1x256xf32>
    %1490 = tpu.reciprocal %1489 {approx = true} : vector<1x256xf32> -> vector<1x256xf32>
    %1491 = arith.mulf %1489, %1490 : vector<1x256xf32>
    %cst_517 = arith.constant 2.000000e+00 : f32
    %1492 = vector.broadcast %cst_517 : f32 to vector<1x256xf32>
    %1493 = arith.subf %1492, %1491 : vector<1x256xf32>
    %1494 = arith.mulf %1490, %1493 : vector<1x256xf32>
    %1495 = arith.mulf %1435, %1494 : vector<1x256xf32>
    %1496 = arith.mulf %1461, %1494 : vector<1x256xf32>
    %1497 = math.floor %1495 : vector<1x256xf32>
    %1498 = math.floor %1496 : vector<1x256xf32>
    %cst_518 = arith.constant 0.000000e+00 : f32
    %1499 = vector.broadcast %cst_518 : f32 to vector<1x256xf32>
    %1500 = arith.cmpf oge, %1497, %1499 : vector<1x256xf32>
    %cst_519 = arith.constant 1.000000e+00 : f32
    %1501 = vector.broadcast %cst_519 : f32 to vector<1x256xf32>
    %1502 = arith.addf %1497, %1501 : vector<1x256xf32>
    %cst_520 = arith.constant 1.500000e+01 : f32
    %1503 = vector.broadcast %cst_520 : f32 to vector<1x256xf32>
    %1504 = arith.cmpf ole, %1502, %1503 : vector<1x256xf32>
    %1505 = arith.andi %1500, %1504 : vector<1x256xi1>
    %cst_521 = arith.constant 0.000000e+00 : f32
    %1506 = vector.broadcast %cst_521 : f32 to vector<1x256xf32>
    %1507 = arith.cmpf oge, %1498, %1506 : vector<1x256xf32>
    %1508 = arith.andi %1505, %1507 : vector<1x256xi1>
    %cst_522 = arith.constant 1.000000e+00 : f32
    %1509 = vector.broadcast %cst_522 : f32 to vector<1x256xf32>
    %1510 = arith.addf %1498, %1509 : vector<1x256xf32>
    %cst_523 = arith.constant 1.500000e+01 : f32
    %1511 = vector.broadcast %cst_523 : f32 to vector<1x256xf32>
    %1512 = arith.cmpf ole, %1510, %1511 : vector<1x256xf32>
    %1513 = arith.andi %1508, %1512 : vector<1x256xi1>
    %1514 = arith.extui %1513 : vector<1x256xi1> to vector<1x256xi32>
    %1515 = arith.sitofp %1514 : vector<1x256xi32> to vector<1x256xf32>
    %cst_524 = arith.constant 0.000000e+00 : f32
    %cst_525 = arith.constant 1.500000e+01 : f32
    %1516 = vector.broadcast %cst_524 : f32 to vector<1x256xf32>
    %1517 = arith.maximumf %1516, %1495 : vector<1x256xf32>
    %1518 = vector.broadcast %cst_525 : f32 to vector<1x256xf32>
    %1519 = arith.minimumf %1518, %1517 : vector<1x256xf32>
    %cst_526 = arith.constant 0.000000e+00 : f32
    %cst_527 = arith.constant 1.500000e+01 : f32
    %1520 = vector.broadcast %cst_526 : f32 to vector<1x256xf32>
    %1521 = arith.maximumf %1520, %1496 : vector<1x256xf32>
    %1522 = vector.broadcast %cst_527 : f32 to vector<1x256xf32>
    %1523 = arith.minimumf %1522, %1521 : vector<1x256xf32>
    %cst_528 = arith.constant 0.000000e+00 : f32
    %cst_529 = arith.constant 1.500000e+01 : f32
    %1524 = vector.broadcast %cst_528 : f32 to vector<1x256xf32>
    %1525 = arith.maximumf %1524, %1497 : vector<1x256xf32>
    %1526 = vector.broadcast %cst_529 : f32 to vector<1x256xf32>
    %1527 = arith.minimumf %1526, %1525 : vector<1x256xf32>
    %cst_530 = arith.constant 1.000000e+00 : f32
    %1528 = vector.broadcast %cst_530 : f32 to vector<1x256xf32>
    %1529 = arith.addf %1497, %1528 : vector<1x256xf32>
    %cst_531 = arith.constant 0.000000e+00 : f32
    %cst_532 = arith.constant 1.500000e+01 : f32
    %1530 = vector.broadcast %cst_531 : f32 to vector<1x256xf32>
    %1531 = arith.maximumf %1530, %1529 : vector<1x256xf32>
    %1532 = vector.broadcast %cst_532 : f32 to vector<1x256xf32>
    %1533 = arith.minimumf %1532, %1531 : vector<1x256xf32>
    %cst_533 = arith.constant 0.000000e+00 : f32
    %cst_534 = arith.constant 1.500000e+01 : f32
    %1534 = vector.broadcast %cst_533 : f32 to vector<1x256xf32>
    %1535 = arith.maximumf %1534, %1498 : vector<1x256xf32>
    %1536 = vector.broadcast %cst_534 : f32 to vector<1x256xf32>
    %1537 = arith.minimumf %1536, %1535 : vector<1x256xf32>
    %cst_535 = arith.constant 1.000000e+00 : f32
    %1538 = vector.broadcast %cst_535 : f32 to vector<1x256xf32>
    %1539 = arith.addf %1498, %1538 : vector<1x256xf32>
    %cst_536 = arith.constant 0.000000e+00 : f32
    %cst_537 = arith.constant 1.500000e+01 : f32
    %1540 = vector.broadcast %cst_536 : f32 to vector<1x256xf32>
    %1541 = arith.maximumf %1540, %1539 : vector<1x256xf32>
    %1542 = vector.broadcast %cst_537 : f32 to vector<1x256xf32>
    %1543 = arith.minimumf %1542, %1541 : vector<1x256xf32>
    %1544 = arith.subf %1533, %1519 : vector<1x256xf32>
    %1545 = arith.subf %1519, %1527 : vector<1x256xf32>
    %1546 = arith.subf %1543, %1523 : vector<1x256xf32>
    %1547 = arith.subf %1523, %1537 : vector<1x256xf32>
    %1548 = arith.fptosi %1527 : vector<1x256xf32> to vector<1x256xi32>
    %1549 = arith.fptosi %1533 : vector<1x256xf32> to vector<1x256xi32>
    %1550 = arith.fptosi %1537 : vector<1x256xf32> to vector<1x256xi32>
    %1551 = arith.fptosi %1543 : vector<1x256xf32> to vector<1x256xi32>
    %1552 = vector.broadcast %1548 : vector<1x256xi32> to vector<16x256xi32>
    %1553 = arith.cmpi eq, %45, %1552 : vector<16x256xi32>
    %cst_538 = arith.constant 0.000000e+00 : f32
    %1554 = vector.shape_cast %1544 : vector<1x256xf32> to vector<1x256xf32>
    %1555 = vector.broadcast %1554 : vector<1x256xf32> to vector<16x256xf32>
    %1556 = vector.broadcast %cst_538 : f32 to vector<16x256xf32>
    %1557 = arith.select %1553, %1555, %1556 : vector<16x256xi1>, vector<16x256xf32>
    %1558 = vector.broadcast %1549 : vector<1x256xi32> to vector<16x256xi32>
    %1559 = arith.cmpi eq, %45, %1558 : vector<16x256xi32>
    %cst_539 = arith.constant 0.000000e+00 : f32
    %1560 = vector.shape_cast %1545 : vector<1x256xf32> to vector<1x256xf32>
    %1561 = vector.broadcast %1560 : vector<1x256xf32> to vector<16x256xf32>
    %1562 = vector.broadcast %cst_539 : f32 to vector<16x256xf32>
    %1563 = arith.select %1559, %1561, %1562 : vector<16x256xi1>, vector<16x256xf32>
    %1564 = arith.addf %1557, %1563 : vector<16x256xf32>
    %1565 = arith.truncf %1564 : vector<16x256xf32> to vector<16x256xbf16>
    %1566 = vector.broadcast %1550 : vector<1x256xi32> to vector<16x256xi32>
    %1567 = arith.cmpi eq, %44, %1566 : vector<16x256xi32>
    %cst_540 = arith.constant 0.000000e+00 : f32
    %1568 = vector.shape_cast %1546 : vector<1x256xf32> to vector<1x256xf32>
    %1569 = vector.broadcast %1568 : vector<1x256xf32> to vector<16x256xf32>
    %1570 = vector.broadcast %cst_540 : f32 to vector<16x256xf32>
    %1571 = arith.select %1567, %1569, %1570 : vector<16x256xi1>, vector<16x256xf32>
    %1572 = vector.broadcast %1551 : vector<1x256xi32> to vector<16x256xi32>
    %1573 = arith.cmpi eq, %44, %1572 : vector<16x256xi32>
    %cst_541 = arith.constant 0.000000e+00 : f32
    %1574 = vector.shape_cast %1547 : vector<1x256xf32> to vector<1x256xf32>
    %1575 = vector.broadcast %1574 : vector<1x256xf32> to vector<16x256xf32>
    %1576 = vector.broadcast %cst_541 : f32 to vector<16x256xf32>
    %1577 = arith.select %1573, %1575, %1576 : vector<16x256xi1>, vector<16x256xf32>
    %1578 = arith.addf %1571, %1577 : vector<16x256xf32>
    %c0_542 = arith.constant 0 : index
    %c2 = arith.constant 2 : index
    %c0_543 = arith.constant 0 : index
    %c0_544 = arith.constant 0 : index
    %1579 = vector.load %arg5[%c0_542, %c2, %c0_543, %c0_544] : memref<1x3x48x16xbf16, #tpu.memory_space<vmem>>, vector<1x1x16x16xbf16>
    %1580 = vector.shape_cast %1579 : vector<1x1x16x16xbf16> to vector<16x16xbf16>
    %cst_545 = arith.constant dense<0.000000e+00> : vector<16x256xf32>
    %1581 = tpu.matmul %1580, %1565, %cst_545 {dimension_numbers = #tpu.dot_dimension_numbers<[1], [0], [0], [1], [0, 0, 1, 1], [], []>} : vector<16x16xbf16>, vector<16x256xbf16>, vector<16x256xf32> -> vector<16x256xf32>
    %1582 = arith.mulf %1581, %1578 : vector<16x256xf32>
    %cst_546 = arith.constant dense<0.000000e+00> : vector<256xf32>
    %1583 = vector.multi_reduction <add>, %1582, %cst_546 [0] : vector<16x256xf32> to vector<256xf32>
    %1584 = vector.shape_cast %1583 : vector<256xf32> to vector<1x256xf32>
    %1585 = vector.extract_strided_slice %43 {offsets = [0, 0], sizes = [1, 256], strides = [1, 1]} : vector<3x256xf32> to vector<1x256xf32>
    %1586 = arith.mulf %1585, %1515 : vector<1x256xf32>
    %1587 = arith.mulf %1584, %1515 : vector<1x256xf32>
    %1588 = arith.subf %1587, %1586 : vector<1x256xf32>
    %1589 = math.absf %1588 : vector<1x256xf32>
    %cst_547 = arith.constant 1.000000e+00 : f32
    %1590 = vector.broadcast %cst_547 : f32 to vector<1x256xf32>
    %1591 = arith.cmpf olt, %1589, %1590 : vector<1x256xf32>
    %cst_548 = arith.constant 5.000000e-01 : f32
    %1592 = vector.broadcast %cst_548 : f32 to vector<1x256xf32>
    %1593 = arith.mulf %1592, %1589 : vector<1x256xf32>
    %1594 = arith.mulf %1593, %1589 : vector<1x256xf32>
    %cst_549 = arith.constant 5.000000e-01 : f32
    %1595 = vector.broadcast %cst_549 : f32 to vector<1x256xf32>
    %1596 = arith.subf %1589, %1595 : vector<1x256xf32>
    %1597 = arith.select %1591, %1594, %1596 : vector<1x256xi1>, vector<1x256xf32>
    %1598 = arith.mulf %1597, %19 : vector<1x256xf32>
    %1599 = vector.shape_cast %1598 : vector<1x256xf32> to vector<1x1x256xf32>
    %cst_550 = arith.constant dense<0.000000e+00> : vector<1xf32>
    %1600 = vector.multi_reduction <add>, %1599, %cst_550 [1, 2] : vector<1x1x256xf32> to vector<1xf32>
    %1601 = vector.shape_cast %1600 : vector<1xf32> to vector<1x1x1xf32>
    %1602 = vector.extract %1601[0, 0, 0] : f32 from vector<1x1x1xf32>
    %cst_551 = arith.constant 0.000000e+00 : f32
    %1603 = arith.addf %cst_551, %1602 : f32
    %c255_i32_552 = arith.constant 255 : i32
    %1604 = tpu.dynamic_rotate %1586 by %c255_i32_552 dim 1 : vector<1x256xf32>, i32 -> vector<1x256xf32>
    %1605 = arith.subf %1604, %1586 : vector<1x256xf32>
    %c255_i32_553 = arith.constant 255 : i32
    %1606 = tpu.dynamic_rotate %1587 by %c255_i32_553 dim 1 : vector<1x256xf32>, i32 -> vector<1x256xf32>
    %1607 = arith.subf %1606, %1587 : vector<1x256xf32>
    %c240_i32_554 = arith.constant 240 : i32
    %1608 = tpu.dynamic_rotate %1586 by %c240_i32_554 dim 1 : vector<1x256xf32>, i32 -> vector<1x256xf32>
    %1609 = arith.subf %1608, %1586 : vector<1x256xf32>
    %c240_i32_555 = arith.constant 240 : i32
    %1610 = tpu.dynamic_rotate %1587 by %c240_i32_555 dim 1 : vector<1x256xf32>, i32 -> vector<1x256xf32>
    %1611 = arith.subf %1610, %1587 : vector<1x256xf32>
    %1612 = arith.subf %1607, %1605 : vector<1x256xf32>
    %1613 = math.absf %1612 : vector<1x256xf32>
    %cst_556 = arith.constant 1.000000e+00 : f32
    %1614 = vector.broadcast %cst_556 : f32 to vector<1x256xf32>
    %1615 = arith.cmpf olt, %1613, %1614 : vector<1x256xf32>
    %cst_557 = arith.constant 5.000000e-01 : f32
    %1616 = vector.broadcast %cst_557 : f32 to vector<1x256xf32>
    %1617 = arith.mulf %1616, %1613 : vector<1x256xf32>
    %1618 = arith.mulf %1617, %1613 : vector<1x256xf32>
    %cst_558 = arith.constant 5.000000e-01 : f32
    %1619 = vector.broadcast %cst_558 : f32 to vector<1x256xf32>
    %1620 = arith.subf %1613, %1619 : vector<1x256xf32>
    %1621 = arith.select %1615, %1618, %1620 : vector<1x256xi1>, vector<1x256xf32>
    %1622 = arith.mulf %1621, %25 : vector<1x256xf32>
    %1623 = vector.shape_cast %1622 : vector<1x256xf32> to vector<1x1x256xf32>
    %cst_559 = arith.constant dense<0.000000e+00> : vector<1xf32>
    %1624 = vector.multi_reduction <add>, %1623, %cst_559 [1, 2] : vector<1x1x256xf32> to vector<1xf32>
    %1625 = vector.shape_cast %1624 : vector<1xf32> to vector<1x1x1xf32>
    %1626 = vector.extract %1625[0, 0, 0] : f32 from vector<1x1x1xf32>
    %cst_560 = arith.constant 0.000000e+00 : f32
    %1627 = arith.addf %cst_560, %1626 : f32
    %1628 = arith.subf %1611, %1609 : vector<1x256xf32>
    %1629 = math.absf %1628 : vector<1x256xf32>
    %cst_561 = arith.constant 1.000000e+00 : f32
    %1630 = vector.broadcast %cst_561 : f32 to vector<1x256xf32>
    %1631 = arith.cmpf olt, %1629, %1630 : vector<1x256xf32>
    %cst_562 = arith.constant 5.000000e-01 : f32
    %1632 = vector.broadcast %cst_562 : f32 to vector<1x256xf32>
    %1633 = arith.mulf %1632, %1629 : vector<1x256xf32>
    %1634 = arith.mulf %1633, %1629 : vector<1x256xf32>
    %cst_563 = arith.constant 5.000000e-01 : f32
    %1635 = vector.broadcast %cst_563 : f32 to vector<1x256xf32>
    %1636 = arith.subf %1629, %1635 : vector<1x256xf32>
    %1637 = arith.select %1631, %1634, %1636 : vector<1x256xi1>, vector<1x256xf32>
    %1638 = arith.mulf %1637, %31 : vector<1x256xf32>
    %1639 = vector.shape_cast %1638 : vector<1x256xf32> to vector<1x1x256xf32>
    %cst_564 = arith.constant dense<0.000000e+00> : vector<1xf32>
    %1640 = vector.multi_reduction <add>, %1639, %cst_564 [1, 2] : vector<1x1x256xf32> to vector<1xf32>
    %1641 = vector.shape_cast %1640 : vector<1xf32> to vector<1x1x1xf32>
    %1642 = vector.extract %1641[0, 0, 0] : f32 from vector<1x1x1xf32>
    %cst_565 = arith.constant 0.000000e+00 : f32
    %1643 = arith.addf %cst_565, %1642 : f32
    %c0_566 = arith.constant 0 : index
    %c2_567 = arith.constant 2 : index
    %c16_568 = arith.constant 16 : index
    %c0_569 = arith.constant 0 : index
    %1644 = vector.load %arg5[%c0_566, %c2_567, %c16_568, %c0_569] : memref<1x3x48x16xbf16, #tpu.memory_space<vmem>>, vector<1x1x16x16xbf16>
    %1645 = vector.shape_cast %1644 : vector<1x1x16x16xbf16> to vector<16x16xbf16>
    %cst_570 = arith.constant dense<0.000000e+00> : vector<16x256xf32>
    %1646 = tpu.matmul %1645, %1565, %cst_570 {dimension_numbers = #tpu.dot_dimension_numbers<[1], [0], [0], [1], [0, 0, 1, 1], [], []>} : vector<16x16xbf16>, vector<16x256xbf16>, vector<16x256xf32> -> vector<16x256xf32>
    %1647 = arith.mulf %1646, %1578 : vector<16x256xf32>
    %cst_571 = arith.constant dense<0.000000e+00> : vector<256xf32>
    %1648 = vector.multi_reduction <add>, %1647, %cst_571 [0] : vector<16x256xf32> to vector<256xf32>
    %1649 = vector.shape_cast %1648 : vector<256xf32> to vector<1x256xf32>
    %1650 = vector.extract_strided_slice %43 {offsets = [1, 0], sizes = [1, 256], strides = [1, 1]} : vector<3x256xf32> to vector<1x256xf32>
    %1651 = arith.mulf %1650, %1515 : vector<1x256xf32>
    %1652 = arith.mulf %1649, %1515 : vector<1x256xf32>
    %1653 = arith.subf %1652, %1651 : vector<1x256xf32>
    %1654 = math.absf %1653 : vector<1x256xf32>
    %cst_572 = arith.constant 1.000000e+00 : f32
    %1655 = vector.broadcast %cst_572 : f32 to vector<1x256xf32>
    %1656 = arith.cmpf olt, %1654, %1655 : vector<1x256xf32>
    %cst_573 = arith.constant 5.000000e-01 : f32
    %1657 = vector.broadcast %cst_573 : f32 to vector<1x256xf32>
    %1658 = arith.mulf %1657, %1654 : vector<1x256xf32>
    %1659 = arith.mulf %1658, %1654 : vector<1x256xf32>
    %cst_574 = arith.constant 5.000000e-01 : f32
    %1660 = vector.broadcast %cst_574 : f32 to vector<1x256xf32>
    %1661 = arith.subf %1654, %1660 : vector<1x256xf32>
    %1662 = arith.select %1656, %1659, %1661 : vector<1x256xi1>, vector<1x256xf32>
    %1663 = arith.mulf %1662, %19 : vector<1x256xf32>
    %1664 = vector.shape_cast %1663 : vector<1x256xf32> to vector<1x1x256xf32>
    %cst_575 = arith.constant dense<0.000000e+00> : vector<1xf32>
    %1665 = vector.multi_reduction <add>, %1664, %cst_575 [1, 2] : vector<1x1x256xf32> to vector<1xf32>
    %1666 = vector.shape_cast %1665 : vector<1xf32> to vector<1x1x1xf32>
    %1667 = vector.extract %1666[0, 0, 0] : f32 from vector<1x1x1xf32>
    %1668 = arith.addf %1603, %1667 : f32
    %c255_i32_576 = arith.constant 255 : i32
    %1669 = tpu.dynamic_rotate %1651 by %c255_i32_576 dim 1 : vector<1x256xf32>, i32 -> vector<1x256xf32>
    %1670 = arith.subf %1669, %1651 : vector<1x256xf32>
    %c255_i32_577 = arith.constant 255 : i32
    %1671 = tpu.dynamic_rotate %1652 by %c255_i32_577 dim 1 : vector<1x256xf32>, i32 -> vector<1x256xf32>
    %1672 = arith.subf %1671, %1652 : vector<1x256xf32>
    %c240_i32_578 = arith.constant 240 : i32
    %1673 = tpu.dynamic_rotate %1651 by %c240_i32_578 dim 1 : vector<1x256xf32>, i32 -> vector<1x256xf32>
    %1674 = arith.subf %1673, %1651 : vector<1x256xf32>
    %c240_i32_579 = arith.constant 240 : i32
    %1675 = tpu.dynamic_rotate %1652 by %c240_i32_579 dim 1 : vector<1x256xf32>, i32 -> vector<1x256xf32>
    %1676 = arith.subf %1675, %1652 : vector<1x256xf32>
    %1677 = arith.subf %1672, %1670 : vector<1x256xf32>
    %1678 = math.absf %1677 : vector<1x256xf32>
    %cst_580 = arith.constant 1.000000e+00 : f32
    %1679 = vector.broadcast %cst_580 : f32 to vector<1x256xf32>
    %1680 = arith.cmpf olt, %1678, %1679 : vector<1x256xf32>
    %cst_581 = arith.constant 5.000000e-01 : f32
    %1681 = vector.broadcast %cst_581 : f32 to vector<1x256xf32>
    %1682 = arith.mulf %1681, %1678 : vector<1x256xf32>
    %1683 = arith.mulf %1682, %1678 : vector<1x256xf32>
    %cst_582 = arith.constant 5.000000e-01 : f32
    %1684 = vector.broadcast %cst_582 : f32 to vector<1x256xf32>
    %1685 = arith.subf %1678, %1684 : vector<1x256xf32>
    %1686 = arith.select %1680, %1683, %1685 : vector<1x256xi1>, vector<1x256xf32>
    %1687 = arith.mulf %1686, %25 : vector<1x256xf32>
    %1688 = vector.shape_cast %1687 : vector<1x256xf32> to vector<1x1x256xf32>
    %cst_583 = arith.constant dense<0.000000e+00> : vector<1xf32>
    %1689 = vector.multi_reduction <add>, %1688, %cst_583 [1, 2] : vector<1x1x256xf32> to vector<1xf32>
    %1690 = vector.shape_cast %1689 : vector<1xf32> to vector<1x1x1xf32>
    %1691 = vector.extract %1690[0, 0, 0] : f32 from vector<1x1x1xf32>
    %1692 = arith.addf %1627, %1691 : f32
    %1693 = arith.subf %1676, %1674 : vector<1x256xf32>
    %1694 = math.absf %1693 : vector<1x256xf32>
    %cst_584 = arith.constant 1.000000e+00 : f32
    %1695 = vector.broadcast %cst_584 : f32 to vector<1x256xf32>
    %1696 = arith.cmpf olt, %1694, %1695 : vector<1x256xf32>
    %cst_585 = arith.constant 5.000000e-01 : f32
    %1697 = vector.broadcast %cst_585 : f32 to vector<1x256xf32>
    %1698 = arith.mulf %1697, %1694 : vector<1x256xf32>
    %1699 = arith.mulf %1698, %1694 : vector<1x256xf32>
    %cst_586 = arith.constant 5.000000e-01 : f32
    %1700 = vector.broadcast %cst_586 : f32 to vector<1x256xf32>
    %1701 = arith.subf %1694, %1700 : vector<1x256xf32>
    %1702 = arith.select %1696, %1699, %1701 : vector<1x256xi1>, vector<1x256xf32>
    %1703 = arith.mulf %1702, %31 : vector<1x256xf32>
    %1704 = vector.shape_cast %1703 : vector<1x256xf32> to vector<1x1x256xf32>
    %cst_587 = arith.constant dense<0.000000e+00> : vector<1xf32>
    %1705 = vector.multi_reduction <add>, %1704, %cst_587 [1, 2] : vector<1x1x256xf32> to vector<1xf32>
    %1706 = vector.shape_cast %1705 : vector<1xf32> to vector<1x1x1xf32>
    %1707 = vector.extract %1706[0, 0, 0] : f32 from vector<1x1x1xf32>
    %1708 = arith.addf %1643, %1707 : f32
    %c0_588 = arith.constant 0 : index
    %c2_589 = arith.constant 2 : index
    %c32_590 = arith.constant 32 : index
    %c0_591 = arith.constant 0 : index
    %1709 = vector.load %arg5[%c0_588, %c2_589, %c32_590, %c0_591] : memref<1x3x48x16xbf16, #tpu.memory_space<vmem>>, vector<1x1x16x16xbf16>
    %1710 = vector.shape_cast %1709 : vector<1x1x16x16xbf16> to vector<16x16xbf16>
    %cst_592 = arith.constant dense<0.000000e+00> : vector<16x256xf32>
    %1711 = tpu.matmul %1710, %1565, %cst_592 {dimension_numbers = #tpu.dot_dimension_numbers<[1], [0], [0], [1], [0, 0, 1, 1], [], []>} : vector<16x16xbf16>, vector<16x256xbf16>, vector<16x256xf32> -> vector<16x256xf32>
    %1712 = arith.mulf %1711, %1578 : vector<16x256xf32>
    %cst_593 = arith.constant dense<0.000000e+00> : vector<256xf32>
    %1713 = vector.multi_reduction <add>, %1712, %cst_593 [0] : vector<16x256xf32> to vector<256xf32>
    %1714 = vector.shape_cast %1713 : vector<256xf32> to vector<1x256xf32>
    %1715 = vector.extract_strided_slice %43 {offsets = [2, 0], sizes = [1, 256], strides = [1, 1]} : vector<3x256xf32> to vector<1x256xf32>
    %1716 = arith.mulf %1715, %1515 : vector<1x256xf32>
    %1717 = arith.mulf %1714, %1515 : vector<1x256xf32>
    %1718 = arith.subf %1717, %1716 : vector<1x256xf32>
    %1719 = math.absf %1718 : vector<1x256xf32>
    %cst_594 = arith.constant 1.000000e+00 : f32
    %1720 = vector.broadcast %cst_594 : f32 to vector<1x256xf32>
    %1721 = arith.cmpf olt, %1719, %1720 : vector<1x256xf32>
    %cst_595 = arith.constant 5.000000e-01 : f32
    %1722 = vector.broadcast %cst_595 : f32 to vector<1x256xf32>
    %1723 = arith.mulf %1722, %1719 : vector<1x256xf32>
    %1724 = arith.mulf %1723, %1719 : vector<1x256xf32>
    %cst_596 = arith.constant 5.000000e-01 : f32
    %1725 = vector.broadcast %cst_596 : f32 to vector<1x256xf32>
    %1726 = arith.subf %1719, %1725 : vector<1x256xf32>
    %1727 = arith.select %1721, %1724, %1726 : vector<1x256xi1>, vector<1x256xf32>
    %1728 = arith.mulf %1727, %19 : vector<1x256xf32>
    %1729 = vector.shape_cast %1728 : vector<1x256xf32> to vector<1x1x256xf32>
    %cst_597 = arith.constant dense<0.000000e+00> : vector<1xf32>
    %1730 = vector.multi_reduction <add>, %1729, %cst_597 [1, 2] : vector<1x1x256xf32> to vector<1xf32>
    %1731 = vector.shape_cast %1730 : vector<1xf32> to vector<1x1x1xf32>
    %1732 = vector.extract %1731[0, 0, 0] : f32 from vector<1x1x1xf32>
    %1733 = arith.addf %1668, %1732 : f32
    %c255_i32_598 = arith.constant 255 : i32
    %1734 = tpu.dynamic_rotate %1716 by %c255_i32_598 dim 1 : vector<1x256xf32>, i32 -> vector<1x256xf32>
    %1735 = arith.subf %1734, %1716 : vector<1x256xf32>
    %c255_i32_599 = arith.constant 255 : i32
    %1736 = tpu.dynamic_rotate %1717 by %c255_i32_599 dim 1 : vector<1x256xf32>, i32 -> vector<1x256xf32>
    %1737 = arith.subf %1736, %1717 : vector<1x256xf32>
    %c240_i32_600 = arith.constant 240 : i32
    %1738 = tpu.dynamic_rotate %1716 by %c240_i32_600 dim 1 : vector<1x256xf32>, i32 -> vector<1x256xf32>
    %1739 = arith.subf %1738, %1716 : vector<1x256xf32>
    %c240_i32_601 = arith.constant 240 : i32
    %1740 = tpu.dynamic_rotate %1717 by %c240_i32_601 dim 1 : vector<1x256xf32>, i32 -> vector<1x256xf32>
    %1741 = arith.subf %1740, %1717 : vector<1x256xf32>
    %1742 = arith.subf %1737, %1735 : vector<1x256xf32>
    %1743 = math.absf %1742 : vector<1x256xf32>
    %cst_602 = arith.constant 1.000000e+00 : f32
    %1744 = vector.broadcast %cst_602 : f32 to vector<1x256xf32>
    %1745 = arith.cmpf olt, %1743, %1744 : vector<1x256xf32>
    %cst_603 = arith.constant 5.000000e-01 : f32
    %1746 = vector.broadcast %cst_603 : f32 to vector<1x256xf32>
    %1747 = arith.mulf %1746, %1743 : vector<1x256xf32>
    %1748 = arith.mulf %1747, %1743 : vector<1x256xf32>
    %cst_604 = arith.constant 5.000000e-01 : f32
    %1749 = vector.broadcast %cst_604 : f32 to vector<1x256xf32>
    %1750 = arith.subf %1743, %1749 : vector<1x256xf32>
    %1751 = arith.select %1745, %1748, %1750 : vector<1x256xi1>, vector<1x256xf32>
    %1752 = arith.mulf %1751, %25 : vector<1x256xf32>
    %1753 = vector.shape_cast %1752 : vector<1x256xf32> to vector<1x1x256xf32>
    %cst_605 = arith.constant dense<0.000000e+00> : vector<1xf32>
    %1754 = vector.multi_reduction <add>, %1753, %cst_605 [1, 2] : vector<1x1x256xf32> to vector<1xf32>
    %1755 = vector.shape_cast %1754 : vector<1xf32> to vector<1x1x1xf32>
    %1756 = vector.extract %1755[0, 0, 0] : f32 from vector<1x1x1xf32>
    %1757 = arith.addf %1692, %1756 : f32
    %1758 = arith.subf %1741, %1739 : vector<1x256xf32>
    %1759 = math.absf %1758 : vector<1x256xf32>
    %cst_606 = arith.constant 1.000000e+00 : f32
    %1760 = vector.broadcast %cst_606 : f32 to vector<1x256xf32>
    %1761 = arith.cmpf olt, %1759, %1760 : vector<1x256xf32>
    %cst_607 = arith.constant 5.000000e-01 : f32
    %1762 = vector.broadcast %cst_607 : f32 to vector<1x256xf32>
    %1763 = arith.mulf %1762, %1759 : vector<1x256xf32>
    %1764 = arith.mulf %1763, %1759 : vector<1x256xf32>
    %cst_608 = arith.constant 5.000000e-01 : f32
    %1765 = vector.broadcast %cst_608 : f32 to vector<1x256xf32>
    %1766 = arith.subf %1759, %1765 : vector<1x256xf32>
    %1767 = arith.select %1761, %1764, %1766 : vector<1x256xi1>, vector<1x256xf32>
    %1768 = arith.mulf %1767, %31 : vector<1x256xf32>
    %1769 = vector.shape_cast %1768 : vector<1x256xf32> to vector<1x1x256xf32>
    %cst_609 = arith.constant dense<0.000000e+00> : vector<1xf32>
    %1770 = vector.multi_reduction <add>, %1769, %cst_609 [1, 2] : vector<1x1x256xf32> to vector<1xf32>
    %1771 = vector.shape_cast %1770 : vector<1xf32> to vector<1x1x1xf32>
    %1772 = vector.extract %1771[0, 0, 0] : f32 from vector<1x1x1xf32>
    %1773 = arith.addf %1708, %1772 : f32
    %cst_610 = arith.constant 4.000000e+00 : f32
    %1774 = vector.broadcast %cst_610 : f32 to vector<1x256xf32>
    %1775 = arith.mulf %1515, %1774 : vector<1x256xf32>
    %1776 = arith.addf %1406, %1775 : vector<1x256xf32>
    %cst_611 = arith.constant 0.000000e+00 : f32
    %1777 = vector.broadcast %cst_611 : f32 to vector<1x256xf32>
    %1778 = arith.cmpf oeq, %1776, %1777 : vector<1x256xf32>
    %1779 = arith.andi %17, %1778 : vector<1x256xi1>
    %cst_612 = arith.constant 1.000000e+00 : f32
    %cst_613 = arith.constant 0.000000e+00 : f32
    %1780 = vector.broadcast %cst_612 : f32 to vector<1x256xf32>
    %1781 = vector.broadcast %cst_613 : f32 to vector<1x256xf32>
    %1782 = arith.select %1779, %1780, %1781 : vector<1x256xi1>, vector<1x256xf32>
    %1783 = vector.shape_cast %1782 : vector<1x256xf32> to vector<1x1x256xf32>
    %cst_614 = arith.constant dense<0.000000e+00> : vector<1xf32>
    %1784 = vector.multi_reduction <add>, %1783, %cst_614 [1, 2] : vector<1x1x256xf32> to vector<1xf32>
    %1785 = vector.shape_cast %1784 : vector<1xf32> to vector<1x1x1xf32>
    %1786 = vector.extract %1785[0, 0, 0] : f32 from vector<1x1x1xf32>
    %cst_615 = arith.constant 1.000000e+00 : f32
    %1787 = vector.broadcast %cst_615 : f32 to vector<1x256xf32>
    %1788 = arith.cmpf oeq, %1776, %1787 : vector<1x256xf32>
    %1789 = arith.andi %17, %1788 : vector<1x256xi1>
    %cst_616 = arith.constant 1.000000e+00 : f32
    %cst_617 = arith.constant 0.000000e+00 : f32
    %1790 = vector.broadcast %cst_616 : f32 to vector<1x256xf32>
    %1791 = vector.broadcast %cst_617 : f32 to vector<1x256xf32>
    %1792 = arith.select %1789, %1790, %1791 : vector<1x256xi1>, vector<1x256xf32>
    %1793 = vector.shape_cast %1792 : vector<1x256xf32> to vector<1x1x256xf32>
    %cst_618 = arith.constant dense<0.000000e+00> : vector<1xf32>
    %1794 = vector.multi_reduction <add>, %1793, %cst_618 [1, 2] : vector<1x1x256xf32> to vector<1xf32>
    %1795 = vector.shape_cast %1794 : vector<1xf32> to vector<1x1x1xf32>
    %1796 = vector.extract %1795[0, 0, 0] : f32 from vector<1x1x1xf32>
    %cst_619 = arith.constant 2.000000e+00 : f32
    %1797 = vector.broadcast %cst_619 : f32 to vector<1x256xf32>
    %1798 = arith.cmpf oeq, %1776, %1797 : vector<1x256xf32>
    %1799 = arith.andi %17, %1798 : vector<1x256xi1>
    %cst_620 = arith.constant 1.000000e+00 : f32
    %cst_621 = arith.constant 0.000000e+00 : f32
    %1800 = vector.broadcast %cst_620 : f32 to vector<1x256xf32>
    %1801 = vector.broadcast %cst_621 : f32 to vector<1x256xf32>
    %1802 = arith.select %1799, %1800, %1801 : vector<1x256xi1>, vector<1x256xf32>
    %1803 = vector.shape_cast %1802 : vector<1x256xf32> to vector<1x1x256xf32>
    %cst_622 = arith.constant dense<0.000000e+00> : vector<1xf32>
    %1804 = vector.multi_reduction <add>, %1803, %cst_622 [1, 2] : vector<1x1x256xf32> to vector<1xf32>
    %1805 = vector.shape_cast %1804 : vector<1xf32> to vector<1x1x1xf32>
    %1806 = vector.extract %1805[0, 0, 0] : f32 from vector<1x1x1xf32>
    %cst_623 = arith.constant 3.000000e+00 : f32
    %1807 = vector.broadcast %cst_623 : f32 to vector<1x256xf32>
    %1808 = arith.cmpf oeq, %1776, %1807 : vector<1x256xf32>
    %1809 = arith.andi %17, %1808 : vector<1x256xi1>
    %cst_624 = arith.constant 1.000000e+00 : f32
    %cst_625 = arith.constant 0.000000e+00 : f32
    %1810 = vector.broadcast %cst_624 : f32 to vector<1x256xf32>
    %1811 = vector.broadcast %cst_625 : f32 to vector<1x256xf32>
    %1812 = arith.select %1809, %1810, %1811 : vector<1x256xi1>, vector<1x256xf32>
    %1813 = vector.shape_cast %1812 : vector<1x256xf32> to vector<1x1x256xf32>
    %cst_626 = arith.constant dense<0.000000e+00> : vector<1xf32>
    %1814 = vector.multi_reduction <add>, %1813, %cst_626 [1, 2] : vector<1x1x256xf32> to vector<1xf32>
    %1815 = vector.shape_cast %1814 : vector<1xf32> to vector<1x1x1xf32>
    %1816 = vector.extract %1815[0, 0, 0] : f32 from vector<1x1x1xf32>
    %cst_627 = arith.constant 4.000000e+00 : f32
    %1817 = vector.broadcast %cst_627 : f32 to vector<1x256xf32>
    %1818 = arith.cmpf oeq, %1776, %1817 : vector<1x256xf32>
    %1819 = arith.andi %17, %1818 : vector<1x256xi1>
    %cst_628 = arith.constant 1.000000e+00 : f32
    %cst_629 = arith.constant 0.000000e+00 : f32
    %1820 = vector.broadcast %cst_628 : f32 to vector<1x256xf32>
    %1821 = vector.broadcast %cst_629 : f32 to vector<1x256xf32>
    %1822 = arith.select %1819, %1820, %1821 : vector<1x256xi1>, vector<1x256xf32>
    %1823 = vector.shape_cast %1822 : vector<1x256xf32> to vector<1x1x256xf32>
    %cst_630 = arith.constant dense<0.000000e+00> : vector<1xf32>
    %1824 = vector.multi_reduction <add>, %1823, %cst_630 [1, 2] : vector<1x1x256xf32> to vector<1xf32>
    %1825 = vector.shape_cast %1824 : vector<1xf32> to vector<1x1x1xf32>
    %1826 = vector.extract %1825[0, 0, 0] : f32 from vector<1x1x1xf32>
    %cst_631 = arith.constant 5.000000e+00 : f32
    %1827 = vector.broadcast %cst_631 : f32 to vector<1x256xf32>
    %1828 = arith.cmpf oeq, %1776, %1827 : vector<1x256xf32>
    %1829 = arith.andi %17, %1828 : vector<1x256xi1>
    %cst_632 = arith.constant 1.000000e+00 : f32
    %cst_633 = arith.constant 0.000000e+00 : f32
    %1830 = vector.broadcast %cst_632 : f32 to vector<1x256xf32>
    %1831 = vector.broadcast %cst_633 : f32 to vector<1x256xf32>
    %1832 = arith.select %1829, %1830, %1831 : vector<1x256xi1>, vector<1x256xf32>
    %1833 = vector.shape_cast %1832 : vector<1x256xf32> to vector<1x1x256xf32>
    %cst_634 = arith.constant dense<0.000000e+00> : vector<1xf32>
    %1834 = vector.multi_reduction <add>, %1833, %cst_634 [1, 2] : vector<1x1x256xf32> to vector<1xf32>
    %1835 = vector.shape_cast %1834 : vector<1xf32> to vector<1x1x1xf32>
    %1836 = vector.extract %1835[0, 0, 0] : f32 from vector<1x1x1xf32>
    %cst_635 = arith.constant 6.000000e+00 : f32
    %1837 = vector.broadcast %cst_635 : f32 to vector<1x256xf32>
    %1838 = arith.cmpf oeq, %1776, %1837 : vector<1x256xf32>
    %1839 = arith.andi %17, %1838 : vector<1x256xi1>
    %cst_636 = arith.constant 1.000000e+00 : f32
    %cst_637 = arith.constant 0.000000e+00 : f32
    %1840 = vector.broadcast %cst_636 : f32 to vector<1x256xf32>
    %1841 = vector.broadcast %cst_637 : f32 to vector<1x256xf32>
    %1842 = arith.select %1839, %1840, %1841 : vector<1x256xi1>, vector<1x256xf32>
    %1843 = vector.shape_cast %1842 : vector<1x256xf32> to vector<1x1x256xf32>
    %cst_638 = arith.constant dense<0.000000e+00> : vector<1xf32>
    %1844 = vector.multi_reduction <add>, %1843, %cst_638 [1, 2] : vector<1x1x256xf32> to vector<1xf32>
    %1845 = vector.shape_cast %1844 : vector<1xf32> to vector<1x1x1xf32>
    %1846 = vector.extract %1845[0, 0, 0] : f32 from vector<1x1x1xf32>
    %cst_639 = arith.constant 7.000000e+00 : f32
    %1847 = vector.broadcast %cst_639 : f32 to vector<1x256xf32>
    %1848 = arith.cmpf oeq, %1776, %1847 : vector<1x256xf32>
    %1849 = arith.andi %17, %1848 : vector<1x256xi1>
    %cst_640 = arith.constant 1.000000e+00 : f32
    %cst_641 = arith.constant 0.000000e+00 : f32
    %1850 = vector.broadcast %cst_640 : f32 to vector<1x256xf32>
    %1851 = vector.broadcast %cst_641 : f32 to vector<1x256xf32>
    %1852 = arith.select %1849, %1850, %1851 : vector<1x256xi1>, vector<1x256xf32>
    %1853 = vector.shape_cast %1852 : vector<1x256xf32> to vector<1x1x256xf32>
    %cst_642 = arith.constant dense<0.000000e+00> : vector<1xf32>
    %1854 = vector.multi_reduction <add>, %1853, %cst_642 [1, 2] : vector<1x1x256xf32> to vector<1xf32>
    %1855 = vector.shape_cast %1854 : vector<1xf32> to vector<1x1x1xf32>
    %1856 = vector.extract %1855[0, 0, 0] : f32 from vector<1x1x1xf32>
    %1857 = tpu.iota {dimensions = array<i32: 0>} : vector<8x128xi32>
    %1858 = tpu.iota {dimensions = array<i32: 1>} : vector<8x128xi32>
    %cst_643 = arith.constant 0.000000e+00 : f32
    %1859 = vector.broadcast %cst_643 : f32 to vector<8x128xf32>
    %c0_i32_644 = arith.constant 0 : i32
    %1860 = vector.broadcast %c0_i32_644 : i32 to vector<8x128xi32>
    %1861 = arith.cmpi eq, %1857, %1860 : vector<8x128xi32>
    %c0_i32_645 = arith.constant 0 : i32
    %1862 = vector.broadcast %c0_i32_645 : i32 to vector<8x128xi32>
    %1863 = arith.cmpi eq, %1858, %1862 : vector<8x128xi32>
    %1864 = arith.andi %1861, %1863 : vector<8x128xi1>
    %cst_646 = arith.constant 0.000000e+00 : f32
    %1865 = vector.broadcast %583 : f32 to vector<8x128xf32>
    %1866 = vector.broadcast %cst_646 : f32 to vector<8x128xf32>
    %1867 = arith.select %1864, %1865, %1866 : vector<8x128xi1>, vector<8x128xf32>
    %1868 = arith.addf %1859, %1867 : vector<8x128xf32>
    %c1_i32_647 = arith.constant 1 : i32
    %1869 = vector.broadcast %c1_i32_647 : i32 to vector<8x128xi32>
    %1870 = arith.cmpi eq, %1857, %1869 : vector<8x128xi32>
    %c0_i32_648 = arith.constant 0 : i32
    %1871 = vector.broadcast %c0_i32_648 : i32 to vector<8x128xi32>
    %1872 = arith.cmpi eq, %1858, %1871 : vector<8x128xi32>
    %1873 = arith.andi %1870, %1872 : vector<8x128xi1>
    %cst_649 = arith.constant 0.000000e+00 : f32
    %1874 = vector.broadcast %607 : f32 to vector<8x128xf32>
    %1875 = vector.broadcast %cst_649 : f32 to vector<8x128xf32>
    %1876 = arith.select %1873, %1874, %1875 : vector<8x128xi1>, vector<8x128xf32>
    %1877 = arith.addf %1868, %1876 : vector<8x128xf32>
    %c2_i32_650 = arith.constant 2 : i32
    %1878 = vector.broadcast %c2_i32_650 : i32 to vector<8x128xi32>
    %1879 = arith.cmpi eq, %1857, %1878 : vector<8x128xi32>
    %c0_i32_651 = arith.constant 0 : i32
    %1880 = vector.broadcast %c0_i32_651 : i32 to vector<8x128xi32>
    %1881 = arith.cmpi eq, %1858, %1880 : vector<8x128xi32>
    %1882 = arith.andi %1879, %1881 : vector<8x128xi1>
    %cst_652 = arith.constant 0.000000e+00 : f32
    %1883 = vector.broadcast %623 : f32 to vector<8x128xf32>
    %1884 = vector.broadcast %cst_652 : f32 to vector<8x128xf32>
    %1885 = arith.select %1882, %1883, %1884 : vector<8x128xi1>, vector<8x128xf32>
    %1886 = arith.addf %1877, %1885 : vector<8x128xf32>
    %c3_i32_653 = arith.constant 3 : i32
    %1887 = vector.broadcast %c3_i32_653 : i32 to vector<8x128xi32>
    %1888 = arith.cmpi eq, %1857, %1887 : vector<8x128xi32>
    %c0_i32_654 = arith.constant 0 : i32
    %1889 = vector.broadcast %c0_i32_654 : i32 to vector<8x128xi32>
    %1890 = arith.cmpi eq, %1858, %1889 : vector<8x128xi32>
    %1891 = arith.andi %1888, %1890 : vector<8x128xi1>
    %cst_655 = arith.constant 0.000000e+00 : f32
    %1892 = vector.broadcast %723 : f32 to vector<8x128xf32>
    %1893 = vector.broadcast %cst_655 : f32 to vector<8x128xf32>
    %1894 = arith.select %1891, %1892, %1893 : vector<8x128xi1>, vector<8x128xf32>
    %1895 = arith.addf %1886, %1894 : vector<8x128xf32>
    %c0_i32_656 = arith.constant 0 : i32
    %1896 = vector.broadcast %c0_i32_656 : i32 to vector<8x128xi32>
    %1897 = arith.cmpi eq, %1857, %1896 : vector<8x128xi32>
    %c1_i32_657 = arith.constant 1 : i32
    %1898 = vector.broadcast %c1_i32_657 : i32 to vector<8x128xi32>
    %1899 = arith.cmpi eq, %1858, %1898 : vector<8x128xi32>
    %1900 = arith.andi %1897, %1899 : vector<8x128xi1>
    %cst_658 = arith.constant 0.000000e+00 : f32
    %1901 = vector.broadcast %1263 : f32 to vector<8x128xf32>
    %1902 = vector.broadcast %cst_658 : f32 to vector<8x128xf32>
    %1903 = arith.select %1900, %1901, %1902 : vector<8x128xi1>, vector<8x128xf32>
    %1904 = arith.addf %1895, %1903 : vector<8x128xf32>
    %c1_i32_659 = arith.constant 1 : i32
    %1905 = vector.broadcast %c1_i32_659 : i32 to vector<8x128xi32>
    %1906 = arith.cmpi eq, %1857, %1905 : vector<8x128xi32>
    %c1_i32_660 = arith.constant 1 : i32
    %1907 = vector.broadcast %c1_i32_660 : i32 to vector<8x128xi32>
    %1908 = arith.cmpi eq, %1858, %1907 : vector<8x128xi32>
    %1909 = arith.andi %1906, %1908 : vector<8x128xi1>
    %cst_661 = arith.constant 0.000000e+00 : f32
    %1910 = vector.broadcast %1287 : f32 to vector<8x128xf32>
    %1911 = vector.broadcast %cst_661 : f32 to vector<8x128xf32>
    %1912 = arith.select %1909, %1910, %1911 : vector<8x128xi1>, vector<8x128xf32>
    %1913 = arith.addf %1904, %1912 : vector<8x128xf32>
    %c2_i32_662 = arith.constant 2 : i32
    %1914 = vector.broadcast %c2_i32_662 : i32 to vector<8x128xi32>
    %1915 = arith.cmpi eq, %1857, %1914 : vector<8x128xi32>
    %c1_i32_663 = arith.constant 1 : i32
    %1916 = vector.broadcast %c1_i32_663 : i32 to vector<8x128xi32>
    %1917 = arith.cmpi eq, %1858, %1916 : vector<8x128xi32>
    %1918 = arith.andi %1915, %1917 : vector<8x128xi1>
    %cst_664 = arith.constant 0.000000e+00 : f32
    %1919 = vector.broadcast %1303 : f32 to vector<8x128xf32>
    %1920 = vector.broadcast %cst_664 : f32 to vector<8x128xf32>
    %1921 = arith.select %1918, %1919, %1920 : vector<8x128xi1>, vector<8x128xf32>
    %1922 = arith.addf %1913, %1921 : vector<8x128xf32>
    %c3_i32_665 = arith.constant 3 : i32
    %1923 = vector.broadcast %c3_i32_665 : i32 to vector<8x128xi32>
    %1924 = arith.cmpi eq, %1857, %1923 : vector<8x128xi32>
    %c1_i32_666 = arith.constant 1 : i32
    %1925 = vector.broadcast %c1_i32_666 : i32 to vector<8x128xi32>
    %1926 = arith.cmpi eq, %1858, %1925 : vector<8x128xi32>
    %1927 = arith.andi %1924, %1926 : vector<8x128xi1>
    %cst_667 = arith.constant 0.000000e+00 : f32
    %1928 = vector.broadcast %1403 : f32 to vector<8x128xf32>
    %1929 = vector.broadcast %cst_667 : f32 to vector<8x128xf32>
    %1930 = arith.select %1927, %1928, %1929 : vector<8x128xi1>, vector<8x128xf32>
    %1931 = arith.addf %1922, %1930 : vector<8x128xf32>
    %c0_i32_668 = arith.constant 0 : i32
    %1932 = vector.broadcast %c0_i32_668 : i32 to vector<8x128xi32>
    %1933 = arith.cmpi eq, %1857, %1932 : vector<8x128xi32>
    %c2_i32_669 = arith.constant 2 : i32
    %1934 = vector.broadcast %c2_i32_669 : i32 to vector<8x128xi32>
    %1935 = arith.cmpi eq, %1858, %1934 : vector<8x128xi32>
    %1936 = arith.andi %1933, %1935 : vector<8x128xi1>
    %cst_670 = arith.constant 0.000000e+00 : f32
    %1937 = vector.broadcast %1733 : f32 to vector<8x128xf32>
    %1938 = vector.broadcast %cst_670 : f32 to vector<8x128xf32>
    %1939 = arith.select %1936, %1937, %1938 : vector<8x128xi1>, vector<8x128xf32>
    %1940 = arith.addf %1931, %1939 : vector<8x128xf32>
    %c1_i32_671 = arith.constant 1 : i32
    %1941 = vector.broadcast %c1_i32_671 : i32 to vector<8x128xi32>
    %1942 = arith.cmpi eq, %1857, %1941 : vector<8x128xi32>
    %c2_i32_672 = arith.constant 2 : i32
    %1943 = vector.broadcast %c2_i32_672 : i32 to vector<8x128xi32>
    %1944 = arith.cmpi eq, %1858, %1943 : vector<8x128xi32>
    %1945 = arith.andi %1942, %1944 : vector<8x128xi1>
    %cst_673 = arith.constant 0.000000e+00 : f32
    %1946 = vector.broadcast %1757 : f32 to vector<8x128xf32>
    %1947 = vector.broadcast %cst_673 : f32 to vector<8x128xf32>
    %1948 = arith.select %1945, %1946, %1947 : vector<8x128xi1>, vector<8x128xf32>
    %1949 = arith.addf %1940, %1948 : vector<8x128xf32>
    %c2_i32_674 = arith.constant 2 : i32
    %1950 = vector.broadcast %c2_i32_674 : i32 to vector<8x128xi32>
    %1951 = arith.cmpi eq, %1857, %1950 : vector<8x128xi32>
    %c2_i32_675 = arith.constant 2 : i32
    %1952 = vector.broadcast %c2_i32_675 : i32 to vector<8x128xi32>
    %1953 = arith.cmpi eq, %1858, %1952 : vector<8x128xi32>
    %1954 = arith.andi %1951, %1953 : vector<8x128xi1>
    %cst_676 = arith.constant 0.000000e+00 : f32
    %1955 = vector.broadcast %1773 : f32 to vector<8x128xf32>
    %1956 = vector.broadcast %cst_676 : f32 to vector<8x128xf32>
    %1957 = arith.select %1954, %1955, %1956 : vector<8x128xi1>, vector<8x128xf32>
    %1958 = arith.addf %1949, %1957 : vector<8x128xf32>
    %c3_i32_677 = arith.constant 3 : i32
    %1959 = vector.broadcast %c3_i32_677 : i32 to vector<8x128xi32>
    %1960 = arith.cmpi eq, %1857, %1959 : vector<8x128xi32>
    %c2_i32_678 = arith.constant 2 : i32
    %1961 = vector.broadcast %c2_i32_678 : i32 to vector<8x128xi32>
    %1962 = arith.cmpi eq, %1858, %1961 : vector<8x128xi32>
    %1963 = arith.andi %1960, %1962 : vector<8x128xi1>
    %cst_679 = arith.constant 0.000000e+00 : f32
    %cst_680 = arith.constant 0.000000e+00 : f32
    %1964 = vector.broadcast %cst_679 : f32 to vector<8x128xf32>
    %1965 = vector.broadcast %cst_680 : f32 to vector<8x128xf32>
    %1966 = arith.select %1963, %1964, %1965 : vector<8x128xi1>, vector<8x128xf32>
    %1967 = arith.addf %1958, %1966 : vector<8x128xf32>
    %c4_i32_681 = arith.constant 4 : i32
    %1968 = vector.broadcast %c4_i32_681 : i32 to vector<8x128xi32>
    %1969 = arith.cmpi eq, %1857, %1968 : vector<8x128xi32>
    %c0_i32_682 = arith.constant 0 : i32
    %1970 = vector.broadcast %c0_i32_682 : i32 to vector<8x128xi32>
    %1971 = arith.cmpi eq, %1858, %1970 : vector<8x128xi32>
    %1972 = arith.andi %1969, %1971 : vector<8x128xi1>
    %cst_683 = arith.constant 0.000000e+00 : f32
    %1973 = vector.broadcast %1786 : f32 to vector<8x128xf32>
    %1974 = vector.broadcast %cst_683 : f32 to vector<8x128xf32>
    %1975 = arith.select %1972, %1973, %1974 : vector<8x128xi1>, vector<8x128xf32>
    %1976 = arith.addf %1967, %1975 : vector<8x128xf32>
    %c4_i32_684 = arith.constant 4 : i32
    %1977 = vector.broadcast %c4_i32_684 : i32 to vector<8x128xi32>
    %1978 = arith.cmpi eq, %1857, %1977 : vector<8x128xi32>
    %c1_i32_685 = arith.constant 1 : i32
    %1979 = vector.broadcast %c1_i32_685 : i32 to vector<8x128xi32>
    %1980 = arith.cmpi eq, %1858, %1979 : vector<8x128xi32>
    %1981 = arith.andi %1978, %1980 : vector<8x128xi1>
    %cst_686 = arith.constant 0.000000e+00 : f32
    %1982 = vector.broadcast %1796 : f32 to vector<8x128xf32>
    %1983 = vector.broadcast %cst_686 : f32 to vector<8x128xf32>
    %1984 = arith.select %1981, %1982, %1983 : vector<8x128xi1>, vector<8x128xf32>
    %1985 = arith.addf %1976, %1984 : vector<8x128xf32>
    %c4_i32_687 = arith.constant 4 : i32
    %1986 = vector.broadcast %c4_i32_687 : i32 to vector<8x128xi32>
    %1987 = arith.cmpi eq, %1857, %1986 : vector<8x128xi32>
    %c2_i32_688 = arith.constant 2 : i32
    %1988 = vector.broadcast %c2_i32_688 : i32 to vector<8x128xi32>
    %1989 = arith.cmpi eq, %1858, %1988 : vector<8x128xi32>
    %1990 = arith.andi %1987, %1989 : vector<8x128xi1>
    %cst_689 = arith.constant 0.000000e+00 : f32
    %1991 = vector.broadcast %1806 : f32 to vector<8x128xf32>
    %1992 = vector.broadcast %cst_689 : f32 to vector<8x128xf32>
    %1993 = arith.select %1990, %1991, %1992 : vector<8x128xi1>, vector<8x128xf32>
    %1994 = arith.addf %1985, %1993 : vector<8x128xf32>
    %c4_i32_690 = arith.constant 4 : i32
    %1995 = vector.broadcast %c4_i32_690 : i32 to vector<8x128xi32>
    %1996 = arith.cmpi eq, %1857, %1995 : vector<8x128xi32>
    %c3_i32_691 = arith.constant 3 : i32
    %1997 = vector.broadcast %c3_i32_691 : i32 to vector<8x128xi32>
    %1998 = arith.cmpi eq, %1858, %1997 : vector<8x128xi32>
    %1999 = arith.andi %1996, %1998 : vector<8x128xi1>
    %cst_692 = arith.constant 0.000000e+00 : f32
    %2000 = vector.broadcast %1816 : f32 to vector<8x128xf32>
    %2001 = vector.broadcast %cst_692 : f32 to vector<8x128xf32>
    %2002 = arith.select %1999, %2000, %2001 : vector<8x128xi1>, vector<8x128xf32>
    %2003 = arith.addf %1994, %2002 : vector<8x128xf32>
    %c4_i32_693 = arith.constant 4 : i32
    %2004 = vector.broadcast %c4_i32_693 : i32 to vector<8x128xi32>
    %2005 = arith.cmpi eq, %1857, %2004 : vector<8x128xi32>
    %c4_i32_694 = arith.constant 4 : i32
    %2006 = vector.broadcast %c4_i32_694 : i32 to vector<8x128xi32>
    %2007 = arith.cmpi eq, %1858, %2006 : vector<8x128xi32>
    %2008 = arith.andi %2005, %2007 : vector<8x128xi1>
    %cst_695 = arith.constant 0.000000e+00 : f32
    %2009 = vector.broadcast %1826 : f32 to vector<8x128xf32>
    %2010 = vector.broadcast %cst_695 : f32 to vector<8x128xf32>
    %2011 = arith.select %2008, %2009, %2010 : vector<8x128xi1>, vector<8x128xf32>
    %2012 = arith.addf %2003, %2011 : vector<8x128xf32>
    %c4_i32_696 = arith.constant 4 : i32
    %2013 = vector.broadcast %c4_i32_696 : i32 to vector<8x128xi32>
    %2014 = arith.cmpi eq, %1857, %2013 : vector<8x128xi32>
    %c5_i32 = arith.constant 5 : i32
    %2015 = vector.broadcast %c5_i32 : i32 to vector<8x128xi32>
    %2016 = arith.cmpi eq, %1858, %2015 : vector<8x128xi32>
    %2017 = arith.andi %2014, %2016 : vector<8x128xi1>
    %cst_697 = arith.constant 0.000000e+00 : f32
    %2018 = vector.broadcast %1836 : f32 to vector<8x128xf32>
    %2019 = vector.broadcast %cst_697 : f32 to vector<8x128xf32>
    %2020 = arith.select %2017, %2018, %2019 : vector<8x128xi1>, vector<8x128xf32>
    %2021 = arith.addf %2012, %2020 : vector<8x128xf32>
    %c4_i32_698 = arith.constant 4 : i32
    %2022 = vector.broadcast %c4_i32_698 : i32 to vector<8x128xi32>
    %2023 = arith.cmpi eq, %1857, %2022 : vector<8x128xi32>
    %c6_i32 = arith.constant 6 : i32
    %2024 = vector.broadcast %c6_i32 : i32 to vector<8x128xi32>
    %2025 = arith.cmpi eq, %1858, %2024 : vector<8x128xi32>
    %2026 = arith.andi %2023, %2025 : vector<8x128xi1>
    %cst_699 = arith.constant 0.000000e+00 : f32
    %2027 = vector.broadcast %1846 : f32 to vector<8x128xf32>
    %2028 = vector.broadcast %cst_699 : f32 to vector<8x128xf32>
    %2029 = arith.select %2026, %2027, %2028 : vector<8x128xi1>, vector<8x128xf32>
    %2030 = arith.addf %2021, %2029 : vector<8x128xf32>
    %c4_i32_700 = arith.constant 4 : i32
    %2031 = vector.broadcast %c4_i32_700 : i32 to vector<8x128xi32>
    %2032 = arith.cmpi eq, %1857, %2031 : vector<8x128xi32>
    %c7_i32 = arith.constant 7 : i32
    %2033 = vector.broadcast %c7_i32 : i32 to vector<8x128xi32>
    %2034 = arith.cmpi eq, %1858, %2033 : vector<8x128xi32>
    %2035 = arith.andi %2032, %2034 : vector<8x128xi1>
    %cst_701 = arith.constant 0.000000e+00 : f32
    %2036 = vector.broadcast %1856 : f32 to vector<8x128xf32>
    %2037 = vector.broadcast %cst_701 : f32 to vector<8x128xf32>
    %2038 = arith.select %2035, %2036, %2037 : vector<8x128xi1>, vector<8x128xf32>
    %2039 = arith.addf %2030, %2038 : vector<8x128xf32>
    %2040 = vector.shape_cast %2039 : vector<8x128xf32> to vector<1x1x8x128xf32>
    %c0_702 = arith.constant 0 : index
    %c0_703 = arith.constant 0 : index
    %c0_704 = arith.constant 0 : index
    %c0_705 = arith.constant 0 : index
    %2041 = vector.load %arg6[%c0_702, %c0_703, %c0_704, %c0_705] : memref<1x1x8x128xf32, #tpu.memory_space<vmem>>, vector<1x1x8x128xf32>
    tpu.vector_store %arg6[%c0_702, %c0_703, %c0_704, %c0_705], %2040 {strides = array<i32>} : memref<1x1x8x128xf32, #tpu.memory_space<vmem>>, vector<1x1x8x128xf32>,
    return
  }
  func.func @transform_0(%arg0: i32, %arg1: i32) -> i32 {
    %c0_i32 = arith.constant 0 : i32
    %c0_i32_0 = arith.constant 0 : i32
    return %c0_i32 : i32
  }
  func.func @transform_1(%arg0: i32, %arg1: i32) -> (i32, i32, i32) {
    %c0_i32 = arith.constant 0 : i32
    %c0_i32_0 = arith.constant 0 : i32
    %c0_i32_1 = arith.constant 0 : i32
    return %arg0, %c0_i32, %c0_i32_0 : i32, i32, i32
  }
  func.func @transform_2(%arg0: i32, %arg1: i32) -> (i32, i32, i32) {
    %c0_i32 = arith.constant 0 : i32
    %c0_i32_0 = arith.constant 0 : i32
    %c0_i32_1 = arith.constant 0 : i32
    return %arg0, %c0_i32, %c0_i32_0 : i32, i32, i32
  }
  func.func @transform_3(%arg0: i32, %arg1: i32) -> (i32, i32, i32, i32) {
    %c0_i32 = arith.constant 0 : i32
    %c0_i32_0 = arith.constant 0 : i32
    %c0_i32_1 = arith.constant 0 : i32
    %c0_i32_2 = arith.constant 0 : i32
    return %arg0, %c0_i32, %c0_i32_0, %c0_i32_1 : i32, i32, i32, i32
  }
  func.func @transform_4(%arg0: i32, %arg1: i32) -> (i32, i32, i32, i32) {
    %c0_i32 = arith.constant 0 : i32
    %c0_i32_0 = arith.constant 0 : i32
    %c0_i32_1 = arith.constant 0 : i32
    return %arg0, %arg1, %c0_i32, %c0_i32_0 : i32, i32, i32, i32
  }
}

</mosaic_0001>

<bundles_post_ra>
// kernel: custom-call.11
= control target key start
LH: loop header
LB: loop body
LE: loop exit
PB: predicated region body
PF: predicated region fallthrough
CT: control target
= control target key end

     0   :  { %5 = vsyncpa [#allocation6], 0  ;;  %s896_s0 = inlined_call_operand.vmem [shape: f32[2,3,3], index: 0, kind: input, shape index: {}]   ;;  %s897_s1 = inlined_call_operand.vmem [shape: f32[2,3,3], index: 1, kind: output, shape index: {0}]   ;;  %s898_s2 = inlined_call_operand.hbm [shape: s32[2,3], index: 2, kind: output, shape index: {1}]   ;;  %s899_s3 = inlined_call_operand.vmem [shape: s32[2,3], index: 3, kind: output, shape index: {2}]  }
   0x1   :  { %7 = vsyncpa [#allocation6 + $0x1], 0  ;;  %s715_s12 = smov 0   ;;  %s717_s13 = smov 0  }
   0x2   :  { %s719_s14 = smov 0   ;;  %s721_s15 = smov 0  }
   0x3 LB: > { %s736_s16 = sadd.s32 4294967295, %s687_s15   ;;  %s550_s17 = sadd.s32 4294967294, %s687_s15   ;;  %s687_s15 = sphi %s721_s15, %s907_s15   ;;  %s683_s14 = sphi %s719_s14, %s906_s14   ;;  %s679_s13 = sphi %s717_s13, %s905_s13   ;;  %s675_s12 = sphi %s715_s12, %s904_s12  }
   0x4   : > { %s740_s18 = sadd.s32 1, %s687_s15   ;;  %s17_s19 = sshrl.u32 %s687_s15, 3 }
   0x5   : > { %s18_s20 = sshrl.u32 %s740_s18, 3  ;;  %s22_s21 = sadd.s32 1, %s683_s14 }
   0x6   : > { %s19_s22 = ssub.s32 %s17_s19, %s18_s20  ;;  %p32_p0 = scmp.ne.s32.totalorder %s683_s14, %s679_s13 }
   0x7   : > { %p20_p1 = scmp.eq.s32.totalorder %s19_s22, 0  ;;  %p33_p2 = scmp.eq.s32.totalorder %s736_s16, 1 }
   0x8   : > { %p38_p3 = scmp.ne.s32.totalorder %s679_s13, %s675_s12  ;;  %p39_p4 = scmp.eq.s32.totalorder %s550_s17, 1 }
   0x9   : > { %s751_s23 = scalar_select %p20_p1, %s683_s14, %s22_s21  }
   0xa   : > { %p753_p5 = por %p33_p2, %p32_p0  ;;  %p757_p6 = por %p39_p4, %p38_p3 }
   0xb   : > { %p552_p7 = scmp.ge.s32.totalorder %s687_s15, 2 }
   0xc   : > { %s85_s26 = sand.u32 (!%p552_p7), 1, %s687_s15   ;;  %s554_s27 = sshll.u32 (!%p552_p7), %s687_s15, 2 }
   0xd   : > { %83 = sbr.rel (%p552_p7) target bundleno = 20 (0x14), region = 16  ;;  %s553_s28 = sshll.u32 (!%p552_p7), %s85_s26, 2 }
   0xe   : > { %s89_s4 = scalar_lea.vmem (!%p552_p7), %s896_s0, %s554_s27  ;;  %s87_s5 = scalar_lea.vmem (!%p552_p7), [#allocation1], %s553_s28 }
   0xf   : > { %v105_v0 = vld [vmem:[%s89_s4] sm:$0xf] (!%p552_p7) }
  0x10   : > { %106 = vst [vmem:[%s87_s5] sm:$0xf] (!%p552_p7), %v105_v0 }
  0x14 PF: > { %p555_p8 = scmp.ge.s32.totalorder %s687_s15, 1  ;;  %p122_p9 = scmp.lt.s32.totalorder %s687_s15, 3 }
  0x16   : > { %p123_p10 = pnand %p555_p8, %p122_p9 }
  0x18   : > { %126 = sbr.rel (%p123_p10) target bundleno = 451 (0x1c3), region = 50 }
  0x1f   : > { %s133_s6 = sand.u32 1, %s736_s16   ;;  %s144_s7 = sand.u32 1, %s679_s13   ;;  %v166_v1 = vlaneseq  ;;  %v693_v4 = vmov 0  }
  0x20   : > { %s773_s8 = sshll.u32 %s133_s6, 2  ;;  %s777_s9 = sshll.u32 %s144_s7, 1 }
  0x21   : > { %v780_v2 = vshrl.u32 %v166_v1, 7  ;;  %s135_s10 = scalar_lea.vmem [#allocation1], %s773_s8  ;;  %s161_s11 = sand.u32 7, %s736_s16  }
  0x22   : > { %v155_v3 = vld [vmem:[%s135_s10] sm:$0xf]  ;;  %s785_s17 = scalar_lea.vmem [#allocation4], %s161_s11  ;;  %s139_s19 = scalar_lea.vmem [#allocation3], %s773_s8 }
  0x23   : > { %156 = vst [vmem:[#allocation0] sm:$0xf] %v155_v3  ;;  %170 = vst [vmem:[#allocation9] sm:$0xff] %v780_v2  ;;  %s146_s20 = scalar_lea.vmem [#allocation5], %s777_s9  ;;  %s152_s21 = scalar_lea.vmem [#allocation8], %s777_s9 }
  0x24   : > { %165 = vst [vmem:[%s785_s17] sm:$0x1] %v693_v4  ;;  %s791_s22 = scalar_lea.vmem [#allocation7], %s161_s11  ;;  %s793_s26 = smov 0  }
  0x2a   : > { %v159_v5 = vld [vmem:[#allocation0] sm:$0xff] }
  0x2b   : > { %160 = vst [vmem:[#allocation2] sm:$0xff] %v159_v5 }
  0x2c LB: >> { %vm186_vm0 = vcmp.lt.s32.totalorder %v780_v2, 3  ;;  %v800_v8 = vstv %s691_s26  ;;  %s227_s27 = ssub.s32 128, %s691_s26  ;;  %v233_v38 = vand.u32 127, %v166_v1  ;;  %v236_v40 = vld [vmem:[%s785_s17] ss:$0 sm:$0xff]  ;;  %s239_s28 = scalar_lea.vmem [#allocation2], %s691_s26  ;;  %s691_s26 = sphi %s793_s26, %s176_s26  }
  0x2d   : >> { %vm185_vm1 = vcmp.ge.s32.totalorder %v780_v2, %v800_v8  ;;  %s245_s30 = scalar_lea.vmem [#allocation9], %s691_s26  ;;  %vm265_vm15 = vcmp.gt.s32.totalorder %v780_v2, %v800_v8  ;;  %s176_s26 = sadd.s32 1, %s691_s26  }
  0x2e   : >> { %vm187_vm3 = vmand %vm185_vm1, %vm186_vm0  ;;  %vm257_vm12 = vcmp.gt.s32.totalorder %v233_v38, %v800_v8  ;;  %vm234_vm13 = vcmp.eq.s32.totalorder %v233_v38, %v800_v8  ;;  %v247_v42 = vld [vmem:[%s245_s30] ss:$0 sm:$0xff]  ;;  %p173_p11 = scmp.ge.s32.totalorder %s176_s26, 3  }
  0x2f   : >> { %vm269_vm1 = vmand %vm265_vm15, %vm234_vm13  ;;  %s900_s6 = sshrl.u32 (%p173_p11), %s736_s16, 3  ;;  %s564_s10 = sshll.u32 (%p173_p11), %s736_s16, 2 }
  0x30   : > { %s565_s11 = sshll.u32 (%p173_p11), %s900_s6, 5 }
  0x32   : >> { %v181_v6 = vld [vmem:[#allocation2] sm:$0xff]  ;;  %v241_v41 = vld [vmem:[%s239_s28] ss:$0 sm:$0xff] }
  0x33   : >> { %v182_v7 = vand.u32 2147483647, %v181_v6 }
  0x35   : >> { %vm560_vm2 = vcmp.gt.f32.partialorder %v182_v7, -inf }
  0x36   : >> { %vm189_vm4 = vmand %vm187_vm3, %vm560_vm2 }
  0x37   : >> { %v190_v9 = vsel %vm189_vm4, %v780_v2, %v800_v8  ;;  %v191_v10 = vsel %vm189_vm4, %v182_v7, -inf }
  0x38   : >> { %v192_v11 = vrot.slane %v191_v10, 1  ;;  %v193_v12 = vrot.slane %v190_v9, 1 }
  0x3a   : >> { %vm194_vm5 = vcmp.ge.f32.partialorder %v192_v11, %v191_v10  ;;  %v197_v13 = vrot.slane %v192_v11, 1  ;;  %v198_v14 = vrot.slane %v193_v12, 1 }
  0x3b   : >> { %v195_v15 = vsel %vm194_vm5, %v192_v11, %v191_v10  ;;  %v196_v16 = vsel %vm194_vm5, %v193_v12, %v190_v9 }
  0x3c   : >> { %vm199_vm6 = vcmp.ge.f32.partialorder %v197_v13, %v195_v15  ;;  %v202_v17 = vrot.slane %v197_v13, 1  ;;  %v203_v18 = vrot.slane %v198_v14, 1 }
  0x3d   : >> { %v200_v19 = vsel %vm199_vm6, %v197_v13, %v195_v15  ;;  %v201_v20 = vsel %vm199_vm6, %v198_v14, %v196_v16 }
  0x3e   : >> { %vm204_vm7 = vcmp.ge.f32.partialorder %v202_v17, %v200_v19  ;;  %v207_v21 = vrot.slane %v202_v17, 1  ;;  %v208_v22 = vrot.slane %v203_v18, 1 }
  0x3f   : >> { %v205_v23 = vsel %vm204_vm7, %v202_v17, %v200_v19  ;;  %v206_v24 = vsel %vm204_vm7, %v203_v18, %v201_v20 }
  0x40   : >> { %vm209_vm8 = vcmp.ge.f32.partialorder %v207_v21, %v205_v23  ;;  %v212_v25 = vrot.slane %v207_v21, 1  ;;  %v213_v26 = vrot.slane %v208_v22, 1 }
  0x41   : >> { %v210_v27 = vsel %vm209_vm8, %v207_v21, %v205_v23  ;;  %v211_v28 = vsel %vm209_vm8, %v208_v22, %v206_v24 }
  0x42   : >> { %vm214_vm9 = vcmp.ge.f32.partialorder %v212_v25, %v210_v27  ;;  %v217_v29 = vrot.slane %v212_v25, 1  ;;  %v218_v30 = vrot.slane %v213_v26, 1 }
  0x43   : >> { %v215_v31 = vsel %vm214_vm9, %v212_v25, %v210_v27  ;;  %v216_v32 = vsel %vm214_vm9, %v213_v26, %v211_v28 }
  0x44   : >> { %vm219_vm10 = vcmp.ge.f32.partialorder %v217_v29, %v215_v31  ;;  %v222_v33 = vrot.slane %v217_v29, 1  ;;  %v223_v34 = vrot.slane %v218_v30, 1 }
  0x45   : >> { %v220_v35 = vsel %vm219_vm10, %v217_v29, %v215_v31  ;;  %v221_v36 = vsel %vm219_vm10, %v218_v30, %v216_v32 }
  0x46   : >> { %vm224_vm11 = vcmp.ge.f32.partialorder %v222_v33, %v220_v35 }
  0x47   : >> { %v226_v37 = vsel %vm224_vm11, %v223_v34, %v221_v36 }
  0x48   : >> { %228 = vrot.lane.b32.xlu0 %v226_v37, %s227_s27  ;;  %s357_s27 = scalar_lea.vmem (%p173_p11), %s897_s1, %s564_s10 }
  0xba   : >> { %v229_v39 = vpop.permute.xlu0 %228 }
  0xbb   : >> { %569 = vpush %v229_v39 }
  0xec   : >> { %s570_s29 = spop %569 }
  0xed   : >> { %v235_v43 = vstv %s570_s29  ;;  %s240_s4 = scalar_lea.vmem [#allocation2], %s570_s29  ;;  %s246_s5 = scalar_lea.vmem [#allocation9], %s570_s29 }
  0xee   : >> { %v242_v44 = vld [vmem:[%s240_s4] ss:$0 sm:$0xff]  ;;  %v237_v46 = vsel %vm234_vm13, %v235_v43, %v236_v40 }
  0xef   : >> { %v248_v45 = vld [vmem:[%s246_s5] ss:$0 sm:$0xff]  ;;  %243 = vst [vmem:[%s240_s4] sm:$0x1] %v241_v41  ;;  %vm251_vm14 = vcmp.ne.f32.partialorder %v242_v44, 0.0  ;;  %238 = vst [vmem:[%s785_s17] sm:$0x1] %v237_v46  ;;  %v258_v53 = vsel %vm257_vm12, %v242_v44, 0.0 }
  0xf0   : >> { %249 = vst [vmem:[%s246_s5] sm:$0x1] %v247_v42  ;;  %244 = vst [vmem:[%s239_s28] sm:$0x1] %v242_v44  ;;  %s399_s4 = sshll.u32 (%p173_p11), %s146_s20, 4  ;;  %s348_s5 = scalar_lea.sflag (%p173_p11), [#allocation6], %s144_s7  ;;  %s400_s4 = int_to_ptr.vmem [resolvable:$true] %s399_s4 }
  0xf1   : >> { %250 = vst [vmem:[%s245_s30] sm:$0x1] %v248_v45  ;;  %vm252_vm0 = vmand %vm234_vm13, %vm251_vm14  ;;  %s843_s30 = scalar_lea.hbm (%p173_p11), %s898_s2, %s565_s11  ;;  %s621_s6 = scalar_lea.vmem (%p173_p11), %s400_s4, 32 }
  0xf2   : >> { %v253_v47 = vsel %vm252_vm0, %v242_v44, 1.0  ;;  %p622_p12 = scmp.ne.s32.totalorder (%p173_p11), %s400_s4, %s621_s6  ;;  %s694_s17 = smov (%p173_p11), [#allocation5]  }
  0xf3   : >> { %v266_v48 = vsel %vm265_vm15, %v253_v47, 1.0  ;;  %s625_s10 = sshll.u32 (%p173_p11), %s694_s17, 4  ;;  %s626_s10 = int_to_ptr.vmem [resolvable:$false] %s625_s10 }
  0xf4   : >> { %619 = vrcp.f32 %v266_v48  ;;  %p623_p13 = pnand (%p173_p11), %p622_p12, %p753_p5  ;;  %s627_s8 = scalar_lea.vmem (%p173_p11), %s626_s10, 64 }
  0xf5   : > { %p628_p1 = scmp.lt.s32.totalorder (%p173_p11), %s400_s4, %s626_s10  ;;  %p629_p2 = scmp.lt.s32.totalorder (%p173_p11), %s627_s8, %s621_s6 }
  0xf6   : > { %v334_v59 = vld [vmem:[#allocation4] sm:$0x3] (%p173_p11)  ;;  %p624_p0 = pneg (%p173_p11), %p623_p13 }
  0xf7   : >> { %v262_v50 = vld [vmem:[#allocation2] sm:$0xff]  ;;  %336 = vst [vmem:[%s146_s20] sm:$0x3] (%p173_p11), %v334_v59  ;;  %p630_p3 = por (%p173_p11), %p629_p2, %p628_p1 }
  0xf8   : > { %v276_v57 = vld [vmem:[#allocation9] sm:$0xff] (%p173_p11) }
  0xf9   : > { %p631_p4 = pnand (%p173_p11), %p630_p3, %p624_p0 }
  0xfe   : >> { %v620_v49 = vpop.eup %619 }
  0xff   : >> { %v268_v51 = vmul.f32 %v620_v49, %v262_v50 }
 0x101   : >> { %v270_v52 = vsel %vm269_vm1, %v268_v51, 0.0 }
 0x102   : >> { %271 = vadd.xlane.f32.xlu0 %v270_v52 }
 0x12f   : > { %292 = vxpose.xlu0.b32.start.end [1/1] (short) (narrow) (%p173_p11), %v276_v57, 8 }
 0x18e   : > { %175 = sbr.rel (!%p173_p11) target bundleno = 44 (0x2c), region = 202 }
 0x18f   : >> { %v272_v54 = vpop.xlane.xlu0 %271 }
 0x190   : >> { %v273_v55 = vmul.f32 %v272_v54, %v258_v53 }
 0x192   : >> { %v274_v56 = vsub.f32 %v268_v51, %v273_v55 }
 0x194   : >> { %275 = vst [vmem:[#allocation2] sm:$0xff] %v274_v56 }
 0x19b   : > { %v328_v58 = vld [vmem:[#allocation2] sm:$0xf] }
 0x19c   : > { %330 = vst [vmem:[%s139_s19] sm:$0xf] %v328_v58 }
 0x1a3   : > { %v373_v60 = vld [vmem:[%s139_s19] sm:$0xf] }
 0x1a4   : > { %374 = vst [vmem:[%s357_s27] sm:$0xf] %v373_v60 }
 0x1a5   : > { %634 = shalt.err (!%p631_p4)
}
 0x1a6   : > { %s635_s7 = scalar_lea.hbm %s843_s30, 32  ;;  %s639_s11 = scalar_lea.hbm %s898_s2, 32 }
 0x1a7   : > { %p636_p8 = scmp.ne.s32.totalorder %s843_s30, %s635_s7  ;;  %p640_p11 = scmp.lt.u32.totalorder %s843_s30, %s898_s2 }
 0x1a8   : > { %p641_p12 = scmp.lt.u32.totalorder %s639_s11, %s635_s7  ;;  %p643_p0 = scmp.lt.u32.totalorder %s635_s7, %s843_s30 }
 0x1a9   : > { %p637_p9 = pnand %p636_p8, %p753_p5 }
 0x1aa   : > { %p642_p13 = por %p641_p12, %p640_p11 }
 0x1ab   : > { %p638_p10 = pneg %p637_p9 }
 0x1ac   : > { %p644_p1 = por %p643_p0, %p642_p13 }
 0x1ae   : > { %p645_p2 = pnand %p644_p1, %p638_p10 }
 0x1b0   : > { %648 = shalt.err (!%p645_p2)
}
 0x1b1   : > { %571 = dma.vmem_to_hbm [thread:$0]  (%p753_p5), %s400_s4, 32, %s843_s30, %s348_s5   ;;  %v308_v61 = vpop.trf.xlu0 }
 0x1b2   : > { %324 = vst [vmem:[%s791_s22] sm:$0x1] %v308_v61  ;;  %s903_s6 = sshrl.u32 (%p753_p5), %s736_s16, 3 }
 0x1b3   : > { %s566_s28 = sshll.u32 (%p753_p5), %s903_s6, 1 }
 0x1b4   : > { %405 = sbr.rel (!%p753_p5) target bundleno = 451 (0x1c3), region = 96  ;;  %s408_s10 = scalar_lea.vmem (%p753_p5), %s899_s3, %s566_s28 }
 0x1b9   : > { %v340_v62 = vld [vmem:[#allocation7] sm:$0x3] }
 0x1ba   : > { %342 = vst [vmem:[%s152_s21] sm:$0x3] %v340_v62 }
 0x1c1   : > { %v424_v63 = vld [vmem:[%s152_s21] sm:$0x3] }
 0x1c2   : > { %425 = vst [vmem:[%s408_s10] sm:$0x3] %v424_v63 }
 0x1c3 PF: > { %s452_s22 = sand.u32 1, %s675_s12   ;;  %p574_p5 = pnand %p552_p7, %p757_p6 }
 0x1c4   : > { %s453_s24 = scalar_lea.sflag [#allocation6], %s452_s22 }
 0x1c5   : > { %670 = dma.done.wait (!%p574_p5), %s453_s24, 32  }
 0x1c6   : > { %672 = vsyncadd (!%p574_p5), %s453_s24, 4294967264  ;;  %p10_p3 = scmp.ge.s32.totalorder %s740_s18, 4   ;;  %s904_s12 = smov %s679_s13 }
 0x1c7   : > { %s905_s13 = smov %s683_s14  ;;  %s906_s14 = smov %s751_s23 }
 0x1c8   : > { %s907_s15 = smov %s740_s18  ;;  %12 = sbr.rel (!%p10_p3) target bundleno = 3 (0x3), region = 213 }
 0x1cf   :  { %465 = vsyncpa [#allocation6], 1 }
 0x1d0   :  { %467 = vsyncpa [#allocation6 + $0x1], 1 }

// kernel: custom-call.13
= control target key start
LH: loop header
LB: loop body
LE: loop exit
PB: predicated region body
PF: predicated region fallthrough
CT: control target
= control target key end

     0   :  { %s343_s6 = smov 0   ;;  %s345_s7 = smov 0   ;;  %s390_s0 = inlined_call_operand.vmem [shape: f32[2,1,3,3], index: 0, kind: input, shape index: {}]   ;;  %s391_s1 = inlined_call_operand.vmem [shape: f32[2,1,3,3], index: 1, kind: output, shape index: {}]  }
   0x1   :  { %s347_s8 = smov 0  }
   0x2 LB: > { %s269_s9 = sadd.s32 4294967295, %s330_s8   ;;  %s33_s10 = sadd.s32 1, %s326_s7  ;;  %s330_s8 = sphi %s347_s8, %s7_s8   ;;  %s326_s7 = sphi %s345_s7, %s393_s7   ;;  %s322_s6 = sphi %s343_s6, %s392_s6  }
   0x3   : > { %p35_p0 = scmp.ge.s32.totalorder %s33_s10, 2  ;;  %p271_p1 = scmp.ge.s32.totalorder %s330_s8, 2 }
   0x4   : > { %s49_s11 = sand.u32 (!%p271_p1), 1, %s330_s8   ;;  %s273_s12 = sshll.u32 (!%p271_p1), %s326_s7, 2 }
   0x5   : > { %s395_s10 = smov (%p35_p0, %s33_s10), 0  ;;  %47 = sbr.rel (%p271_p1) target bundleno = 12 (0xc), region = 16 }
   0x6   : > { %s272_s13 = sshll.u32 (!%p271_p1), %s49_s11, 2  ;;  %s56_s16 = scalar_lea.vmem (!%p271_p1), %s390_s0, %s273_s12 }
   0x7   : > { %v72_v0 = vld [vmem:[%s56_s16] sm:$0xf] (!%p271_p1)  ;;  %s51_s17 = scalar_lea.vmem (!%p271_p1), [#allocation1], %s272_s13 }
   0x8   : > { %73 = vst [vmem:[%s51_s17] sm:$0xf] (!%p271_p1), %v72_v0 }
   0xc PF: > { %p274_p2 = scmp.ge.s32.totalorder %s330_s8, 1  ;;  %p89_p3 = scmp.lt.s32.totalorder %s330_s8, 3 }
   0xe   : > { %p90_p4 = pnand %p274_p2, %p89_p3 }
  0x10   : > { %93 = sbr.rel (%p90_p4) target bundleno = 511 (0x1ff), region = 50 }
  0x17   : > { %s370_s18 = sand.u32 1, %s269_s9   ;;  %v111_v1 = vlaneseq  ;;  %v332_v11 = vmov -1.0   ;;  %s278_s22 = sshll.u32 %s322_s6, 2 }
  0x18   : > { %s275_s19 = sshll.u32 %s370_s18, 2  ;;  %s178_s25 = scalar_lea.vmem %s391_s1, %s278_s22 }
  0x19   : > { %s102_s20 = scalar_lea.vmem [#allocation1], %s275_s19  ;;  %v112_v3 = vand.u32 127, %v111_v1  ;;  %v115_v4 = vshrl.u32 %v111_v1, 7  ;;  %s106_s21 = scalar_lea.vmem [#allocation3], %s275_s19 }
  0x1a   : > { %v109_v2 = vld [vmem:[%s102_s20] sm:$0xf] }
  0x1b   : > { %110 = vst [vmem:[#allocation0] sm:$0xf] %v109_v2  ;;  %vm113_vm0 = vcmp.lt.s32.totalorder %v112_v3, 3  ;;  %vm122_vm1 = vcmp.ge.s32.totalorder %v115_v4, %v112_v3  ;;  %vm117_vm2 = vcmp.eq.s32.totalorder %v115_v4, %v112_v3  ;;  %vm136_vm4 = vcmp.eq.s32.totalorder %v112_v3, 0 }
  0x1c   : > { %vm123_vm3 = vmand %vm122_vm1, %vm113_vm0  ;;  %vm133_vm5 = vcmp.eq.s32.totalorder %v112_v3, %v115_v4  ;;  %v137_v12 = vsel %vm136_vm4, 1.0, %v332_v11  ;;  %vm144_vm6 = vcmp.eq.s32.totalorder %v112_v3, 1  ;;  %vm154_vm7 = vcmp.eq.s32.totalorder %v112_v3, 2 }
  0x1d   : > { %v138_v13 = vsel %vm133_vm5, %v137_v12, 0.0 }
  0x22   : > { %v118_v5 = vld [vmem:[#allocation0] sm:$0xff] }
  0x23   : > { %v119_v6 = vsel %vm117_vm2, %v118_v5, 0.0  ;;  %v124_v7 = vsel %vm123_vm3, %v118_v5, 0.0 }
  0x24   : > { %120 = vadd.xlane.f32.xlu0 %v119_v6 }
  0xb1   : > { %v121_v8 = vpop.xlane.xlu0 %120 }
  0xb2   : > { %306 = vrcp.f32 %v121_v8  ;;  %vm161_vm8 = vweird.f32 %v121_v8 }
  0xbc   : > { %v307_v9 = vpop.eup %306 }
  0xbd   : > { %v126_v10 = vmul.f32 %v307_v9, %v124_v7 }
  0xbf   : > { %127 = vst [vmem:[#allocation4] sm:$0xff] %v126_v10 }
  0xc6   : > { %v140_v14 = vld [vmem:[#allocation4 + $0x1] ss:$0 sm:$0xff]  ;;  %v150_v17 = vld [vmem:[#allocation4 + $0x2] ss:$0 sm:$0xff] }
  0xc7   : > { %v141_v15 = vxor.u32 2147483648, %v140_v14  ;;  %v151_v19 = vxor.u32 2147483648, %v150_v17 }
  0xc9   : > { %v145_v16 = vmul.f32 %v141_v15, %v138_v13 }
  0xcb   : > { %146 = vadd.xlane.f32.xlu0 %v145_v16 }
 0x158   : > { %v147_v18 = vpop.xlane.xlu0 %146 }
 0x159   : > { %v148_v20 = vsel %vm144_vm6, %v147_v18, %v138_v13 }
 0x15a   : > { %v155_v21 = vmul.f32 %v151_v19, %v148_v20 }
 0x15c   : > { %156 = vadd.xlane.f32.xlu1 %v155_v21 }
 0x1e9   : > { %v157_v22 = vpop.xlane.xlu1 %156 }
 0x1ea   : > { %v158_v23 = vsel %vm154_vm7, %v157_v22, %v148_v20 }
 0x1eb   : > { %v160_v24 = vmul.f32 %v307_v9, %v158_v23 }
 0x1ed   : > { %v162_v25 = vsel %vm161_vm8, %v158_v23, %v160_v24 }
 0x1ee   : > { %163 = vst [vmem:[#allocation2] sm:$0xff] %v162_v25 }
 0x1f5   : > { %v167_v26 = vld [vmem:[#allocation2] sm:$0xf] }
 0x1f6   : > { %169 = vst [vmem:[%s106_s21] sm:$0xf] %v167_v26 }
 0x1fd   : > { %v194_v27 = vld [vmem:[%s106_s21] sm:$0xf] }
 0x1fe   : > { %195 = vst [vmem:[%s178_s25] sm:$0xf] %v194_v27 }
 0x1ff PF: > { %s7_s8 = sadd.s32 1, %s330_s8   ;;  %s392_s6 = smov %s326_s7 }
 0x200   : > { %p4_p5 = scmp.ge.s32.totalorder %s7_s8, 4   ;;  %s393_s7 = smov %s395_s10 }
 0x202   :  { %6 = sbr.rel (!%p4_p5) target bundleno = 2 (0x2), region = 112 }

// kernel: custom-call.12
= control target key start
LH: loop header
LB: loop body
LE: loop exit
PB: predicated region body
PF: predicated region fallthrough
CT: control target
= control target key end

     0   :  { %s342_s6 = smov 0   ;;  %s344_s7 = smov 0   ;;  %s389_s0 = inlined_call_operand.vmem [shape: f32[2,1,3,3], index: 0, kind: input, shape index: {}]   ;;  %s390_s1 = inlined_call_operand.vmem [shape: f32[2,1,3,3], index: 1, kind: output, shape index: {}]  }
   0x1   :  { %s346_s8 = smov 0  }
   0x2 LB: > { %s268_s9 = sadd.s32 4294967295, %s329_s8   ;;  %s33_s10 = sadd.s32 1, %s325_s7  ;;  %s329_s8 = sphi %s346_s8, %s7_s8   ;;  %s325_s7 = sphi %s344_s7, %s392_s7   ;;  %s321_s6 = sphi %s342_s6, %s391_s6  }
   0x3   : > { %p35_p0 = scmp.ge.s32.totalorder %s33_s10, 2  ;;  %p270_p1 = scmp.ge.s32.totalorder %s329_s8, 2 }
   0x4   : > { %s49_s11 = sand.u32 (!%p270_p1), 1, %s329_s8   ;;  %s272_s12 = sshll.u32 (!%p270_p1), %s325_s7, 2 }
   0x5   : > { %s394_s10 = smov (%p35_p0, %s33_s10), 0  ;;  %47 = sbr.rel (%p270_p1) target bundleno = 12 (0xc), region = 16 }
   0x6   : > { %s271_s13 = sshll.u32 (!%p270_p1), %s49_s11, 2  ;;  %s56_s16 = scalar_lea.vmem (!%p270_p1), %s389_s0, %s272_s12 }
   0x7   : > { %v72_v0 = vld [vmem:[%s56_s16] sm:$0xf] (!%p270_p1)  ;;  %s51_s17 = scalar_lea.vmem (!%p270_p1), [#allocation1], %s271_s13 }
   0x8   : > { %73 = vst [vmem:[%s51_s17] sm:$0xf] (!%p270_p1), %v72_v0 }
   0xc PF: > { %p273_p2 = scmp.ge.s32.totalorder %s329_s8, 1  ;;  %p89_p3 = scmp.lt.s32.totalorder %s329_s8, 3 }
   0xe   : > { %p90_p4 = pnand %p273_p2, %p89_p3 }
  0x10   : > { %93 = sbr.rel (%p90_p4) target bundleno = 511 (0x1ff), region = 50 }
  0x17   : > { %s369_s18 = sand.u32 1, %s268_s9   ;;  %v111_v1 = vlaneseq  ;;  %v331_v11 = vmov -1.0   ;;  %s277_s22 = sshll.u32 %s321_s6, 2 }
  0x18   : > { %s274_s19 = sshll.u32 %s369_s18, 2  ;;  %s177_s25 = scalar_lea.vmem %s390_s1, %s277_s22 }
  0x19   : > { %s102_s20 = scalar_lea.vmem [#allocation1], %s274_s19  ;;  %v112_v3 = vand.u32 127, %v111_v1  ;;  %v115_v4 = vshrl.u32 %v111_v1, 7  ;;  %s106_s21 = scalar_lea.vmem [#allocation3], %s274_s19 }
  0x1a   : > { %v109_v2 = vld [vmem:[%s102_s20] sm:$0xf] }
  0x1b   : > { %110 = vst [vmem:[#allocation0] sm:$0xf] %v109_v2  ;;  %vm113_vm0 = vcmp.lt.s32.totalorder %v112_v3, 3  ;;  %vm122_vm1 = vcmp.le.s32.totalorder %v115_v4, %v112_v3  ;;  %vm117_vm2 = vcmp.eq.s32.totalorder %v115_v4, %v112_v3  ;;  %vm136_vm4 = vcmp.eq.s32.totalorder %v112_v3, 2 }
  0x1c   : > { %vm123_vm3 = vmand %vm122_vm1, %vm113_vm0  ;;  %vm133_vm5 = vcmp.eq.s32.totalorder %v112_v3, %v115_v4  ;;  %v137_v12 = vsel %vm136_vm4, 1.0, %v331_v11  ;;  %vm144_vm6 = vcmp.eq.s32.totalorder %v112_v3, 1  ;;  %vm153_vm7 = vcmp.eq.s32.totalorder %v112_v3, 0 }
  0x1d   : > { %v138_v13 = vsel %vm133_vm5, %v137_v12, 0.0 }
  0x22   : > { %v118_v5 = vld [vmem:[#allocation0] sm:$0xff] }
  0x23   : > { %v119_v6 = vsel %vm117_vm2, %v118_v5, 0.0  ;;  %v124_v7 = vsel %vm123_vm3, %v118_v5, 0.0 }
  0x24   : > { %120 = vadd.xlane.f32.xlu0 %v119_v6 }
  0xb1   : > { %v121_v8 = vpop.xlane.xlu0 %120 }
  0xb2   : > { %305 = vrcp.f32 %v121_v8  ;;  %vm160_vm8 = vweird.f32 %v121_v8 }
  0xbc   : > { %v306_v9 = vpop.eup %305 }
  0xbd   : > { %v126_v10 = vmul.f32 %v306_v9, %v124_v7 }
  0xbf   : > { %127 = vst [vmem:[#allocation4] sm:$0xff] %v126_v10 }
  0xc6   : > { %v140_v14 = vld [vmem:[#allocation4 + $0x1] ss:$0 sm:$0xff]  ;;  %v149_v17 = vld [vmem:[#allocation4] ss:$0 sm:$0xff] }
  0xc7   : > { %v141_v15 = vxor.u32 2147483648, %v140_v14  ;;  %v150_v19 = vxor.u32 2147483648, %v149_v17 }
  0xc9   : > { %v145_v16 = vmul.f32 %v141_v15, %v138_v13 }
  0xcb   : > { %146 = vadd.xlane.f32.xlu0 %v145_v16 }
 0x158   : > { %v147_v18 = vpop.xlane.xlu0 %146 }
 0x159   : > { %v148_v20 = vsel %vm144_vm6, %v147_v18, %v138_v13 }
 0x15a   : > { %v154_v21 = vmul.f32 %v150_v19, %v148_v20 }
 0x15c   : > { %155 = vadd.xlane.f32.xlu1 %v154_v21 }
 0x1e9   : > { %v156_v22 = vpop.xlane.xlu1 %155 }
 0x1ea   : > { %v157_v23 = vsel %vm153_vm7, %v156_v22, %v148_v20 }
 0x1eb   : > { %v159_v24 = vmul.f32 %v306_v9, %v157_v23 }
 0x1ed   : > { %v161_v25 = vsel %vm160_vm8, %v157_v23, %v159_v24 }
 0x1ee   : > { %162 = vst [vmem:[#allocation2] sm:$0xff] %v161_v25 }
 0x1f5   : > { %v166_v26 = vld [vmem:[#allocation2] sm:$0xf] }
 0x1f6   : > { %168 = vst [vmem:[%s106_s21] sm:$0xf] %v166_v26 }
 0x1fd   : > { %v193_v27 = vld [vmem:[%s106_s21] sm:$0xf] }
 0x1fe   : > { %194 = vst [vmem:[%s177_s25] sm:$0xf] %v193_v27 }
 0x1ff PF: > { %s7_s8 = sadd.s32 1, %s329_s8   ;;  %s391_s6 = smov %s325_s7 }
 0x200   : > { %p4_p5 = scmp.ge.s32.totalorder %s7_s8, 4   ;;  %s392_s7 = smov %s394_s10 }
 0x202   :  { %6 = sbr.rel (!%p4_p5) target bundleno = 2 (0x2), region = 111 }

// kernel: _lambda_.1
= control target key start
LH: loop header
LB: loop body
LE: loop exit
PB: predicated region body
PF: predicated region fallthrough
CT: control target
= control target key end

     0   :  { %s9352_s0 = inlined_call_operand.vmem [shape: f32[96], index: 0, kind: input, shape index: {}]   ;;  %s9353_s1 = inlined_call_operand.vmem [shape: f32[2,1,384], index: 1, kind: input, shape index: {}]   ;;  %s9354_s2 = inlined_call_operand.vmem [shape: f32[2,3,384], index: 2, kind: input, shape index: {}]   ;;  %s9355_s3 = inlined_call_operand.vmem [shape: bf16[2,3,48,16], index: 3, kind: input, shape index: {}]   ;;  %s9356_s4 = inlined_call_operand.vmem [shape: f32[2,2,8,128], index: 4, kind: output, shape index: {}]  }
   0x1   :  { %9519 = sst [smem:[#allocation80_spill]] %s9352_s0 }
   0x2   :  { %9520 = sst [smem:[#allocation81_spill]] %s9353_s1 }
   0x3   :  { %9521 = sst [smem:[#allocation82_spill]] %s9354_s2 }
   0x4   :  { %9522 = sst [smem:[#allocation83_spill]] %s9355_s3 }
   0x5   :  { %9 = vsyncpa [#allocation3], 0  ;;  %s5935_s15 = smov 0   ;;  %s5937_s16 = smov 0  }
   0x6   :  { %s5939_s17 = smov 0   ;;  %s5941_s18 = smov 0  }
   0x7   :  { %s5943_s19 = smov 0  }
   0x8 LB: > { %s5509_s20 = sadd.s32 4294967295, %s5899_s19   ;;  %s24_s21 = sadd.s32 1, %s5891_s17  ;;  %s5899_s19 = sphi %s5943_s19, %s15_s19   ;;  %s5895_s18 = sphi %s5941_s18, %s9823_s18   ;;  %s5891_s17 = sphi %s5939_s17, %s9822_s17   ;;  %s5887_s16 = sphi %s5937_s16, %s9821_s16   ;;  %s5883_s15 = sphi %s5935_s15, %s9820_s15  }
   0x9   : > { %p25_p0 = scmp.ge.s32.totalorder %s24_s21, 2  ;;  %s27_s22 = sadd.s32 1, %s5895_s18 }
   0xa   : > { %p5511_p1 = scmp.ge.s32.totalorder %s5899_s19, 1  ;;  %p159_p2 = scmp.lt.s32.totalorder %s5899_s19, 5 }
   0xb   : > { %s9825_s21 = smov (%p25_p0, %s24_s21), 0  ;;  %s9827_s22 = smov (!%p25_p0, %s27_s22), %s5895_s18 }
   0xc   : > { %p5968_p3 = pnand %p5511_p1, %p159_p2  ;;  %p29_p4 = scmp.ge.s32.totalorder %s9827_s22, 2 }
   0xd   : > { %p5972_p5 = scmp.eq.s32.totalorder %s5509_s20, 0  ;;  %s9525_s0 = sld [smem:[#allocation80_spill]] }
   0xe   : > { %p5735_p6 = pneg %p5968_p3  ;;  %s9829_s22 = smov (%p29_p4, %s9827_s22), 0 }
  0x10   : > { %p5736_p7 = pnand %p5972_p5, %p5735_p6 }
  0x12   : > { %p5844_p9 = pneg %p5736_p7 }
  0x13   : > { %s172_s27 = sshll.u32 %s9525_s0, 4  ;;  %s173_s27 = int_to_ptr.vmem [resolvable:$true] %s172_s27 }
  0x14   : > { %s5842_s28 = scalar_lea.vmem %s173_s27, 16  ;;  %p5850_p12 = scmp.lt.s32.totalorder %s173_s27, %s173_s27 }
  0x15   : > { %p5843_p8 = scmp.ne.s32.totalorder %s173_s27, %s5842_s28  ;;  %p5851_p13 = scmp.lt.s32.totalorder %s5842_s28, %s5842_s28 }
  0x17   : > { %p5845_p10 = pnand %p5844_p9, %p5843_p8  ;;  %p5852_p0 = por %p5851_p13, %p5850_p12 }
  0x19   : > { %p5846_p11 = pneg %p5845_p10 }
  0x1b   : > { %p5853_p1 = pnand %p5852_p0, %p5846_p11 }
  0x1d   : > { %5856 = shalt.err (!%p5853_p1)
}
  0x1e   : > { %s5901_s29 = smov [#allocation2]   ;;  %208 = sbr.rel (%p5968_p3) target bundleno = 3013 (0xbc5), region = 36 }
  0x1f   : > { %5738 = dma.vmem_to_smem (!%p5736_p7), %s173_s27, 16, %s5901_s29, [#allocation3]  }
  0x25   : > { %5878 = dma.done.wait (%p5972_p5), [#allocation3], 16  }
  0x26   : > { %5880 = vsyncadd (%p5972_p5), [#allocation3], 4294967280 }
  0x27   : > { %214 = sfence }
  0x28   : > { %p247_p2 = scmp.lt.s32.totalorder %s5887_s16, 1  ;;  %s5521_s30 = sshll.u32 %s5883_s15, 7  ;;  %v272_v0 = vlaneseq  ;;  %v9359_v3 = vmov 0   ;;  %v5905_v25 = vmov 1966171168   ;;  %vm739_vm15 = vcmask 130048  }
  0x29   : > { %s5993_s5 = sshra.s32 %s5521_s30, 7  ;;  %775 = vmatprep.mubr.bf16.mxu0 %v9359_v3  ;;  %1348 = vmatprep.mubr.bf16.mxu1 %v9359_v3  ;;  %s9527_s2 = sld [smem:[#allocation82_spill]]  ;;  %v348_v26 = vunpack.c.l.s4 %v5905_v25 }
  0x2a   : > { %s5996_s6 = scalar_select %p247_p2, %s5887_s16, 1  ;;  %v5998_v1 = vshrl.u32 %v272_v0, 7  ;;  %v6000_v2 = vand.u32 127, %v272_v0 }
  0x2b   : > { %s5524_s8 = sshll.u32 %s5993_s5, 2  ;;  %s6029_s13 = smul.u32 48, %s5887_s16  ;;  %v349_v35 = vunpack.c.0.s8 %v348_v26 }
  0x2c   : > { %9526 = vst [vmem:[#allocation5_spill] sm:$0xff] %v5998_v1  ;;  %s5623_s7 = smul.u32 12, %s5996_s6  ;;  %v274_v4 = vadd.s32 128, %v6000_v2  ;;  %v275_v5 = vcvt.s32.f32 %v6000_v2  ;;  %v6009_v6 = vsub.s32 0, %v5998_v1  ;;  %v6017_v9 = vsub.s32 4, %v5998_v1  ;;  %s5520_s14 = sshll.u32 %s5883_s15, 3 }
  0x2d   : > { %s9357_s20 = smov 127   ;;  %s332_s16 = sadd.s32 1, %s6029_s13  ;;  %v6115_v52 = vsub.s32 %v349_v35, %v5998_v1 }
  0x2e   : > { %v276_v7 = vcvt.s32.f32 %v274_v4  ;;  %v277_v8 = vadd.f32 0.5, %v275_v5  ;;  %9528 = vst [vmem:[#allocation6_spill] sm:$0xff] %v6017_v9  ;;  %s367_s23 = sadd.s32 4, %s6029_s13  ;;  %s287_s24 = scvt.s32.f32 %s5520_s14 }
  0x2f   : > { %s255_s11 = scalar_lea.vmem %s9527_s2, %s5623_s7  ;;  %s372_s25 = sadd.s32 5, %s6029_s13  ;;  %9535 = vst [vmem:[#allocation10_spill] sm:$0xff] %v6115_v52 }
  0x30   : > { %s6014_s12 = scalar_lea.vmem %s255_s11, %s5524_s8  ;;  %v278_v11 = vadd.f32 0.5, %v276_v7  ;;  %v279_v12 = vmul.f32 0.0625, %v277_v8  ;;  %s6046_s26 = sld [smem:[#allocation2 + %s6029_s13]]  ;;  %v288_v22 = vstv %s287_s24 }
  0x31   : > { %v6020_v10 = vld [vmem:[%s6014_s12] sm:$0x77]  ;;  %s6048_s27 = sld [smem:[#allocation2 + %s332_s16]]  ;;  %s407_s29 = sadd.s32 8, %s6029_s13 }
  0x32   : > { %v950_v13 = vrot.slane %v6020_v10, %v6009_v6  ;;  %v6026_v14 = vmul.f32 %v6020_v10, %v6020_v10  ;;  %v280_v15 = vmul.f32 0.0625, %v278_v11  ;;  %v954_v16 = vrot.slane %v6020_v10, %v6017_v9  ;;  %s6053_s28 = sld [smem:[#allocation2 + %s367_s23]]  ;;  %s5904_s8 = smov 126  }
  0x33   : > { %v6037_v18 = vfloor.f32 %v279_v12  ;;  %s6056_s30 = sld [smem:[#allocation2 + %s372_s25]]  ;;  %s412_s9 = sadd.s32 9, %s6029_s13 }
  0x34   : > { %9529 = vst [vmem:[#allocation7_spill] sm:$0xff] %v6026_v14  ;;  %957 = vrot.lane.b32.xlu0 %v950_v13, %s9357_s20  ;;  %v1052_v17 = vrot.slane %v6026_v14, %v6009_v6  ;;  %v6040_v19 = vfloor.f32 %v280_v15  ;;  %s408_s7 = sld [smem:[#allocation2 + %s407_s29]]  ;;  %s419_s10 = sadd.s32 10, %s6029_s13  ;;  %v1056_v31 = vrot.slane %v6026_v14, %v6017_v9 }
  0x35   : > { %9530 = vst [vmem:[#allocation8_spill] sm:$0xff] %v6037_v18  ;;  %v283_v20 = vmul.f32 16.0, %v6037_v18  ;;  %s413_s11 = sld [smem:[#allocation2 + %s412_s9]]  ;;  %s5624_s16 = smul.u32 72, %s5996_s6  ;;  %v6070_v27 = vadd.f32 %v288_v22, %v6037_v18 }
  0x36   : > { %9531 = vst [vmem:[#allocation9_spill] sm:$0xff] %v6040_v19  ;;  %1059 = vrot.lane.b32.xlu1 %v1052_v17, %s9357_s20  ;;  %v284_v21 = vmul.f32 16.0, %v6040_v19  ;;  %s6061_s14 = sld [smem:[#allocation2 + %s419_s10]]  ;;  %v6073_v28 = vadd.f32 %v288_v22, %v6040_v19  ;;  %s339_s23 = sadd.s32 2, %s6029_s13  ;;  %v329_v29 = vstv %s6046_s26 }
  0x37   : > { %v6064_v23 = vsub.f32 %v275_v5, %v283_v20  ;;  %s379_s24 = sadd.s32 6, %s6029_s13  ;;  %s9532_s3 = sld [smem:[#allocation83_spill]]  ;;  %v334_v32 = vstv %s6048_s27 }
  0x38   : > { %959 = vrot.lane.b32.xlu0 %v954_v16, %s9357_s20  ;;  %v6066_v24 = vsub.f32 %v276_v7, %v284_v21  ;;  %s443_s10 = sadd.s32 11, %s6029_s13  ;;  %s5622_s26 = smul.u32 3, %s5996_s6  ;;  %v369_v37 = vstv %s6053_s28  ;;  %v335_v42 = vmul.f32 %v334_v32, %v6070_v27  ;;  %v336_v45 = vmul.f32 %v334_v32, %v6073_v28 }
  0x39   : > { %s6091_s20 = sld [smem:[#allocation2 + %s339_s23]]  ;;  %v374_v38 = vstv %s6056_s30  ;;  %v330_v41 = vmul.f32 %v329_v29, %v6064_v23  ;;  %v370_v48 = vmul.f32 %v369_v37, %v6064_v23  ;;  %s5908_s25 = smov 112  }
  0x3a   : > { %1070 = vrot.lane.b32.xlu1 %v1052_v17, %s5904_s8  ;;  %v409_v30 = vstv %s408_s7  ;;  %s6095_s7 = sld [smem:[#allocation2 + %s379_s24]]  ;;  %v331_v44 = vmul.f32 %v329_v29, %v6066_v24  ;;  %v371_v49 = vmul.f32 %v369_v37, %v6066_v24  ;;  %v375_v50 = vmul.f32 %v374_v38, %v6070_v27  ;;  %s5909_s29 = smov 96  }
  0x3b   : > { %v410_v33 = vmul.f32 %v409_v30, %v6064_v23  ;;  %v411_v34 = vmul.f32 %v409_v30, %v6066_v24  ;;  %v414_v36 = vstv %s413_s11  ;;  %s6102_s27 = sld [smem:[#allocation2 + %s443_s10]]  ;;  %v376_v51 = vmul.f32 %v374_v38, %v6073_v28  ;;  %s7028_s10 = sadd.s32 16, %s6029_s13 }
  0x3c   : > { %968 = vrot.lane.b32.xlu0 %v950_v13, %s5904_s8  ;;  %v415_v39 = vmul.f32 %v414_v36, %v6070_v27  ;;  %v416_v40 = vmul.f32 %v414_v36, %v6073_v28  ;;  %v421_v43 = vstv %s6061_s14  ;;  %s9534_s1 = sld [smem:[#allocation81_spill]]  ;;  %v337_v55 = vadd.f32 %v335_v42, %v330_v41  ;;  %s2553_s30 = sadd.s32 10, %s7028_s10 }
  0x3d   : > { %s6081_s9 = scalar_lea.vmem %s9532_s3, %s5624_s16  ;;  %s9533_s16 = smov 127   ;;  %v338_v57 = vadd.f32 %v336_v45, %v331_v44  ;;  %v377_v59 = vadd.f32 %v375_v50, %v370_v48  ;;  %v378_v60 = vadd.f32 %v376_v51, %v371_v49  ;;  %v5906_v38 = vmov 286326784  }
  0x3e   : > { %v417_v46 = vadd.f32 %v415_v39, %v410_v33  ;;  %v418_v47 = vadd.f32 %v416_v40, %v411_v34  ;;  %v805_v39 = vunpack.c.l.s4 %v5906_v38  ;;  %p263_p3 = scmp.lt.s32.totalorder %s5883_s15, 1 }
  0x3f   : > { %v341_v58 = vstv %s6091_s20  ;;  %s403_s20 = sadd.s32 7, %s6029_s13 }
  0x40   : > { %970 = vrot.lane.b32.xlu0 %v954_v16, %s5904_s8  ;;  %v422_v53 = vadd.f32 %v421_v43, %v417_v46  ;;  %v423_v54 = vadd.f32 %v421_v43, %v418_v47  ;;  %v381_v61 = vstv %s6095_s7  ;;  %v342_v0 = vadd.f32 %v341_v58, %v337_v55  ;;  %s404_s24 = sld [smem:[#allocation2 + %s403_s20]]  ;;  %s2546_s7 = sadd.s32 9, %s7028_s10 }
  0x41   : > { %v343_v5 = vadd.f32 %v341_v58, %v338_v57  ;;  %v382_v7 = vadd.f32 %v381_v61, %v377_v59  ;;  %v383_v8 = vadd.f32 %v381_v61, %v378_v60  ;;  %v445_v11 = vstv %s6102_s27  ;;  %s2547_s28 = sld [smem:[#allocation2 + %s2546_s7]]  ;;  %s2473_s7 = sadd.s32 2, %s7028_s10 }
  0x42   : > { %s250_s11 = scalar_lea.vmem %s9534_s1, %s5622_s26  ;;  %v426_v56 = vcombine.low %v422_v53, %v423_v54  ;;  %v806_v45 = vunpack.c.0.s8 %v805_v39  ;;  %v6147_v55 = vsub.s32 1, %v5998_v1  ;;  %v9361_v58 = vmov 0.0   ;;  %s2541_s26 = sadd.s32 8, %s7028_s10 }
  0x43   : > { %s6119_s14 = scalar_lea.vmem %s250_s11, %s5993_s5  ;;  %v346_v15 = vcombine.low %v342_v0, %v343_v5  ;;  %v386_v16 = vcombine.low %v382_v7, %v383_v8  ;;  %s363_s5 = sadd.s32 3, %s6029_s13 }
  0x44   : > { %1061 = vrot.lane.b32.xlu0 %v1056_v31, %s9533_s16  ;;  %v433_v62 = vrot.slane %v426_v56, %v6115_v52  ;;  %v320_v63 = vld [vmem:[%s6119_s14] sm:$0x3]  ;;  %s364_s23 = sld [smem:[#allocation2 + %s363_s5]]  ;;  %v6144_v51 = vsub.s32 %v806_v45, %v5998_v1  ;;  %s2577_s5 = sadd.s32 11, %s7028_s10 }
  0x45   : > { %v353_v20 = vrot.slane %v346_v15, %v6115_v52  ;;  %v393_v21 = vrot.slane %v386_v16, %v6115_v52  ;;  %v5810_v45 = vld [vmem:[%s6081_s9] sm:$0xff]   ;;  %s2542_s27 = sld [smem:[#allocation2 + %s2541_s26]]  ;;  %s9831_s15 = smov (!%p263_p3, %s5883_s15), 1 }
  0x46   : > { %v440_v4 = vrot.slane %v433_v62, %v6115_v52  ;;  %v405_v32 = vstv %s404_s24  ;;  %9536 = vst [vmem:[#allocation11_spill] sm:$0xff] %v6144_v51  ;;  %s2554_s11 = sld [smem:[#allocation2 + %s2553_s30]] }
  0x47   : > { %v360_v22 = vrot.slane %v353_v20, %v6115_v52  ;;  %v400_v25 = vrot.slane %v393_v21, %v6115_v52  ;;  %s2578_s20 = sld [smem:[#allocation2 + %s2577_s5]]  ;;  %s2506_s5 = sadd.s32 5, %s7028_s10 }
  0x48   : > { %1072 = vrot.lane.b32.xlu0 %v1056_v31, %s5904_s8  ;;  %v442_v12 = vmul.f32 %v440_v4, %v320_v63  ;;  %s2462_s24 = sld [smem:[#allocation2 + %s7028_s10]] }
  0x49   : > { %v362_v26 = vmul.f32 %v360_v22, %v320_v63  ;;  %v402_v29 = vmul.f32 %v400_v25, %v320_v63  ;;  %v6155_v63 = vadd.s32 8, %v5998_v1 }
  0x4a   : > { %v446_v13 = vadd.f32 %v445_v11, %v442_v12  ;;  %v365_v31 = vstv %s364_s23  ;;  %s2466_s23 = sadd.s32 1, %s7028_s10 }
  0x4b   : > { %v366_v34 = vadd.f32 %v365_v31, %v362_v26  ;;  %v406_v35 = vadd.f32 %v405_v32, %v402_v29  ;;  %9538 = vst [vmem:[#allocation13_spill] sm:$0xff] %v6155_v63  ;;  %s2467_s26 = sld [smem:[#allocation2 + %s2466_s23]] }
  0x4c   : > { %v447_v17 = vadd.f32 1e-10, %v446_v13  ;;  %s2507_s23 = sld [smem:[#allocation2 + %s2506_s5]] }
  0x4e   : > { %5819 = vrcp.f32 %v447_v17 }
  0x58   : > { %v5820_v30 = vpop.eup %5819 }
  0x59   : > { %v449_v33 = vmul.f32 %v5820_v30, %v447_v17 }
  0x5b   : > { %v450_v36 = vsub.f32 2.0, %v449_v33 }
  0x5d   : > { %v451_v37 = vmul.f32 %v5820_v30, %v450_v36 }
  0x5f   : > { %v452_v40 = vmul.f32 %v451_v37, %v366_v34  ;;  %v6133_v41 = vmul.f32 %v451_v37, %v406_v35 }
  0x61   : > { %v454_v42 = vfloor.f32 %v452_v40  ;;  %v6136_v43 = vfloor.f32 %v6133_v41  ;;  %v467_v44 = vmax.f32 %v452_v40, 0.0 }
  0x63   : > { %vm456_vm0 = vcmp.ge.f32.partialorder %v454_v42, 0.0  ;;  %v457_v46 = vadd.f32 1.0, %v454_v42  ;;  %v6139_v47 = vadd.f32 1.0, %v6136_v43  ;;  %vm460_vm1 = vcmp.ge.f32.partialorder %v6136_v43, 0.0 }
  0x64   : > { %v468_v48 = vmin.f32 %v467_v44, 15.0  ;;  %v471_v49 = vmax.f32 %v454_v42, 0.0 }
  0x65   : > { %vm458_vm2 = vcmp.le.f32.partialorder %v457_v46, 15.0  ;;  %vm463_vm3 = vcmp.le.f32.partialorder %v6139_v47, 15.0  ;;  %v473_v50 = vmax.f32 %v457_v46, 0.0  ;;  %v5811_v46 = vld [vmem:[%s6081_s9 + $0x8] sm:$0xff]  }
  0x66   : > { %vm459_vm4 = vmand %vm456_vm0, %vm458_vm2  ;;  %v472_v53 = vmin.f32 %v471_v49, 15.0  ;;  %vm620_vm0 = vcmp.lt.s32.totalorder %v6000_v2, 127 }
  0x67   : > { %vm461_vm5 = vmand %vm459_vm4, %vm460_vm1  ;;  %v474_v54 = vmin.f32 %v473_v50, 15.0  ;;  %vm646_vm1 = vcmp.lt.s32.totalorder %v6000_v2, 126 }
  0x68   : > { %vm464_vm6 = vmand %vm461_vm5, %vm463_vm3  ;;  %v480_v56 = vsub.f32 %v468_v48, %v472_v53  ;;  %v5625_v57 = vtrunc.f32 %v472_v53  ;;  %v5812_v53 = vld [vmem:[%s6081_s9 + $0x10] sm:$0xff]  }
  0x69   : > { %v6150_v59 = vsel %vm464_vm6, 1.0, %v9361_v58  ;;  %v479_v60 = vsub.f32 %v474_v54, %v468_v48  ;;  %v5627_v61 = vtrunc.f32 %v474_v54  ;;  %v6205_v48 = vsub.s32 5, %v5998_v1 }
  0x6a   : > { %9537 = vst [vmem:[#allocation12_spill] sm:$0xff] %v6150_v59  ;;  %v810_v62 = vrot.slane %v6150_v59, %v6144_v51  ;;  %v5626_v0 = vcvt.f32.s32 %v5625_v57  ;;  %v534_v7 = vrot.slane %v480_v56, %v6147_v55  ;;  %v530_v8 = vrot.slane %v480_v56, %v6009_v6 }
  0x6b   : > { %v5628_v4 = vcvt.f32.s32 %v5627_v61  ;;  %v507_v5 = vrot.slane %v479_v60, %v6147_v55  ;;  %v503_v15 = vrot.slane %v479_v60, %v6009_v6  ;;  %v6170_v20 = vrot.slane %v6150_v59, %v6009_v6  ;;  %9539 = vst [vmem:[#allocation14_spill] sm:$0xff] %v6205_v48 }
  0x6c   : > { %v6161_v11 = vmul.f32 %v810_v62, %v6020_v10  ;;  %v494_v12 = vrot.slane %v5626_v0, %v6147_v55  ;;  %v490_v13 = vrot.slane %v5626_v0, %v6009_v6  ;;  %v6174_v21 = vrot.slane %v6150_v59, %v6147_v55 }
  0x6d   : > { %v521_v16 = vrot.slane %v5628_v4, %v6147_v55  ;;  %v517_v17 = vrot.slane %v5628_v4, %v6009_v6  ;;  %v1511_v54 = vrot.slane %v6020_v10, %v6147_v55  ;;  %v1515_v56 = vrot.slane %v6020_v10, %v6205_v48 }
  0x6e   : > { %v6178_v22 = vrot.slane %v6161_v11, %v6009_v6  ;;  %v6182_v25 = vrot.slane %v6161_v11, %v6017_v9  ;;  %vm496_vm7 = vcmp.eq.s32.totalorder %v5998_v1, %v494_v12  ;;  %vm498_vm8 = vcmp.eq.s32.totalorder %v6155_v63, %v494_v12 }
  0x6f   : > { %v511_v26 = vsel %vm496_vm7, %v507_v5, 0.0  ;;  %v513_v29 = vsel %vm498_vm8, %v507_v5, 0.0  ;;  %vm523_vm9 = vcmp.eq.s32.totalorder %v5998_v1, %v521_v16  ;;  %vm525_vm10 = vcmp.eq.s32.totalorder %v6155_v63, %v521_v16 }
  0x70   : > { %856 = vrot.lane.b32.xlu1 %v6178_v22, %s9533_s16  ;;  %v538_v30 = vsel %vm523_vm9, %v534_v7, 0.0  ;;  %v540_v31 = vsel %vm525_vm10, %v534_v7, 0.0  ;;  %vm495_vm11 = vcmp.eq.s32.totalorder %v5998_v1, %v490_v13  ;;  %vm497_vm12 = vcmp.eq.s32.totalorder %v6155_v63, %v490_v13 }
  0x71   : > { %v542_v32 = vadd.f32 %v538_v30, %v511_v26  ;;  %v544_v33 = vadd.f32 %v540_v31, %v513_v29  ;;  %v510_v34 = vsel %vm495_vm11, %v503_v15, 0.0  ;;  %v512_v35 = vsel %vm497_vm12, %v503_v15, 0.0 }
  0x72   : > { %vm522_vm13 = vcmp.eq.s32.totalorder %v5998_v1, %v517_v17  ;;  %vm524_vm14 = vcmp.eq.s32.totalorder %v6155_v63, %v517_v17  ;;  %v5790_v36 = vpack.i.bf16 %v6174_v21, %v6170_v20  ;;  %v6209_v49 = vrot.slane %v6161_v11, %v6147_v55 }
  0x73   : > { %v546_v37 = vpack.c.bf16 %v544_v33, %v542_v32  ;;  %v537_v38 = vsel %vm522_vm13, %v530_v8, 0.0  ;;  %v539_v39 = vsel %vm524_vm14, %v530_v8, 0.0  ;;  %v6218_v50 = vrot.slane %v6161_v11, %v6205_v48 }
  0x74   : > { %858 = vrot.lane.b32.xlu1 %v6182_v25, %s9533_s16  ;;  %v541_v40 = vadd.f32 %v537_v38, %v510_v34  ;;  %v543_v42 = vadd.f32 %v539_v39, %v512_v35  ;;  %5791 = vrot.lane.b32.xlu0 %v5790_v36, %s9533_s16  ;;  %v1619_v57 = vrot.slane %v6026_v14, %v6205_v48  ;;  %vm291_vm10 = vcmp.lt.f32.partialorder %v6037_v18, 8.0 }
  0x75   : > { %743 = vmatprep.subr.bf16.mxu0 %v546_v37  ;;  %1316 = vmatprep.subr.bf16.mxu1 %v546_v37  ;;  %v1615_v60 = vrot.slane %v6026_v14, %v6147_v55  ;;  %vm9492_vm11 = vcmp.lt.f32.partialorder %v6040_v19, 8.0  ;;  %vm842_vm14 = vcmask 1040384  }
  0x76   : > { %v545_v44 = vpack.c.bf16 %v543_v42, %v541_v40 }
  0x78   : > { %744 = vmatpush1.bf16.msra.mxu0 %v545_v44  ;;  %1317 = vmatpush1.bf16.msra.mxu1 %v545_v44 }
  0x79   : > { %872 = vrot.lane.b32.xlu1 %v6178_v22, %s5908_s25  ;;  %5796 = vrot.lane.b32.xlu0 %v5790_v36, %s5904_s8 }
  0x7a   : > { %1892 = vmatprep.subr.bf16.mxu0 %v546_v37 }
  0x7b   : > { %5527 = vmatmul.mubr.msk.bf16.vlgmr.msra.gmra.mrb[0].mxu0 %vm739_vm15, %v5810_v45  ;;  %5535 = vmatmul.mubr.msk.bf16.vlgmr.msra.gmra.mrb[0].mxu1 %vm739_vm15, %v5811_v46 }
  0x7c   : > { %1893 = vmatpush1.bf16.msra.mxu0 %v545_v44  ;;  %1924 = vmatprep.mubr.bf16.mxu0 %v9359_v3 }
  0x7d   : > { %874 = vrot.lane.b32.xlu1 %v6182_v25, %s5908_s25  ;;  %1418 = vrot.lane.b32.xlu0 %v6209_v49, %s9533_s16 }
  0x7e   : > { %2905 = vmatprep.mubr.bf16.mxu1 %v9359_v3 }
  0x81   : > { %1420 = vrot.lane.b32.xlu1 %v6218_v50, %s9533_s16  ;;  %1436 = vrot.lane.b32.xlu0 %v6218_v50, %s5908_s25 }
  0x83   : > { %5543 = vmatmul.mubr.msk.bf16.vlgmr.msra.gmra.mrb[4].mxu0 %vm739_vm15, %v5812_v53 }
  0x84   : > { %3339 = vmatprep.mubr.bf16.mxu0 %v9359_v3 }
  0x85   : > { %1434 = vrot.lane.b32.xlu1 %v6209_v49, %s5908_s25  ;;  %1518 = vrot.lane.b32.xlu0 %v1511_v54, %s9533_s16 }
  0x89   : > { %1520 = vrot.lane.b32.xlu1 %v1515_v56, %s9533_s16  ;;  %1532 = vrot.lane.b32.xlu0 %v1515_v56, %s5904_s8 }
  0x8d   : > { %1530 = vrot.lane.b32.xlu1 %v1511_v54, %s5904_s8  ;;  %1624 = vrot.lane.b32.xlu0 %v1619_v57, %s9533_s16 }
  0x91   : > { %1622 = vrot.lane.b32.xlu1 %v1615_v60, %s9533_s16  ;;  %1636 = vrot.lane.b32.xlu0 %v1619_v57, %s5904_s8 }
  0x95   : > { %1634 = vrot.lane.b32.xlu1 %v1615_v60, %s5904_s8 }
  0xa6   : > { %v958_v61 = vpop.permute.xlu0 %957 }
  0xa8   : > { %v1060_v13 = vpop.permute.xlu1 %1059 }
  0xaa   : > { %v960_v62 = vpop.permute.xlu0 %959 }
  0xab   : > { %v961_v0 = vsel %vm620_vm0, %v958_v61, %v960_v62  ;;  %v962_v4 = vsel %vm620_vm0, %v960_v62, %v958_v61 }
  0xac   : > { %v965_v5 = vcombine.low %v961_v0, %v962_v4  ;;  %v1071_v35 = vpop.permute.xlu1 %1070 }
  0xae   : > { %v969_v7 = vpop.permute.xlu0 %968  ;;  %v967_v8 = vadd.f32 %v965_v5, %v6020_v10 }
  0xb2   : > { %v971_v12 = vpop.permute.xlu0 %970 }
  0xb3   : > { %v972_v15 = vsel %vm646_vm1, %v969_v7, %v971_v12  ;;  %v973_v16 = vsel %vm646_vm1, %v971_v12, %v969_v7 }
  0xb4   : > { %v976_v17 = vcombine.low %v972_v15, %v973_v16 }
  0xb6   : > { %v6259_v26 = vadd.f32 %v976_v17, %v967_v8  ;;  %v1062_v29 = vpop.permute.xlu0 %1061 }
  0xb7   : > { %v1063_v30 = vsel %vm620_vm0, %v1060_v13, %v1062_v29  ;;  %v1064_v31 = vsel %vm620_vm0, %v1062_v29, %v1060_v13 }
  0xb8   : > { %9540 = vst [vmem:[#allocation15_spill] sm:$0xff] %v6259_v26  ;;  %v1067_v32 = vcombine.low %v1063_v30, %v1064_v31  ;;  %v983_v33 = vrot.slane %v6259_v26, %v6009_v6  ;;  %v987_v34 = vrot.slane %v6259_v26, %v6017_v9 }
  0xba   : > { %v1069_v36 = vadd.f32 %v1067_v32, %v6026_v14  ;;  %990 = vrot.lane.b32.xlu1 %v983_v33, %s5908_s25  ;;  %992 = vrot.lane.b32.xlu0 %v987_v34, %s5908_s25  ;;  %v1073_v37 = vpop.permute.xlu0 %1072 }
  0xbb   : > { %v1074_v38 = vsel %vm646_vm1, %v1071_v35, %v1073_v37  ;;  %v1075_v39 = vsel %vm646_vm1, %v1073_v37, %v1071_v35 }
  0xbc   : > { %v1078_v40 = vcombine.low %v1074_v38, %v1075_v39 }
  0xbe   : > { %v6276_v42 = vadd.f32 %v1078_v40, %v1069_v36  ;;  %1001 = vrot.lane.b32.xlu0 %v983_v33, %s5909_s29 }
  0xc0   : > { %9541 = vst [vmem:[#allocation16_spill] sm:$0xff] %v6276_v42  ;;  %v1085_v44 = vrot.slane %v6276_v42, %v6009_v6  ;;  %v1089_v45 = vrot.slane %v6276_v42, %v6017_v9 }
  0xc2   : > { %1003 = vrot.lane.b32.xlu0 %v987_v34, %s5909_s29  ;;  %1092 = vrot.lane.b32.xlu1 %v1085_v44, %s5908_s25 }
  0xc6   : > { %1094 = vrot.lane.b32.xlu0 %v1089_v45, %s5908_s25  ;;  %1103 = vrot.lane.b32.xlu1 %v1085_v44, %s5909_s29 }
  0xca   : > { %1105 = vrot.lane.b32.xlu0 %v1089_v45, %s5909_s29 }
  0xe2   : > { %v6288_v46 = vpop.permute.xlu1 %856 }
  0xe6   : > { %v6290_v53 = vpop.permute.xlu1 %858  ;;  %v5792_v54 = vpop.permute.xlu0 %5791 }
  0xe7   : > { %v5794_v34 = vunpack.i.h.bf16 %v5792_v54  ;;  %v5793_v35 = vunpack.i.l.bf16 %v5792_v54 }
  0xeb   : > { %v6292_v56 = vpop.permute.xlu1 %872  ;;  %v5797_v57 = vpop.permute.xlu0 %5796 }
  0xec   : > { %v5798_v54 = vunpack.i.l.bf16 %v5797_v57 }
  0xef   : > { %v6294_v60 = vpop.permute.xlu1 %874  ;;  %v6296_v61 = vpop.permute.xlu0 %1418 }
  0xf3   : > { %v6298_v62 = vpop.permute.xlu1 %1420  ;;  %v6300_v0 = vpop.permute.xlu0 %1436 }
  0xf7   : > { %v6302_v4 = vpop.permute.xlu1 %1434  ;;  %v1519_v5 = vpop.permute.xlu0 %1518 }
  0xfb   : > { %v1521_v7 = vpop.permute.xlu1 %1520  ;;  %v1533_v8 = vpop.permute.xlu0 %1532 }
  0xfc   : > { %v1522_v12 = vsel %vm620_vm0, %v1519_v5, %v1521_v7  ;;  %v1523_v13 = vsel %vm620_vm0, %v1521_v7, %v1519_v5  ;;  %v621_v5 = vsel %vm620_vm0, %v5793_v35, %v5794_v34  ;;  %v622_v7 = vsel %vm620_vm0, %v5794_v34, %v5793_v35 }
  0xfd   : > { %v1526_v15 = vcombine.low %v1522_v12, %v1523_v13 }
  0xff   : > { %v1527_v16 = vrot.slane %v1526_v15, 7  ;;  %v1531_v17 = vpop.permute.xlu1 %1530  ;;  %v1625_v29 = vpop.permute.xlu0 %1624 }
 0x100   : > { %v1534_v30 = vsel %vm646_vm1, %v1531_v17, %v1533_v8  ;;  %v1535_v31 = vsel %vm646_vm1, %v1533_v8, %v1531_v17  ;;  %v5799_v8 = vunpack.i.h.bf16 %v5797_v57 }
 0x101   : > { %v1529_v32 = vadd.f32 %v1527_v16, %v6020_v10  ;;  %v1538_v33 = vcombine.low %v1534_v30, %v1535_v31  ;;  %v625_v30 = vcombine.low %v621_v5, %v622_v7  ;;  %v6355_v7 = vsub.s32 2, %v5998_v1 }
 0x102   : > { %v647_v57 = vsel %vm646_vm1, %v5798_v54, %v5799_v8 }
 0x103   : > { %v1539_v36 = vrot.slane %v1538_v33, 7  ;;  %v1623_v37 = vpop.permute.xlu1 %1622  ;;  %v1637_v45 = vpop.permute.xlu0 %1636  ;;  %v648_v33 = vsel %vm646_vm1, %v5799_v8, %v5798_v54  ;;  %v632_v35 = vrot.slane %v625_v30, %v6115_v52  ;;  %9545 = vst [vmem:[#allocation20_spill] sm:$0xff] %v6355_v7 }
 0x104   : > { %v1626_v38 = vsel %vm620_vm0, %v1623_v37, %v1625_v29  ;;  %v1627_v39 = vsel %vm620_vm0, %v1625_v29, %v1623_v37 }
 0x105   : > { %v6317_v40 = vadd.f32 %v1539_v36, %v1529_v32  ;;  %v1630_v44 = vcombine.low %v1626_v38, %v1627_v39  ;;  %v651_v36 = vcombine.low %v647_v57, %v648_v33  ;;  %v639_v5 = vrot.slane %v632_v35, %v6115_v52 }
 0x107   : > { %9542 = vst [vmem:[#allocation17_spill] sm:$0xff] %v6317_v40  ;;  %v1631_v12 = vrot.slane %v1630_v44, 7  ;;  %v1635_v13 = vpop.permute.xlu1 %1634  ;;  %v1550_v15 = vrot.slane %v6317_v40, %v6205_v48  ;;  %v1546_v16 = vrot.slane %v6317_v40, %v6147_v55  ;;  %v658_v44 = vrot.slane %v651_v36, %v6115_v52 }
 0x108   : > { %v1638_v17 = vsel %vm646_vm1, %v1635_v13, %v1637_v45  ;;  %v1639_v29 = vsel %vm646_vm1, %v1637_v45, %v1635_v13  ;;  %v6351_v45 = vsub.s32 6, %v5998_v1  ;;  %v641_v54 = vadd.f32 %v6150_v59, %v639_v5 }
 0x109   : > { %v1633_v31 = vadd.f32 %v1631_v12, %v6026_v14  ;;  %v1642_v32 = vcombine.low %v1638_v17, %v1639_v29  ;;  %1555 = vrot.lane.b32.xlu0 %v1550_v15, %s5908_s25  ;;  %1553 = vrot.lane.b32.xlu1 %v1546_v16, %s5908_s25  ;;  %v665_v12 = vrot.slane %v658_v44, %v6115_v52  ;;  %v475_v17 = vmax.f32 %v6136_v43, 0.0 }
 0x10a   : > { %9544 = vst [vmem:[#allocation19_spill] sm:$0xff] %v6351_v45  ;;  %v6361_v8 = vrot.slane %v6161_v11, %v6351_v45  ;;  %v6367_v13 = vrot.slane %v6161_v11, %v6355_v7  ;;  %v477_v29 = vmax.f32 %v6139_v47, 0.0 }
 0x10b   : > { %v1643_v34 = vrot.slane %v1642_v32, 7  ;;  %v476_v30 = vmin.f32 %v475_v17, 15.0  ;;  %v469_v32 = vmax.f32 %v6133_v41, 0.0 }
 0x10c   : > { %9546 = vst [vmem:[#allocation21_spill] sm:$0xff] %v6361_v8  ;;  %9547 = vst [vmem:[#allocation22_spill] sm:$0xff] %v6367_v13 }
 0x10d   : > { %v6339_v37 = vadd.f32 %v1643_v34, %v1633_v31  ;;  %1567 = vrot.lane.b32.xlu0 %v1550_v15, %s5909_s29  ;;  %1565 = vrot.lane.b32.xlu1 %v1546_v16, %s5909_s29  ;;  %v6373_v15 = vadd.f32 %v665_v12, %v641_v54  ;;  %v478_v31 = vmin.f32 %v477_v29, 15.0  ;;  %v5629_v57 = vtrunc.f32 %v476_v30 }
 0x10e   : > { %v470_v34 = vmin.f32 %v469_v32, 15.0 }
 0x10f   : > { %9543 = vst [vmem:[#allocation18_spill] sm:$0xff] %v6339_v37  ;;  %v1654_v38 = vrot.slane %v6339_v37, %v6205_v48  ;;  %v1650_v39 = vrot.slane %v6339_v37, %v6147_v55  ;;  %9548 = vst [vmem:[#allocation23_spill] sm:$0xff] %v6373_v15  ;;  %v672_v16 = vrot.slane %v6373_v15, %v6009_v6  ;;  %v5631_v33 = vtrunc.f32 %v478_v31 }
 0x110   : > { %v676_v11 = vrot.slane %v6373_v15, %v6147_v55  ;;  %v5630_v35 = vcvt.f32.s32 %v5629_v57 }
 0x111   : > { %1659 = vrot.lane.b32.xlu0 %v1654_v38, %s5908_s25  ;;  %1657 = vrot.lane.b32.xlu1 %v1650_v39, %s5908_s25  ;;  %v5632_v36 = vcvt.f32.s32 %v5631_v33 }
 0x112   : > { %v550_v44 = vrot.slane %v5630_v35, %v6009_v6  ;;  %v554_v54 = vrot.slane %v5630_v35, %v6147_v55 }
 0x113   : > { %v577_v5 = vrot.slane %v5632_v36, %v6009_v6  ;;  %v581_v43 = vrot.slane %v5632_v36, %v6147_v55 }
 0x114   : > { %vm555_vm2 = vcmp.eq.s32.totalorder %v5998_v1, %v550_v44  ;;  %vm557_vm4 = vcmp.eq.s32.totalorder %v6155_v63, %v550_v44  ;;  %vm556_vm6 = vcmp.eq.s32.totalorder %v5998_v1, %v554_v54  ;;  %vm558_vm8 = vcmp.eq.s32.totalorder %v6155_v63, %v554_v54 }
 0x115   : > { %1671 = vrot.lane.b32.xlu0 %v1654_v38, %s5909_s29  ;;  %1669 = vrot.lane.b32.xlu1 %v1650_v39, %s5909_s29  ;;  %v481_v38 = vsub.f32 %v478_v31, %v470_v34  ;;  %v482_v39 = vsub.f32 %v470_v34, %v476_v30  ;;  %vm582_vm3 = vcmp.eq.s32.totalorder %v5998_v1, %v577_v5 }
 0x116   : > { %vm584_vm5 = vcmp.eq.s32.totalorder %v6155_v63, %v577_v5  ;;  %vm583_vm7 = vcmp.eq.s32.totalorder %v5998_v1, %v581_v43  ;;  %vm585_vm9 = vcmp.eq.s32.totalorder %v6155_v63, %v581_v43 }
 0x117   : > { %v563_v47 = vrot.slane %v481_v38, %v6009_v6  ;;  %v590_v41 = vrot.slane %v482_v39, %v6009_v6  ;;  %v567_v12 = vrot.slane %v481_v38, %v6147_v55 }
 0x119   : > { %1996 = vrot.lane.b32.xlu1 %v6361_v8, %s9533_s16  ;;  %1994 = vrot.lane.b32.xlu0 %v6367_v13, %s9533_s16  ;;  %v597_v17 = vsel %vm582_vm3, %v590_v41, 0.0  ;;  %v572_v29 = vsel %vm557_vm4, %v563_v47, 0.0  ;;  %v599_v30 = vsel %vm584_vm5, %v590_v41, 0.0  ;;  %v571_v31 = vsel %vm556_vm6, %v567_v12, 0.0 }
 0x11a   : > { %v573_v57 = vsel %vm558_vm8, %v567_v12, 0.0  ;;  %v603_v35 = vadd.f32 %v599_v30, %v572_v29  ;;  %vm683_vm6 = vcmp.lt.s32.totalorder %v6000_v2, 112  ;;  %vm298_vm8 = vcmp.le.f32.partialorder %v6066_v24, 14.0 }
 0x11d   : > { %2010 = vrot.lane.b32.xlu1 %v6367_v13, %s5908_s25  ;;  %2012 = vrot.lane.b32.xlu0 %v6361_v8, %s5908_s25 }
 0x121   : > { %679 = vrot.lane.b32.xlu1 %v672_v16, %s5908_s25  ;;  %705 = vrot.lane.b32.xlu0 %v672_v16, %s5909_s29  ;;  %v594_v16 = vrot.slane %v482_v39, %v6147_v55 }
 0x123   : > { %v598_v32 = vsel %vm583_vm7, %v594_v16, 0.0  ;;  %v600_v33 = vsel %vm585_vm9, %v594_v16, 0.0  ;;  %vm297_vm7 = vcmp.le.f32.partialorder %v6064_v23, 14.0  ;;  %vm303_vm9 = vcmp.le.f32.partialorder %v6070_v27, 14.0 }
 0x124   : > { %v602_v39 = vadd.f32 %v598_v32, %v571_v31  ;;  %v604_v44 = vadd.f32 %v600_v33, %v573_v57 }
 0x125   : > { %681 = vrot.lane.b32.xlu1 %v676_v11, %s5908_s25 }
 0x129   : > { %707 = vrot.lane.b32.xlu1 %v676_v11, %s5909_s29  ;;  %v570_v11 = vsel %vm555_vm2, %v563_v47, 0.0 }
 0x12a   : > { %v601_v34 = vadd.f32 %v597_v17, %v570_v11 }
 0x14e   : > { %v777_v36 = vpop.f32.mrb[0].mxu0  ;;  %v1350_v38 = vpop.f32.mrb[0].mxu1 }
 0x14f   : > { %v1359_v5 = vmul.f32 %v1350_v38, %v601_v34  ;;  %v779_v3 = vpop.f32.mrb[1].mxu0  ;;  %v1352_v58 = vpop.f32.mrb[1].mxu1  ;;  %v786_v15 = vmul.f32 %v777_v36, %v601_v34 }
 0x150   : > { %v1360_v54 = vmul.f32 %v1352_v58, %v602_v39  ;;  %v781_v59 = vpop.f32.mrb[2].mxu0  ;;  %v1354_v43 = vpop.f32.mrb[2].mxu1  ;;  %v787_v40 = vmul.f32 %v779_v3, %v602_v39 }
 0x151   : > { %v788_v51 = vmul.f32 %v781_v59, %v603_v35  ;;  %v1361_v47 = vmul.f32 %v1354_v43, %v603_v35  ;;  %v783_v41 = vpop.f32.mrb[3].mxu0  ;;  %v1356_v37 = vpop.f32.mrb[3].mxu1 }
 0x152   : > { %v789_v12 = vmul.f32 %v783_v41, %v604_v44  ;;  %v1362_v16 = vmul.f32 %v1356_v37, %v604_v44 }
 0x153   : > { %v790_v11 = vadd.f32 %v788_v51, %v786_v15  ;;  %v1363_v17 = vadd.f32 %v1361_v47, %v1359_v5 }
 0x154   : > { %v797_v29 = vadd.f32 %v789_v12, %v787_v40  ;;  %v1370_v30 = vadd.f32 %v1362_v16, %v1360_v54 }
 0x155   : > { %v791_v31 = vrot.slane %v790_v11, 4  ;;  %v1364_v32 = vrot.slane %v1363_v17, 4 }
 0x156   : > { %v798_v57 = vrot.slane %v797_v29, 4  ;;  %v1926_v33 = vpop.f32.mrb[4].mxu0  ;;  %v1371_v42 = vrot.slane %v1370_v30, 4 }
 0x157   : > { %v792_v38 = vadd.f32 %v791_v31, %v790_v11  ;;  %v1365_v58 = vadd.f32 %v1364_v32, %v1363_v17  ;;  %v1935_v26 = vmul.f32 %v1926_v33, %v601_v34  ;;  %v1928_v36 = vpop.f32.mrb[5].mxu0 }
 0x158   : > { %v799_v59 = vadd.f32 %v798_v57, %v797_v29  ;;  %v1936_v43 = vmul.f32 %v1928_v36, %v602_v39  ;;  %v1930_v63 = vpop.f32.mrb[6].mxu0  ;;  %v1372_v54 = vadd.f32 %v1371_v42, %v1370_v30 }
 0x159   : > { %v793_v1 = vrot.slane %v792_v38, 2  ;;  %v1366_v3 = vrot.slane %v1365_v58, 2  ;;  %v1937_v41 = vmul.f32 %v1930_v63, %v603_v35  ;;  %v1932_v37 = vpop.f32.mrb[7].mxu0 }
 0x15a   : > { %v800_v51 = vrot.slane %v799_v59, 2  ;;  %v1938_v15 = vmul.f32 %v1932_v37, %v604_v44  ;;  %v1373_v29 = vrot.slane %v1372_v54, 2 }
 0x15b   : > { %v794_v40 = vadd.f32 %v793_v1, %v792_v38  ;;  %v1367_v5 = vadd.f32 %v1366_v3, %v1365_v58  ;;  %v1939_v47 = vadd.f32 %v1937_v41, %v1935_v26 }
 0x15c   : > { %v801_v12 = vadd.f32 %v800_v51, %v799_v59  ;;  %v1946_v16 = vadd.f32 %v1938_v15, %v1936_v43  ;;  %v1374_v42 = vadd.f32 %v1373_v29, %v1372_v54 }
 0x15d   : > { %v795_v11 = vrot.slane %v794_v40, 1  ;;  %v1368_v34 = vrot.slane %v1367_v5, 1  ;;  %v1940_v41 = vrot.slane %v1939_v47, 4 }
 0x15e   : > { %v802_v31 = vrot.slane %v801_v12, 1  ;;  %v1375_v26 = vrot.slane %v1374_v42, 1  ;;  %v1947_v33 = vrot.slane %v1946_v16, 4 }
 0x15f   : > { %v6406_v17 = vadd.f32 %v795_v11, %v794_v40  ;;  %v6412_v63 = vadd.f32 %v1368_v34, %v1367_v5  ;;  %v1941_v5 = vadd.f32 %v1940_v41, %v1939_v47  ;;  %v6507_v11 = vpop.permute.xlu0 %992 }
 0x160   : > { %v6414_v1 = vadd.f32 %v802_v31, %v801_v12  ;;  %v6424_v35 = vadd.f32 %v1375_v26, %v1374_v42  ;;  %v1948_v59 = vadd.f32 %v1947_v33, %v1946_v16  ;;  %v6505_v16 = vpop.permute.xlu1 %990  ;;  %9550 = vst [vmem:[#allocation25_spill] sm:$0xff] %v6507_v11  ;;  %v9566_v11 = vmov 0.0  }
 0x161   : > { %1013 = vrot.lane.b32.xlu0 %v6406_v17, %s9533_s16  ;;  %1021 = vrot.lane.b32.xlu1 %v6406_v17, %s5904_s8  ;;  %v6428_v39 = vmul.f32 %v6406_v17, %v6170_v20  ;;  %v6444_v30 = vmul.f32 %v6406_v17, %v6406_v17  ;;  %v6460_v57 = vmul.f32 %v6412_v63, %v6170_v20  ;;  %v1942_v34 = vrot.slane %v1941_v5, 2 }
 0x162   : > { %v6440_v44 = vmul.f32 %v6414_v1, %v6414_v1  ;;  %v6456_v32 = vmul.f32 %v6424_v35, %v6174_v21  ;;  %v6472_v38 = vmul.f32 %v6424_v35, %v6424_v35  ;;  %v6476_v58 = vmul.f32 %v6412_v63, %v6412_v63  ;;  %9549 = vst [vmem:[#allocation24_spill] sm:$0xff] %v6505_v16 }
 0x163   : > { %v1159_v36 = vcombine.low %v6406_v17, %v6414_v1  ;;  %v1726_v3 = vcombine.low %v6412_v63, %v6424_v35  ;;  %v1949_v37 = vrot.slane %v1948_v59, 2  ;;  %v6497_v15 = vmul.f32 %v6414_v1, %v6174_v21  ;;  %v6522_v33 = vpop.permute.xlu0 %1001 }
 0x164   : > { %v6516_v42 = vpop.permute.xlu1 %1092  ;;  %9553 = vst [vmem:[#allocation28_spill] sm:$0xff] %v6522_v33  ;;  %v6583_v52 = vsel %vm291_vm10, 1.0, %v9566_v11 }
 0x165   : > { %1015 = vrot.lane.b32.xlu0 %v6414_v1, %s9533_s16  ;;  %1578 = vrot.lane.b32.xlu1 %v6412_v63, %s9533_s16  ;;  %v6485_v43 = vmul.f32 %v1159_v36, %v6020_v10  ;;  %v1727_v40 = vrot.slane %v1726_v3, 7  ;;  %v1950_v54 = vadd.f32 %v1949_v37, %v1948_v59  ;;  %9551 = vst [vmem:[#allocation26_spill] sm:$0xff] %v6516_v42  ;;  %9567 = vst [vmem:[#allocation41_spill] sm:$0xff] %v6583_v52 }
 0x167   : > { %v1170_v51 = vrot.slane %v6485_v43, %v6017_v9  ;;  %v6503_v12 = vmul.f32 %v1727_v40, %v6020_v10  ;;  %v1951_v31 = vrot.slane %v1950_v54, 1  ;;  %v1166_v29 = vrot.slane %v6485_v43, %v6009_v6  ;;  %v6534_v37 = vpop.permute.xlu0 %1003 }
 0x168   : > { %v1943_v10 = vadd.f32 %v1942_v34, %v1941_v5  ;;  %v6530_v3 = vpop.permute.xlu1 %1103  ;;  %9556 = vst [vmem:[#allocation31_spill] sm:$0xff] %v6534_v37  ;;  %v827_v34 = vsub.f32 %v6497_v15, %v6182_v25 }
 0x169   : > { %1023 = vrot.lane.b32.xlu0 %v6414_v1, %s5904_s8  ;;  %1586 = vrot.lane.b32.xlu1 %v6412_v63, %s5904_s8  ;;  %v1738_v47 = vrot.slane %v6503_v12, %v6205_v48  ;;  %v6518_v26 = vadd.f32 %v1951_v31, %v1950_v54  ;;  %9555 = vst [vmem:[#allocation30_spill] sm:$0xff] %v6530_v3 }
 0x16a   : > { %v1944_v36 = vrot.slane %v1943_v10, 1  ;;  %v1734_v41 = vrot.slane %v6503_v12, %v6147_v55  ;;  %v826_v54 = vsub.f32 %v6428_v39, %v6178_v22 }
 0x16b   : > { %9552 = vst [vmem:[#allocation27_spill] sm:$0xff] %v6518_v26  ;;  %v6528_v59 = vmul.f32 %v6518_v26, %v6174_v21  ;;  %v6550_v5 = vpop.permute.xlu0 %1094 }
 0x16c   : > { %9560 = vst [vmem:[#allocation35_spill] sm:$0xff] %v6550_v5 }
 0x16d   : > { %1580 = vrot.lane.b32.xlu0 %v6424_v35, %s9533_s16  ;;  %864 = vrot.lane.b32.xlu1 %v6428_v39, %s9533_s16  ;;  %9554 = vst [vmem:[#allocation29_spill] sm:$0xff] %v6528_v59  ;;  %v1966_v33 = vsub.f32 %v6528_v59, %v6361_v8 }
 0x171   : > { %1588 = vrot.lane.b32.xlu0 %v6424_v35, %s5904_s8  ;;  %880 = vrot.lane.b32.xlu1 %v6428_v39, %s5908_s25 }
 0x175   : > { %1121 = vrot.lane.b32.xlu0 %v6440_v44, %s9533_s16  ;;  %1119 = vrot.lane.b32.xlu1 %v6444_v30, %s9533_s16 }
 0x179   : > { %1129 = vrot.lane.b32.xlu0 %v6440_v44, %s5904_s8  ;;  %1127 = vrot.lane.b32.xlu1 %v6444_v30, %s5904_s8 }
 0x17b   : > { %v6541_v40 = vpop.permute.xlu1 %1553 }
 0x17c   : > { %9558 = vst [vmem:[#allocation33_spill] sm:$0xff] %v6541_v40 }
 0x17d   : > { %1428 = vrot.lane.b32.xlu0 %v6456_v32, %s9533_s16  ;;  %1426 = vrot.lane.b32.xlu1 %v6460_v57, %s9533_s16 }
 0x17f   : > { %v6556_v31 = vpop.permute.xlu1 %1565 }
 0x180   : > { %9561 = vst [vmem:[#allocation36_spill] sm:$0xff] %v6556_v31 }
 0x181   : > { %1444 = vrot.lane.b32.xlu0 %v6456_v32, %s5908_s25  ;;  %1442 = vrot.lane.b32.xlu1 %v6460_v57, %s5908_s25 }
 0x185   : > { %1688 = vrot.lane.b32.xlu0 %v6472_v38, %s9533_s16  ;;  %1686 = vrot.lane.b32.xlu1 %v6476_v58, %s9533_s16 }
 0x189   : > { %1696 = vrot.lane.b32.xlu0 %v6472_v38, %s5904_s8  ;;  %1694 = vrot.lane.b32.xlu1 %v6476_v58, %s5904_s8 }
 0x18d   : > { %1175 = vrot.lane.b32.xlu0 %v1170_v51, %s9533_s16  ;;  %866 = vrot.lane.b32.xlu1 %v6497_v15, %s9533_s16 }
 0x191   : > { %1186 = vrot.lane.b32.xlu0 %v1170_v51, %s5904_s8  ;;  %882 = vrot.lane.b32.xlu1 %v6497_v15, %s5908_s25  ;;  %v6536_v51 = vadd.f32 %v1944_v36, %v1943_v10  ;;  %v829_v10 = vand.u32 2147483647, %v827_v34  ;;  %v6564_v36 = vpop.permute.xlu0 %1105 }
 0x192   : > { %9562 = vst [vmem:[#allocation37_spill] sm:$0xff] %v6564_v36 }
 0x193   : > { %9557 = vst [vmem:[#allocation32_spill] sm:$0xff] %v6536_v51  ;;  %v6548_v21 = vmul.f32 %v6536_v51, %v6170_v20  ;;  %v1390_v20 = vsub.f32 %v6456_v32, %v6218_v50  ;;  %v833_v31 = vmul.f32 0.5, %v829_v10  ;;  %v5529_v51 = vadd.f32 -0.5, %v829_v10 }
 0x194   : > { %vm831_vm13 = vcmp.lt.f32.partialorder %v829_v10, 1.0 }
 0x195   : > { %1743 = vrot.lane.b32.xlu0 %v1738_v47, %s9533_s16  ;;  %1173 = vrot.lane.b32.xlu1 %v1166_v29, %s9533_s16  ;;  %9559 = vst [vmem:[#allocation34_spill] sm:$0xff] %v6548_v21  ;;  %v1392_v42 = vand.u32 2147483647, %v1390_v20  ;;  %v1965_v40 = vsub.f32 %v6548_v21, %v6367_v13  ;;  %v6574_v37 = vpop.permute.xlu0 %1555  ;;  %v1968_v20 = vand.u32 2147483647, %v1966_v33 }
 0x196   : > { %9564 = vst [vmem:[#allocation39_spill] sm:$0xff] %v6574_v37  ;;  %v6588_v37 = vsel %vm9492_vm11, 1.0, %v9566_v11 }
 0x197   : > { %v1396_v34 = vmul.f32 0.5, %v1392_v42  ;;  %9568 = vst [vmem:[#allocation42_spill] sm:$0xff] %v6588_v37  ;;  %v1972_v7 = vmul.f32 0.5, %v1968_v20  ;;  %v5537_v8 = vadd.f32 -0.5, %v1392_v42  ;;  %vm1394_vm3 = vcmp.lt.f32.partialorder %v1392_v42, 1.0 }
 0x198   : > { %vm1970_vm5 = vcmp.lt.f32.partialorder %v1968_v20, 1.0 }
 0x199   : > { %1755 = vrot.lane.b32.xlu0 %v1738_v47, %s5904_s8  ;;  %1184 = vrot.lane.b32.xlu1 %v1166_v29, %s5904_s8  ;;  %v1389_v47 = vsub.f32 %v6460_v57, %v6209_v49  ;;  %v828_v29 = vand.u32 2147483647, %v826_v54  ;;  %v6590_v26 = vpop.permute.xlu0 %1567  ;;  %v1398_v33 = vmul.f32 %v1396_v34, %v1392_v42 }
 0x19a   : > { %9569 = vst [vmem:[#allocation43_spill] sm:$0xff] %v6590_v26 }
 0x19b   : > { %v1391_v3 = vand.u32 2147483647, %v1389_v47  ;;  %v832_v5 = vmul.f32 0.5, %v828_v29  ;;  %v1967_v47 = vand.u32 2147483647, %v1965_v40  ;;  %v5528_v14 = vadd.f32 -0.5, %v828_v29 }
 0x19c   : > { %vm830_vm12 = vcmp.lt.f32.partialorder %v828_v29, 1.0 }
 0x19d   : > { %2004 = vrot.lane.b32.xlu0 %v6528_v59, %s9533_s16  ;;  %1741 = vrot.lane.b32.xlu1 %v1734_v41, %s9533_s16  ;;  %v1395_v54 = vmul.f32 0.5, %v1391_v3  ;;  %v834_v36 = vmul.f32 %v832_v5, %v828_v29  ;;  %v5536_v45 = vadd.f32 -0.5, %v1391_v3  ;;  %vm1393_vm2 = vcmp.lt.f32.partialorder %v1391_v3, 1.0 }
 0x19e   : > { %v1402_v29 = vsel %vm1394_vm3, %v1398_v33, %v5537_v8  ;;  %v5544_v34 = vadd.f32 -0.5, %v1967_v47  ;;  %vm1969_vm4 = vcmp.lt.f32.partialorder %v1967_v47, 1.0  ;;  %vm6822_vm3 = vmand %vm291_vm10, %vm303_vm9 }
 0x19f   : > { %v1397_v40 = vmul.f32 %v1395_v54, %v1391_v3  ;;  %v838_v5 = vsel %vm830_vm12, %v834_v36, %v5528_v14  ;;  %v1974_v54 = vmul.f32 %v1972_v7, %v1968_v20  ;;  %v5545_v14 = vadd.f32 -0.5, %v1968_v20 }
 0x1a0   : > { %vm304_vm12 = vcmp.le.f32.partialorder %v6073_v28, 14.0 }
 0x1a1   : > { %2020 = vrot.lane.b32.xlu0 %v6528_v59, %s5908_s25  ;;  %1753 = vrot.lane.b32.xlu1 %v1734_v41, %s5904_s8  ;;  %v6568_v41 = vpop.permute.xlu1 %1657  ;;  %v840_v59 = vmul.f32 %v6583_v52, %v838_v5  ;;  %v1401_v26 = vsel %vm1393_vm2, %v1397_v40, %v5536_v45  ;;  %vm300_vm2 = vmand %vm9492_vm11, %vm298_vm8 }
 0x1a2   : > { %9563 = vst [vmem:[#allocation38_spill] sm:$0xff] %v6568_v41  ;;  %v835_v41 = vmul.f32 %v833_v31, %v829_v10  ;;  %v1403_v3 = vmul.f32 %v6583_v52, %v1401_v26 }
 0x1a3   : > { %v843_v36 = vsel %vm842_vm14, %v840_v59, 0.0 }
 0x1a4   : > { %v839_v31 = vsel %vm831_vm13, %v835_v41, %v5529_v51  ;;  %v6596_v51 = vpop.permute.xlu0 %1659  ;;  %v1404_v41 = vmul.f32 %v6588_v37, %v1402_v29  ;;  %vm299_vm13 = vmand %vm291_vm10, %vm297_vm7 }
 0x1a5   : > { %2002 = vrot.lane.b32.xlu1 %v6548_v21, %s9533_s16  ;;  %v6578_v16 = vpop.permute.xlu1 %1669 }
 0x1a6   : > { %9565 = vst [vmem:[#allocation40_spill] sm:$0xff] %v6578_v16  ;;  %v1971_v16 = vmul.f32 0.5, %v1967_v47 }
 0x1a8   : > { %v1973_v10 = vmul.f32 %v1971_v16, %v1967_v47  ;;  %v6604_v7 = vpop.permute.xlu0 %1671  ;;  %v1405_v16 = vsel %vm842_vm14, %v1403_v3, 0.0  ;;  %v1406_v47 = vsel %vm842_vm14, %v1404_v41, 0.0 }
 0x1a9   : > { %2018 = vrot.lane.b32.xlu1 %v6548_v21, %s5908_s25  ;;  %v6592_v13 = vpop.permute.xlu1 %1996  ;;  %v841_v21 = vmul.f32 %v6588_v37, %v839_v31  ;;  %v1978_v31 = vsel %vm1970_vm5, %v1974_v54, %v5545_v14 }
 0x1aa   : > { %v1977_v5 = vsel %vm1969_vm4, %v1973_v10, %v5544_v34  ;;  %v1980_v59 = vmul.f32 %v6588_v37, %v1978_v31  ;;  %vm306_vm4 = vmand %vm9492_vm11, %vm304_vm12 }
 0x1ab   : > { %v844_v42 = vsel %vm842_vm14, %v841_v21, 0.0  ;;  %v1979_v20 = vmul.f32 %v6583_v52, %v1977_v5  ;;  %v1407_v21 = vadd.f32 %v1406_v47, %v1405_v16 }
 0x1ac   : > { %v845_v8 = vadd.f32 %v844_v42, %v843_v36  ;;  %v6610_v26 = vpop.permute.xlu0 %1994  ;;  %v1982_v29 = vsel %vm842_vm14, %v1980_v59, 0.0 }
 0x1ad   : > { %v6602_v45 = vpop.permute.xlu1 %2010  ;;  %v1981_v33 = vsel %vm842_vm14, %v1979_v20, 0.0 }
 0x1ae   : > { %v1983_v10 = vadd.f32 %v1982_v29, %v1981_v33 }
 0x1b0   : > { %v6616_v54 = vpop.permute.xlu0 %2012 }
 0x1b1   : > { %v6612_v40 = vpop.permute.xlu1 %679 }
 0x1b2   : > { %9570 = vst [vmem:[#allocation44_spill] sm:$0xff] %v6612_v40 }
 0x1b4   : > { %v6620_v14 = vpop.permute.xlu0 %705 }
 0x1b5   : > { %v6618_v34 = vpop.permute.xlu1 %681  ;;  %9572 = vst [vmem:[#allocation46_spill] sm:$0xff] %v6620_v14 }
 0x1b6   : > { %9571 = vst [vmem:[#allocation45_spill] sm:$0xff] %v6618_v34 }
 0x1b9   : > { %v6622_v36 = vpop.permute.xlu1 %707 }
 0x1ba   : > { %9573 = vst [vmem:[#allocation47_spill] sm:$0xff] %v6622_v36 }
 0x1c0   : > { %846 = vadd.xlane.f32.xlu0 %v845_v8 }
 0x1c4   : > { %1408 = vadd.xlane.f32.xlu0 %v1407_v21 }
 0x1c8   : > { %1984 = vadd.xlane.f32.xlu0 %v1983_v10 }
 0x1d3   : > { %v1014_v42 = vpop.permute.xlu0 %1013  ;;  %v1022_v3 = vpop.permute.xlu1 %1021 }
 0x1d7   : > { %v1016_v41 = vpop.permute.xlu0 %1015  ;;  %v1579_v5 = vpop.permute.xlu1 %1578 }
 0x1d8   : > { %v1017_v31 = vsel %vm620_vm0, %v1014_v42, %v1016_v41  ;;  %v1018_v8 = vsel %vm620_vm0, %v1016_v41, %v1014_v42 }
 0x1d9   : > { %v1019_v16 = vadd.f32 %v1017_v31, %v6406_v17  ;;  %v1020_v47 = vadd.f32 %v1018_v8, %v6414_v1 }
 0x1db   : > { %v1024_v20 = vpop.permute.xlu0 %1023  ;;  %v1587_v59 = vpop.permute.xlu1 %1586 }
 0x1dc   : > { %v1025_v21 = vsel %vm646_vm1, %v1022_v3, %v1024_v20  ;;  %v1026_v33 = vsel %vm646_vm1, %v1024_v20, %v1022_v3 }
 0x1dd   : > { %v6634_v29 = vadd.f32 %v1025_v21, %v1019_v16  ;;  %v6636_v10 = vadd.f32 %v1026_v33, %v1020_v47 }
 0x1df   : > { %v1581_v37 = vpop.permute.xlu0 %1580  ;;  %1029 = vrot.lane.b32.xlu1 %v6634_v29, %s5908_s25  ;;  %v6640_v42 = vpop.permute.xlu1 %864  ;;  %1031 = vrot.lane.b32.xlu0 %v6636_v10, %s5908_s25 }
 0x1e0   : > { %v1582_v17 = vsel %vm620_vm0, %v1579_v5, %v1581_v37  ;;  %v1583_v1 = vsel %vm620_vm0, %v1581_v37, %v1579_v5 }
 0x1e1   : > { %v1584_v3 = vadd.f32 %v1582_v17, %v6412_v63  ;;  %v1585_v41 = vadd.f32 %v1583_v1, %v6424_v35 }
 0x1e3   : > { %v1589_v31 = vpop.permute.xlu0 %1588  ;;  %1037 = vrot.lane.b32.xlu1 %v6634_v29, %s5909_s29  ;;  %v6652_v8 = vpop.permute.xlu1 %880  ;;  %1039 = vrot.lane.b32.xlu0 %v6636_v10, %s5909_s29 }
 0x1e4   : > { %v1590_v16 = vsel %vm646_vm1, %v1587_v59, %v1589_v31  ;;  %v1591_v47 = vsel %vm646_vm1, %v1589_v31, %v1587_v59 }
 0x1e5   : > { %v6660_v37 = vadd.f32 %v1590_v16, %v1584_v3  ;;  %v6662_v63 = vadd.f32 %v1591_v47, %v1585_v41 }
 0x1e7   : > { %v1122_v35 = vpop.permute.xlu0 %1121  ;;  %1594 = vrot.lane.b32.xlu1 %v6660_v37, %s5908_s25  ;;  %v1120_v5 = vpop.permute.xlu1 %1119  ;;  %1596 = vrot.lane.b32.xlu0 %v6662_v63, %s5908_s25 }
 0x1e8   : > { %v1123_v20 = vsel %vm620_vm0, %v1120_v5, %v1122_v35  ;;  %v1124_v21 = vsel %vm620_vm0, %v1122_v35, %v1120_v5 }
 0x1e9   : > { %v1125_v59 = vadd.f32 %v1123_v20, %v6444_v30  ;;  %v1126_v33 = vadd.f32 %v1124_v21, %v6440_v44 }
 0x1eb   : > { %v1130_v17 = vpop.permute.xlu0 %1129  ;;  %1602 = vrot.lane.b32.xlu1 %v6660_v37, %s5909_s29  ;;  %v1128_v1 = vpop.permute.xlu1 %1127  ;;  %1604 = vrot.lane.b32.xlu0 %v6662_v63, %s5909_s29 }
 0x1ec   : > { %v1131_v3 = vsel %vm646_vm1, %v1128_v1, %v1130_v17  ;;  %v1132_v41 = vsel %vm646_vm1, %v1130_v17, %v1128_v1 }
 0x1ed   : > { %v6682_v31 = vadd.f32 %v1132_v41, %v1126_v33  ;;  %v6684_v16 = vadd.f32 %v1131_v3, %v1125_v59 }
 0x1ef   : > { %9574 = vst [vmem:[#allocation48_spill] sm:$0xff] %v6682_v31  ;;  %v6686_v30 = vpop.permute.xlu0 %1428  ;;  %1135 = vrot.lane.b32.xlu1 %v6684_v16, %s5908_s25  ;;  %v6690_v44 = vpop.permute.xlu1 %1426  ;;  %1137 = vrot.lane.b32.xlu0 %v6682_v31, %s5908_s25 }
 0x1f3   : > { %v1445_v47 = vpop.permute.xlu0 %1444  ;;  %1143 = vrot.lane.b32.xlu1 %v6684_v16, %s5909_s29  ;;  %v1443_v35 = vpop.permute.xlu1 %1442  ;;  %1145 = vrot.lane.b32.xlu0 %v6682_v31, %s5909_s29 }
 0x1f7   : > { %v1689_v5 = vpop.permute.xlu0 %1688  ;;  %v1687_v20 = vpop.permute.xlu1 %1686 }
 0x1f8   : > { %v1690_v21 = vsel %vm620_vm0, %v1687_v20, %v1689_v5  ;;  %v1691_v59 = vsel %vm620_vm0, %v1689_v5, %v1687_v20 }
 0x1f9   : > { %v1692_v33 = vadd.f32 %v1690_v21, %v6476_v58  ;;  %v1693_v17 = vadd.f32 %v1691_v59, %v6472_v38 }
 0x1fb   : > { %v1697_v1 = vpop.permute.xlu0 %1696  ;;  %v1695_v3 = vpop.permute.xlu1 %1694 }
 0x1fc   : > { %v1698_v41 = vsel %vm646_vm1, %v1695_v3, %v1697_v1  ;;  %v1699_v52 = vsel %vm646_vm1, %v1697_v1, %v1695_v3 }
 0x1fd   : > { %v6708_v14 = vadd.f32 %v1698_v41, %v1692_v33  ;;  %v6710_v36 = vadd.f32 %v1699_v52, %v1693_v17 }
 0x1ff   : > { %1702 = vrot.lane.b32.xlu1 %v6708_v14, %s5908_s25  ;;  %v867_v5 = vpop.permute.xlu1 %866  ;;  %1704 = vrot.lane.b32.xlu0 %v6710_v36, %s5908_s25  ;;  %v1176_v58 = vpop.permute.xlu0 %1175 }
 0x203   : > { %1710 = vrot.lane.b32.xlu1 %v6708_v14, %s5909_s29  ;;  %v883_v38 = vpop.permute.xlu1 %882  ;;  %1712 = vrot.lane.b32.xlu0 %v6710_v36, %s5909_s29  ;;  %v1187_v33 = vpop.permute.xlu0 %1186 }
 0x207   : > { %v1174_v20 = vpop.permute.xlu1 %1173 }
 0x208   : > { %v1177_v52 = vsel %vm620_vm0, %v1174_v20, %v1176_v58  ;;  %v1178_v21 = vsel %vm620_vm0, %v1176_v58, %v1174_v20  ;;  %v868_v20 = vsel %vm620_vm0, %v6640_v42, %v867_v5 }
 0x209   : > { %v1181_v59 = vcombine.low %v1177_v52, %v1178_v21  ;;  %v869_v52 = vsel %vm620_vm0, %v867_v5, %v6640_v42  ;;  %v870_v21 = vsub.f32 %v868_v20, %v6428_v39  ;;  %v1446_v5 = vsel %vm683_vm6, %v1443_v35, %v1445_v47 }
 0x20a   : > { %v871_v42 = vsub.f32 %v869_v52, %v6497_v15  ;;  %v1430_v52 = vsel %vm620_vm0, %v6690_v44, %v6686_v30 }
 0x20b   : > { %v1185_v17 = vpop.permute.xlu1 %1184  ;;  %v1183_v41 = vadd.f32 %v1181_v59, %v6485_v43  ;;  %v860_v43 = vsel %vm620_vm0, %v6288_v46, %v6290_v53  ;;  %v1447_v59 = vsel %vm683_vm6, %v1445_v47, %v1443_v35  ;;  %v876_v47 = vsel %vm683_vm6, %v6292_v56, %v6294_v60 }
 0x20c   : > { %v1188_v1 = vsel %vm646_vm1, %v1185_v17, %v1187_v33  ;;  %v1189_v3 = vsel %vm646_vm1, %v1187_v33, %v1185_v17  ;;  %v862_v33 = vsub.f32 %v860_v43, %v6178_v22  ;;  %v885_v17 = vsel %vm683_vm6, %v883_v38, %v6652_v8 }
 0x20d   : > { %v1192_v40 = vcombine.low %v1188_v1, %v1189_v3  ;;  %v1438_v35 = vsel %vm683_vm6, %v6302_v4, %v6300_v0  ;;  %v1449_v1 = vsub.f32 %v1447_v59, %v6456_v32  ;;  %v1423_v43 = vsel %vm620_vm0, %v6298_v62, %v6296_v61 }
 0x20e   : > { %v888_v3 = vsub.f32 %v870_v21, %v862_v33  ;;  %v1425_v33 = vsub.f32 %v1423_v43, %v6218_v50 }
 0x20f   : > { %v6729_v34 = vadd.f32 %v1192_v40, %v1183_v41  ;;  %v861_v40 = vsel %vm620_vm0, %v6290_v53, %v6288_v46  ;;  %v884_v53 = vsel %vm683_vm6, %v6652_v8, %v883_v38  ;;  %v1439_v8 = vsel %vm683_vm6, %v6300_v0, %v6302_v4 }
 0x210   : > { %v863_v46 = vsub.f32 %v861_v40, %v6182_v25  ;;  %v1448_v38 = vsub.f32 %v1446_v5, %v6460_v57  ;;  %v1441_v20 = vsub.f32 %v1439_v8, %v6218_v50  ;;  %v1431_v0 = vsel %vm620_vm0, %v6686_v30, %v6690_v44 }
 0x211   : > { %9575 = vst [vmem:[#allocation49_spill] sm:$0xff] %v6729_v34  ;;  %v1199_v31 = vrot.slane %v6729_v34, %v6009_v6  ;;  %v1203_v58 = vrot.slane %v6729_v34, %v6017_v9  ;;  %v878_v4 = vsub.f32 %v876_v47, %v6178_v22  ;;  %v1432_v30 = vsub.f32 %v1430_v52, %v6460_v57 }
 0x212   : > { %v889_v41 = vsub.f32 %v871_v42, %v863_v46  ;;  %v1480_v21 = vsub.f32 %v1449_v1, %v1441_v20  ;;  %v890_v42 = vand.u32 2147483647, %v888_v3  ;;  %v1433_v22 = vsub.f32 %v1431_v0, %v6456_v32 }
 0x213   : > { %1206 = vrot.lane.b32.xlu1 %v1199_v31, %s5908_s25  ;;  %1208 = vrot.lane.b32.xlu0 %v1203_v58, %s5908_s25  ;;  %v6837_v52 = vsel %vm6822_vm3, 1.0, %v9566_v11  ;;  %v6840_v0 = vsel %vm306_vm4, 1.0, %v9566_v11 }
 0x214   : > { %v891_v5 = vand.u32 2147483647, %v889_v41  ;;  %v894_v46 = vmul.f32 0.5, %v890_v42  ;;  %v1451_v32 = vsub.f32 %v1433_v22, %v1425_v33  ;;  %vm892_vm5 = vcmp.lt.f32.partialorder %v890_v42, 1.0  ;;  %9580 = vst [vmem:[#allocation52_spill] sm:$0xff] %v6837_v52  ;;  %9581 = vst [vmem:[#allocation53_spill] sm:$0xff] %v6840_v0 }
 0x216   : > { %v895_v57 = vmul.f32 0.5, %v891_v5  ;;  %v896_v50 = vmul.f32 %v894_v46, %v890_v42  ;;  %v1453_v1 = vand.u32 2147483647, %v1451_v32  ;;  %v5531_v20 = vadd.f32 -0.5, %v891_v5 }
 0x217   : > { %1217 = vrot.lane.b32.xlu1 %v1199_v31, %s5909_s29  ;;  %1219 = vrot.lane.b32.xlu0 %v1203_v58, %s5909_s29  ;;  %v877_v31 = vsel %vm683_vm6, %v6294_v60, %v6292_v56  ;;  %v886_v58 = vsub.f32 %v884_v53, %v6428_v39  ;;  %v887_v56 = vsub.f32 %v885_v17, %v6497_v15  ;;  %vm893_vm7 = vcmp.lt.f32.partialorder %v891_v5, 1.0 }
 0x218   : > { %v1440_v60 = vsub.f32 %v1438_v35, %v6209_v49  ;;  %v879_v39 = vsub.f32 %v877_v31, %v6182_v25  ;;  %v1422_v15 = vsel %vm620_vm0, %v6296_v61, %v6298_v62  ;;  %v1482_v62 = vand.u32 2147483647, %v1480_v21 }
 0x219   : > { %v917_v44 = vsub.f32 %v886_v58, %v878_v4  ;;  %v1424_v59 = vsub.f32 %v1422_v15, %v6209_v49  ;;  %v897_v31 = vmul.f32 %v895_v57, %v891_v5  ;;  %v6829_v58 = vsel %vm299_vm13, 1.0, %v9566_v11 }
 0x21a   : > { %v1479_v40 = vsub.f32 %v1448_v38, %v1440_v60  ;;  %v918_v25 = vsub.f32 %v887_v56, %v879_v39  ;;  %v1486_v8 = vmul.f32 0.5, %v1482_v62  ;;  %9578 = vst [vmem:[#allocation50_spill] sm:$0xff] %v6829_v58  ;;  %v6832_v56 = vsel %vm300_vm2, 1.0, %v9566_v11 }
 0x21b   : > { %v1450_v53 = vsub.f32 %v1432_v30, %v1424_v59  ;;  %v919_v17 = vand.u32 2147483647, %v917_v44  ;;  %9579 = vst [vmem:[#allocation51_spill] sm:$0xff] %v6832_v56  ;;  %v5530_v60 = vadd.f32 -0.5, %v890_v42  ;;  %v901_v39 = vsel %vm893_vm7, %v897_v31, %v5531_v20 }
 0x21c   : > { %v1481_v61 = vand.u32 2147483647, %v1479_v40  ;;  %v920_v47 = vand.u32 2147483647, %v918_v25  ;;  %v1488_v43 = vmul.f32 %v1486_v8, %v1482_v62  ;;  %v1457_v22 = vmul.f32 0.5, %v1453_v1 }
 0x21d   : > { %v1452_v38 = vand.u32 2147483647, %v1450_v53  ;;  %v923_v3 = vmul.f32 0.5, %v919_v17  ;;  %v900_v4 = vsel %vm892_vm5, %v896_v50, %v5530_v60  ;;  %vm1484_vm9 = vcmp.lt.f32.partialorder %v1482_v62, 1.0 }
 0x21e   : > { %v1485_v35 = vmul.f32 0.5, %v1481_v61  ;;  %v924_v41 = vmul.f32 0.5, %v920_v47  ;;  %vm1483_vm8 = vcmp.lt.f32.partialorder %v1481_v61, 1.0  ;;  %v5540_v42 = vadd.f32 -0.5, %v1481_v61 }
 0x21f   : > { %v925_v40 = vmul.f32 %v923_v3, %v919_v17  ;;  %v1456_v30 = vmul.f32 0.5, %v1452_v38  ;;  %v5541_v5 = vadd.f32 -0.5, %v1482_v62  ;;  %v902_v44 = vmul.f32 %v900_v4, %v6829_v58 }
 0x220   : > { %v1487_v15 = vmul.f32 %v1485_v35, %v1481_v61  ;;  %v926_v21 = vmul.f32 %v924_v41, %v920_v47  ;;  %v903_v25 = vmul.f32 %v901_v39, %v6832_v56  ;;  %v5532_v59 = vadd.f32 -0.5, %v919_v17 }
 0x221   : > { %v5533_v33 = vadd.f32 -0.5, %v920_v47  ;;  %v1492_v57 = vsel %vm1484_vm9, %v1488_v43, %v5541_v5  ;;  %vm921_vm12 = vcmp.lt.f32.partialorder %v919_v17, 1.0  ;;  %vm922_vm13 = vcmp.lt.f32.partialorder %v920_v47, 1.0 }
 0x222   : > { %v1491_v46 = vsel %vm1483_vm8, %v1487_v15, %v5540_v42  ;;  %v929_v53 = vsel %vm921_vm12, %v925_v40, %v5532_v59  ;;  %v1458_v49 = vmul.f32 %v1456_v30, %v1452_v38  ;;  %v1459_v50 = vmul.f32 %v1457_v22, %v1453_v1  ;;  %v1742_v15 = vpop.permute.xlu1 %1741  ;;  %v1744_v22 = vpop.permute.xlu0 %1743 }
 0x223   : > { %v930_v32 = vsel %vm922_vm13, %v926_v21, %v5533_v33  ;;  %v5538_v31 = vadd.f32 -0.5, %v1452_v38  ;;  %v5539_v35 = vadd.f32 -0.5, %v1453_v1  ;;  %v904_v8 = vsel %vm842_vm14, %v902_v44, 0.0 }
 0x224   : > { %v905_v61 = vsel %vm842_vm14, %v903_v25, 0.0  ;;  %v1493_v62 = vmul.f32 %v1491_v46, %v6837_v52  ;;  %v1494_v3 = vmul.f32 %v1492_v57, %v6840_v0  ;;  %v931_v41 = vmul.f32 %v929_v53, %v6837_v52 }
 0x225   : > { %v932_v60 = vmul.f32 %v930_v32, %v6840_v0  ;;  %vm1454_vm2 = vcmp.lt.f32.partialorder %v1452_v38, 1.0  ;;  %vm1455_vm3 = vcmp.lt.f32.partialorder %v1453_v1, 1.0  ;;  %v906_v20 = vadd.f32 %v905_v61, %v904_v8 }
 0x226   : > { %v1462_v17 = vsel %vm1454_vm2, %v1458_v49, %v5538_v31  ;;  %v1463_v47 = vsel %vm1455_vm3, %v1459_v50, %v5539_v35  ;;  %v1495_v4 = vsel %vm842_vm14, %v1493_v62, 0.0  ;;  %v1496_v39 = vsel %vm842_vm14, %v1494_v3, 0.0  ;;  %v1754_v44 = vpop.permute.xlu1 %1753  ;;  %v1756_v46 = vpop.permute.xlu0 %1755 }
 0x227   : > { %v933_v43 = vsel %vm842_vm14, %v931_v41, 0.0  ;;  %v934_v40 = vsel %vm842_vm14, %v932_v60, 0.0  ;;  %v1464_v21 = vmul.f32 %v1462_v17, %v6829_v58  ;;  %v1465_v30 = vmul.f32 %v1463_v47, %v6832_v56 }
 0x228   : > { %v1497_v38 = vadd.f32 %v1496_v39, %v1495_v4  ;;  %v935_v1 = vadd.f32 %v934_v40, %v933_v43  ;;  %v1745_v25 = vsel %vm620_vm0, %v1742_v15, %v1744_v22  ;;  %v1746_v59 = vsel %vm620_vm0, %v1744_v22, %v1742_v15  ;;  %v9584_v22 = vld [vmem:[#allocation29_spill] sm:$0xff] }
 0x229   : > { %v1466_v42 = vsel %vm842_vm14, %v1464_v21, 0.0  ;;  %v1467_v5 = vsel %vm842_vm14, %v1465_v30, 0.0  ;;  %v1757_v57 = vsel %vm646_vm1, %v1754_v44, %v1756_v46  ;;  %v1758_v53 = vsel %vm646_vm1, %v1756_v46, %v1754_v44  ;;  %v9583_v21 = vld [vmem:[#allocation34_spill] sm:$0xff]  ;;  %v9586_v44 = vld [vmem:[#allocation21_spill] sm:$0xff] }
 0x22a   : > { %v1468_v33 = vadd.f32 %v1467_v5, %v1466_v42  ;;  %v1749_v32 = vcombine.low %v1745_v25, %v1746_v59  ;;  %v1761_v49 = vcombine.low %v1757_v57, %v1758_v53  ;;  %v2005_v50 = vpop.permute.xlu0 %2004  ;;  %v2003_v8 = vpop.permute.xlu1 %2002  ;;  %v2015_v43 = vsel %vm683_vm6, %v6616_v54, %v6602_v45  ;;  %v9585_v42 = vld [vmem:[#allocation22_spill] sm:$0xff] }
 0x22b   : > { %v2017_v25 = vsub.f32 %v2015_v43, %v9586_v44  ;;  %v2006_v59 = vsel %vm620_vm0, %v2003_v8, %v2005_v50  ;;  %v1999_v46 = vsel %vm620_vm0, %v6592_v13, %v6610_v26 }
 0x22c   : > { %v1750_v31 = vrot.slane %v1749_v32, 7  ;;  %v1762_v35 = vrot.slane %v1761_v49, 7  ;;  %v2008_v32 = vsub.f32 %v2006_v59, %v9583_v21 }
 0x22e   : > { %v1752_v61 = vadd.f32 %v1750_v31, %v6503_v12  ;;  %v2021_v62 = vpop.permute.xlu0 %2020  ;;  %v2019_v41 = vpop.permute.xlu1 %2018  ;;  %v2014_v12 = vsel %vm683_vm6, %v6602_v45, %v6616_v54  ;;  %v2007_v45 = vsel %vm620_vm0, %v2005_v50, %v2003_v8 }
 0x22f   : > { %v2022_v4 = vsel %vm683_vm6, %v2019_v41, %v2021_v62  ;;  %v2023_v39 = vsel %vm683_vm6, %v2021_v62, %v2019_v41  ;;  %v2016_v5 = vsub.f32 %v2014_v12, %v9585_v42  ;;  %v2009_v49 = vsub.f32 %v2007_v45, %v9584_v22 }
 0x230   : > { %v6867_v3 = vadd.f32 %v1762_v35, %v1752_v61  ;;  %v2024_v30 = vsub.f32 %v2022_v4, %v9583_v21  ;;  %v2001_v35 = vsub.f32 %v1999_v46, %v9586_v44 }
 0x232   : > { %9582 = vst [vmem:[#allocation54_spill] sm:$0xff] %v6867_v3  ;;  %v1769_v47 = vrot.slane %v6867_v3, %v6147_v55  ;;  %v2055_v57 = vsub.f32 %v2024_v30, %v2016_v5  ;;  %v2027_v41 = vsub.f32 %v2009_v49, %v2001_v35 }
 0x234   : > { %v2057_v8 = vand.u32 2147483647, %v2055_v57 }
 0x236   : > { %907 = vadd.xlane.f32.xlu0 %v906_v20  ;;  %v1773_v20 = vrot.slane %v6867_v3, %v6205_v48  ;;  %vm2059_vm4 = vcmp.lt.f32.partialorder %v2057_v8, 1.0 }
 0x23a   : > { %1498 = vadd.xlane.f32.xlu0 %v1497_v38  ;;  %v2025_v38 = vsub.f32 %v2023_v39, %v9584_v22 }
 0x23b   : > { %936 = vadd.xlane.f32.xlu1 %v935_v1 }
 0x23c   : > { %v2056_v53 = vsub.f32 %v2025_v38, %v2017_v25 }
 0x23e   : > { %v2058_v61 = vand.u32 2147483647, %v2056_v53 }
 0x23f   : > { %1469 = vadd.xlane.f32.xlu1 %v1468_v33  ;;  %v1998_v33 = vsel %vm620_vm0, %v6610_v26, %v6592_v13  ;;  %v2029_v13 = vand.u32 2147483647, %v2027_v41 }
 0x240   : > { %v2000_v50 = vsub.f32 %v1998_v33, %v9585_v42  ;;  %v5549_v12 = vadd.f32 -0.5, %v2058_v61  ;;  %vm2060_vm5 = vcmp.lt.f32.partialorder %v2058_v61, 1.0 }
 0x241   : > { %v2033_v39 = vmul.f32 0.5, %v2029_v13  ;;  %v5547_v42 = vadd.f32 -0.5, %v2029_v13  ;;  %vm2031_vm8 = vcmp.lt.f32.partialorder %v2029_v13, 1.0 }
 0x242   : > { %v2026_v62 = vsub.f32 %v2008_v32, %v2000_v50  ;;  %v9589_v50 = vld [vmem:[#allocation19_spill] sm:$0xff] }
 0x243   : > { %v2035_v30 = vmul.f32 %v2033_v39, %v2029_v13 }
 0x245   : > { %v2039_v44 = vsel %vm2031_vm8, %v2035_v30, %v5547_v42 }
 0x24d   : > { %v847_v60 = vpop.xlane.xlu0 %846 }
 0x24e   : > { %v848_v17 = vrot.slane %v847_v60, 4 }
 0x250   : > { %v849_v15 = vadd.f32 %v848_v17, %v847_v60  ;;  %1776 = vrot.lane.b32.xlu1 %v1769_v47, %s5908_s25  ;;  %1778 = vrot.lane.b32.xlu0 %v1773_v20, %s5908_s25  ;;  %v2061_v60 = vmul.f32 0.5, %v2057_v8  ;;  %v2062_v17 = vmul.f32 0.5, %v2058_v61 }
 0x251   : > { %v6917_v32 = vpop.xlane.xlu0 %1408 }
 0x252   : > { %v850_v40 = vrot.slane %v849_v15, 2  ;;  %v2063_v26 = vmul.f32 %v2061_v60, %v2057_v8  ;;  %9587 = vst [vmem:[#allocation34_spill] sm:$0xff] %v6917_v32  ;;  %v6936_v60 = vpop.permute.xlu1 %1029 }
 0x254   : > { %1788 = vrot.lane.b32.xlu1 %v1769_v47, %s5909_s29  ;;  %1790 = vrot.lane.b32.xlu0 %v1773_v20, %s5909_s29  ;;  %v851_v1 = vadd.f32 %v850_v40, %v849_v15  ;;  %v2028_v47 = vand.u32 2147483647, %v2026_v62  ;;  %v2064_v20 = vmul.f32 %v2062_v17, %v2058_v61  ;;  %v5548_v15 = vadd.f32 -0.5, %v2057_v8  ;;  %v9590_v8 = vld [vmem:[#allocation20_spill] sm:$0xff] }
 0x255   : > { %v6919_v49 = vpop.xlane.xlu0 %1984 }
 0x256   : > { %v852_v54 = vrot.slane %v851_v1, 1  ;;  %v2032_v4 = vmul.f32 0.5, %v2028_v47  ;;  %v2067_v43 = vsel %vm2059_vm4, %v2063_v26, %v5548_v15  ;;  %v2068_v40 = vsel %vm2060_vm5, %v2064_v20, %v5549_v12  ;;  %9588 = vst [vmem:[#allocation29_spill] sm:$0xff] %v6919_v49 }
 0x257   : > { %v2069_v22 = vmul.f32 %v2067_v43, %v6837_v52  ;;  %v2070_v38 = vmul.f32 %v2068_v40, %v6840_v0  ;;  %vm2030_vm7 = vcmp.lt.f32.partialorder %v2028_v47, 1.0 }
 0x258   : > { %v853_v31 = vadd.f32 %v852_v54, %v851_v1  ;;  %v2034_v21 = vmul.f32 %v2032_v4, %v2028_v47  ;;  %v5546_v1 = vadd.f32 -0.5, %v2028_v47  ;;  %v2041_v54 = vmul.f32 %v2039_v44, %v6832_v56  ;;  %v6940_v47 = vpop.permute.xlu1 %1037 }
 0x259   : > { %v2071_v25 = vsel %vm842_vm14, %v2069_v22, 0.0  ;;  %v2072_v59 = vsel %vm842_vm14, %v2070_v38, 0.0  ;;  %v6930_v62 = vpop.permute.xlu0 %1031 }
 0x25a   : > { %5633 = vpush %v853_v31  ;;  %v2038_v5 = vsel %vm2030_vm7, %v2034_v21, %v5546_v1  ;;  %v2073_v33 = vadd.f32 %v2072_v59, %v2071_v25  ;;  %v2043_v57 = vsel %vm842_vm14, %v2041_v54, 0.0  ;;  %v6922_v31 = vld [vmem:[%s6014_s12] sm:$0x77] }
 0x25b   : > { %v2040_v45 = vmul.f32 %v2038_v5, %v6829_v58  ;;  %v2091_v35 = vrot.slane %v6922_v31, %v9589_v50  ;;  %v2087_v61 = vrot.slane %v6922_v31, %v9590_v8 }
 0x25c   : > { %v6944_v26 = vpop.permute.xlu1 %1594 }
 0x25d   : > { %v2042_v46 = vsel %vm842_vm14, %v2040_v45, 0.0  ;;  %v6934_v41 = vpop.permute.xlu0 %1039 }
 0x25e   : > { %v2044_v53 = vadd.f32 %v2043_v57, %v2042_v46 }
 0x260   : > { %v6948_v4 = vpop.permute.xlu1 %1602 }
 0x261   : > { %v6938_v17 = vpop.permute.xlu0 %1596 }
 0x264   : > { %v6952_v15 = vpop.permute.xlu1 %1135 }
 0x265   : > { %v6942_v13 = vpop.permute.xlu0 %1604 }
 0x268   : > { %v6956_v43 = vpop.permute.xlu1 %1143 }
 0x269   : > { %v6946_v20 = vpop.permute.xlu0 %1137 }
 0x26d   : > { %v6950_v39 = vpop.permute.xlu0 %1145 }
 0x271   : > { %v6954_v12 = vpop.permute.xlu0 %1704  ;;  %v6958_v40 = vpop.permute.xlu1 %1702 }
 0x273   : > { %2074 = vadd.xlane.f32.xlu0 %v2073_v33 }
 0x275   : > { %v6960_v21 = vpop.permute.xlu0 %1712  ;;  %v6964_v22 = vpop.permute.xlu1 %1710 }
 0x278   : > { %2045 = vadd.xlane.f32.xlu1 %v2044_v53 }
 0x285   : > { %v6962_v30 = vpop.permute.xlu0 %1208  ;;  %v6966_v38 = vpop.permute.xlu1 %1206 }
 0x286   : > { %9591 = vst [vmem:[#allocation22_spill] sm:$0xff] %v6962_v30  ;;  %9592 = vst [vmem:[#allocation21_spill] sm:$0xff] %v6966_v38 }
 0x289   : > { %2096 = vrot.lane.b32.xlu1 %v2091_v35, %s9533_s16  ;;  %2094 = vrot.lane.b32.xlu0 %v2087_v61, %s9533_s16  ;;  %v6968_v1 = vpop.permute.xlu0 %1219  ;;  %v6970_v5 = vpop.permute.xlu1 %1217 }
 0x28a   : > { %9593 = vst [vmem:[#allocation19_spill] sm:$0xff] %v6968_v1  ;;  %9594 = vst [vmem:[#allocation55_spill] sm:$0xff] %v6970_v5 }
 0x28d   : > { %2106 = vrot.lane.b32.xlu1 %v2087_v61, %s5904_s8  ;;  %2108 = vrot.lane.b32.xlu0 %v2091_v35, %s5904_s8 }
 0x2c3   : > { %v908_v42 = vpop.xlane.xlu0 %907 }
 0x2c4   : > { %v909_v44 = vrot.slane %v908_v42, 4 }
 0x2c6   : > { %v910_v25 = vadd.f32 %v909_v44, %v908_v42 }
 0x2c7   : > { %v6972_v58 = vpop.xlane.xlu0 %1498 }
 0x2c8   : > { %v937_v59 = vpop.xlane.xlu1 %936  ;;  %v911_v45 = vrot.slane %v910_v25, 2  ;;  %9595 = vst [vmem:[#allocation56_spill] sm:$0xff] %v6972_v58 }
 0x2c9   : > { %v938_v54 = vrot.slane %v937_v59, 4 }
 0x2ca   : > { %v912_v33 = vadd.f32 %v911_v45, %v910_v25 }
 0x2cb   : > { %v939_v46 = vadd.f32 %v938_v54, %v937_v59  ;;  %v6976_v52 = vpop.permute.xlu0 %1778 }
 0x2cc   : > { %v913_v57 = vrot.slane %v912_v33, 1  ;;  %v6974_v0 = vpop.xlane.xlu1 %1469 }
 0x2cd   : > { %v940_v53 = vrot.slane %v939_v46, 2  ;;  %9596 = vst [vmem:[#allocation57_spill] sm:$0xff] %v6974_v0 }
 0x2ce   : > { %v914_v35 = vadd.f32 %v913_v57, %v912_v33 }
 0x2cf   : > { %v941_v61 = vadd.f32 %v940_v53, %v939_v46  ;;  %v6980_v44 = vpop.permute.xlu0 %1790 }
 0x2d0   : > { %5635 = vpush %v914_v35  ;;  %v6978_v42 = vpop.permute.xlu1 %1776  ;;  %9597 = vst [vmem:[#allocation58_spill] sm:$0xff] %v6980_v44 }
 0x2d1   : > { %v942_v48 = vrot.slane %v941_v61, 1 }
 0x2d3   : > { %v943_v56 = vadd.f32 %v942_v48, %v941_v61 }
 0x2d4   : > { %v6982_v25 = vpop.permute.xlu1 %1788 }
 0x2d5   : > { %5637 = vpush %v943_v56  ;;  %9598 = vst [vmem:[#allocation59_spill] sm:$0xff] %v6982_v25 }
 0x300   : > { %v6984_v59 = vpop.xlane.xlu0 %2074 }
 0x301   : > { %9599 = vst [vmem:[#allocation60_spill] sm:$0xff] %v6984_v59 }
 0x304   : > { %v2095_v54 = vpop.permute.xlu0 %2094 }
 0x305   : > { %v6986_v45 = vpop.xlane.xlu1 %2045 }
 0x306   : > { %9600 = vst [vmem:[#allocation61_spill] sm:$0xff] %v6986_v45 }
 0x308   : > { %v2109_v57 = vpop.permute.xlu0 %2108 }
 0x309   : > { %v2097_v33 = vpop.permute.xlu1 %2096 }
 0x30a   : > { %v2098_v48 = vsel %vm620_vm0, %v2095_v54, %v2097_v33  ;;  %v2099_v56 = vsel %vm620_vm0, %v2097_v33, %v2095_v54 }
 0x30b   : > { %v2102_v46 = vcombine.low %v2098_v48, %v2099_v56 }
 0x30d   : > { %v2103_v53 = vrot.slane %v2102_v46, 6  ;;  %v2107_v35 = vpop.permute.xlu1 %2106 }
 0x30e   : > { %v2110_v61 = vsel %vm646_vm1, %v2107_v35, %v2109_v57  ;;  %v2111_v59 = vsel %vm646_vm1, %v2109_v57, %v2107_v35 }
 0x30f   : > { %v2114_v49 = vcombine.low %v2110_v61, %v2111_v59  ;;  %v2105_v45 = vadd.f32 %v6922_v31, %v2103_v53  ;;  %v9602_v59 = vld [vmem:[#allocation27_spill] sm:$0xff] }
 0x311   : > { %v2115_v58 = vrot.slane %v2114_v49, 6 }
 0x313   : > { %v6997_v0 = vadd.f32 %v2115_v58, %v2105_v45  ;;  %v9603_v58 = vld [vmem:[#allocation32_spill] sm:$0xff] }
 0x315   : > { %9601 = vst [vmem:[#allocation62_spill] sm:$0xff] %v6997_v0  ;;  %v2126_v32 = vrot.slane %v6997_v0, %v9589_v50  ;;  %v2122_v54 = vrot.slane %v6997_v0, %v9590_v8 }
 0x317   : > { %2131 = vrot.lane.b32.xlu0 %v2126_v32, %s5908_s25  ;;  %2129 = vrot.lane.b32.xlu1 %v2122_v54, %s5908_s25 }
 0x31b   : > { %2143 = vrot.lane.b32.xlu0 %v2126_v32, %s5909_s29  ;;  %2141 = vrot.lane.b32.xlu1 %v2122_v54, %s5909_s29 }
 0x31f   : > { %2156 = vrot.lane.b32.xlu0 %v9602_v59, %s9533_s16  ;;  %2154 = vrot.lane.b32.xlu1 %v9603_v58, %s9533_s16 }
 0x323   : > { %2164 = vrot.lane.b32.xlu0 %v9602_v59, %s5904_s8  ;;  %2162 = vrot.lane.b32.xlu1 %v9603_v58, %s5904_s8 }
 0x389   : > { %v7015_v49 = vpop.permute.xlu0 %2131  ;;  %v7017_v45 = vpop.permute.xlu1 %2129 }
 0x38a   : > { %9604 = vst [vmem:[#allocation27_spill] sm:$0xff] %v7015_v49  ;;  %9605 = vst [vmem:[#allocation32_spill] sm:$0xff] %v7017_v45  ;;  %v2555_v49 = vstv %s2554_s11  ;;  %s2501_s11 = sadd.s32 4, %s7028_s10 }
 0x38d   : > { %v7019_v33 = vpop.permute.xlu0 %2143  ;;  %v7021_v32 = vpop.permute.xlu1 %2141 }
 0x38e   : > { %9606 = vst [vmem:[#allocation63_spill] sm:$0xff] %v7019_v33  ;;  %9607 = vst [vmem:[#allocation64_spill] sm:$0xff] %v7021_v32 }
 0x391   : > { %v2157_v48 = vpop.permute.xlu0 %2156  ;;  %v2155_v56 = vpop.permute.xlu1 %2154 }
 0x392   : > { %v2158_v46 = vsel %vm620_vm0, %v2155_v56, %v2157_v48  ;;  %v2159_v57 = vsel %vm620_vm0, %v2157_v48, %v2155_v56 }
 0x393   : > { %v2160_v53 = vadd.f32 %v2158_v46, %v9603_v58  ;;  %v2161_v35 = vadd.f32 %v2159_v57, %v9602_v59  ;;  %v2543_v46 = vstv %s2542_s27  ;;  %v2548_v57 = vstv %s2547_s28  ;;  %s2474_s27 = sld [smem:[#allocation2 + %s2473_s7]]  ;;  %s2497_s28 = sadd.s32 3, %s7028_s10 }
 0x394   : > { %v2544_v33 = vmul.f32 %v2543_v46, %v6064_v23  ;;  %v2545_v45 = vmul.f32 %v2543_v46, %v6066_v24  ;;  %s2498_s30 = sld [smem:[#allocation2 + %s2497_s28]]  ;;  %s2537_s7 = sadd.s32 7, %s7028_s10 }
 0x395   : > { %v2165_v61 = vpop.permute.xlu0 %2164  ;;  %v2163_v54 = vpop.permute.xlu1 %2162 }
 0x396   : > { %v2166_v0 = vsel %vm646_vm1, %v2163_v54, %v2165_v61  ;;  %v2167_v48 = vsel %vm646_vm1, %v2165_v61, %v2163_v54 }
 0x397   : > { %v7038_v56 = vadd.f32 %v2166_v0, %v2160_v53  ;;  %v7040_v32 = vadd.f32 %v2167_v48, %v2161_v35  ;;  %v2549_v0 = vmul.f32 %v2548_v57, %v6070_v27  ;;  %v2550_v53 = vmul.f32 %v2548_v57, %v6073_v28  ;;  %v9610_v35 = vld [vmem:[#allocation7_spill] sm:$0xff] }
 0x398   : > { %v2195_v61 = vrot.slane %v9610_v35, %v9589_v50  ;;  %v2191_v54 = vrot.slane %v9610_v35, %v9590_v8 }
 0x399   : > { %9608 = vst [vmem:[#allocation65_spill] sm:$0xff] %v7038_v56  ;;  %9609 = vst [vmem:[#allocation66_spill] sm:$0xff] %v7040_v32  ;;  %2172 = vrot.lane.b32.xlu0 %v7040_v32, %s5908_s25  ;;  %2170 = vrot.lane.b32.xlu1 %v7038_v56, %s5908_s25  ;;  %v2551_v48 = vadd.f32 %v2549_v0, %v2544_v33  ;;  %v2552_v46 = vadd.f32 %v2550_v53, %v2545_v45  ;;  %v2579_v0 = vstv %s2578_s20  ;;  %s2502_s20 = sld [smem:[#allocation2 + %s2501_s11]] }
 0x39a   : > { %v2499_v1 = vstv %s2498_s30 }
 0x39b   : > { %v2556_v19 = vadd.f32 %v2555_v49, %v2551_v48  ;;  %v2557_v57 = vadd.f32 %v2555_v49, %v2552_v46  ;;  %v7069_v49 = vld [vmem:[%s6119_s14] sm:$0x3]  ;;  %v2468_v48 = vstv %s2467_s26 }
 0x39c   : > { %v2470_v46 = vmul.f32 %v2468_v48, %v6073_v28 }
 0x39d   : > { %2180 = vrot.lane.b32.xlu0 %v7040_v32, %s5909_s29  ;;  %2178 = vrot.lane.b32.xlu1 %v7038_v56, %s5909_s29  ;;  %v2560_v32 = vcombine.low %v2556_v19, %v2557_v57  ;;  %v9611_v56 = vld [vmem:[#allocation10_spill] sm:$0xff] }
 0x39f   : > { %v2567_v18 = vrot.slane %v2560_v32, %v9611_v56  ;;  %v2463_v32 = vstv %s2462_s24  ;;  %s2513_s24 = sadd.s32 6, %s7028_s10  ;;  %s8046_s10 = sadd.s32 32, %s6029_s13 }
 0x3a0   : > { %s2514_s26 = sld [smem:[#allocation2 + %s2513_s24]]  ;;  %s4246_s28 = sadd.s32 8, %s8046_s10 }
 0x3a1   : > { %2200 = vrot.lane.b32.xlu0 %v2195_v61, %s9533_s16  ;;  %2198 = vrot.lane.b32.xlu1 %v2191_v54, %s9533_s16  ;;  %v2574_v45 = vrot.slane %v2567_v18, %v9611_v56  ;;  %v2465_v18 = vmul.f32 %v2463_v32, %v6066_v24  ;;  %s4251_s30 = sadd.s32 9, %s8046_s10  ;;  %s4247_s13 = sld [smem:[#allocation2 + %s4246_s28]] }
 0x3a2   : > { %s4252_s11 = sld [smem:[#allocation2 + %s4251_s30]]  ;;  %s4258_s5 = sadd.s32 10, %s8046_s10 }
 0x3a3   : > { %v2576_v33 = vmul.f32 %v7069_v49, %v2574_v45  ;;  %v2472_v9 = vadd.f32 %v2470_v46, %v2465_v18  ;;  %v2475_v45 = vstv %s2474_s27  ;;  %s2538_s27 = sld [smem:[#allocation2 + %s2537_s7]]  ;;  %s4178_s28 = sadd.s32 2, %s8046_s10 }
 0x3a4   : > { %s4167_s7 = sld [smem:[#allocation2 + %s8046_s10]] }
 0x3a5   : > { %2212 = vrot.lane.b32.xlu0 %v2195_v61, %s5904_s8  ;;  %2210 = vrot.lane.b32.xlu1 %v2191_v54, %s5904_s8  ;;  %v2580_v19 = vadd.f32 %v2579_v0, %v2576_v33  ;;  %v2464_v61 = vmul.f32 %v2463_v32, %v6064_v23  ;;  %v2469_v54 = vmul.f32 %v2468_v48, %v6070_v27  ;;  %s8100_s30 = sld [smem:[#allocation2 + %s4178_s28]] }
 0x3a6   : > { %v2477_v0 = vadd.f32 %v2475_v45, %v2472_v9 }
 0x3a7   : > { %v2581_v53 = vadd.f32 1e-10, %v2580_v19  ;;  %v2471_v57 = vadd.f32 %v2469_v54, %v2464_v61 }
 0x3a9   : > { %5821 = vrcp.f32 %v2581_v53  ;;  %v2476_v33 = vadd.f32 %v2475_v45, %v2471_v57 }
 0x3ab   : > { %v2480_v3 = vcombine.low %v2476_v33, %v2477_v0 }
 0x3ad   : > { %v2487_v19 = vrot.slane %v2480_v3, %v9611_v56 }
 0x3af   : > { %v2494_v11 = vrot.slane %v2487_v19, %v9611_v56 }
 0x3b1   : > { %v2496_v32 = vmul.f32 %v7069_v49, %v2494_v11 }
 0x3b3   : > { %v5822_v34 = vpop.eup %5821  ;;  %v2500_v30 = vadd.f32 %v2499_v1, %v2496_v32 }
 0x3b4   : > { %v2583_v5 = vmul.f32 %v5822_v34, %v2581_v53  ;;  %v9612_v53 = vmov 0 }
 0x3b6   : > { %v2584_v38 = vsub.f32 2.0, %v2583_v5 }
 0x3b8   : > { %v7081_v48 = vmul.f32 %v5822_v34, %v2584_v38 }
 0x3ba   : > { %v2586_v61 = vmul.f32 %v7081_v48, %v2500_v30 }
 0x3bc   : > { %v2588_v18 = vfloor.f32 %v2586_v61  ;;  %v2601_v54 = vmax.f32 %v2586_v61, 0.0 }
 0x3be   : > { %vm2590_vm9 = vcmp.ge.f32.partialorder %v2588_v18, 0.0  ;;  %v2591_v9 = vadd.f32 1.0, %v2588_v18  ;;  %v2605_v46 = vmax.f32 %v2588_v18, 0.0  ;;  %v2602_v57 = vmin.f32 %v2601_v54, 15.0  ;;  %v9615_v54 = vld [vmem:[#allocation5_spill] sm:$0xff] }
 0x3c0   : > { %vm2592_vm12 = vcmp.le.f32.partialorder %v2591_v9, 15.0  ;;  %v2606_v3 = vmin.f32 %v2605_v46, 15.0  ;;  %v2607_v45 = vmax.f32 %v2591_v9, 0.0  ;;  %v9616_v9 = vld [vmem:[#allocation13_spill] sm:$0xff] }
 0x3c1   : > { %vm7084_vm13 = vmand %vm2590_vm9, %vm2592_vm12 }
 0x3c2   : > { %v9613_v53 = vsel %vm7084_vm13, 4294967295, %v9612_v53  ;;  %v2608_v11 = vmin.f32 %v2607_v45, 15.0  ;;  %v5657_v5 = vtrunc.f32 %v2606_v3  ;;  %v2614_v1 = vsub.f32 %v2602_v57, %v2606_v3 }
 0x3c3   : > { %9614 = vst [vmem:[#allocation7_spill] sm:$0xff] %v9613_v53 }
 0x3c4   : > { %v2613_v34 = vsub.f32 %v2608_v11, %v2602_v57  ;;  %v5658_v38 = vcvt.f32.s32 %v5657_v5  ;;  %v5659_v33 = vtrunc.f32 %v2608_v11  ;;  %v2668_v61 = vrot.slane %v2614_v1, %v6147_v55 }
 0x3c5   : > { %v2664_v45 = vrot.slane %v2614_v1, %v6009_v6 }
 0x3c6   : > { %v5660_v30 = vcvt.f32.s32 %v5659_v33  ;;  %v2628_v0 = vrot.slane %v5658_v38, %v6147_v55  ;;  %v2641_v19 = vrot.slane %v2613_v34, %v6147_v55  ;;  %v2624_v32 = vrot.slane %v5658_v38, %v6009_v6 }
 0x3c7   : > { %v2637_v18 = vrot.slane %v2613_v34, %v6009_v6 }
 0x3c8   : > { %vm2630_vm2 = vcmp.eq.s32.totalorder %v9615_v54, %v2628_v0  ;;  %vm2632_vm3 = vcmp.eq.s32.totalorder %v9616_v9, %v2628_v0  ;;  %v2655_v46 = vrot.slane %v5660_v30, %v6147_v55  ;;  %vm2629_vm4 = vcmp.eq.s32.totalorder %v9615_v54, %v2624_v32 }
 0x3c9   : > { %v2645_v57 = vsel %vm2630_vm2, %v2641_v19, 0.0  ;;  %v2647_v3 = vsel %vm2632_vm3, %v2641_v19, 0.0  ;;  %vm2631_vm5 = vcmp.eq.s32.totalorder %v9616_v9, %v2624_v32  ;;  %v2651_v11 = vrot.slane %v5660_v30, %v6009_v6  ;;  %v5813_v30 = vld [vmem:[%s6081_s9 + $0x18] sm:$0xff]  }
 0x3ca   : > { %vm2657_vm7 = vcmp.eq.s32.totalorder %v9615_v54, %v2655_v46  ;;  %vm2659_vm8 = vcmp.eq.s32.totalorder %v9616_v9, %v2655_v46  ;;  %v2644_v38 = vsel %vm2629_vm4, %v2637_v18, 0.0  ;;  %v2646_v33 = vsel %vm2631_vm5, %v2637_v18, 0.0 }
 0x3cb   : > { %v2672_v5 = vsel %vm2657_vm7, %v2668_v61, 0.0  ;;  %v2674_v34 = vsel %vm2659_vm8, %v2668_v61, 0.0  ;;  %vm2656_vm9 = vcmp.eq.s32.totalorder %v9615_v54, %v2651_v11  ;;  %vm2658_vm12 = vcmp.eq.s32.totalorder %v9616_v9, %v2651_v11 }
 0x3cc   : > { %v2676_v0 = vadd.f32 %v2672_v5, %v2645_v57  ;;  %v2678_v53 = vadd.f32 %v2674_v34, %v2647_v3  ;;  %v2671_v19 = vsel %vm2656_vm9, %v2664_v45, 0.0  ;;  %v2673_v32 = vsel %vm2658_vm12, %v2664_v45, 0.0 }
 0x3cd   : > { %v2675_v25 = vadd.f32 %v2671_v19, %v2644_v38  ;;  %v2677_v44 = vadd.f32 %v2673_v32, %v2646_v33  ;;  %v9617_v61 = vmov 0  }
 0x3ce   : > { %v2680_v1 = vpack.c.bf16 %v2678_v53, %v2676_v0 }
 0x3cf   : > { %v2679_v46 = vpack.c.bf16 %v2677_v44, %v2675_v25 }
 0x3d0   : > { %2873 = vmatprep.subr.bf16.mxu1 %v2680_v1  ;;  %3307 = vmatprep.subr.bf16.mxu0 %v2680_v1 }
 0x3d1   : > { %2874 = vmatpush1.bf16.msra.mxu1 %v2679_v46  ;;  %3308 = vmatpush1.bf16.msra.mxu0 %v2679_v46 }
 0x3d2   : > { %3740 = vmatprep.subr.bf16.mxu1 %v2680_v1 }
 0x3d4   : > { %5555 = vmatmul.mubr.msk.bf16.vlgmr.msra.gmra.mrb[4].mxu1 %vm739_vm15, %v5813_v30 }
 0x3d5   : > { %3741 = vmatpush1.bf16.msra.mxu1 %v2679_v46  ;;  %3772 = vmatprep.mubr.bf16.mxu1 %v9617_v61 }
 0x40b   : > { %v7107_v18 = vpop.permute.xlu0 %2172  ;;  %v7109_v57 = vpop.permute.xlu1 %2170 }
 0x40c   : > { %9618 = vst [vmem:[#allocation10_spill] sm:$0xff] %v7109_v57 }
 0x40f   : > { %v7111_v3 = vpop.permute.xlu0 %2180  ;;  %v7113_v53 = vpop.permute.xlu1 %2178 }
 0x410   : > { %9619 = vst [vmem:[#allocation67_spill] sm:$0xff] %v7111_v3  ;;  %9620 = vst [vmem:[#allocation68_spill] sm:$0xff] %v7113_v53 }
 0x413   : > { %v2201_v45 = vpop.permute.xlu0 %2200  ;;  %v2199_v44 = vpop.permute.xlu1 %2198 }
 0x414   : > { %v2202_v25 = vsel %vm620_vm0, %v2199_v44, %v2201_v45  ;;  %v2203_v11 = vsel %vm620_vm0, %v2201_v45, %v2199_v44 }
 0x415   : > { %v2206_v5 = vcombine.low %v2202_v25, %v2203_v11  ;;  %v2260_v25 = vmul.f32 %v9603_v58, %v9603_v58  ;;  %v2503_v11 = vstv %s2502_s20  ;;  %s4259_s20 = sld [smem:[#allocation2 + %s4258_s5]] }
 0x417   : > { %v2213_v34 = vpop.permute.xlu0 %2212  ;;  %v2211_v38 = vpop.permute.xlu1 %2210  ;;  %v2207_v33 = vrot.slane %v2206_v5, 6  ;;  %v2508_v5 = vstv %s2507_s23  ;;  %s4282_s23 = sadd.s32 11, %s8046_s10 }
 0x418   : > { %v2214_v0 = vsel %vm646_vm1, %v2211_v38, %v2213_v34  ;;  %v2215_v19 = vsel %vm646_vm1, %v2213_v34, %v2211_v38  ;;  %v2504_v34 = vmul.f32 %v2503_v11, %v6064_v23  ;;  %v2505_v38 = vmul.f32 %v2503_v11, %v6066_v24  ;;  %s4283_s24 = sld [smem:[#allocation2 + %s4282_s23]] }
 0x419   : > { %v2218_v32 = vcombine.low %v2214_v0, %v2215_v19  ;;  %v2209_v1 = vadd.f32 %v2207_v33, %v9610_v35  ;;  %v2261_v35 = vmul.f32 %v9602_v59, %v9602_v59  ;;  %v2509_v33 = vmul.f32 %v2508_v5, %v6070_v27 }
 0x41a   : > { %v2510_v0 = vmul.f32 %v2508_v5, %v6073_v28 }
 0x41b   : > { %v2219_v46 = vrot.slane %v2218_v32, 6  ;;  %v2511_v19 = vadd.f32 %v2509_v33, %v2504_v34  ;;  %v2539_v34 = vstv %s2538_s27 }
 0x41c   : > { %v2512_v32 = vadd.f32 %v2510_v0, %v2505_v38 }
 0x41d   : > { %v7124_v30 = vadd.f32 %v2219_v46, %v2209_v1  ;;  %v2515_v1 = vstv %s2514_s26  ;;  %s4171_s26 = sadd.s32 1, %s8046_s10 }
 0x41e   : > { %v2516_v46 = vadd.f32 %v2515_v1, %v2511_v19  ;;  %s4172_s27 = sld [smem:[#allocation2 + %s4171_s26]] }
 0x41f   : > { %9621 = vst [vmem:[#allocation69_spill] sm:$0xff] %v7124_v30  ;;  %v2230_v45 = vrot.slane %v7124_v30, %v9589_v50  ;;  %v2226_v44 = vrot.slane %v7124_v30, %v9590_v8 }
 0x421   : > { %2235 = vrot.lane.b32.xlu0 %v2230_v45, %s5908_s25  ;;  %2233 = vrot.lane.b32.xlu1 %v2226_v44, %s5908_s25 }
 0x425   : > { %2247 = vrot.lane.b32.xlu0 %v2230_v45, %s5909_s29  ;;  %2245 = vrot.lane.b32.xlu1 %v2226_v44, %s5909_s29  ;;  %v2517_v45 = vadd.f32 %v2515_v1, %v2512_v32 }
 0x427   : > { %v2520_v44 = vcombine.low %v2516_v46, %v2517_v45 }
 0x429   : > { %2264 = vrot.lane.b32.xlu0 %v2261_v35, %s9533_s16  ;;  %2262 = vrot.lane.b32.xlu1 %v2260_v25, %s9533_s16  ;;  %v2527_v61 = vrot.slane %v2520_v44, %v9611_v56 }
 0x42b   : > { %v2534_v11 = vrot.slane %v2527_v61, %v9611_v56 }
 0x42d   : > { %2272 = vrot.lane.b32.xlu0 %v2261_v35, %s5904_s8  ;;  %2270 = vrot.lane.b32.xlu1 %v2260_v25, %s5904_s8  ;;  %v2536_v3 = vmul.f32 %v7069_v49, %v2534_v11  ;;  %v2302_v49 = vcombine.low %v9603_v58, %v9602_v59 }
 0x42f   : > { %v2540_v38 = vadd.f32 %v2539_v34, %v2536_v3  ;;  %v2303_v58 = vrot.slane %v2302_v49, 6 }
 0x431   : > { %v2587_v33 = vmul.f32 %v7081_v48, %v2540_v38 }
 0x433   : > { %v7166_v46 = vfloor.f32 %v2587_v33 }
 0x435   : > { %v7171_v61 = vadd.f32 1.0, %v7166_v46  ;;  %v2609_v38 = vmax.f32 %v7166_v46, 0.0 }
 0x493   : > { %v7151_v30 = vpop.permute.xlu0 %2235  ;;  %v7153_v53 = vpop.permute.xlu1 %2233 }
 0x494   : > { %9622 = vst [vmem:[#allocation70_spill] sm:$0xff] %v7153_v53 }
 0x497   : > { %v7157_v57 = vpop.permute.xlu0 %2247  ;;  %v7159_v5 = vpop.permute.xlu1 %2245 }
 0x498   : > { %9623 = vst [vmem:[#allocation71_spill] sm:$0xff] %v7157_v57  ;;  %9624 = vst [vmem:[#allocation72_spill] sm:$0xff] %v7159_v5  ;;  %v2610_v5 = vmin.f32 %v2609_v38, 15.0 }
 0x49b   : > { %v2265_v0 = vpop.permute.xlu0 %2264  ;;  %v2263_v19 = vpop.permute.xlu1 %2262 }
 0x49c   : > { %v2266_v32 = vsel %vm620_vm0, %v2263_v19, %v2265_v0  ;;  %v2267_v1 = vsel %vm620_vm0, %v2265_v0, %v2263_v19  ;;  %v2611_v0 = vmax.f32 %v7171_v61, 0.0 }
 0x49d   : > { %v2268_v45 = vadd.f32 %v2266_v32, %v2260_v25  ;;  %v2269_v3 = vadd.f32 %v2267_v1, %v2261_v35  ;;  %v2603_v35 = vmax.f32 %v2587_v33, 0.0  ;;  %v5661_v32 = vtrunc.f32 %v2610_v5 }
 0x49e   : > { %v2612_v25 = vmin.f32 %v2611_v0, 15.0 }
 0x49f   : > { %v2273_v44 = vpop.permute.xlu0 %2272  ;;  %v2271_v48 = vpop.permute.xlu1 %2270 }
 0x4a0   : > { %v2274_v11 = vsel %vm646_vm1, %v2271_v48, %v2273_v44  ;;  %v2275_v34 = vsel %vm646_vm1, %v2273_v44, %v2271_v48  ;;  %v5663_v1 = vtrunc.f32 %v2612_v25  ;;  %v7188_v44 = vmul.f32 %v6922_v31, %v2303_v58 }
 0x4a1   : > { %v7179_v19 = vadd.f32 %v2274_v11, %v2268_v45  ;;  %v7181_v59 = vadd.f32 %v2275_v34, %v2269_v3  ;;  %v2604_v48 = vmin.f32 %v2603_v35, 15.0  ;;  %v5662_v45 = vcvt.f32.s32 %v5661_v32 }
 0x4a2   : > { %v5664_v11 = vcvt.f32.s32 %v5663_v1  ;;  %v2314_v38 = vrot.slane %v7188_v44, %v9589_v50  ;;  %v2310_v31 = vrot.slane %v7188_v44, %v9590_v8 }
 0x4a3   : > { %9625 = vst [vmem:[#allocation73_spill] sm:$0xff] %v7179_v19  ;;  %9626 = vst [vmem:[#allocation74_spill] sm:$0xff] %v7181_v59  ;;  %2280 = vrot.lane.b32.xlu0 %v7181_v59, %s5908_s25  ;;  %2278 = vrot.lane.b32.xlu1 %v7179_v19, %s5908_s25  ;;  %v2615_v49 = vsub.f32 %v2612_v25, %v2604_v48  ;;  %v2616_v3 = vsub.f32 %v2604_v48, %v2610_v5 }
 0x4a4   : > { %v2684_v34 = vrot.slane %v5662_v45, %v6009_v6  ;;  %v2711_v33 = vrot.slane %v5664_v11, %v6009_v6 }
 0x4a5   : > { %v2697_v0 = vrot.slane %v2615_v49, %v6009_v6  ;;  %v2724_v58 = vrot.slane %v2616_v3, %v6009_v6 }
 0x4a6   : > { %vm2689_vm2 = vcmp.eq.s32.totalorder %v9615_v54, %v2684_v34  ;;  %vm2716_vm3 = vcmp.eq.s32.totalorder %v9615_v54, %v2711_v33  ;;  %vm2691_vm4 = vcmp.eq.s32.totalorder %v9616_v9, %v2684_v34  ;;  %vm2718_vm5 = vcmp.eq.s32.totalorder %v9616_v9, %v2711_v33 }
 0x4a7   : > { %2288 = vrot.lane.b32.xlu0 %v7181_v59, %s5909_s29  ;;  %2286 = vrot.lane.b32.xlu1 %v7179_v19, %s5909_s29  ;;  %v2704_v5 = vsel %vm2689_vm2, %v2697_v0, 0.0  ;;  %v2731_v25 = vsel %vm2716_vm3, %v2724_v58, 0.0  ;;  %v2706_v35 = vsel %vm2691_vm4, %v2697_v0, 0.0  ;;  %v2733_v32 = vsel %vm2718_vm5, %v2724_v58, 0.0  ;;  %v2907_v48 = vpop.f32.mrb[4].mxu1 }
 0x4a8   : > { %v7208_v1 = vadd.f32 %v2731_v25, %v2704_v5  ;;  %v7210_v57 = vadd.f32 %v2733_v32, %v2706_v35  ;;  %v2909_v59 = vpop.f32.mrb[5].mxu1  ;;  %v2688_v0 = vrot.slane %v5662_v45, %v6147_v55  ;;  %v2701_v58 = vrot.slane %v2615_v49, %v6147_v55 }
 0x4a9   : > { %v2911_v53 = vpop.f32.mrb[6].mxu1  ;;  %v2715_v5 = vrot.slane %v5664_v11, %v6147_v55  ;;  %v2728_v25 = vrot.slane %v2616_v3, %v6147_v55  ;;  %vm709_vm2 = vcmp.lt.s32.totalorder %v6000_v2, 96  ;;  %vm2594_vm3 = vcmp.ge.f32.partialorder %v7166_v46, 0.0 }
 0x4aa   : > { %9627 = vst [vmem:[#allocation75_spill] sm:$0xff] %v7208_v1  ;;  %9628 = vst [vmem:[#allocation76_spill] sm:$0xff] %v7210_v57  ;;  %v2916_v19 = vmul.f32 %v2907_v48, %v7208_v1  ;;  %v2918_v34 = vmul.f32 %v2911_v53, %v7210_v57  ;;  %vm2690_vm7 = vcmp.eq.s32.totalorder %v9615_v54, %v2688_v0  ;;  %v2913_v53 = vpop.f32.mrb[7].mxu1  ;;  %v9632_v48 = vld [vmem:[#allocation25_spill] sm:$0xff]  ;;  %vm2597_vm5 = vcmp.le.f32.partialorder %v7171_v61, 15.0 }
 0x4ab   : > { %2319 = vrot.lane.b32.xlu0 %v2314_v38, %s9533_s16  ;;  %2317 = vrot.lane.b32.xlu1 %v2310_v31, %s9533_s16  ;;  %vm2717_vm8 = vcmp.eq.s32.totalorder %v9615_v54, %v2715_v5  ;;  %v2705_v35 = vsel %vm2690_vm7, %v2701_v58, 0.0  ;;  %vm2692_vm9 = vcmp.eq.s32.totalorder %v9616_v9, %v2688_v0  ;;  %vm2719_vm12 = vcmp.eq.s32.totalorder %v9616_v9, %v2715_v5  ;;  %v9642_v9 = vld [vmem:[#allocation35_spill] sm:$0xff]  ;;  %v9643_v54 = vld [vmem:[#allocation26_spill] sm:$0xff]  ;;  %vm2595_vm4 = vmand %vm7084_vm13, %vm2594_vm3 }
 0x4ac   : > { %v7216_v33 = vadd.f32 %v2918_v34, %v2916_v19  ;;  %v2707_v19 = vsel %vm2692_vm9, %v2701_v58, 0.0  ;;  %v2734_v45 = vsel %vm2719_vm12, %v2728_v25, 0.0  ;;  %v9633_v34 = vld [vmem:[#allocation24_spill] sm:$0xff]  ;;  %vm2598_vm13 = vmand %vm2595_vm4, %vm2597_vm5  ;;  %vm309_vm7 = vcmp.le.f32.partialorder %v6064_v23, 13.0 }
 0x4ad   : > { %v7229_v11 = vadd.f32 %v2734_v45, %v2707_v19  ;;  %v995_v0 = vsel %vm683_vm6, %v9632_v48, %v9633_v34  ;;  %v9637_v19 = vld [vmem:[#allocation39_spill] sm:$0xff]  ;;  %v9638_v45 = vld [vmem:[#allocation33_spill] sm:$0xff]  ;;  %vm311_vm9 = vmand %vm291_vm10, %vm309_vm7  ;;  %vm313_vm12 = vcmp.le.f32.partialorder %v6070_v27, 13.0  ;;  %vm314_vm4 = vcmp.le.f32.partialorder %v6073_v28, 13.0 }
 0x4ae   : > { %v2921_v61 = vrot.slane %v7216_v33, 4  ;;  %vm7585_vm5 = vmand %vm311_vm9, %vm313_vm12 }
 0x4af   : > { %2331 = vrot.lane.b32.xlu0 %v2314_v38, %s5904_s8  ;;  %2329 = vrot.lane.b32.xlu1 %v2310_v31, %s5904_s8  ;;  %v2732_v38 = vsel %vm2717_vm8, %v2728_v25, 0.0  ;;  %9630 = vst [vmem:[#allocation78_spill] sm:$0xff] %v7229_v11  ;;  %v2919_v3 = vmul.f32 %v2913_v53, %v7229_v11  ;;  %v9635_v25 = vld [vmem:[#allocation31_spill] sm:$0xff]  ;;  %vm310_vm8 = vcmp.le.f32.partialorder %v6066_v24, 13.0 }
 0x4b0   : > { %v7224_v32 = vadd.f32 %v2732_v38, %v2705_v35  ;;  %v994_v35 = vsel %vm683_vm6, %v9633_v34, %v9632_v48  ;;  %v9636_v38 = vld [vmem:[#allocation28_spill] sm:$0xff]  ;;  %v9639_v48 = vld [vmem:[#allocation43_spill] sm:$0xff]  ;;  %vm312_vm3 = vmand %vm9492_vm11, %vm310_vm8 }
 0x4b1   : > { %v998_v58 = vcombine.low %v994_v35, %v995_v0  ;;  %v7250_v53 = vsel %vm709_vm2, %v9636_v38, %v9635_v25  ;;  %v9640_v34 = vld [vmem:[#allocation36_spill] sm:$0xff] }
 0x4b2   : > { %9629 = vst [vmem:[#allocation77_spill] sm:$0xff] %v7224_v32  ;;  %v2917_v49 = vmul.f32 %v2909_v59, %v7224_v32  ;;  %v9634_v59 = vld [vmem:[#allocation15_spill] sm:$0xff]  ;;  %v1569_v35 = vsel %vm709_vm2, %v9640_v34, %v9639_v48  ;;  %v1570_v0 = vsel %vm709_vm2, %v9639_v48, %v9640_v34  ;;  %v1096_v48 = vsel %vm683_vm6, %v9643_v54, %v9642_v9 }
 0x4b3   : > { %v7244_v5 = vadd.f32 %v998_v58, %v9634_v59  ;;  %v9641_v58 = vld [vmem:[#allocation38_spill] sm:$0xff]  ;;  %v1033_v34 = vsel %vm683_vm6, %v6936_v60, %v6930_v62  ;;  %v1573_v1 = vcombine.low %v1569_v35, %v1570_v0  ;;  %v1606_v0 = vsel %vm709_vm2, %v6948_v4, %v6942_v13 }
 0x4b4   : > { %v7232_v31 = vadd.f32 %v2919_v3, %v2917_v49  ;;  %v1557_v49 = vsel %vm683_vm6, %v9638_v45, %v9637_v19  ;;  %v1558_v3 = vsel %vm683_vm6, %v9637_v19, %v9638_v45  ;;  %v1661_v59 = vsel %vm683_vm6, %v9641_v58, %v6596_v51 }
 0x4b5   : > { %v1662_v19 = vsel %vm683_vm6, %v6596_v51, %v9641_v58  ;;  %v1006_v45 = vsel %vm709_vm2, %v9635_v25, %v9636_v38  ;;  %v1034_v51 = vsel %vm683_vm6, %v6930_v62, %v6936_v60  ;;  %v1097_v25 = vsel %vm683_vm6, %v9642_v9, %v9643_v54  ;;  %v9644_v38 = vld [vmem:[#allocation37_spill] sm:$0xff]  ;;  %v9645_v58 = vld [vmem:[#allocation30_spill] sm:$0xff]  ;;  %v9646_v54 = vld [vmem:[#allocation40_spill] sm:$0xff] }
 0x4b6   : > { %9631 = vst [vmem:[#allocation79_spill] sm:$0xff] %v7232_v31  ;;  %v1107_v11 = vsel %vm709_vm2, %v9645_v58, %v9644_v38  ;;  %v1108_v57 = vsel %vm709_vm2, %v9644_v38, %v9645_v58  ;;  %v1561_v32 = vcombine.low %v1557_v49, %v1558_v3  ;;  %v1665_v31 = vcombine.low %v1661_v59, %v1662_v19 }
 0x4b7   : > { %v1598_v62 = vsel %vm683_vm6, %v6944_v26, %v6938_v17  ;;  %v1599_v60 = vsel %vm683_vm6, %v6938_v17, %v6944_v26  ;;  %v1673_v9 = vsel %vm709_vm2, %v9646_v54, %v6604_v7  ;;  %v1674_v49 = vsel %vm709_vm2, %v6604_v7, %v9646_v54 }
 0x4b8   : > { %v1035_v3 = vadd.f32 %v1033_v34, %v6634_v29  ;;  %v1036_v35 = vadd.f32 %v1034_v51, %v6636_v10  ;;  %v1607_v17 = vsel %vm709_vm2, %v6942_v13, %v6948_v4  ;;  %v1706_v26 = vsel %vm683_vm6, %v6958_v40, %v6954_v12 }
 0x4b9   : > { %v1707_v7 = vsel %vm683_vm6, %v6954_v12, %v6958_v40  ;;  %v1041_v29 = vsel %vm709_vm2, %v6940_v47, %v6934_v41  ;;  %v1042_v10 = vsel %vm709_vm2, %v6934_v41, %v6940_v47  ;;  %v1600_v13 = vadd.f32 %v1598_v62, %v6660_v37 }
 0x4ba   : > { %v1601_v4 = vadd.f32 %v1599_v60, %v6662_v63  ;;  %v1139_v59 = vsel %vm683_vm6, %v6952_v15, %v6946_v20  ;;  %v1140_v12 = vsel %vm683_vm6, %v6946_v20, %v6952_v15  ;;  %v1714_v40 = vsel %vm709_vm2, %v6964_v22, %v6960_v21 }
 0x4bb   : > { %v1715_v37 = vsel %vm709_vm2, %v6960_v21, %v6964_v22  ;;  %v1608_v63 = vadd.f32 %v1606_v0, %v1600_v13  ;;  %v1708_v47 = vadd.f32 %v1706_v26, %v6708_v14  ;;  %v1709_v19 = vadd.f32 %v1707_v7, %v6710_v36  ;;  %v9647_v22 = vld [vmem:[#allocation48_spill] sm:$0xff] }
 0x4bc   : > { %v1609_v41 = vadd.f32 %v1607_v17, %v1601_v4  ;;  %v1043_v34 = vadd.f32 %v1041_v29, %v1035_v3  ;;  %v1044_v51 = vadd.f32 %v1042_v10, %v1036_v35  ;;  %v1147_v20 = vsel %vm709_vm2, %v6956_v43, %v6950_v39  ;;  %v9650_v4 = vld [vmem:[#allocation18_spill] sm:$0xff] }
 0x4bd   : > { %v1148_v15 = vsel %vm709_vm2, %v6950_v39, %v6956_v43  ;;  %v1141_v21 = vadd.f32 %v1139_v59, %v6684_v16  ;;  %v1142_v38 = vadd.f32 %v1140_v12, %v9647_v22  ;;  %v1716_v58 = vadd.f32 %v1714_v40, %v1708_v47 }
 0x4be   : > { %v1717_v14 = vadd.f32 %v1715_v37, %v1709_v19  ;;  %v1009_v36 = vcombine.low %v7250_v53, %v1006_v45  ;;  %v1100_v62 = vcombine.low %v1096_v48, %v1097_v25  ;;  %v1562_v60 = vrot.slane %v1561_v32, 7  ;;  %v9648_v45 = vld [vmem:[#allocation16_spill] sm:$0xff]  ;;  %v9649_v48 = vld [vmem:[#allocation17_spill] sm:$0xff] }
 0x4bf   : > { %v1677_v54 = vcombine.low %v1673_v9, %v1674_v49  ;;  %v7377_v3 = vmul.f32 0.11111111, %v1608_v63  ;;  %v7379_v35 = vmul.f32 0.11111111, %v1609_v41  ;;  %v1149_v0 = vadd.f32 %v1147_v20, %v1141_v21 }
 0x4c0   : > { %v1150_v17 = vadd.f32 %v1148_v15, %v1142_v38  ;;  %v1111_v26 = vcombine.low %v1107_v11, %v1108_v57  ;;  %v1574_v7 = vrot.slane %v1573_v1, 7  ;;  %v1666_v39 = vrot.slane %v1665_v31, 7 }
 0x4c1   : > { %v7381_v43 = vmul.f32 0.11111111, %v1043_v34  ;;  %v7383_v16 = vmul.f32 0.11111111, %v1044_v51  ;;  %v1718_v29 = vmul.f32 0.11111111, %v1716_v58  ;;  %v1011_v53 = vadd.f32 %v1009_v36, %v7244_v5 }
 0x4c2   : > { %v1719_v10 = vmul.f32 0.11111111, %v1717_v14  ;;  %v1102_v32 = vadd.f32 %v1100_v62, %v9648_v45  ;;  %v1564_v25 = vadd.f32 %v1562_v60, %v9649_v48  ;;  %v1678_v9 = vrot.slane %v1677_v54, 7  ;;  %v9654_v48 = vld [vmem:[#allocation58_spill] sm:$0xff] }
 0x4c3   : > { %v1720_v49 = vmul.f32 %v7377_v3, %v7377_v3  ;;  %v1721_v57 = vmul.f32 %v7379_v35, %v7379_v35  ;;  %v1151_v1 = vmul.f32 0.11111111, %v1149_v0  ;;  %v1152_v11 = vmul.f32 0.11111111, %v1150_v17 }
 0x4c4   : > { %v1113_v31 = vadd.f32 %v1111_v26, %v1102_v32  ;;  %v1576_v13 = vadd.f32 %v1574_v7, %v1564_v25  ;;  %v1668_v59 = vadd.f32 %v1666_v39, %v9650_v4  ;;  %v1153_v5 = vmul.f32 %v7381_v43, %v7381_v43  ;;  %v9655_v25 = vld [vmem:[#allocation59_spill] sm:$0xff] }
 0x4c5   : > { %v1154_v12 = vmul.f32 %v7383_v16, %v7383_v16  ;;  %v1722_v40 = vsub.f32 %v1718_v29, %v1720_v49  ;;  %v1723_v37 = vsub.f32 %v1719_v10, %v1721_v57  ;;  %v7397_v41 = vmul.f32 0.11111111, %v1011_v53 }
 0x4c6   : > { %v1680_v63 = vadd.f32 %v1678_v9, %v1668_v59  ;;  %v1155_v47 = vsub.f32 %v1151_v1, %v1153_v5  ;;  %v7399_v34 = vmul.f32 0.11111111, %v1576_v13  ;;  %v1114_v51 = vmul.f32 0.11111111, %v1113_v31  ;;  %v9659_v59 = vld [vmem:[#allocation19_spill] sm:$0xff] }
 0x4c7   : > { %v1156_v19 = vsub.f32 %v1152_v11, %v1154_v12  ;;  %v1816_v20 = vcombine.low %v1720_v49, %v1721_v57  ;;  %v1823_v15 = vcombine.low %v1722_v40, %v1723_v37  ;;  %v7407_v58 = vmul.f32 %v7397_v41, %v7397_v41  ;;  %v9656_v57 = vld [vmem:[#allocation22_spill] sm:$0xff] }
 0x4c8   : > { %9651 = vst [vmem:[#allocation25_spill] sm:$0xff] %v7399_v34  ;;  %v1681_v21 = vmul.f32 0.11111111, %v1680_v63  ;;  %v7411_v36 = vmul.f32 %v7399_v34, %v7399_v34  ;;  %v1243_v62 = vcombine.low %v1153_v5, %v1154_v12  ;;  %v1780_v29 = vsel %vm683_vm6, %v6978_v42, %v6976_v52  ;;  %v9660_v5 = vld [vmem:[#allocation55_spill] sm:$0xff] }
 0x4c9   : > { %v1249_v14 = vcombine.low %v1155_v47, %v1156_v19  ;;  %v7414_v60 = vsub.f32 %v1114_v51, %v7407_v58  ;;  %v1817_v54 = vrot.slane %v1816_v20, 7  ;;  %v1824_v0 = vrot.slane %v1823_v15, 7 }
 0x4ca   : > { %9652 = vst [vmem:[#allocation24_spill] sm:$0xff] %v7411_v36  ;;  %v7417_v17 = vsub.f32 %v1681_v21, %v7411_v36  ;;  %v1781_v10 = vsel %vm683_vm6, %v6976_v52, %v6978_v42  ;;  %v1245_v53 = vadd.f32 %v1243_v62, %v7407_v58  ;;  %v1792_v9 = vsel %vm709_vm2, %v9655_v25, %v9654_v48  ;;  %v9657_v52 = vld [vmem:[#allocation21_spill] sm:$0xff] }
 0x4cb   : > { %v1251_v39 = vadd.f32 %v1249_v14, %v7414_v60  ;;  %v1819_v45 = vadd.f32 %v1817_v54, %v7411_v36  ;;  %v1793_v49 = vsel %vm709_vm2, %v9654_v48, %v9655_v25  ;;  %v1210_v42 = vsel %vm683_vm6, %v9657_v52, %v9656_v57 }
 0x4cc   : > { %9653 = vst [vmem:[#allocation15_spill] sm:$0xff] %v7417_v17  ;;  %v1826_v32 = vadd.f32 %v1824_v0, %v7417_v17  ;;  %v1211_v46 = vsel %vm683_vm6, %v9656_v57, %v9657_v52  ;;  %v1784_v1 = vcombine.low %v1780_v29, %v1781_v10  ;;  %v1221_v12 = vsel %vm709_vm2, %v9660_v5, %v9659_v59  ;;  %v9663_v57 = vld [vmem:[#allocation49_spill] sm:$0xff] }
 0x4cd   : > { %v1252_v4 = vadd.f32 0.0009, %v1251_v39  ;;  %v1222_v63 = vsel %vm709_vm2, %v9659_v59, %v9660_v5  ;;  %v1796_v47 = vcombine.low %v1792_v9, %v1793_v49  ;;  %v1246_v51 = vadd.f32 0.0001, %v1245_v53  ;;  %v9696_v17 = vld [vmem:[#allocation69_spill] sm:$0xff] }
 0x4ce   : > { %v1827_v20 = vadd.f32 0.0009, %v1826_v32  ;;  %v1214_v15 = vcombine.low %v1210_v42, %v1211_v46  ;;  %v1820_v21 = vadd.f32 0.0001, %v1819_v45  ;;  %v1785_v14 = vrot.slane %v1784_v1, 7  ;;  %v9664_v46 = vld [vmem:[#allocation54_spill] sm:$0xff] }
 0x4cf   : > { %v1253_v39 = vmul.f32 %v1252_v4, %v1246_v51  ;;  %v1225_v29 = vcombine.low %v1221_v12, %v1222_v63  ;;  %v1797_v25 = vrot.slane %v1796_v47, 7  ;;  %v9661_v49 = vmov 0.0   ;;  %v9665_v4 = vld [vmem:[#allocation11_spill] sm:$0xff]  ;;  %v7492_v63 = vld [vmem:[%s6014_s12] sm:$0x77] }
 0x4d0   : > { %v7473_v53 = vsel %vm2598_vm13, 1.0, %v9661_v49  ;;  %v2922_v32 = vadd.f32 %v2921_v61, %v7216_v33  ;;  %v1828_v45 = vmul.f32 %v1827_v20, %v1820_v21  ;;  %v1216_v52 = vadd.f32 %v1214_v15, %v9663_v57  ;;  %v9667_v57 = vld [vmem:[#allocation6_spill] sm:$0xff]  ;;  %vm7592_vm13 = vmand %vm312_vm3, %vm314_vm4 }
 0x4d1   : > { %9662 = vst [vmem:[#allocation31_spill] sm:$0xff] %v7473_v53  ;;  %v1803_v42 = vcombine.low %v7377_v3, %v7379_v35  ;;  %v1787_v1 = vadd.f32 %v1785_v14, %v9664_v46  ;;  %v2940_v59 = vrot.slane %v7473_v53, %v9665_v4  ;;  %5823 = vrcp.f32 %v1253_v39 }
 0x4d2   : > { %v1227_v13 = vadd.f32 %v1225_v29, %v1216_v52  ;;  %v2923_v33 = vrot.slane %v2922_v32, 2  ;;  %5825 = vrcp.f32 %v1828_v45 }
 0x4d3   : > { %v1799_v5 = vadd.f32 %v1797_v25, %v1787_v1  ;;  %v1804_v3 = vrot.slane %v1803_v42, 7  ;;  %v7495_v47 = vmul.f32 %v7492_v63, %v2940_v59 }
 0x4d4   : > { %v2924_v61 = vadd.f32 %v2923_v33, %v2922_v32 }
 0x4d5   : > { %v1806_v20 = vmul.f32 %v1804_v3, %v7399_v34  ;;  %v7530_v52 = vrot.slane %v7495_v47, %v9667_v57 }
 0x4d6   : > { %v2925_v14 = vrot.slane %v2924_v61, 1 }
 0x4d8   : > { %v7523_v32 = vadd.f32 %v2925_v14, %v2924_v61 }
 0x515   : > { %v7401_v22 = vpop.permute.xlu0 %2280  ;;  %v7403_v38 = vpop.permute.xlu1 %2278 }
 0x519   : > { %v7419_v26 = vpop.permute.xlu0 %2288  ;;  %v7421_v7 = vpop.permute.xlu1 %2286 }
 0x51d   : > { %v2320_v11 = vpop.permute.xlu0 %2319  ;;  %v2318_v31 = vpop.permute.xlu1 %2317 }
 0x51e   : > { %v2321_v40 = vsel %vm620_vm0, %v2318_v31, %v2320_v11  ;;  %v2322_v37 = vsel %vm620_vm0, %v2320_v11, %v2318_v31 }
 0x51f   : > { %v2325_v19 = vcombine.low %v2321_v40, %v2322_v37  ;;  %v1231_v40 = vcombine.low %v7381_v43, %v7383_v16  ;;  %v1228_v37 = vmul.f32 0.11111111, %v1227_v13  ;;  %v7501_v43 = vrot.slane %v7473_v53, %v6009_v6 }
 0x520   : > { %v7505_v16 = vrot.slane %v7473_v53, %v6147_v55 }
 0x521   : > { %v2326_v62 = vrot.slane %v2325_v19, 6  ;;  %v2332_v54 = vpop.permute.xlu0 %2331  ;;  %v2330_v0 = vpop.permute.xlu1 %2329  ;;  %v1800_v19 = vmul.f32 0.11111111, %v1799_v5  ;;  %v1233_v51 = vmul.f32 %v1231_v40, %v7397_v41  ;;  %v7539_v59 = vmul.f32 %v7523_v32, %v7501_v43 }
 0x522   : > { %v2333_v10 = vsel %vm646_vm1, %v2330_v0, %v2332_v54  ;;  %v2334_v48 = vsel %vm646_vm1, %v2332_v54, %v2330_v0  ;;  %v7515_v54 = vrot.slane %v7495_v47, %v6009_v6  ;;  %v5824_v0 = vpop.eup %5823 }
 0x523   : > { %v2337_v9 = vcombine.low %v2333_v10, %v2334_v48  ;;  %v2328_v11 = vadd.f32 %v2326_v62, %v7188_v44  ;;  %v1234_v15 = vsub.f32 %v1228_v37, %v1233_v51  ;;  %v1807_v21 = vsub.f32 %v1800_v19, %v1806_v20  ;;  %v5826_v29 = vpop.eup %5825  ;;  %v9668_v20 = vld [vmem:[#allocation45_spill] sm:$0xff] }
 0x524   : > { %v5800_v62 = vpack.i.bf16 %v7505_v16, %v7501_v43  ;;  %v7518_v10 = vmul.f32 2.0, %v7397_v41  ;;  %v7521_v48 = vmul.f32 2.0, %v7399_v34  ;;  %v1255_v1 = vmul.f32 %v5824_v0, %v1253_v39 }
 0x525   : > { %v2338_v31 = vrot.slane %v2337_v9, 6  ;;  %v1238_v25 = vmul.f32 2.0, %v1234_v15  ;;  %v1811_v9 = vmul.f32 2.0, %v1807_v21  ;;  %v9669_v15 = vld [vmem:[#allocation44_spill] sm:$0xff] }
 0x526   : > { %9666 = vst [vmem:[#allocation28_spill] sm:$0xff] %v7521_v48  ;;  %v1236_v42 = vmul.f32 %v7518_v10, %v1231_v40  ;;  %v1809_v46 = vmul.f32 %v7521_v48, %v1804_v3  ;;  %v684_v21 = vsel %vm683_vm6, %v9669_v15, %v9668_v20  ;;  %v685_v14 = vsel %vm683_vm6, %v9668_v20, %v9669_v15 }
 0x527   : > { %v7483_v12 = vadd.f32 %v2338_v31, %v2328_v11  ;;  %v1830_v11 = vmul.f32 %v5826_v29, %v1828_v45  ;;  %v1239_v31 = vadd.f32 0.0009, %v1238_v25  ;;  %v1812_v13 = vadd.f32 0.0009, %v1811_v9 }
 0x528   : > { %v1237_v5 = vadd.f32 0.0001, %v1236_v42  ;;  %v1810_v33 = vadd.f32 0.0001, %v1809_v46  ;;  %v688_v9 = vcombine.low %v684_v21, %v685_v14 }
 0x529   : > { %v2349_v35 = vrot.slane %v7483_v12, %v9589_v50  ;;  %v2345_v44 = vrot.slane %v7483_v12, %v9590_v8 }
 0x52a   : > { %v1240_v40 = vmul.f32 %v1239_v31, %v1237_v5  ;;  %v1813_v37 = vmul.f32 %v1812_v13, %v1810_v33 }
 0x52b   : > { %2354 = vrot.lane.b32.xlu0 %v2349_v35, %s5908_s25  ;;  %2352 = vrot.lane.b32.xlu1 %v2345_v44, %s5908_s25 }
 0x52f   : > { %2366 = vrot.lane.b32.xlu0 %v2349_v35, %s5909_s29  ;;  %2364 = vrot.lane.b32.xlu1 %v2345_v44, %s5909_s29  ;;  %v1256_v35 = vsub.f32 2.0, %v1255_v1  ;;  %v1831_v44 = vsub.f32 2.0, %v1830_v11  ;;  %v695_v11 = vrot.slane %v688_v9, %v9611_v56 }
 0x531   : > { %v1257_v39 = vmul.f32 %v5824_v0, %v1256_v35  ;;  %v1832_v45 = vmul.f32 %v5826_v29, %v1831_v44  ;;  %v9671_v0 = vld [vmem:[#allocation46_spill] sm:$0xff]  ;;  %v702_v33 = vrot.slane %v695_v11, %v9611_v56 }
 0x533   : > { %5801 = vrot.lane.b32.xlu0 %v5800_v62, %s9533_s16  ;;  %2985 = vrot.lane.b32.xlu1 %v7515_v54, %s9533_s16  ;;  %v1258_v3 = vmul.f32 %v1257_v39, %v1240_v40  ;;  %v1833_v19 = vmul.f32 %v1832_v45, %v1813_v37  ;;  %v9672_v37 = vld [vmem:[#allocation23_spill] sm:$0xff] }
 0x534   : > { %v704_v39 = vadd.f32 %v702_v33, %v9672_v37 }
 0x535   : > { %v1259_v61 = vsub.f32 1.0, %v1258_v3  ;;  %v1834_v51 = vsub.f32 1.0, %v1833_v19 }
 0x537   : > { %5806 = vrot.lane.b32.xlu0 %v5800_v62, %s5904_s8  ;;  %2987 = vrot.lane.b32.xlu1 %v7530_v52, %s9533_s16  ;;  %v9670_v62 = vld [vmem:[#allocation47_spill] sm:$0xff]  ;;  %v1260_v42 = vmul.f32 0.5, %v1259_v61  ;;  %v1835_v46 = vmul.f32 0.5, %v1834_v51 }
 0x538   : > { %v710_v29 = vsel %vm709_vm2, %v9671_v0, %v9670_v62  ;;  %v711_v25 = vsel %vm709_vm2, %v9670_v62, %v9671_v0  ;;  %v9675_v0 = vmov 0 }
 0x539   : > { %v714_v1 = vcombine.low %v710_v29, %v711_v25  ;;  %v1261_v31 = vmax.f32 %v1260_v42, 0.0  ;;  %v1836_v13 = vmax.f32 %v1835_v46, 0.0  ;;  %v9676_v0 = vsel %vm7585_vm5, 4294967295, %v9675_v0 }
 0x53a   : > { %9677 = vst [vmem:[#allocation39_spill] sm:$0xff] %v9676_v0  ;;  %v9678_v42 = vmov 0 }
 0x53b   : > { %2993 = vrot.lane.b32.xlu1 %v7539_v59, %s9533_s16  ;;  %v721_v5 = vrot.slane %v714_v1, %v9611_v56  ;;  %v1262_v35 = vmin.f32 %v1261_v31, 1.0  ;;  %v1837_v44 = vmin.f32 %v1836_v13, 1.0  ;;  %v9679_v42 = vsel %vm7592_vm13, 4294967295, %v9678_v42 }
 0x53c   : > { %9680 = vst [vmem:[#allocation33_spill] sm:$0xff] %v9679_v42 }
 0x53d   : > { %v728_v40 = vrot.slane %v721_v5, %v9611_v56  ;;  %v1270_v45 = vrot.slane %v1262_v35, %v9611_v56  ;;  %v1845_v3 = vrot.slane %v1837_v44, %v9611_v56 }
 0x53f   : > { %3001 = vrot.lane.b32.xlu1 %v7515_v54, %s5908_s25  ;;  %v730_v19 = vadd.f32 %v728_v40, %v704_v39  ;;  %v1277_v61 = vrot.slane %v1270_v45, %v9611_v56  ;;  %v1846_v51 = vcombine.high %v1845_v3, %v1845_v3  ;;  %v9681_v45 = vld [vmem:[#allocation27_spill] sm:$0xff]  ;;  %v9682_v3 = vld [vmem:[#allocation32_spill] sm:$0xff] }
 0x541   : > { %v7573_v20 = vmul.f32 0.11111111, %v730_v19  ;;  %v1853_v21 = vrot.slane %v1846_v51, %v9611_v56  ;;  %v2133_v19 = vsel %vm683_vm6, %v9682_v3, %v9681_v45  ;;  %v9683_v51 = vld [vmem:[#allocation10_spill] sm:$0xff] }
 0x543   : > { %3003 = vrot.lane.b32.xlu1 %v7530_v52, %s5908_s25  ;;  %v1279_v15 = vmul.f32 %v1277_v61, %v7573_v20  ;;  %v1855_v9 = vmul.f32 %v1853_v21, %v7573_v20  ;;  %v2134_v61 = vsel %vm683_vm6, %v9681_v45, %v9682_v3  ;;  %v2175_v21 = vsel %vm683_vm6, %v7107_v18, %v9683_v51 }
 0x544   : > { %v2291_v3 = vsel %vm709_vm2, %v7419_v26, %v7421_v7 }
 0x545   : > { %v1284_v29 = vrot.slane %v1279_v15, %v6009_v6  ;;  %v1288_v25 = vrot.slane %v1279_v15, %v6147_v55  ;;  %v1860_v11 = vrot.slane %v1855_v9, %v6009_v6  ;;  %v1864_v31 = vrot.slane %v1855_v9, %v6147_v55  ;;  %v9685_v9 = vld [vmem:[#allocation68_spill] sm:$0xff] }
 0x546   : > { %v2174_v15 = vsel %vm683_vm6, %v9683_v51, %v7107_v18  ;;  %v2283_v18 = vsel %vm683_vm6, %v7401_v22, %v7403_v38  ;;  %v9691_v51 = vld [vmem:[#allocation73_spill] sm:$0xff] }
 0x547   : > { %3009 = vrot.lane.b32.xlu1 %v7539_v59, %s5908_s25  ;;  %v1291_v46 = vsel %vm7585_vm5, %v1284_v29, 0.0  ;;  %v1292_v1 = vsel %vm7592_vm13, %v1288_v25, 0.0  ;;  %v1867_v33 = vsel %vm7585_vm5, %v1860_v11, 0.0  ;;  %v1868_v35 = vsel %vm7592_vm13, %v1864_v31, 0.0  ;;  %v9684_v25 = vld [vmem:[#allocation67_spill] sm:$0xff] }
 0x548   : > { %v1293_v13 = vsel %vm842_vm14, %v1291_v46, 0.0  ;;  %v1294_v5 = vsel %vm842_vm14, %v1292_v1, 0.0  ;;  %v1869_v40 = vsel %vm842_vm14, %v1867_v33, 0.0  ;;  %v1870_v37 = vsel %vm842_vm14, %v1868_v35, 0.0  ;;  %v9686_v31 = vld [vmem:[#allocation63_spill] sm:$0xff]  ;;  %v9688_v35 = vld [vmem:[#allocation65_spill] sm:$0xff] }
 0x549   : > { %v1295_v44 = vadd.f32 %v1294_v5, %v1293_v13  ;;  %v1871_v39 = vadd.f32 %v1870_v37, %v1869_v40  ;;  %v2137_v29 = vcombine.low %v2133_v19, %v2134_v61  ;;  %v2182_v46 = vsel %vm709_vm2, %v9685_v9, %v9684_v25  ;;  %v9687_v13 = vld [vmem:[#allocation64_spill] sm:$0xff]  ;;  %v9689_v40 = vld [vmem:[#allocation66_spill] sm:$0xff] }
 0x54a   : > { %v2183_v1 = vsel %vm709_vm2, %v9684_v25, %v9685_v9  ;;  %v2282_v11 = vsel %vm683_vm6, %v7403_v38, %v7401_v22  ;;  %v2145_v5 = vsel %vm709_vm2, %v9687_v13, %v9686_v31  ;;  %v2146_v33 = vsel %vm709_vm2, %v9686_v31, %v9687_v13  ;;  %v9693_v9 = vld [vmem:[#allocation71_spill] sm:$0xff]  ;;  %v9694_v31 = vld [vmem:[#allocation72_spill] sm:$0xff] }
 0x54b   : > { %v2177_v37 = vadd.f32 %v2175_v21, %v9689_v40  ;;  %v2290_v38 = vsel %vm709_vm2, %v7421_v7, %v7419_v26  ;;  %v9692_v21 = vld [vmem:[#allocation74_spill] sm:$0xff]  ;;  %v2250_v13 = vsel %vm709_vm2, %v9693_v9, %v9694_v31  ;;  %v2138_v7 = vrot.slane %v2137_v29, 6 }
 0x54c   : > { %v2285_v25 = vadd.f32 %v2283_v18, %v9692_v21  ;;  %v9695_v21 = vld [vmem:[#allocation62_spill] sm:$0xff] }
 0x54d   : > { %v2185_v61 = vadd.f32 %v2183_v1, %v2177_v37  ;;  %v2140_v48 = vadd.f32 %v2138_v7, %v9695_v21 }
 0x54e   : > { %v2293_v26 = vadd.f32 %v2291_v3, %v2285_v25 }
 0x54f   : > { %v2187_v1 = vmul.f32 0.11111111, %v2185_v61 }
 0x551   : > { %v2297_v62 = vmul.f32 %v2187_v1, %v2187_v1 }
 0x56b   : > { %1296 = vadd.xlane.f32.xlu1 %v1295_v44  ;;  %v2176_v44 = vadd.f32 %v2174_v15, %v9688_v35  ;;  %v2284_v15 = vadd.f32 %v2282_v11, %v9691_v51  ;;  %v2149_v35 = vcombine.low %v2145_v5, %v2146_v33  ;;  %v2295_v51 = vmul.f32 0.11111111, %v2293_v26 }
 0x56d   : > { %v2184_v19 = vadd.f32 %v2182_v46, %v2176_v44  ;;  %v2150_v44 = vrot.slane %v2149_v35, 6  ;;  %v2299_v33 = vsub.f32 %v2295_v51, %v2297_v62 }
 0x56f   : > { %1872 = vadd.xlane.f32.xlu1 %v1871_v39  ;;  %v9690_v39 = vld [vmem:[#allocation70_spill] sm:$0xff]  ;;  %v2186_v46 = vmul.f32 0.11111111, %v2184_v19  ;;  %v2152_v36 = vadd.f32 %v2150_v44, %v2140_v48 }
 0x570   : > { %v2237_v45 = vsel %vm683_vm6, %v9690_v39, %v7151_v30  ;;  %v2238_v22 = vsel %vm683_vm6, %v7151_v30, %v9690_v39  ;;  %v2249_v30 = vsel %vm709_vm2, %v9694_v31, %v9693_v9  ;;  %v2292_v39 = vadd.f32 %v2290_v38, %v2284_v15 }
 0x571   : > { %v2241_v40 = vcombine.low %v2237_v45, %v2238_v22  ;;  %v2253_v11 = vcombine.low %v2249_v30, %v2250_v13  ;;  %v2296_v34 = vmul.f32 %v2186_v46, %v2186_v46  ;;  %v7680_v22 = vmul.f32 0.11111111, %v2152_v36 }
 0x572   : > { %v2294_v37 = vmul.f32 0.11111111, %v2292_v39 }
 0x573   : > { %v2242_v18 = vrot.slane %v2241_v40, 6  ;;  %v2254_v14 = vrot.slane %v2253_v11, 6  ;;  %9697 = vst [vmem:[#allocation43_spill] sm:$0xff] %v7680_v22  ;;  %v2392_v38 = vcombine.low %v2296_v34, %v2297_v62  ;;  %v7684_v19 = vmul.f32 %v7680_v22, %v7680_v22 }
 0x574   : > { %v2298_v5 = vsub.f32 %v2294_v37, %v2296_v34  ;;  %v2379_v40 = vcombine.low %v2186_v46, %v2187_v1  ;;  %v7701_v46 = vmul.f32 2.0, %v7680_v22 }
 0x575   : > { %v2244_v9 = vadd.f32 %v2242_v18, %v9696_v17  ;;  %9698 = vst [vmem:[#allocation36_spill] sm:$0xff] %v7684_v19  ;;  %v2393_v15 = vrot.slane %v2392_v38, 6 }
 0x576   : > { %v2399_v29 = vcombine.low %v2298_v5, %v2299_v33  ;;  %v2380_v37 = vrot.slane %v2379_v40, 6  ;;  %9700 = vst [vmem:[#allocation35_spill] sm:$0xff] %v7701_v46 }
 0x577   : > { %v2256_v45 = vadd.f32 %v2254_v14, %v2244_v9  ;;  %v2395_v17 = vadd.f32 %v2393_v15, %v7684_v19 }
 0x578   : > { %v2400_v61 = vrot.slane %v2399_v29, 6 }
 0x579   : > { %v2257_v3 = vmul.f32 0.11111111, %v2256_v45  ;;  %v2396_v14 = vadd.f32 0.0001, %v2395_v17  ;;  %v9701_v17 = vld [vmem:[#allocation79_spill] sm:$0xff] }
 0x57b   : > { %v7687_v25 = vsub.f32 %v2257_v3, %v7684_v19  ;;  %v2382_v3 = vmul.f32 %v2380_v37, %v7680_v22 }
 0x57d   : > { %9699 = vst [vmem:[#allocation38_spill] sm:$0xff] %v7687_v25  ;;  %v2402_v48 = vadd.f32 %v2400_v61, %v7687_v25 }
 0x57f   : > { %v2403_v31 = vadd.f32 0.0009, %v2402_v48 }
 0x581   : > { %v2404_v36 = vmul.f32 %v2403_v31, %v2396_v14  ;;  %v2928_v31 = vrot.slane %v9701_v17, 4 }
 0x583   : > { %5827 = vrcp.f32 %v2404_v36 }
 0x58d   : > { %v5828_v5 = vpop.eup %5827 }
 0x58e   : > { %v2406_v61 = vmul.f32 %v5828_v5, %v2404_v36 }
 0x59d   : > { %v2355_v30 = vpop.permute.xlu0 %2354  ;;  %v2353_v34 = vpop.permute.xlu1 %2352 }
 0x59e   : > { %v2356_v62 = vsel %vm683_vm6, %v2353_v34, %v2355_v30  ;;  %v2357_v13 = vsel %vm683_vm6, %v2355_v30, %v2353_v34  ;;  %v2385_v34 = vmul.f32 %v7701_v46, %v2380_v37 }
 0x59f   : > { %v2360_v35 = vcombine.low %v2356_v62, %v2357_v13 }
 0x5a1   : > { %v2361_v39 = vrot.slane %v2360_v35, 6  ;;  %v2367_v26 = vpop.permute.xlu0 %2366  ;;  %v2365_v7 = vpop.permute.xlu1 %2364 }
 0x5a2   : > { %v2368_v11 = vsel %vm709_vm2, %v2365_v7, %v2367_v26  ;;  %v2369_v44 = vsel %vm709_vm2, %v2367_v26, %v2365_v7 }
 0x5a3   : > { %v2372_v18 = vcombine.low %v2368_v11, %v2369_v44  ;;  %v2363_v51 = vadd.f32 %v2361_v39, %v7483_v12  ;;  %v2407_v39 = vsub.f32 2.0, %v2406_v61  ;;  %v2929_v11 = vadd.f32 %v2928_v31, %v9701_v17 }
 0x5a4   : > { %v2386_v44 = vadd.f32 0.0001, %v2385_v34 }
 0x5a5   : > { %v2373_v21 = vrot.slane %v2372_v18, 6  ;;  %v5802_v9 = vpop.permute.xlu0 %5801 }
 0x5a6   : > { %v5804_v33 = vunpack.i.h.bf16 %v5802_v9  ;;  %v5803_v45 = vunpack.i.l.bf16 %v5802_v9 }
 0x5a7   : > { %v2375_v29 = vadd.f32 %v2373_v21, %v2363_v51  ;;  %v2408_v51 = vmul.f32 %v5828_v5, %v2407_v39  ;;  %v2956_v39 = vsub.f32 %v7539_v59, %v7515_v54 }
 0x5a8   : > { %v2754_v1 = vsel %vm620_vm0, %v5803_v45, %v5804_v33  ;;  %v2755_v38 = vsel %vm620_vm0, %v5804_v33, %v5803_v45  ;;  %v2930_v45 = vrot.slane %v2929_v11, 2 }
 0x5a9   : > { %v2376_v15 = vmul.f32 0.11111111, %v2375_v29  ;;  %v2758_v12 = vcombine.low %v2754_v1, %v2755_v38  ;;  %v5807_v48 = vpop.permute.xlu0 %5806 }
 0x5aa   : > { %v5809_v14 = vunpack.i.h.bf16 %v5807_v48  ;;  %v5808_v30 = vunpack.i.l.bf16 %v5807_v48  ;;  %v2931_v61 = vadd.f32 %v2930_v45, %v2929_v11 }
 0x5ab   : > { %v2383_v62 = vsub.f32 %v2376_v15, %v2382_v3  ;;  %v2765_v13 = vrot.slane %v2758_v12, %v9611_v56 }
 0x5ac   : > { %v2779_v35 = vsel %vm646_vm1, %v5808_v30, %v5809_v14  ;;  %v2780_v40 = vsel %vm646_vm1, %v5809_v14, %v5808_v30  ;;  %v2932_v48 = vrot.slane %v2931_v61, 1 }
 0x5ad   : > { %v2387_v36 = vmul.f32 2.0, %v2383_v62  ;;  %v2772_v26 = vrot.slane %v2765_v13, %v9611_v56  ;;  %v2783_v7 = vcombine.low %v2779_v35, %v2780_v40 }
 0x5ae   : > { %v7729_v14 = vadd.f32 %v2932_v48, %v2931_v61 }
 0x5af   : > { %v2388_v18 = vadd.f32 0.0009, %v2387_v36  ;;  %v2790_v37 = vrot.slane %v2783_v7, %v9611_v56  ;;  %v2774_v33 = vadd.f32 %v7473_v53, %v2772_v26 }
 0x5b0   : > { %v7735_v62 = vmul.f32 %v7729_v14, %v7505_v16 }
 0x5b1   : > { %v2389_v21 = vmul.f32 %v2388_v18, %v2386_v44  ;;  %v2797_v9 = vrot.slane %v2790_v37, %v9611_v56  ;;  %v2958_v18 = vand.u32 2147483647, %v2956_v39  ;;  %v9705_v39 = vld [vmem:[#allocation34_spill] sm:$0xff] }
 0x5b2   : > { %v2957_v36 = vsub.f32 %v7735_v62, %v7530_v52 }
 0x5b3   : > { %v2409_v29 = vmul.f32 %v2408_v51, %v2389_v21  ;;  %v7720_v1 = vadd.f32 %v2797_v9, %v2774_v33  ;;  %v2962_v51 = vmul.f32 0.5, %v2958_v18  ;;  %v5556_v45 = vadd.f32 -0.5, %v2958_v18 }
 0x5b4   : > { %v2959_v37 = vand.u32 2147483647, %v2957_v36  ;;  %vm2960_vm7 = vcmp.lt.f32.partialorder %v2958_v18, 1.0  ;;  %v1410_v36 = vrot.slane %v9705_v39, 4 }
 0x5b5   : > { %9702 = vst [vmem:[#allocation26_spill] sm:$0xff] %v7720_v1  ;;  %v2410_v38 = vsub.f32 1.0, %v2409_v29  ;;  %v2804_v3 = vrot.slane %v7720_v1, %v6009_v6  ;;  %v2808_v5 = vrot.slane %v7720_v1, %v6147_v55  ;;  %v2964_v9 = vmul.f32 %v2962_v51, %v2958_v18 }
 0x5b6   : > { %v2963_v21 = vmul.f32 0.5, %v2959_v37  ;;  %v5557_v29 = vadd.f32 -0.5, %v2959_v37  ;;  %vm2961_vm8 = vcmp.lt.f32.partialorder %v2959_v37, 1.0  ;;  %v1411_v18 = vadd.f32 %v1410_v36, %v9705_v39 }
 0x5b7   : > { %v2411_v15 = vmul.f32 0.5, %v2410_v38  ;;  %2811 = vrot.lane.b32.xlu0 %v2804_v3, %s5908_s25  ;;  %v7751_v38 = vpop.permute.xlu1 %2985 }
 0x5b8   : > { %v2965_v33 = vmul.f32 %v2963_v21, %v2959_v37  ;;  %v9708_v37 = vld [vmem:[#allocation29_spill] sm:$0xff] }
 0x5b9   : > { %v2412_v12 = vmax.f32 %v2411_v15, 0.0  ;;  %v9703_v15 = vld [vmem:[#allocation41_spill] sm:$0xff]  ;;  %v1986_v51 = vrot.slane %v9708_v37, 4 }
 0x5ba   : > { %v2969_v61 = vsel %vm2961_vm8, %v2965_v33, %v5557_v29  ;;  %v9710_v29 = vld [vmem:[#allocation60_spill] sm:$0xff] }
 0x5bb   : > { %2813 = vrot.lane.b32.xlu0 %v2808_v5, %s5908_s25  ;;  %v2413_v17 = vmin.f32 %v2412_v12, 1.0 }
 0x5bd   : > { %v2421_v31 = vrot.slane %v2413_v17, %v9611_v56  ;;  %v7755_v17 = vpop.permute.xlu1 %2987 }
 0x5bf   : > { %2836 = vrot.lane.b32.xlu0 %v2804_v3, %s5909_s29  ;;  %v2428_v30 = vrot.slane %v2421_v31, %v9611_v56  ;;  %v2968_v3 = vsel %vm2960_vm7, %v2964_v9, %v5556_v45  ;;  %v9709_v9 = vld [vmem:[#allocation61_spill] sm:$0xff] }
 0x5c0   : > { %v2970_v12 = vmul.f32 %v9703_v15, %v2968_v3  ;;  %v2047_v33 = vrot.slane %v9709_v9, 4  ;;  %v2076_v3 = vrot.slane %v9710_v29, 4 }
 0x5c1   : > { %v2429_v34 = vcombine.high %v2428_v30, %v2428_v30 }
 0x5c2   : > { %v2972_v31 = vsel %vm842_vm14, %v2970_v12, 0.0  ;;  %v2077_v39 = vadd.f32 %v2076_v3, %v9710_v29 }
 0x5c3   : > { %2838 = vrot.lane.b32.xlu0 %v2808_v5, %s5909_s29  ;;  %v2431_v13 = vmul.f32 %v2429_v34, %v7573_v20  ;;  %v9704_v5 = vld [vmem:[#allocation42_spill] sm:$0xff] }
 0x5c4   : > { %v2971_v48 = vmul.f32 %v9704_v5, %v2969_v61  ;;  %v1987_v61 = vadd.f32 %v1986_v51, %v9708_v37  ;;  %v2078_v19 = vrot.slane %v2077_v39, 2 }
 0x5c5   : > { %v2436_v35 = vrot.slane %v2431_v13, %v6009_v6  ;;  %v2440_v40 = vrot.slane %v2431_v13, %v6147_v55  ;;  %v7761_v13 = vpop.permute.xlu1 %2993 }
 0x5c6   : > { %v2973_v30 = vsel %vm842_vm14, %v2971_v48, 0.0  ;;  %v1412_v48 = vrot.slane %v1411_v18, 2  ;;  %v2079_v3 = vadd.f32 %v2078_v19, %v2077_v39 }
 0x5c7   : > { %v2443_v26 = vsel %vm7585_vm5, %v2436_v35, 0.0  ;;  %v2444_v7 = vsel %vm7592_vm13, %v2440_v40, 0.0  ;;  %v2974_v34 = vadd.f32 %v2973_v30, %v2972_v31  ;;  %v2048_v31 = vadd.f32 %v2047_v33, %v9709_v9 }
 0x5c8   : > { %v2445_v11 = vsel %vm842_vm14, %v2443_v26, 0.0  ;;  %v2446_v20 = vsel %vm842_vm14, %v2444_v7, 0.0  ;;  %v9706_v26 = vld [vmem:[#allocation57_spill] sm:$0xff]  ;;  %v1413_v46 = vadd.f32 %v1412_v48, %v1411_v18 }
 0x5c9   : > { %v2447_v44 = vadd.f32 %v2446_v20, %v2445_v11  ;;  %v7763_v35 = vpop.permute.xlu1 %3001  ;;  %v1471_v7 = vrot.slane %v9706_v26, 4  ;;  %v9707_v11 = vld [vmem:[#allocation56_spill] sm:$0xff]  ;;  %v2049_v37 = vrot.slane %v2048_v31, 2 }
 0x5ca   : > { %v1500_v20 = vrot.slane %v9707_v11, 4  ;;  %v1414_v49 = vrot.slane %v1413_v46, 1 }
 0x5cb   : > { %2448 = vadd.xlane.f32.xlu1 %v2447_v44  ;;  %v1472_v21 = vadd.f32 %v1471_v7, %v9706_v26  ;;  %v2050_v0 = vadd.f32 %v2049_v37, %v2048_v31 }
 0x5cc   : > { %v1501_v45 = vadd.f32 %v1500_v20, %v9707_v11  ;;  %v1988_v11 = vrot.slane %v1987_v61, 2  ;;  %v1415_v18 = vadd.f32 %v1414_v49, %v1413_v46 }
 0x5cd   : > { %v7765_v40 = vpop.permute.xlu1 %3003 }
 0x5ce   : > { %v1502_v36 = vrot.slane %v1501_v45, 2  ;;  %v1989_v8 = vadd.f32 %v1988_v11, %v1987_v61 }
 0x5d0   : > { %v1503_v51 = vadd.f32 %v1502_v36, %v1501_v45  ;;  %v1990_v48 = vrot.slane %v1989_v8, 1  ;;  %v2080_v36 = vrot.slane %v2079_v3, 1 }
 0x5d1   : > { %v7770_v44 = vpop.permute.xlu1 %3009 }
 0x5d2   : > { %v1504_v29 = vrot.slane %v1503_v51, 1  ;;  %v1991_v61 = vadd.f32 %v1990_v48, %v1989_v8  ;;  %v2081_v31 = vadd.f32 %v2080_v36, %v2079_v3  ;;  %v3006_v8 = vsel %vm683_vm6, %v7765_v40, %v7763_v35 }
 0x5d4   : > { %v1505_v45 = vadd.f32 %v1504_v29, %v1503_v51 }
 0x5dc   : > { %3011 = vrot.lane.b32.xlu1 %v7735_v62, %s5908_s25 }
 0x5e2   : > { %2975 = vadd.xlane.f32.xlu0 %v2974_v34  ;;  %v1473_v34 = vrot.slane %v1472_v21, 2 }
 0x5e4   : > { %v1474_v25 = vadd.f32 %v1473_v34, %v1472_v21  ;;  %v2051_v34 = vrot.slane %v2050_v0, 1 }
 0x5e6   : > { %v1475_v33 = vrot.slane %v1474_v25, 1 }
 0x5e8   : > { %v1476_v1 = vadd.f32 %v1475_v33, %v1474_v25 }
 0x5f8   : > { %2995 = vrot.lane.b32.xlu0 %v7735_v62, %s9533_s16  ;;  %v1297_v12 = vpop.xlane.xlu1 %1296 }
 0x5f9   : > { %v1298_v30 = vrot.slane %v1297_v12, 4 }
 0x5fb   : > { %v1299_v26 = vadd.f32 %v1298_v30, %v1297_v12 }
 0x5fc   : > { %v1873_v7 = vpop.xlane.xlu1 %1872 }
 0x5fd   : > { %v1874_v20 = vrot.slane %v1873_v7, 4  ;;  %v1300_v22 = vrot.slane %v1299_v26, 2 }
 0x5ff   : > { %v1875_v53 = vadd.f32 %v1874_v20, %v1873_v7  ;;  %v1301_v4 = vadd.f32 %v1300_v22, %v1299_v26  ;;  %v2052_v26 = vadd.f32 %v2051_v34, %v2050_v0  ;;  %v3008_v7 = vsub.f32 %v3006_v8, %v7530_v52 }
 0x601   : > { %v1302_v9 = vrot.slane %v1301_v4, 1  ;;  %v1876_v42 = vrot.slane %v1875_v53, 2 }
 0x603   : > { %v1303_v12 = vadd.f32 %v1302_v9, %v1301_v4  ;;  %v1877_v30 = vadd.f32 %v1876_v42, %v1875_v53  ;;  %v3005_v42 = vsel %vm683_vm6, %v7763_v35, %v7765_v40 }
 0x604   : > { %v3007_v39 = vsub.f32 %v3005_v42, %v7515_v54 }
 0x605   : > { %5639 = vpush %v1303_v12  ;;  %v1878_v21 = vrot.slane %v1877_v30, 1 }
 0x606   : > { %5641 = vpush %v1415_v18 }
 0x607   : > { %5643 = vpush %v1476_v1  ;;  %v1879_v22 = vadd.f32 %v1878_v21, %v1877_v30 }
 0x608   : > { %5645 = vpush %v1505_v45 }
 0x609   : > { %5647 = vpush %v1879_v22  ;;  %v9711_v22 = vld [vmem:[#allocation52_spill] sm:$0xff] }
 0x60a   : > { %5649 = vpush %v1991_v61 }
 0x60b   : > { %5651 = vpush %v2052_v26  ;;  %v9712_v26 = vld [vmem:[#allocation53_spill] sm:$0xff] }
 0x60c   : > { %5653 = vpush %v2081_v31 }
 0x629   : > { %v7783_v49 = vpop.permute.xlu0 %2811 }
 0x62d   : > { %v7803_v35 = vpop.permute.xlu0 %2813 }
 0x631   : > { %v7805_v30 = vpop.permute.xlu0 %2836 }
 0x658   : > { %v2449_v53 = vpop.xlane.xlu1 %2448 }
 0x659   : > { %v2450_v4 = vrot.slane %v2449_v53, 4 }
 0x65b   : > { %v2451_v19 = vadd.f32 %v2450_v4, %v2449_v53  ;;  %v7809_v53 = vpop.permute.xlu0 %2838 }
 0x65c   : > { %v3012_v0 = vpop.permute.xlu1 %3011 }
 0x65d   : > { %v3013_v25 = vsel %vm683_vm6, %v7770_v44, %v3012_v0  ;;  %v3014_v46 = vsel %vm683_vm6, %v3012_v0, %v7770_v44  ;;  %v2452_v1 = vrot.slane %v2451_v19, 2 }
 0x65e   : > { %v3015_v11 = vsub.f32 %v3013_v25, %v7539_v59  ;;  %v3016_v20 = vsub.f32 %v3014_v46, %v7735_v62  ;;  %v2989_v25 = vsel %vm620_vm0, %v7751_v38, %v7755_v17  ;;  %v2990_v46 = vsel %vm620_vm0, %v7755_v17, %v7751_v38 }
 0x65f   : > { %v2453_v40 = vadd.f32 %v2452_v1, %v2451_v19 }
 0x660   : > { %v3046_v37 = vsub.f32 %v3015_v11, %v3007_v39  ;;  %v3047_v51 = vsub.f32 %v3016_v20, %v3008_v7 }
 0x661   : > { %v2454_v9 = vrot.slane %v2453_v40, 1 }
 0x662   : > { %v3048_v33 = vand.u32 2147483647, %v3046_v37  ;;  %v3049_v29 = vand.u32 2147483647, %v3047_v51  ;;  %v2992_v37 = vsub.f32 %v2990_v46, %v7530_v52 }
 0x663   : > { %v2455_v3 = vadd.f32 %v2454_v9, %v2453_v40  ;;  %v2991_v40 = vsub.f32 %v2989_v25, %v7515_v54 }
 0x664   : > { %v3052_v12 = vmul.f32 0.5, %v3048_v33  ;;  %v3053_v44 = vmul.f32 0.5, %v3049_v29  ;;  %v5560_v21 = vadd.f32 -0.5, %v3048_v33  ;;  %v5561_v34 = vadd.f32 -0.5, %v3049_v29 }
 0x665   : > { %5655 = vpush %v2455_v3  ;;  %vm3050_vm9 = vcmp.lt.f32.partialorder %v3048_v33, 1.0  ;;  %vm3051_vm12 = vcmp.lt.f32.partialorder %v3049_v29, 1.0 }
 0x666   : > { %v3054_v18 = vmul.f32 %v3052_v12, %v3048_v33  ;;  %v3055_v48 = vmul.f32 %v3053_v44, %v3049_v29 }
 0x668   : > { %v3058_v45 = vsel %vm3050_vm9, %v3054_v18, %v5560_v21  ;;  %v3059_v36 = vsel %vm3051_vm12, %v3055_v48, %v5561_v34 }
 0x669   : > { %v3060_v61 = vmul.f32 %v3058_v45, %v9711_v22  ;;  %v3061_v31 = vmul.f32 %v3059_v36, %v9712_v26  ;;  %v9714_v36 = vld [vmem:[#allocation51_spill] sm:$0xff] }
 0x66b   : > { %v3062_v4 = vsel %vm842_vm14, %v3060_v61, 0.0  ;;  %v3063_v42 = vsel %vm842_vm14, %v3061_v31, 0.0 }
 0x66c   : > { %v3064_v8 = vadd.f32 %v3063_v42, %v3062_v4 }
 0x66e   : > { %3065 = vadd.xlane.f32.xlu0 %v3064_v8  ;;  %v5814_v8 = vld [vmem:[%s6081_s9 + $0x20] sm:$0xff]  }
 0x66f   : > { %v2976_v19 = vpop.xlane.xlu0 %2975  ;;  %5565 = vmatmul.mubr.msk.bf16.vlgmr.msra.gmra.mrb[8].mxu0 %vm739_vm15, %v5814_v8 }
 0x670   : > { %v2977_v0 = vrot.slane %v2976_v19, 4 }
 0x672   : > { %v2978_v1 = vadd.f32 %v2977_v0, %v2976_v19  ;;  %v9715_v19 = vmov 0  }
 0x673   : > { %v2996_v39 = vpop.permute.xlu0 %2995  ;;  %4487 = vmatprep.mubr.bf16.mxu0 %v9715_v19 }
 0x674   : > { %v2997_v7 = vsel %vm620_vm0, %v7761_v13, %v2996_v39  ;;  %v2998_v11 = vsel %vm620_vm0, %v2996_v39, %v7761_v13  ;;  %v2979_v20 = vrot.slane %v2978_v1, 2 }
 0x675   : > { %v2999_v51 = vsub.f32 %v2997_v7, %v7539_v59  ;;  %v3000_v9 = vsub.f32 %v2998_v11, %v7735_v62  ;;  %v9713_v62 = vld [vmem:[#allocation50_spill] sm:$0xff] }
 0x676   : > { %v2980_v38 = vadd.f32 %v2979_v20, %v2978_v1 }
 0x677   : > { %v3017_v17 = vsub.f32 %v2999_v51, %v2991_v40  ;;  %v3018_v33 = vsub.f32 %v3000_v9, %v2992_v37 }
 0x678   : > { %v2981_v29 = vrot.slane %v2980_v38, 1 }
 0x679   : > { %v3019_v3 = vand.u32 2147483647, %v3017_v17  ;;  %v3020_v12 = vand.u32 2147483647, %v3018_v33 }
 0x67a   : > { %v2982_v44 = vadd.f32 %v2981_v29, %v2980_v38 }
 0x67b   : > { %v3023_v18 = vmul.f32 0.5, %v3019_v3  ;;  %v3024_v48 = vmul.f32 0.5, %v3020_v12  ;;  %v5558_v34 = vadd.f32 -0.5, %v3019_v3  ;;  %v5559_v54 = vadd.f32 -0.5, %v3020_v12 }
 0x67c   : > { %5665 = vpush %v2982_v44  ;;  %vm3021_vm3 = vcmp.lt.f32.partialorder %v3019_v3, 1.0  ;;  %vm3022_vm4 = vcmp.lt.f32.partialorder %v3020_v12, 1.0 }
 0x67d   : > { %v3025_v13 = vmul.f32 %v3023_v18, %v3019_v3  ;;  %v3026_v21 = vmul.f32 %v3024_v48, %v3020_v12 }
 0x67f   : > { %v3029_v52 = vsel %vm3021_vm3, %v3025_v13, %v5558_v34  ;;  %v3030_v59 = vsel %vm3022_vm4, %v3026_v21, %v5559_v54 }
 0x680   : > { %v3031_v45 = vmul.f32 %v3029_v52, %v9713_v62  ;;  %v3032_v61 = vmul.f32 %v3030_v59, %v9714_v36  ;;  %v3110_v59 = vmul.f32 %v7729_v14, %v7729_v14 }
 0x682   : > { %v3033_v31 = vsel %vm842_vm14, %v3031_v45, 0.0  ;;  %v3034_v4 = vsel %vm842_vm14, %v3032_v61, 0.0  ;;  %v3109_v45 = vmul.f32 %v7523_v32, %v7523_v32  ;;  %v5815_v61 = vld [vmem:[%s6081_s9 + $0x28] sm:$0xff]  }
 0x683   : > { %v3035_v42 = vadd.f32 %v3034_v4, %v3033_v31  ;;  %5575 = vmatmul.mubr.msk.bf16.vlgmr.msra.gmra.mrb[8].mxu1 %vm739_vm15, %v5815_v61 }
 0x684   : > { %3075 = vrot.lane.b32.xlu0 %v7523_v32, %s9533_s16  ;;  %4710 = vmatprep.mubr.bf16.mxu1 %v9715_v19 }
 0x685   : > { %3036 = vadd.xlane.f32.xlu1 %v3035_v42 }
 0x688   : > { %3085 = vrot.lane.b32.xlu0 %v7729_v14, %s5904_s8 }
 0x696   : > { %3077 = vrot.lane.b32.xlu1 %v7729_v14, %s9533_s16 }
 0x69a   : > { %3083 = vrot.lane.b32.xlu1 %v7523_v32, %s5904_s8 }
 0x6fb   : > { %v3066_v0 = vpop.xlane.xlu0 %3065 }
 0x6fc   : > { %v3067_v25 = vrot.slane %v3066_v0, 4 }
 0x6fe   : > { %v3068_v46 = vadd.f32 %v3067_v25, %v3066_v0 }
 0x6ff   : > { %v3076_v11 = vpop.permute.xlu0 %3075 }
 0x700   : > { %v3069_v39 = vrot.slane %v3068_v46, 2 }
 0x702   : > { %v3070_v37 = vadd.f32 %v3069_v39, %v3068_v46 }
 0x703   : > { %v3086_v33 = vpop.permute.xlu0 %3085 }
 0x704   : > { %v3071_v44 = vrot.slane %v3070_v37, 1 }
 0x706   : > { %v3072_v52 = vadd.f32 %v3071_v44, %v3070_v37 }
 0x712   : > { %v3037_v1 = vpop.xlane.xlu1 %3036 }
 0x713   : > { %v3038_v7 = vrot.slane %v3037_v1, 4 }
 0x715   : > { %v3039_v20 = vadd.f32 %v3038_v7, %v3037_v1 }
 0x716   : > { %v3078_v40 = vpop.permute.xlu1 %3077 }
 0x717   : > { %v3079_v51 = vsel %vm620_vm0, %v3076_v11, %v3078_v40  ;;  %v3080_v9 = vsel %vm620_vm0, %v3078_v40, %v3076_v11  ;;  %v3040_v38 = vrot.slane %v3039_v20, 2 }
 0x718   : > { %v3081_v29 = vadd.f32 %v3079_v51, %v7523_v32  ;;  %v3082_v3 = vadd.f32 %v3080_v9, %v7729_v14 }
 0x719   : > { %v3041_v17 = vadd.f32 %v3040_v38, %v3039_v20  ;;  %v3151_v38 = vcombine.low %v7523_v32, %v7729_v14 }
 0x71a   : > { %v3084_v12 = vpop.permute.xlu1 %3083 }
 0x71b   : > { %v3087_v18 = vsel %vm646_vm1, %v3084_v12, %v3086_v33  ;;  %v3088_v48 = vsel %vm646_vm1, %v3086_v33, %v3084_v12  ;;  %v3042_v13 = vrot.slane %v3041_v17, 1  ;;  %v9716_v12 = vld [vmem:[#allocation75_spill] sm:$0xff] }
 0x71c   : > { %v7856_v21 = vadd.f32 %v3087_v18, %v3081_v29  ;;  %v7858_v34 = vadd.f32 %v3088_v48, %v3082_v3  ;;  %v9717_v18 = vld [vmem:[#allocation77_spill] sm:$0xff] }
 0x71d   : > { %v3043_v54 = vadd.f32 %v3042_v13, %v3041_v17  ;;  %v3153_v17 = vmul.f32 %v7492_v63, %v3151_v38  ;;  %v9718_v13 = vld [vmem:[#allocation76_spill] sm:$0xff] }
 0x71e   : > { %3093 = vrot.lane.b32.xlu0 %v7858_v34, %s5908_s25  ;;  %3091 = vrot.lane.b32.xlu1 %v7856_v21, %s5908_s25 }
 0x71f   : > { %5667 = vpush %v3043_v54  ;;  %v3162_v33 = vrot.slane %v3153_v17, %v9667_v57  ;;  %v3158_v29 = vrot.slane %v3153_v17, %v6009_v6 }
 0x720   : > { %5669 = vpush %v3072_v52  ;;  %v9719_v52 = vld [vmem:[#allocation78_spill] sm:$0xff] }
 0x722   : > { %3101 = vrot.lane.b32.xlu0 %v7858_v34, %s5909_s29  ;;  %3099 = vrot.lane.b32.xlu1 %v7856_v21, %s5909_s29 }
 0x726   : > { %3113 = vrot.lane.b32.xlu0 %v3110_v59, %s9533_s16  ;;  %3111 = vrot.lane.b32.xlu1 %v3109_v45, %s9533_s16 }
 0x72a   : > { %3121 = vrot.lane.b32.xlu0 %v3110_v59, %s5904_s8  ;;  %3119 = vrot.lane.b32.xlu1 %v3109_v45, %s5904_s8 }
 0x742   : > { %v3341_v32 = vpop.f32.mrb[8].mxu0 }
 0x743   : > { %v3343_v14 = vpop.f32.mrb[9].mxu0  ;;  %v3350_v44 = vmul.f32 %v3341_v32, %v9716_v12 }
 0x744   : > { %v3345_v63 = vpop.f32.mrb[10].mxu0  ;;  %v3351_v48 = vmul.f32 %v3343_v14, %v9717_v18 }
 0x745   : > { %v3347_v3 = vpop.f32.mrb[11].mxu0  ;;  %v3352_v54 = vmul.f32 %v3345_v63, %v9718_v13 }
 0x790   : > { %v7879_v31 = vpop.permute.xlu0 %3093  ;;  %v7881_v4 = vpop.permute.xlu1 %3091 }
 0x794   : > { %v7883_v42 = vpop.permute.xlu0 %3101  ;;  %v7885_v8 = vpop.permute.xlu1 %3099 }
 0x798   : > { %v3114_v0 = vpop.permute.xlu0 %3113  ;;  %v3112_v25 = vpop.permute.xlu1 %3111 }
 0x799   : > { %v3115_v46 = vsel %vm620_vm0, %v3112_v25, %v3114_v0  ;;  %v3116_v1 = vsel %vm620_vm0, %v3114_v0, %v3112_v25  ;;  %v3774_v0 = vpop.f32.mrb[8].mxu1 }
 0x79a   : > { %v3117_v39 = vadd.f32 %v3115_v46, %v3109_v45  ;;  %v3118_v7 = vadd.f32 %v3116_v1, %v3110_v59  ;;  %v3353_v59 = vmul.f32 %v3347_v3, %v9719_v52  ;;  %v3354_v45 = vadd.f32 %v3352_v54, %v3350_v44  ;;  %v3776_v46 = vpop.f32.mrb[9].mxu1 }
 0x79b   : > { %v3783_v25 = vmul.f32 %v3774_v0, %v9716_v12  ;;  %v3784_v1 = vmul.f32 %v3776_v46, %v9717_v18 }
 0x79c   : > { %v3122_v11 = vpop.permute.xlu0 %3121  ;;  %v3120_v20 = vpop.permute.xlu1 %3119  ;;  %v3361_v61 = vadd.f32 %v3353_v59, %v3351_v48  ;;  %v3355_v38 = vrot.slane %v3354_v45, 4 }
 0x79d   : > { %v3123_v40 = vsel %vm646_vm1, %v3120_v20, %v3122_v11  ;;  %v3124_v37 = vsel %vm646_vm1, %v3122_v11, %v3120_v20 }
 0x79e   : > { %v7895_v51 = vadd.f32 %v3123_v40, %v3117_v39  ;;  %v7897_v9 = vadd.f32 %v3124_v37, %v3118_v7  ;;  %v3778_v39 = vpop.f32.mrb[10].mxu1  ;;  %v3356_v14 = vadd.f32 %v3355_v38, %v3354_v45 }
 0x79f   : > { %v3785_v7 = vmul.f32 %v3778_v39, %v9718_v13  ;;  %v3780_v11 = vpop.f32.mrb[11].mxu1 }
 0x7a0   : > { %3129 = vrot.lane.b32.xlu0 %v7897_v9, %s5908_s25  ;;  %3127 = vrot.lane.b32.xlu1 %v7895_v51, %s5908_s25  ;;  %v3786_v20 = vmul.f32 %v3780_v11, %v9719_v52  ;;  %v3357_v44 = vrot.slane %v3356_v14, 2 }
 0x7a1   : > { %v7924_v40 = vadd.f32 %v3785_v7, %v3783_v25 }
 0x7a2   : > { %v7926_v37 = vadd.f32 %v3786_v20, %v3784_v1  ;;  %v3358_v59 = vadd.f32 %v3357_v44, %v3356_v14 }
 0x7a4   : > { %3137 = vrot.lane.b32.xlu0 %v7897_v9, %s5909_s29  ;;  %3135 = vrot.lane.b32.xlu1 %v7895_v51, %s5909_s29  ;;  %v3359_v39 = vrot.slane %v3358_v59, 1 }
 0x7a8   : > { %3167 = vrot.lane.b32.xlu0 %v3162_v33, %s9533_s16  ;;  %3165 = vrot.lane.b32.xlu1 %v3158_v29, %s9533_s16 }
 0x7ac   : > { %3178 = vrot.lane.b32.xlu0 %v3162_v33, %s5904_s8  ;;  %3176 = vrot.lane.b32.xlu1 %v3158_v29, %s5904_s8  ;;  %v3362_v33 = vrot.slane %v3361_v61, 4 }
 0x7ae   : > { %v3363_v63 = vadd.f32 %v3362_v33, %v3361_v61  ;;  %v7946_v33 = vadd.f32 %v3359_v39, %v3358_v59 }
 0x7b0   : > { %v3364_v18 = vrot.slane %v3363_v63, 2 }
 0x7b2   : > { %v3365_v0 = vadd.f32 %v3364_v18, %v3363_v63  ;;  %v7966_v18 = vrot.slane %v7495_v47, %v6147_v55 }
 0x7b4   : > { %v3366_v7 = vrot.slane %v3365_v0, 1  ;;  %9720 = vst [vmem:[#allocation37_spill] sm:$0xff] %v7966_v18 }
 0x812   : > { %v7928_v29 = vpop.permute.xlu0 %3129  ;;  %v7930_v32 = vpop.permute.xlu1 %3127 }
 0x816   : > { %v7932_v3 = vpop.permute.xlu0 %3137  ;;  %v7934_v12 = vpop.permute.xlu1 %3135 }
 0x81a   : > { %v3168_v48 = vpop.permute.xlu0 %3167  ;;  %v3166_v13 = vpop.permute.xlu1 %3165 }
 0x81b   : > { %v3169_v54 = vsel %vm620_vm0, %v3166_v13, %v3168_v48  ;;  %v3170_v52 = vsel %vm620_vm0, %v3168_v48, %v3166_v13  ;;  %v7948_v48 = vadd.f32 %v3366_v7, %v3365_v0  ;;  %v9721_v13 = vld [vmem:[#allocation14_spill] sm:$0xff] }
 0x81c   : > { %v3173_v25 = vcombine.low %v3169_v54, %v3170_v52  ;;  %v7970_v54 = vrot.slane %v7495_v47, %v9721_v13 }
 0x81d   : > { %v7962_v44 = vmul.f32 %v7948_v48, %v7505_v16 }
 0x81e   : > { %v3179_v46 = vpop.permute.xlu0 %3178  ;;  %v3177_v45 = vpop.permute.xlu1 %3176  ;;  %v3175_v11 = vadd.f32 %v3173_v25, %v3153_v17  ;;  %v7958_v17 = vmul.f32 %v7946_v33, %v7501_v43 }
 0x81f   : > { %v3180_v61 = vsel %vm646_vm1, %v3177_v45, %v3179_v46  ;;  %v3181_v1 = vsel %vm646_vm1, %v3179_v46, %v3177_v45  ;;  %v3381_v59 = vsub.f32 %v7962_v44, %v7970_v54 }
 0x820   : > { %v3184_v20 = vcombine.low %v3180_v61, %v3181_v1  ;;  %v3380_v52 = vsub.f32 %v7958_v17, %v7966_v18 }
 0x821   : > { %v3383_v25 = vand.u32 2147483647, %v3381_v59  ;;  %v3103_v59 = vsel %vm709_vm2, %v7885_v8, %v7883_v42 }
 0x822   : > { %v7944_v38 = vadd.f32 %v3184_v20, %v3175_v11  ;;  %v3382_v0 = vand.u32 2147483647, %v3380_v52 }
 0x823   : > { %v3387_v45 = vmul.f32 0.5, %v3383_v25  ;;  %v5567_v7 = vadd.f32 -0.5, %v3383_v25  ;;  %vm3385_vm8 = vcmp.lt.f32.partialorder %v3383_v25, 1.0 }
 0x824   : > { %v3195_v14 = vrot.slane %v7944_v38, %v9667_v57  ;;  %v3191_v63 = vrot.slane %v7944_v38, %v6009_v6  ;;  %v3386_v46 = vmul.f32 0.5, %v3382_v0  ;;  %v5566_v39 = vadd.f32 -0.5, %v3382_v0 }
 0x825   : > { %v3389_v1 = vmul.f32 %v3387_v45, %v3383_v25  ;;  %vm3384_vm7 = vcmp.lt.f32.partialorder %v3382_v0, 1.0  ;;  %v3131_v25 = vsel %vm683_vm6, %v7930_v32, %v7928_v29  ;;  %v3139_v45 = vsel %vm709_vm2, %v7934_v12, %v7932_v3 }
 0x826   : > { %3200 = vrot.lane.b32.xlu0 %v3195_v14, %s5908_s25  ;;  %3198 = vrot.lane.b32.xlu1 %v3191_v63, %s5908_s25  ;;  %v3388_v61 = vmul.f32 %v3386_v46, %v3382_v0  ;;  %v3104_v0 = vsel %vm709_vm2, %v7883_v42, %v7885_v8  ;;  %v3140_v42 = vsel %vm709_vm2, %v7932_v3, %v7934_v12  ;;  %v3788_v8 = vrot.slane %v7924_v40, 4 }
 0x827   : > { %v3393_v20 = vsel %vm3385_vm8, %v3389_v1, %v5567_v7  ;;  %v8042_v3 = vmul.f32 %v7946_v33, %v7946_v33 }
 0x828   : > { %v3392_v11 = vsel %vm3384_vm7, %v3388_v61, %v5566_v39  ;;  %v3789_v39 = vadd.f32 %v3788_v8, %v7924_v40 }
 0x82a   : > { %3211 = vrot.lane.b32.xlu0 %v3195_v14, %s5909_s29  ;;  %3209 = vrot.lane.b32.xlu1 %v3191_v63, %s5909_s29  ;;  %v3394_v14 = vmul.f32 %v9703_v15, %v3392_v11  ;;  %v3395_v63 = vmul.f32 %v9704_v5, %v3393_v20  ;;  %v3790_v12 = vrot.slane %v3789_v39, 2  ;;  %v3795_v20 = vrot.slane %v7926_v37, 4 }
 0x82c   : > { %v3396_v26 = vsel %vm842_vm14, %v3394_v14, 0.0  ;;  %v3397_v22 = vsel %vm842_vm14, %v3395_v63, 0.0  ;;  %v8056_v63 = vmul.f32 %v7948_v48, %v7948_v48 }
 0x82d   : > { %v3398_v52 = vadd.f32 %v3397_v22, %v3396_v26  ;;  %v3095_v22 = vsel %vm683_vm6, %v7881_v4, %v7879_v31  ;;  %v3096_v26 = vsel %vm683_vm6, %v7879_v31, %v7881_v4  ;;  %v3132_v31 = vsel %vm683_vm6, %v7928_v29, %v7930_v32 }
 0x82e   : > { %v3097_v4 = vadd.f32 %v3095_v22, %v7856_v21  ;;  %v3098_v46 = vadd.f32 %v3096_v26, %v7858_v34  ;;  %v3133_v29 = vadd.f32 %v3131_v25, %v7895_v51  ;;  %v3134_v21 = vadd.f32 %v3132_v31, %v7897_v9 }
 0x82f   : > { %v3791_v26 = vadd.f32 %v3790_v12, %v3789_v39 }
 0x830   : > { %v3105_v61 = vadd.f32 %v3103_v59, %v3097_v4  ;;  %v3106_v1 = vadd.f32 %v3104_v0, %v3098_v46  ;;  %v3141_v34 = vadd.f32 %v3139_v45, %v3133_v29  ;;  %v3142_v32 = vadd.f32 %v3140_v42, %v3134_v21 }
 0x831   : > { %v3796_v59 = vadd.f32 %v3795_v20, %v7926_v37  ;;  %v3792_v31 = vrot.slane %v3791_v26, 1  ;;  %v4248_v46 = vstv %s4247_s13  ;;  %v4253_v45 = vstv %s4252_s11 }
 0x832   : > { %v8034_v7 = vmul.f32 0.11111111, %v3105_v61  ;;  %v8036_v11 = vmul.f32 0.11111111, %v3106_v1  ;;  %v3143_v51 = vmul.f32 0.11111111, %v3141_v34  ;;  %v4249_v42 = vmul.f32 %v4248_v46, %v6064_v23 }
 0x833   : > { %v3144_v9 = vmul.f32 0.11111111, %v3142_v32  ;;  %v3797_v4 = vrot.slane %v3796_v59, 2  ;;  %v4250_v8 = vmul.f32 %v4248_v46, %v6066_v24  ;;  %v4254_v37 = vmul.f32 %v4253_v45, %v6070_v27 }
 0x834   : > { %v3145_v40 = vmul.f32 %v8034_v7, %v8034_v7  ;;  %v3146_v14 = vmul.f32 %v8036_v11, %v8036_v11  ;;  %v4255_v61 = vmul.f32 %v4253_v45, %v6073_v28  ;;  %v4260_v32 = vstv %s4259_s20  ;;  %s4218_s20 = sadd.s32 6, %s8046_s10 }
 0x835   : > { %v4256_v29 = vadd.f32 %v4254_v37, %v4249_v42  ;;  %v8072_v39 = vadd.f32 %v3792_v31, %v3791_v26  ;;  %v3575_v46 = vcombine.low %v7946_v33, %v7948_v48  ;;  %s4219_s23 = sld [smem:[#allocation2 + %s4218_s20]] }
 0x836   : > { %v3148_v22 = vsub.f32 %v3144_v9, %v3146_v14  ;;  %v3234_v0 = vcombine.low %v3145_v40, %v3146_v14  ;;  %v4257_v21 = vadd.f32 %v4255_v61, %v4250_v8 }
 0x837   : > { %v4261_v9 = vadd.f32 %v4260_v32, %v4256_v29  ;;  %v4173_v29 = vstv %s4172_s27 }
 0x838   : > { %v3236_v34 = vadd.f32 %v3234_v0, %v7407_v58  ;;  %v4262_v12 = vadd.f32 %v4260_v32, %v4257_v21 }
 0x849   : > { %3399 = vadd.xlane.f32.xlu0 %v3398_v52  ;;  %v3147_v52 = vsub.f32 %v3143_v51, %v3145_v40  ;;  %v3798_v51 = vadd.f32 %v3797_v4, %v3796_v59  ;;  %v4265_v40 = vcombine.low %v4261_v9, %v4262_v12  ;;  %v8088_v59 = vld [vmem:[%s6119_s14] sm:$0x3]  ;;  %v8096_v4 = vmul.f32 %v8072_v39, %v8072_v39  ;;  %s4202_s14 = sadd.s32 3, %s8046_s10 }
 0x84a   : > { %v3576_v12 = vrot.slane %v3575_v46, 7  ;;  %s4203_s13 = sld [smem:[#allocation2 + %s4202_s14]] }
 0x84b   : > { %v3240_v25 = vcombine.low %v3147_v52, %v3148_v22  ;;  %v3799_v14 = vrot.slane %v3798_v51, 1  ;;  %v4272_v58 = vrot.slane %v4265_v40, %v9611_v56 }
 0x84d   : > { %v3242_v1 = vadd.f32 %v3240_v25, %v7414_v60  ;;  %v3237_v60 = vadd.f32 0.0001, %v3236_v34  ;;  %v4279_v22 = vrot.slane %v4272_v58, %v9611_v56  ;;  %v8082_v26 = vadd.f32 %v3799_v14, %v3798_v51 }
 0x84e   : > { %v4284_v25 = vstv %s4283_s24  ;;  %v4174_v51 = vmul.f32 %v4173_v29, %v6070_v27  ;;  %s4242_s24 = sadd.s32 7, %s8046_s10 }
 0x84f   : > { %v3243_v20 = vadd.f32 0.0009, %v3242_v1  ;;  %v4281_v0 = vmul.f32 %v8088_v59, %v4279_v22  ;;  %v4168_v1 = vstv %s4167_s7  ;;  %v8113_v9 = vmul.f32 %v8082_v26, %v8082_v26  ;;  %s4243_s26 = sld [smem:[#allocation2 + %s4242_s24]] }
 0x850   : > { %v4169_v34 = vmul.f32 %v4168_v1, %v6064_v23  ;;  %v4170_v32 = vmul.f32 %v4168_v1, %v6066_v24 }
 0x851   : > { %v3244_v52 = vmul.f32 %v3243_v20, %v3237_v60  ;;  %v4285_v31 = vadd.f32 %v4284_v25, %v4281_v0  ;;  %v4175_v20 = vmul.f32 %v4173_v29, %v6073_v28  ;;  %v4180_v25 = vstv %s8100_s30 }
 0x852   : > { %v4176_v14 = vadd.f32 %v4174_v51, %v4169_v34  ;;  %v4008_v29 = vcombine.low %v8072_v39, %v8082_v26 }
 0x853   : > { %5829 = vrcp.f32 %v3244_v52  ;;  %v4286_v45 = vadd.f32 1e-10, %v4285_v31  ;;  %v4177_v0 = vadd.f32 %v4175_v20, %v4170_v32  ;;  %v3223_v31 = vcombine.low %v8034_v7, %v8036_v11 }
 0x855   : > { %5831 = vrcp.f32 %v4286_v45  ;;  %v4182_v34 = vadd.f32 %v4180_v25, %v4177_v0  ;;  %v3225_v11 = vmul.f32 %v3223_v31, %v7397_v41 }
 0x85f   : > { %3409 = vrot.lane.b32.xlu0 %v7966_v18, %s9533_s16 }
 0x863   : > { %3419 = vrot.lane.b32.xlu0 %v7962_v44, %s9533_s16 }
 0x867   : > { %3427 = vrot.lane.b32.xlu0 %v7970_v54, %s5908_s25 }
 0x86b   : > { %3435 = vrot.lane.b32.xlu0 %v7962_v44, %s5908_s25 }
 0x86f   : > { %3499 = vrot.lane.b32.xlu0 %v7946_v33, %s9533_s16 }
 0x873   : > { %3501 = vrot.lane.b32.xlu0 %v7948_v48, %s9533_s16 }
 0x877   : > { %3507 = vrot.lane.b32.xlu0 %v7946_v33, %s5904_s8 }
 0x87b   : > { %3509 = vrot.lane.b32.xlu0 %v7948_v48, %s5904_s8 }
 0x87f   : > { %3535 = vrot.lane.b32.xlu0 %v8042_v3, %s9533_s16 }
 0x883   : > { %3537 = vrot.lane.b32.xlu0 %v8056_v63, %s9533_s16 }
 0x887   : > { %3543 = vrot.lane.b32.xlu0 %v8042_v3, %s5904_s8 }
 0x88b   : > { %3545 = vrot.lane.b32.xlu0 %v8056_v63, %s5904_s8 }
 0x88f   : > { %3932 = vrot.lane.b32.xlu0 %v8072_v39, %s9533_s16 }
 0x893   : > { %3940 = vrot.lane.b32.xlu0 %v8072_v39, %s5904_s8 }
 0x897   : > { %3942 = vrot.lane.b32.xlu0 %v8082_v26, %s5904_s8 }
 0x898   : > { %v3201_v42 = vpop.permute.xlu0 %3200  ;;  %v3199_v8 = vpop.permute.xlu1 %3198 }
 0x899   : > { %v3202_v37 = vsel %vm683_vm6, %v3199_v8, %v3201_v42  ;;  %v3203_v61 = vsel %vm683_vm6, %v3201_v42, %v3199_v8  ;;  %v4181_v8 = vadd.f32 %v4180_v25, %v4176_v14  ;;  %v3227_v14 = vmul.f32 %v3223_v31, %v7518_v10 }
 0x89a   : > { %v3206_v21 = vcombine.low %v3202_v37, %v3203_v61  ;;  %v5830_v37 = vpop.eup %5829  ;;  %v8127_v61 = vld [vmem:[%s6014_s12] sm:$0x77]  ;;  %s4206_s12 = sadd.s32 4, %s8046_s10 }
 0x89b   : > { %3968 = vrot.lane.b32.xlu0 %v8096_v4, %s9533_s16  ;;  %v8130_v1 = vmul.f32 %v8127_v61, %v3576_v12  ;;  %v4185_v7 = vcombine.low %v4181_v8, %v4182_v34  ;;  %v2816_v12 = vsel %vm683_vm6, %v7803_v35, %v7783_v49  ;;  %v5832_v41 = vpop.eup %5831  ;;  %s4207_s11 = sld [smem:[#allocation2 + %s4206_s12]] }
 0x89c   : > { %v3212_v40 = vpop.permute.xlu0 %3211  ;;  %v3210_v60 = vpop.permute.xlu1 %3209  ;;  %v3208_v46 = vadd.f32 %v3206_v21, %v7944_v38  ;;  %v2815_v38 = vsel %vm683_vm6, %v7783_v49, %v7803_v35  ;;  %v3246_v21 = vmul.f32 %v5830_v37, %v3244_v52  ;;  %v2840_v52 = vsel %vm709_vm2, %v7805_v30, %v7809_v53 }
 0x89d   : > { %v3213_v58 = vsel %vm709_vm2, %v3210_v60, %v3212_v40  ;;  %v3214_v22 = vsel %vm709_vm2, %v3212_v40, %v3210_v60  ;;  %v3587_v20 = vrot.slane %v8130_v1, %v9721_v13  ;;  %v4009_v40 = vrot.slane %v4008_v29, 6 }
 0x89e   : > { %v3217_v42 = vcombine.low %v3213_v58, %v3214_v22  ;;  %v4192_v60 = vrot.slane %v4185_v7, %v9611_v56  ;;  %v2841_v49 = vsel %vm709_vm2, %v7809_v53, %v7805_v30  ;;  %v2819_v22 = vcombine.low %v2815_v38, %v2816_v12 }
 0x89f   : > { %3970 = vrot.lane.b32.xlu0 %v8113_v9, %s9533_s16  ;;  %v3247_v0 = vsub.f32 2.0, %v3246_v21  ;;  %v8161_v10 = vmul.f32 %v8127_v61, %v4009_v40  ;;  %v2844_v8 = vcombine.low %v2840_v52, %v2841_v49  ;;  %v3228_v29 = vadd.f32 0.0001, %v3227_v14 }
 0x8a0   : > { %v3219_v32 = vadd.f32 %v3217_v42, %v3208_v46  ;;  %v4199_v35 = vrot.slane %v4192_v60, %v9611_v56  ;;  %v4288_v46 = vmul.f32 %v5832_v41, %v4286_v45  ;;  %v4204_v42 = vstv %s4203_s13 }
 0x8a1   : > { %v2826_v30 = vrot.slane %v2819_v22, %v9611_v56  ;;  %v3248_v53 = vmul.f32 %v5830_v37, %v3247_v0  ;;  %v4020_v45 = vrot.slane %v8161_v10, %v9589_v50  ;;  %v2851_v21 = vrot.slane %v2844_v8, %v9611_v56 }
 0x8a2   : > { %v3220_v51 = vmul.f32 0.11111111, %v3219_v32  ;;  %v4201_v31 = vmul.f32 %v8088_v59, %v4199_v35  ;;  %v4289_v32 = vsub.f32 2.0, %v4288_v46  ;;  %v9722_v35 = vld [vmem:[#allocation26_spill] sm:$0xff] }
 0x8a3   : > { %3978 = vrot.lane.b32.xlu0 %v8113_v9, %s5904_s8  ;;  %v2833_v40 = vrot.slane %v2826_v30, %v9611_v56  ;;  %v2858_v37 = vrot.slane %v2851_v21, %v9611_v56 }
 0x8a4   : > { %v3226_v58 = vsub.f32 %v3220_v51, %v3225_v11  ;;  %v4205_v7 = vadd.f32 %v4204_v42, %v4201_v31  ;;  %v8165_v11 = vmul.f32 %v5832_v41, %v4289_v32 }
 0x8a5   : > { %v2835_v22 = vadd.f32 %v2833_v40, %v9722_v35  ;;  %v9727_v35 = vld [vmem:[#allocation13_spill] sm:$0xff] }
 0x8a6   : > { %v3229_v25 = vmul.f32 2.0, %v3226_v58  ;;  %v4291_v12 = vmul.f32 %v8165_v11, %v4205_v7 }
 0x8a7   : > { %3592 = vrot.lane.b32.xlu0 %v3587_v20, %s9533_s16  ;;  %v2860_v42 = vadd.f32 %v2858_v37, %v2835_v22 }
 0x8a8   : > { %v3230_v34 = vadd.f32 0.0009, %v3229_v25  ;;  %v4293_v14 = vfloor.f32 %v4291_v12  ;;  %v4306_v58 = vmax.f32 %v4291_v12, 0.0 }
 0x8a9   : > { %v8182_v21 = vmul.f32 0.11111111, %v2860_v42 }
 0x8aa   : > { %v3231_v38 = vmul.f32 %v3230_v34, %v3228_v29  ;;  %vm4295_vm9 = vcmp.ge.f32.partialorder %v4293_v14, 0.0  ;;  %v4307_v52 = vmin.f32 %v4306_v58, 15.0  ;;  %v4310_v49 = vmax.f32 %v4293_v14, 0.0 }
 0x8ab   : > { %3604 = vrot.lane.b32.xlu0 %v3587_v20, %s5904_s8  ;;  %v4296_v20 = vadd.f32 1.0, %v4293_v14  ;;  %9725 = vst [vmem:[#allocation30_spill] sm:$0xff] %v8182_v21 }
 0x8ac   : > { %v3249_v51 = vmul.f32 %v3248_v53, %v3231_v38  ;;  %v4311_v31 = vmin.f32 %v4310_v49, 15.0  ;;  %v9726_v49 = vld [vmem:[#allocation5_spill] sm:$0xff] }
 0x8ad   : > { %vm4297_vm12 = vcmp.le.f32.partialorder %v4296_v20, 15.0  ;;  %v4312_v25 = vmax.f32 %v4296_v20, 0.0 }
 0x8ae   : > { %v3250_v60 = vsub.f32 1.0, %v3249_v51  ;;  %vm8177_vm3 = vmand %vm4295_vm9, %vm4297_vm12  ;;  %v4319_v34 = vsub.f32 %v4307_v52, %v4311_v31  ;;  %v5689_v32 = vtrunc.f32 %v4311_v31 }
 0x8af   : > { %4025 = vrot.lane.b32.xlu0 %v4020_v45, %s9533_s16  ;;  %v4313_v29 = vmin.f32 %v4312_v25, 15.0 }
 0x8b0   : > { %v3251_v41 = vmul.f32 0.5, %v3250_v60  ;;  %v5690_v38 = vcvt.f32.s32 %v5689_v32  ;;  %v4373_v60 = vrot.slane %v4319_v34, %v6147_v55 }
 0x8b1   : > { %v4318_v30 = vsub.f32 %v4313_v29, %v4307_v52  ;;  %v5691_v53 = vtrunc.f32 %v4313_v29  ;;  %v4369_v52 = vrot.slane %v4319_v34, %v6009_v6 }
 0x8b2   : > { %v3252_v0 = vmax.f32 %v3251_v41, 0.0  ;;  %v4333_v40 = vrot.slane %v5690_v38, %v6147_v55  ;;  %v4329_v14 = vrot.slane %v5690_v38, %v6009_v6 }
 0x8b3   : > { %4037 = vrot.lane.b32.xlu0 %v4020_v45, %s5904_s8  ;;  %v5692_v45 = vcvt.f32.s32 %v5691_v53  ;;  %v4346_v12 = vrot.slane %v4318_v30, %v6147_v55  ;;  %v4342_v58 = vrot.slane %v4318_v30, %v6009_v6 }
 0x8b4   : > { %v3253_v8 = vmin.f32 %v3252_v0, 1.0  ;;  %vm4335_vm4 = vcmp.eq.s32.totalorder %v9726_v49, %v4333_v40  ;;  %vm4337_vm7 = vcmp.eq.s32.totalorder %v9727_v35, %v4333_v40  ;;  %vm4334_vm8 = vcmp.eq.s32.totalorder %v9726_v49, %v4329_v14 }
 0x8b5   : > { %v4360_v41 = vrot.slane %v5692_v45, %v6147_v55  ;;  %v4356_v20 = vrot.slane %v5692_v45, %v6009_v6  ;;  %vm4336_vm9 = vcmp.eq.s32.totalorder %v9727_v35, %v4329_v14  ;;  %v4350_v25 = vsel %vm4335_vm4, %v4346_v12, 0.0 }
 0x8b6   : > { %v3261_v7 = vrot.slane %v3253_v8, %v9611_v56  ;;  %v4352_v31 = vsel %vm4337_vm7, %v4346_v12, 0.0  ;;  %v4349_v42 = vsel %vm4334_vm8, %v4342_v58, 0.0  ;;  %v4351_v8 = vsel %vm4336_vm9, %v4342_v58, 0.0 }
 0x8b7   : > { %vm4362_vm12 = vcmp.eq.s32.totalorder %v9726_v49, %v4360_v41  ;;  %vm4364_vm11 = vcmp.eq.s32.totalorder %v9727_v35, %v4360_v41  ;;  %vm4361_vm4 = vcmp.eq.s32.totalorder %v9726_v49, %v4356_v20  ;;  %vm4363_vm7 = vcmp.eq.s32.totalorder %v9727_v35, %v4356_v20 }
 0x8b8   : > { %v3268_v51 = vrot.slane %v3261_v7, %v9611_v56  ;;  %v4377_v30 = vsel %vm4362_vm12, %v4373_v60, 0.0  ;;  %v4379_v53 = vsel %vm4364_vm11, %v4373_v60, 0.0  ;;  %v4376_v58 = vsel %vm4361_vm4, %v4369_v52, 0.0 }
 0x8b9   : > { %v4381_v45 = vadd.f32 %v4377_v30, %v4350_v25  ;;  %v4383_v12 = vadd.f32 %v4379_v53, %v4352_v31  ;;  %v4380_v41 = vadd.f32 %v4376_v58, %v4349_v42  ;;  %v5818_v31 = vld [vmem:[%s6081_s9 + $0x40] sm:$0xff]  }
 0x8ba   : > { %v3270_v37 = vmul.f32 %v3268_v51, %v8182_v21 }
 0x8bb   : > { %v4385_v14 = vpack.c.bf16 %v4383_v12, %v4381_v45 }
 0x8bc   : > { %v3275_v22 = vrot.slane %v3270_v37, %v6009_v6  ;;  %v3279_v0 = vrot.slane %v3270_v37, %v6147_v55  ;;  %v4378_v37 = vsel %vm4363_vm7, %v4369_v52, 0.0 }
 0x8bd   : > { %4455 = vmatprep.subr.bf16.mxu0 %v4385_v14  ;;  %4678 = vmatprep.subr.bf16.mxu1 %v4385_v14 }
 0x8be   : > { %v3282_v34 = vsel %vm7585_vm5, %v3275_v22, 0.0  ;;  %v3283_v7 = vsel %vm7592_vm13, %v3279_v0, 0.0  ;;  %v4382_v22 = vadd.f32 %v4378_v37, %v4351_v8  ;;  %v5816_v0 = vld [vmem:[%s6081_s9 + $0x30] sm:$0xff]  }
 0x8bf   : > { %v3284_v38 = vsel %vm842_vm14, %v3282_v34, 0.0  ;;  %v3285_v51 = vsel %vm842_vm14, %v3283_v7, 0.0  ;;  %v5817_v34 = vld [vmem:[%s6081_s9 + $0x38] sm:$0xff]   ;;  %s4211_s9 = sadd.s32 5, %s8046_s10 }
 0x8c0   : > { %v3286_v40 = vadd.f32 %v3285_v51, %v3284_v38  ;;  %v4384_v60 = vpack.c.bf16 %v4382_v22, %v4380_v41  ;;  %s4212_s5 = sld [smem:[#allocation2 + %s4211_s9]] }
 0x8c2   : > { %3287 = vadd.xlane.f32.xlu1 %v3286_v40  ;;  %4456 = vmatpush1.bf16.msra.mxu0 %v4384_v60 }
 0x8c3   : > { %4679 = vmatpush1.bf16.msra.mxu1 %v4384_v60  ;;  %4880 = vmatprep.subr.bf16.mxu0 %v4385_v14 }
 0x8c5   : > { %5587 = vmatmul.mubr.msk.bf16.vlgmr.msra.gmra.mrb[12].mxu0 %vm739_vm15, %v5816_v0 }
 0x8c6   : > { %5597 = vmatmul.mubr.msk.bf16.vlgmr.msra.gmra.mrb[12].mxu1 %vm739_vm15, %v5817_v34  ;;  %4881 = vmatpush1.bf16.msra.mxu0 %v4384_v60 }
 0x8c7   : > { %4912 = vmatprep.mubr.bf16.mxu0 %v9715_v19 }
 0x8cd   : > { %5607 = vmatmul.mubr.msk.bf16.vlgmr.msra.gmra.mrb[16].mxu0 %vm739_vm15, %v5818_v31 }
 0x8d3   : > { %3411 = vrot.lane.b32.xlu1 %v7970_v54, %s9533_s16 }
 0x8d6   : > { %v3400_v20 = vpop.xlane.xlu0 %3399 }
 0x8d7   : > { %3417 = vrot.lane.b32.xlu1 %v7958_v17, %s9533_s16  ;;  %v3401_v34 = vrot.slane %v3400_v20, 4 }
 0x8d9   : > { %v3402_v31 = vadd.f32 %v3401_v34, %v3400_v20 }
 0x8da   : > { %v3410_v52 = vpop.permute.xlu0 %3409 }
 0x8db   : > { %3425 = vrot.lane.b32.xlu1 %v7966_v18, %s5908_s25 }
 0x8de   : > { %v3420_v25 = vpop.permute.xlu0 %3419 }
 0x8df   : > { %3433 = vrot.lane.b32.xlu1 %v7958_v17, %s5908_s25 }
 0x8e2   : > { %v8225_v42 = vpop.permute.xlu0 %3427 }
 0x8e6   : > { %v8227_v8 = vpop.permute.xlu0 %3435 }
 0x8e7   : > { %9730 = vst [vmem:[#allocation40_spill] sm:$0xff] %v8227_v8 }
 0x8ea   : > { %v8229_v7 = vpop.permute.xlu0 %3499 }
 0x8ee   : > { %v8231_v30 = vpop.permute.xlu0 %3501 }
 0x8ef   : > { %v3504_v38 = vsel %vm620_vm0, %v8231_v30, %v8229_v7 }
 0x8f0   : > { %v3506_v51 = vadd.f32 %v3504_v38, %v7948_v48 }
 0x8f2   : > { %v8233_v53 = vpop.permute.xlu0 %3507 }
 0x8f6   : > { %v8240_v45 = vpop.permute.xlu0 %3509 }
 0x8f7   : > { %v3512_v12 = vsel %vm646_vm1, %v8240_v45, %v8233_v53 }
 0x8f8   : > { %v8246_v40 = vadd.f32 %v3512_v12, %v3506_v51  ;;  %v3403_v51 = vrot.slane %v3402_v31, 2 }
 0x8fa   : > { %9731 = vst [vmem:[#allocation48_spill] sm:$0xff] %v8246_v40  ;;  %3517 = vrot.lane.b32.xlu0 %v8246_v40, %s5908_s25  ;;  %v8250_v14 = vpop.permute.xlu0 %3535  ;;  %v3404_v32 = vadd.f32 %v3403_v51, %v3402_v31 }
 0x8fc   : > { %v3405_v5 = vrot.slane %v3404_v32, 1 }
 0x8fe   : > { %3525 = vrot.lane.b32.xlu0 %v8246_v40, %s5909_s29  ;;  %v8254_v58 = vpop.permute.xlu0 %3537 }
 0x8ff   : > { %v3540_v37 = vsel %vm620_vm0, %v8254_v58, %v8250_v14 }
 0x900   : > { %v3542_v41 = vadd.f32 %v3540_v37, %v8056_v63 }
 0x902   : > { %v8256_v48 = vpop.permute.xlu0 %3543 }
 0x906   : > { %v8263_v22 = vpop.permute.xlu0 %3545 }
 0x907   : > { %v3548_v60 = vsel %vm646_vm1, %v8263_v22, %v8256_v48 }
 0x908   : > { %v8269_v0 = vadd.f32 %v3548_v60, %v3542_v41 }
 0x90a   : > { %9732 = vst [vmem:[#allocation16_spill] sm:$0xff] %v8269_v0  ;;  %3553 = vrot.lane.b32.xlu0 %v8269_v0, %s5908_s25 }
 0x90e   : > { %3561 = vrot.lane.b32.xlu0 %v8269_v0, %s5909_s29 }
 0x94f   : > { %v3288_v38 = vpop.xlane.xlu1 %3287 }
 0x950   : > { %v3289_v63 = vrot.slane %v3288_v38, 4 }
 0x952   : > { %v3290_v12 = vadd.f32 %v3289_v63, %v3288_v38 }
 0x953   : > { %v3412_v37 = vpop.permute.xlu1 %3411 }
 0x954   : > { %v3291_v29 = vrot.slane %v3290_v12, 2  ;;  %v3413_v21 = vsel %vm620_vm0, %v3410_v52, %v3412_v37  ;;  %v3414_v41 = vsel %vm620_vm0, %v3412_v37, %v3410_v52 }
 0x955   : > { %v3415_v38 = vsub.f32 %v3413_v21, %v7966_v18  ;;  %v3416_v31 = vsub.f32 %v3414_v41, %v7970_v54 }
 0x956   : > { %v3292_v60 = vadd.f32 %v3291_v29, %v3290_v12  ;;  %v3406_v12 = vadd.f32 %v3405_v5, %v3404_v32 }
 0x957   : > { %v3418_v19 = vpop.permute.xlu1 %3417 }
 0x958   : > { %v3421_v15 = vsel %vm620_vm0, %v3418_v19, %v3420_v25  ;;  %v3422_v20 = vsel %vm620_vm0, %v3420_v25, %v3418_v19  ;;  %v3293_v34 = vrot.slane %v3292_v60, 1 }
 0x959   : > { %v3423_v51 = vsub.f32 %v3421_v15, %v7958_v17  ;;  %v3424_v63 = vsub.f32 %v3422_v20, %v7962_v44 }
 0x95a   : > { %v3294_v0 = vadd.f32 %v3293_v34, %v3292_v60 }
 0x95b   : > { %v3441_v52 = vsub.f32 %v3423_v51, %v3415_v38  ;;  %v3442_v29 = vsub.f32 %v3424_v63, %v3416_v31 }
 0x95c   : > { %5671 = vpush %v3294_v0 }
 0x95d   : > { %v3443_v37 = vand.u32 2147483647, %v3441_v52  ;;  %v3444_v40 = vand.u32 2147483647, %v3442_v29  ;;  %5673 = vpush %v3406_v12  ;;  %v4220_v29 = vstv %s4219_s23 }
 0x95f   : > { %v3447_v8 = vmul.f32 0.5, %v3443_v37  ;;  %v3448_v19 = vmul.f32 0.5, %v3444_v40  ;;  %v5568_v18 = vadd.f32 -0.5, %v3443_v37  ;;  %v5569_v41 = vadd.f32 -0.5, %v3444_v40 }
 0x960   : > { %vm3445_vm15 = vcmp.lt.f32.partialorder %v3443_v37, 1.0  ;;  %vm3446_vm11 = vcmp.lt.f32.partialorder %v3444_v40, 1.0 }
 0x961   : > { %v3449_v25 = vmul.f32 %v3447_v8, %v3443_v37  ;;  %v3450_v21 = vmul.f32 %v3448_v19, %v3444_v40  ;;  %v4208_v8 = vstv %s4207_s11 }
 0x962   : > { %v4209_v40 = vmul.f32 %v4208_v8, %v6064_v23  ;;  %v4210_v38 = vmul.f32 %v4208_v8, %v6066_v24  ;;  %v3583_v24 = vrot.slane %v8130_v1, %v6147_v55 }
 0x963   : > { %v3453_v15 = vsel %vm3445_vm15, %v3449_v25, %v5568_v18  ;;  %v3454_v60 = vsel %vm3446_vm11, %v3450_v21, %v5569_v41  ;;  %v4213_v18 = vstv %s4212_s5  ;;  %v4244_v25 = vstv %s4243_s26 }
 0x964   : > { %v3455_v20 = vmul.f32 %v3453_v15, %v9713_v62  ;;  %v3456_v5 = vmul.f32 %v3454_v60, %v9714_v36  ;;  %v4214_v31 = vmul.f32 %v4213_v18, %v6070_v27  ;;  %v4215_v51 = vmul.f32 %v4213_v18, %v6073_v28  ;;  %v9733_v15 = vld [vmem:[#allocation20_spill] sm:$0xff] }
 0x965   : > { %v4016_v60 = vrot.slane %v8161_v10, %v9733_v15 }
 0x966   : > { %v3457_v32 = vsel %vm842_vm14, %v3455_v20, 0.0  ;;  %v3458_v0 = vsel %vm842_vm14, %v3456_v5, 0.0  ;;  %v4216_v63 = vadd.f32 %v4214_v31, %v4209_v40  ;;  %v4217_v52 = vadd.f32 %v4215_v51, %v4210_v38 }
 0x967   : > { %v3459_v34 = vadd.f32 %v3458_v0, %v3457_v32  ;;  %v3503_v5 = vsel %vm620_vm0, %v8229_v7, %v8231_v30  ;;  %v3547_v51 = vsel %vm646_vm1, %v8256_v48, %v8263_v22 }
 0x968   : > { %v4221_v12 = vadd.f32 %v4220_v29, %v4216_v63  ;;  %v4222_v37 = vadd.f32 %v4220_v29, %v4217_v52 }
 0x969   : > { %3460 = vadd.xlane.f32.xlu1 %v3459_v34  ;;  %v3505_v34 = vadd.f32 %v3503_v5, %v7946_v33 }
 0x96a   : > { %v4225_v19 = vcombine.low %v4221_v12, %v4222_v37 }
 0x96c   : > { %v4232_v23 = vrot.slane %v4225_v19, %v9611_v56 }
 0x96e   : > { %v4239_v27 = vrot.slane %v4232_v23, %v9611_v56 }
 0x970   : > { %v4241_v28 = vmul.f32 %v8088_v59, %v4239_v27 }
 0x972   : > { %v4245_v21 = vadd.f32 %v4244_v25, %v4241_v28 }
 0x974   : > { %v4292_v41 = vmul.f32 %v8165_v11, %v4245_v21  ;;  %v3511_v11 = vsel %vm646_vm1, %v8233_v53, %v8240_v45  ;;  %v3539_v53 = vsel %vm620_vm0, %v8250_v14, %v8254_v58 }
 0x975   : > { %v8331_v40 = vadd.f32 %v3511_v11, %v3505_v34  ;;  %v3541_v19 = vadd.f32 %v3539_v53, %v8042_v3 }
 0x976   : > { %v8313_v20 = vfloor.f32 %v4292_v41  ;;  %v4308_v7 = vmax.f32 %v4292_v41, 0.0 }
 0x977   : > { %v8355_v22 = vadd.f32 %v3547_v51, %v3541_v19 }
 0x978   : > { %v8321_v59 = vadd.f32 1.0, %v8313_v20  ;;  %v4314_v32 = vmax.f32 %v8313_v20, 0.0  ;;  %v4309_v31 = vmin.f32 %v4308_v7, 15.0 }
 0x97a   : > { %3934 = vrot.lane.b32.xlu1 %v8082_v26, %s9533_s16  ;;  %v4316_v0 = vmax.f32 %v8321_v59, 0.0  ;;  %v4315_v8 = vmin.f32 %v4314_v32, 15.0 }
 0x97c   : > { %v4317_v18 = vmin.f32 %v4316_v0, 15.0  ;;  %v5693_v30 = vtrunc.f32 %v4315_v8  ;;  %v4321_v52 = vsub.f32 %v4309_v31, %v4315_v8 }
 0x97e   : > { %3976 = vrot.lane.b32.xlu1 %v8096_v4, %s5904_s8  ;;  %v5695_v38 = vtrunc.f32 %v4317_v18  ;;  %v5694_v45 = vcvt.f32.s32 %v5693_v30  ;;  %v4320_v63 = vsub.f32 %v4317_v18, %v4309_v31  ;;  %v4429_v48 = vrot.slane %v4321_v52, %v6009_v6 }
 0x97f   : > { %v4433_v28 = vrot.slane %v4321_v52, %v6147_v55 }
 0x980   : > { %v5696_v33 = vcvt.f32.s32 %v5695_v38  ;;  %v4389_v29 = vrot.slane %v5694_v45, %v6009_v6  ;;  %v4393_v37 = vrot.slane %v5694_v45, %v6147_v55  ;;  %v4402_v14 = vrot.slane %v4320_v63, %v6009_v6 }
 0x981   : > { %v4406_v58 = vrot.slane %v4320_v63, %v6147_v55 }
 0x982   : > { %3590 = vrot.lane.b32.xlu1 %v3583_v24, %s9533_s16  ;;  %v4416_v12 = vrot.slane %v5696_v33, %v6009_v6  ;;  %v4420_v23 = vrot.slane %v5696_v33, %v6147_v55  ;;  %vm4394_vm8 = vcmp.eq.s32.totalorder %v9726_v49, %v4389_v29  ;;  %vm4395_vm12 = vcmp.eq.s32.totalorder %v9726_v49, %v4393_v37 }
 0x983   : > { %v4410_v27 = vsel %vm4395_vm12, %v4406_v58, 0.0  ;;  %vm4396_vm7 = vcmp.eq.s32.totalorder %v9727_v35, %v4389_v29  ;;  %vm4397_vm11 = vcmp.eq.s32.totalorder %v9727_v35, %v4393_v37 }
 0x984   : > { %vm4421_vm9 = vcmp.eq.s32.totalorder %v9726_v49, %v4416_v12  ;;  %vm4422_vm4 = vcmp.eq.s32.totalorder %v9726_v49, %v4420_v23  ;;  %v4411_v41 = vsel %vm4396_vm7, %v4402_v14, 0.0  ;;  %vm4423_vm15 = vcmp.eq.s32.totalorder %v9727_v35, %v4416_v12 }
 0x985   : > { %v4436_v3 = vsel %vm4421_vm9, %v4429_v48, 0.0  ;;  %v4437_v21 = vsel %vm4422_vm4, %v4433_v28, 0.0  ;;  %v4438_v11 = vsel %vm4423_vm15, %v4429_v48, 0.0  ;;  %v4412_v8 = vsel %vm4397_vm11, %v4406_v58, 0.0 }
 0x986   : > { %3602 = vrot.lane.b32.xlu1 %v3583_v24, %s5904_s8  ;;  %v4409_v24 = vsel %vm4394_vm8, %v4402_v14, 0.0  ;;  %v8366_v5 = vadd.f32 %v4437_v21, %v4410_v27  ;;  %vm4424_vm8 = vcmp.eq.s32.totalorder %v9727_v35, %v4420_v23  ;;  %v4442_v34 = vadd.f32 %v4438_v11, %v4411_v41 }
 0x987   : > { %v8362_v25 = vadd.f32 %v4436_v3, %v4409_v24  ;;  %v4439_v18 = vsel %vm4424_vm8, %v4433_v28, 0.0  ;;  %vm4299_vm9 = vcmp.ge.f32.partialorder %v8313_v20, 0.0  ;;  %vm4302_vm4 = vcmp.le.f32.partialorder %v8321_v59, 15.0 }
 0x988   : > { %v4443_v38 = vadd.f32 %v4439_v18, %v4412_v8  ;;  %vm4300_vm12 = vmand %vm8177_vm3, %vm4299_vm9  ;;  %v9734_v58 = vmov 0.0  }
 0x989   : > { %vm4303_vm7 = vmand %vm4300_vm12, %vm4302_vm4 }
 0x98a   : > { %4023 = vrot.lane.b32.xlu1 %v4016_v60, %s9533_s16  ;;  %v8379_v23 = vsel %vm4303_vm7, 1.0, %v9734_v58 }
 0x98b   : > { %v4529_v46 = vrot.slane %v8379_v23, %v6009_v6 }
 0x98e   : > { %4035 = vrot.lane.b32.xlu1 %v4016_v60, %s5904_s8  ;;  %s9195_s8 = spop %5633 }
 0x992   : > { %3515 = vrot.lane.b32.xlu1 %v8331_v40, %s5908_s25 }
 0x996   : > { %3523 = vrot.lane.b32.xlu1 %v8331_v40, %s5909_s29 }
 0x998   : > { %v4489_v60 = vpop.f32.mrb[12].mxu0 }
 0x999   : > { %v4498_v32 = vmul.f32 %v4489_v60, %v8362_v25  ;;  %v4491_v0 = vpop.f32.mrb[13].mxu0  ;;  %v4712_v37 = vpop.f32.mrb[12].mxu1  ;;  %v4533_v60 = vrot.slane %v8379_v23, %v6147_v55 }
 0x99a   : > { %3551 = vrot.lane.b32.xlu1 %v8355_v22, %s5908_s25  ;;  %v4499_v7 = vmul.f32 %v4491_v0, %v8366_v5  ;;  %v4493_v30 = vpop.f32.mrb[14].mxu0  ;;  %v4714_v14 = vpop.f32.mrb[13].mxu1  ;;  %v4721_v27 = vmul.f32 %v4712_v37, %v8362_v25 }
 0x99b   : > { %v4500_v31 = vmul.f32 %v4493_v30, %v4442_v34  ;;  %v4495_v53 = vpop.f32.mrb[15].mxu0  ;;  %v4716_v48 = vpop.f32.mrb[14].mxu1  ;;  %v4722_v28 = vmul.f32 %v4714_v14, %v8366_v5 }
 0x99c   : > { %v4501_v45 = vmul.f32 %v4495_v53, %v4443_v38  ;;  %v4718_v3 = vpop.f32.mrb[15].mxu1  ;;  %v4723_v21 = vmul.f32 %v4716_v48, %v4442_v34 }
 0x99d   : > { %v4502_v33 = vadd.f32 %v4500_v31, %v4498_v32  ;;  %v4724_v11 = vmul.f32 %v4718_v3, %v4443_v38 }
 0x99e   : > { %3559 = vrot.lane.b32.xlu1 %v8355_v22, %s5909_s29  ;;  %v4509_v35 = vadd.f32 %v4501_v45, %v4499_v7  ;;  %v4725_v0 = vadd.f32 %v4723_v21, %v4721_v27 }
 0x99f   : > { %v4503_v51 = vrot.slane %v4502_v33, 4  ;;  %v4732_v18 = vadd.f32 %v4724_v11, %v4722_v28 }
 0x9a0   : > { %v4510_v63 = vrot.slane %v4509_v35, 4  ;;  %v4726_v30 = vrot.slane %v4725_v0, 4 }
 0x9a1   : > { %v4504_v52 = vadd.f32 %v4503_v51, %v4502_v33  ;;  %v4733_v53 = vrot.slane %v4732_v18, 4 }
 0x9a2   : > { %v4511_v29 = vadd.f32 %v4510_v63, %v4509_v35  ;;  %v4727_v45 = vadd.f32 %v4726_v30, %v4725_v0 }
 0x9a3   : > { %v4505_v12 = vrot.slane %v4504_v52, 2  ;;  %v4734_v33 = vadd.f32 %v4733_v53, %v4732_v18 }
 0x9a4   : > { %v4512_v19 = vrot.slane %v4511_v29, 2  ;;  %v4728_v35 = vrot.slane %v4727_v45, 2 }
 0x9a5   : > { %v4506_v20 = vadd.f32 %v4505_v12, %v4504_v52  ;;  %v4735_v51 = vrot.slane %v4734_v33, 2  ;;  %v4914_v12 = vpop.f32.mrb[16].mxu0 }
 0x9a6   : > { %v4513_v24 = vadd.f32 %v4512_v19, %v4511_v29  ;;  %v4729_v63 = vadd.f32 %v4728_v35, %v4727_v45  ;;  %v4916_v19 = vpop.f32.mrb[17].mxu0 }
 0x9a7   : > { %v4507_v59 = vrot.slane %v4506_v20, 1  ;;  %v4736_v52 = vadd.f32 %v4735_v51, %v4734_v33  ;;  %v4924_v27 = vmul.f32 %v4916_v19, %v8366_v5  ;;  %v8401_v19 = vpop.permute.xlu1 %3425 }
 0x9a8   : > { %v4514_v41 = vrot.slane %v4513_v24, 1  ;;  %v4730_v29 = vrot.slane %v4729_v63, 1 }
 0x9a9   : > { %v4508_v32 = vadd.f32 %v4507_v59, %v4506_v20  ;;  %v4737_v37 = vrot.slane %v4736_v52, 1  ;;  %v4918_v20 = vpop.f32.mrb[18].mxu0  ;;  %v4923_v59 = vmul.f32 %v4914_v12, %v8362_v25 }
 0x9aa   : > { %v4515_v8 = vadd.f32 %v4514_v41, %v4513_v24  ;;  %v4731_v14 = vadd.f32 %v4730_v29, %v4729_v63  ;;  %v4920_v24 = vpop.f32.mrb[19].mxu0  ;;  %v4925_v28 = vmul.f32 %v4918_v20, %v4442_v34  ;;  %v3933_v34 = vpop.permute.xlu0 %3932 }
 0x9ab   : > { %v8387_v7 = vmul.f32 %v4529_v46, %v4508_v32  ;;  %v4738_v48 = vadd.f32 %v4737_v37, %v4736_v52  ;;  %v4926_v41 = vmul.f32 %v4920_v24, %v4443_v38  ;;  %v8403_v20 = vpop.permute.xlu1 %3433 }
 0x9ac   : > { %v8389_v31 = vmul.f32 %v4533_v60, %v4515_v8  ;;  %v8391_v3 = vmul.f32 %v4731_v14, %v4529_v46  ;;  %v4927_v11 = vadd.f32 %v4925_v28, %v4923_v59 }
 0x9ad   : > { %v8395_v21 = vmul.f32 %v4738_v48, %v4533_v60  ;;  %v4934_v32 = vadd.f32 %v4926_v41, %v4924_v27 }
 0x9ae   : > { %9735 = vst [vmem:[#allocation17_spill] sm:$0xff] %v8391_v3  ;;  %v4928_v0 = vrot.slane %v4927_v11, 4  ;;  %v3941_v38 = vpop.permute.xlu0 %3940 }
 0x9af   : > { %9736 = vst [vmem:[#allocation18_spill] sm:$0xff] %v8395_v21  ;;  %v4935_v8 = vrot.slane %v4934_v32, 4 }
 0x9b0   : > { %v4929_v18 = vadd.f32 %v4928_v0, %v4927_v11 }
 0x9b1   : > { %v4936_v30 = vadd.f32 %v4935_v8, %v4934_v32 }
 0x9b2   : > { %v4930_v53 = vrot.slane %v4929_v18, 2  ;;  %v3943_v12 = vpop.permute.xlu0 %3942 }
 0x9b3   : > { %v4937_v45 = vrot.slane %v4936_v30, 2  ;;  %v3944_v0 = vsel %vm646_vm1, %v3941_v38, %v3943_v12  ;;  %v3945_v8 = vsel %vm646_vm1, %v3943_v12, %v3941_v38 }
 0x9b4   : > { %v4931_v33 = vadd.f32 %v4930_v53, %v4929_v18 }
 0x9b5   : > { %v4938_v35 = vadd.f32 %v4937_v45, %v4936_v30 }
 0x9b6   : > { %v4932_v51 = vrot.slane %v4931_v33, 1  ;;  %v3969_v37 = vpop.permute.xlu0 %3968 }
 0x9b7   : > { %v4939_v63 = vrot.slane %v4938_v35, 1 }
 0x9b8   : > { %v4933_v52 = vadd.f32 %v4932_v51, %v4931_v33 }
 0x9b9   : > { %v4940_v25 = vadd.f32 %v4939_v63, %v4938_v35 }
 0x9ba   : > { %v8397_v29 = vmul.f32 %v4933_v52, %v4529_v46  ;;  %v3971_v14 = vpop.permute.xlu0 %3970 }
 0x9bb   : > { %v8399_v5 = vmul.f32 %v4940_v25, %v4533_v60  ;;  %v3972_v51 = vsel %vm620_vm0, %v3969_v37, %v3971_v14  ;;  %v3973_v63 = vsel %vm620_vm0, %v3971_v14, %v3969_v37 }
 0x9bc   : > { %9737 = vst [vmem:[#allocation58_spill] sm:$0xff] %v8397_v29 }
 0x9bd   : > { %9738 = vst [vmem:[#allocation59_spill] sm:$0xff] %v8399_v5 }
 0x9be   : > { %v3979_v59 = vpop.permute.xlu0 %3978 }
 0x9c2   : > { %v3593_v30 = vpop.permute.xlu0 %3592 }
 0x9c6   : > { %v3605_v37 = vpop.permute.xlu0 %3604 }
 0x9f6   : > { %v3461_v48 = vpop.xlane.xlu1 %3460 }
 0x9f7   : > { %v3462_v24 = vrot.slane %v3461_v48, 4 }
 0x9f9   : > { %v3463_v27 = vadd.f32 %v3462_v24, %v3461_v48  ;;  %v3974_v24 = vadd.f32 %v3972_v51, %v8096_v4 }
 0x9fa   : > { %v3935_v28 = vpop.permute.xlu1 %3934 }
 0x9fb   : > { %v3464_v41 = vrot.slane %v3463_v27, 2  ;;  %v3936_v46 = vsel %vm620_vm0, %v3933_v34, %v3935_v28  ;;  %v3937_v60 = vsel %vm620_vm0, %v3935_v28, %v3933_v34 }
 0x9fc   : > { %v3938_v11 = vadd.f32 %v3936_v46, %v8072_v39  ;;  %v3939_v32 = vadd.f32 %v3937_v60, %v8082_v26 }
 0x9fd   : > { %v3465_v18 = vadd.f32 %v3464_v41, %v3463_v27  ;;  %v3975_v27 = vadd.f32 %v3973_v63, %v8113_v9  ;;  %v4026_v9 = vpop.permute.xlu0 %4025 }
 0x9fe   : > { %v8415_v53 = vadd.f32 %v3944_v0, %v3938_v11  ;;  %v8417_v45 = vadd.f32 %v3945_v8, %v3939_v32  ;;  %v3977_v33 = vpop.permute.xlu1 %3976 }
 0x9ff   : > { %v3466_v35 = vrot.slane %v3465_v18, 1  ;;  %v3980_v34 = vsel %vm646_vm1, %v3977_v33, %v3979_v59  ;;  %v3981_v38 = vsel %vm646_vm1, %v3979_v59, %v3977_v33 }
 0xa00   : > { %3950 = vrot.lane.b32.xlu0 %v8417_v45, %s5908_s25  ;;  %3948 = vrot.lane.b32.xlu1 %v8415_v53, %s5908_s25  ;;  %v8441_v59 = vadd.f32 %v3980_v34, %v3974_v24  ;;  %v8443_v28 = vadd.f32 %v3981_v38, %v3975_v27 }
 0xa01   : > { %v3467_v52 = vadd.f32 %v3466_v35, %v3465_v18  ;;  %v4038_v51 = vpop.permute.xlu0 %4037 }
 0xa02   : > { %v3591_v25 = vpop.permute.xlu1 %3590 }
 0xa03   : > { %v3594_v12 = vsel %vm620_vm0, %v3591_v25, %v3593_v30  ;;  %v3595_v48 = vsel %vm620_vm0, %v3593_v30, %v3591_v25  ;;  %5675 = vpush %v3467_v52 }
 0xa04   : > { %v3598_v14 = vcombine.low %v3594_v12, %v3595_v48  ;;  %3958 = vrot.lane.b32.xlu0 %v8417_v45, %s5909_s29  ;;  %3956 = vrot.lane.b32.xlu1 %v8415_v53, %s5909_s29 }
 0xa06   : > { %v3599_v41 = vrot.slane %v3598_v14, 7  ;;  %v3603_v46 = vpop.permute.xlu1 %3602 }
 0xa07   : > { %v3606_v60 = vsel %vm646_vm1, %v3603_v46, %v3605_v37  ;;  %v3607_v4 = vsel %vm646_vm1, %v3605_v37, %v3603_v46  ;;  %v8501_v46 = vmul.f32 %v8082_v26, %v7505_v16 }
 0xa08   : > { %v3610_v11 = vcombine.low %v3606_v60, %v3607_v4  ;;  %3986 = vrot.lane.b32.xlu0 %v8443_v28, %s5908_s25  ;;  %3984 = vrot.lane.b32.xlu1 %v8441_v59, %s5908_s25  ;;  %v3601_v32 = vadd.f32 %v3599_v41, %v8130_v1  ;;  %v8493_v41 = vrot.slane %v7495_v47, %v9733_v15 }
 0xa09   : > { %v8505_v60 = vmul.f32 %v8072_v39, %v7501_v43 }
 0xa0a   : > { %v3611_v0 = vrot.slane %v3610_v11, 7  ;;  %v4024_v8 = vpop.permute.xlu1 %4023 }
 0xa0b   : > { %v4027_v18 = vsel %vm620_vm0, %v4024_v8, %v4026_v9  ;;  %v4028_v30 = vsel %vm620_vm0, %v4026_v9, %v4024_v8  ;;  %v3518_v9 = vpop.permute.xlu0 %3517 }
 0xa0c   : > { %v8458_v33 = vadd.f32 %v3611_v0, %v3601_v32  ;;  %v4031_v35 = vcombine.low %v4027_v18, %v4028_v30  ;;  %3994 = vrot.lane.b32.xlu0 %v8443_v28, %s5909_s29  ;;  %3992 = vrot.lane.b32.xlu1 %v8441_v59, %s5909_s29  ;;  %v3429_v18 = vsel %vm683_vm6, %v8401_v19, %v8225_v42  ;;  %v9744_v30 = vld [vmem:[#allocation40_spill] sm:$0xff] }
 0xa0e   : > { %v4032_v63 = vrot.slane %v4031_v35, 6  ;;  %v4036_v1 = vpop.permute.xlu1 %4035  ;;  %v3622_v52 = vrot.slane %v8458_v33, %v9721_v13  ;;  %v3618_v25 = vrot.slane %v8458_v33, %v6147_v55  ;;  %v3437_v35 = vsel %vm683_vm6, %v8403_v20, %v9744_v30 }
 0xa0f   : > { %v4039_v34 = vsel %vm646_vm1, %v4036_v1, %v4038_v51  ;;  %v4040_v38 = vsel %vm646_vm1, %v4038_v51, %v4036_v1  ;;  %v3526_v11 = vpop.permute.xlu0 %3525 }
 0xa10   : > { %v4043_v12 = vcombine.low %v4039_v34, %v4040_v38  ;;  %3627 = vrot.lane.b32.xlu0 %v3622_v52, %s5908_s25  ;;  %3625 = vrot.lane.b32.xlu1 %v3618_v25, %s5908_s25  ;;  %v4034_v48 = vadd.f32 %v4032_v63, %v8161_v10  ;;  %v8489_v10 = vrot.slane %v7495_v47, %v9589_v50  ;;  %v9739_v47 = vld [vmem:[#allocation11_spill] sm:$0xff]  ;;  %v9745_v63 = vld [vmem:[#allocation37_spill] sm:$0xff] }
 0xa11   : > { %v4523_v4 = vrot.slane %v8379_v23, %v9739_v47  ;;  %v3431_v1 = vsub.f32 %v3429_v18, %v9745_v63  ;;  %v9747_v18 = vld [vmem:[#allocation16_spill] sm:$0xff] }
 0xa12   : > { %v4044_v24 = vrot.slane %v4043_v12, 6 }
 0xa13   : > { %v4525_v16 = vmul.f32 %v8127_v61, %v4523_v4  ;;  %v3516_v61 = vpop.permute.xlu1 %3515  ;;  %v3554_v51 = vpop.permute.xlu0 %3553  ;;  %v3814_v4 = vsub.f32 %v8501_v46, %v8489_v10 }
 0xa14   : > { %v8475_v27 = vadd.f32 %v4044_v24, %v4034_v48  ;;  %3639 = vrot.lane.b32.xlu0 %v3622_v52, %s5909_s29  ;;  %3637 = vrot.lane.b32.xlu1 %v3618_v25, %s5909_s29  ;;  %v3439_v52 = vsub.f32 %v3437_v35, %v7958_v17  ;;  %v3813_v25 = vsub.f32 %v8505_v60, %v8493_v41 }
 0xa15   : > { %v8523_v43 = vrot.slane %v4525_v16, %v9667_v57  ;;  %v8526_v39 = vrot.slane %v4525_v16, %v6009_v6  ;;  %v8545_v57 = vrot.slane %v4525_v16, %v9721_v13  ;;  %v8548_v26 = vrot.slane %v4525_v16, %v6147_v55 }
 0xa16   : > { %v4055_v37 = vrot.slane %v8475_v27, %v9589_v50  ;;  %v4051_v14 = vrot.slane %v8475_v27, %v9733_v15  ;;  %v8567_v32 = vrot.slane %v4525_v16, %v9589_v50  ;;  %v8570_v0 = vrot.slane %v4525_v16, %v9733_v15 }
 0xa17   : > { %9740 = vst [vmem:[#allocation22_spill] sm:$0xff] %v8545_v57  ;;  %9741 = vst [vmem:[#allocation21_spill] sm:$0xff] %v8548_v26  ;;  %v3524_v13 = vpop.permute.xlu1 %3523  ;;  %v3430_v50 = vsel %vm683_vm6, %v8225_v42, %v8401_v19  ;;  %v3438_v15 = vsel %vm683_vm6, %v9744_v30, %v8403_v20  ;;  %v3519_v19 = vsel %vm683_vm6, %v3516_v61, %v3518_v9  ;;  %v3562_v24 = vpop.permute.xlu0 %3561  ;;  %v3816_v63 = vand.u32 2147483647, %v3814_v4 }
 0xa18   : > { %4060 = vrot.lane.b32.xlu0 %v4055_v37, %s5908_s25  ;;  %4058 = vrot.lane.b32.xlu1 %v4051_v14, %s5908_s25  ;;  %9742 = vst [vmem:[#allocation7_spill] sm:$0xff] %v8567_v32  ;;  %9743 = vst [vmem:[#allocation19_spill] sm:$0xff] %v8570_v0  ;;  %v3432_v34 = vsub.f32 %v3430_v50, %v7970_v54  ;;  %v3440_v42 = vsub.f32 %v3438_v15, %v7962_v44 }
 0xa19   : > { %v3520_v20 = vsel %vm683_vm6, %v3518_v9, %v3516_v61  ;;  %v3527_v38 = vsel %vm709_vm2, %v3524_v13, %v3526_v11  ;;  %v3528_v12 = vsel %vm709_vm2, %v3526_v11, %v3524_v13  ;;  %v3470_v48 = vsub.f32 %v3439_v52, %v3431_v1 }
 0xa1a   : > { %v3471_v16 = vsub.f32 %v3440_v42, %v3432_v34  ;;  %v3815_v13 = vand.u32 2147483647, %v3813_v25  ;;  %vm3818_vm3 = vcmp.lt.f32.partialorder %v3816_v63, 1.0 }
 0xa1b   : > { %v3552_v8 = vpop.permute.xlu1 %3551  ;;  %v3472_v35 = vand.u32 2147483647, %v3470_v48 }
 0xa1c   : > { %4072 = vrot.lane.b32.xlu0 %v4055_v37, %s5909_s29  ;;  %4070 = vrot.lane.b32.xlu1 %v4051_v14, %s5909_s29  ;;  %v3555_v54 = vsel %vm683_vm6, %v3552_v8, %v3554_v51  ;;  %v3556_v44 = vsel %vm683_vm6, %v3554_v51, %v3552_v8  ;;  %v3521_v37 = vadd.f32 %v3519_v19, %v8331_v40  ;;  %v9746_v14 = vld [vmem:[#allocation48_spill] sm:$0xff]  ;;  %v3473_v51 = vand.u32 2147483647, %v3471_v16 }
 0xa1d   : > { %v3522_v47 = vadd.f32 %v3520_v20, %v9746_v14  ;;  %v3557_v8 = vadd.f32 %v3555_v54, %v8355_v22  ;;  %v3558_v30 = vadd.f32 %v3556_v44, %v9747_v18  ;;  %v3819_v25 = vmul.f32 0.5, %v3815_v13 }
 0xa1e   : > { %v3529_v40 = vadd.f32 %v3527_v38, %v3521_v37  ;;  %v3476_v34 = vmul.f32 0.5, %v3472_v35  ;;  %v3477_v19 = vmul.f32 0.5, %v3473_v51  ;;  %v3820_v20 = vmul.f32 0.5, %v3816_v63 }
 0xa1f   : > { %v3560_v17 = vpop.permute.xlu1 %3559  ;;  %v3530_v11 = vadd.f32 %v3528_v12, %v3522_v47  ;;  %v3821_v12 = vmul.f32 %v3819_v25, %v3815_v13  ;;  %v5576_v54 = vadd.f32 -0.5, %v3815_v13  ;;  %vm3817_vm1 = vcmp.lt.f32.partialorder %v3815_v13, 1.0 }
 0xa20   : > { %3844 = vrot.lane.b32.xlu0 %v8489_v10, %s9533_s16  ;;  %3842 = vrot.lane.b32.xlu1 %v8493_v41, %s9533_s16  ;;  %v3563_v61 = vsel %vm709_vm2, %v3560_v17, %v3562_v24  ;;  %v3564_v9 = vsel %vm709_vm2, %v3562_v24, %v3560_v17  ;;  %v8632_v1 = vmul.f32 0.11111111, %v3529_v40  ;;  %v3478_v24 = vmul.f32 %v3476_v34, %v3472_v35 }
 0xa21   : > { %v3565_v50 = vadd.f32 %v3563_v61, %v3557_v8  ;;  %v3566_v15 = vadd.f32 %v3564_v9, %v3558_v30  ;;  %v8634_v52 = vmul.f32 0.11111111, %v3530_v11  ;;  %v3479_v37 = vmul.f32 %v3477_v19, %v3473_v51  ;;  %v9748_v30 = vld [vmem:[#allocation31_spill] sm:$0xff] }
 0xa22   : > { %v3569_v17 = vmul.f32 %v8632_v1, %v8632_v1  ;;  %v3822_v14 = vmul.f32 %v3820_v20, %v3816_v63  ;;  %v5577_v47 = vadd.f32 -0.5, %v3816_v63  ;;  %v5570_v4 = vadd.f32 -0.5, %v3472_v35 }
 0xa23   : > { %v3567_v22 = vmul.f32 0.11111111, %v3565_v50  ;;  %v3568_v42 = vmul.f32 0.11111111, %v3566_v15  ;;  %v3570_v38 = vmul.f32 %v8634_v52, %v8634_v52  ;;  %v3825_v16 = vsel %vm3817_vm1, %v3821_v12, %v5576_v54  ;;  %v9751_v54 = vld [vmem:[#allocation53_spill] sm:$0xff] }
 0xa24   : > { %3852 = vrot.lane.b32.xlu0 %v8501_v46, %s9533_s16  ;;  %3850 = vrot.lane.b32.xlu1 %v8505_v60, %s9533_s16  ;;  %v4549_v61 = vsub.f32 %v8387_v7, %v8526_v39  ;;  %vm3474_vm15 = vcmp.lt.f32.partialorder %v3472_v35, 1.0  ;;  %vm3475_vm11 = vcmp.lt.f32.partialorder %v3473_v51, 1.0  ;;  %v5571_v9 = vadd.f32 -0.5, %v3473_v51 }
 0xa25   : > { %v3571_v44 = vsub.f32 %v3567_v22, %v3569_v17  ;;  %v3572_v48 = vsub.f32 %v3568_v42, %v3570_v38  ;;  %v4550_v40 = vsub.f32 %v8389_v31, %v8523_v43  ;;  %v3482_v13 = vsel %vm3474_vm15, %v3478_v24, %v5570_v4  ;;  %v9749_v22 = vld [vmem:[#allocation52_spill] sm:$0xff]  ;;  %v9750_v42 = vld [vmem:[#allocation41_spill] sm:$0xff] }
 0xa26   : > { %v4751_v8 = vsub.f32 %v8391_v3, %v8548_v26  ;;  %v4752_v18 = vsub.f32 %v8395_v21, %v8545_v57  ;;  %v4163_v50 = vmul.f32 2.0, %v9748_v30  ;;  %v3483_v15 = vsel %vm3475_vm11, %v3479_v37, %v5571_v9  ;;  %v9752_v4 = vld [vmem:[#allocation12_spill] sm:$0xff] }
 0xa27   : > { %v3671_v11 = vcombine.low %v3571_v44, %v3572_v48  ;;  %v3664_v25 = vcombine.low %v3569_v17, %v3570_v38  ;;  %v4551_v34 = vand.u32 2147483647, %v4549_v61  ;;  %v3484_v35 = vmul.f32 %v3482_v13, %v9749_v22  ;;  %v9753_v38 = vld [vmem:[#allocation42_spill] sm:$0xff]  ;;  %v9754_v61 = vld [vmem:[#allocation15_spill] sm:$0xff] }
 0xa28   : > { %3860 = vrot.lane.b32.xlu0 %v8489_v10, %s5908_s25  ;;  %3858 = vrot.lane.b32.xlu1 %v8493_v41, %s5908_s25  ;;  %v3826_v51 = vsel %vm3818_vm3, %v3822_v14, %v5577_v47  ;;  %v3827_v19 = vmul.f32 %v9750_v42, %v3825_v16  ;;  %v4552_v20 = vand.u32 2147483647, %v4550_v40  ;;  %v3485_v44 = vmul.f32 %v3483_v15, %v9751_v54 }
 0xa29   : > { %v3672_v12 = vrot.slane %v3671_v11, 7  ;;  %v4753_v48 = vand.u32 2147483647, %v4751_v8  ;;  %v4754_v24 = vand.u32 2147483647, %v4752_v18  ;;  %v4164_v49 = vadd.f32 %v9752_v4, %v4163_v50  ;;  %v9755_v50 = vld [vmem:[#allocation24_spill] sm:$0xff] }
 0xa2a   : > { %v3665_v30 = vrot.slane %v3664_v25, 7  ;;  %v4555_v37 = vmul.f32 0.5, %v4551_v34  ;;  %v4953_v17 = vsub.f32 %v8397_v29, %v8570_v0  ;;  %v3486_v63 = vsel %vm842_vm14, %v3484_v35, 0.0 }
 0xa2b   : > { %v8659_v14 = vmul.f32 %v9753_v38, %v3826_v51  ;;  %v8662_v47 = vsel %vm842_vm14, %v3827_v19, 0.0  ;;  %v4556_v16 = vmul.f32 0.5, %v4552_v20  ;;  %v3674_v9 = vadd.f32 %v3672_v12, %v9754_v61 }
 0xa2c   : > { %3868 = vrot.lane.b32.xlu0 %v8501_v46, %s5908_s25  ;;  %3866 = vrot.lane.b32.xlu1 %v8505_v60, %s5908_s25  ;;  %v3487_v40 = vsel %vm842_vm14, %v3485_v44, 0.0  ;;  %v4757_v11 = vmul.f32 0.5, %v4753_v48  ;;  %vm4553_vm8 = vcmp.lt.f32.partialorder %v4551_v34, 1.0  ;;  %v5588_v8 = vadd.f32 -0.5, %v4551_v34 }
 0xa2d   : > { %v4954_v18 = vsub.f32 %v8399_v5, %v8567_v32  ;;  %v3667_v15 = vadd.f32 %v3665_v30, %v9755_v50  ;;  %vm4554_vm9 = vcmp.lt.f32.partialorder %v4552_v20, 1.0  ;;  %v4557_v51 = vmul.f32 %v4555_v37, %v4551_v34 }
 0xa2e   : > { %v4955_v19 = vand.u32 2147483647, %v4953_v17  ;;  %v3675_v4 = vadd.f32 0.0009, %v3674_v9  ;;  %v4759_v61 = vmul.f32 %v4757_v11, %v4753_v48  ;;  %vm4755_vm12 = vcmp.lt.f32.partialorder %v4753_v48, 1.0 }
 0xa2f   : > { %vm4756_vm4 = vcmp.lt.f32.partialorder %v4754_v24, 1.0  ;;  %v5599_v30 = vadd.f32 -0.5, %v4754_v24  ;;  %v4956_v50 = vand.u32 2147483647, %v4954_v18  ;;  %v3488_v11 = vadd.f32 %v3487_v40, %v3486_v63 }
 0xa30   : > { %4580 = vrot.lane.b32.xlu0 %v8523_v43, %s9533_s16  ;;  %4578 = vrot.lane.b32.xlu1 %v8526_v39, %s9533_s16  ;;  %vm4957_vm1 = vcmp.lt.f32.partialorder %v4955_v19, 1.0 }
 0xa31   : > { %vm4958_vm3 = vcmp.lt.f32.partialorder %v4956_v50, 1.0 }
 0xa34   : > { %4588 = vrot.lane.b32.xlu0 %v8389_v31, %s9533_s16  ;;  %4586 = vrot.lane.b32.xlu1 %v8387_v7, %s9533_s16 }
 0xa38   : > { %4596 = vrot.lane.b32.xlu0 %v8523_v43, %s5908_s25  ;;  %4594 = vrot.lane.b32.xlu1 %v8526_v39, %s5908_s25 }
 0xa3c   : > { %4604 = vrot.lane.b32.xlu0 %v8389_v31, %s5908_s25  ;;  %4602 = vrot.lane.b32.xlu1 %v8387_v7, %s5908_s25 }
 0xa40   : > { %4782 = vrot.lane.b32.xlu0 %v8545_v57, %s9533_s16  ;;  %4780 = vrot.lane.b32.xlu1 %v8548_v26, %s9533_s16 }
 0xa44   : > { %4790 = vrot.lane.b32.xlu0 %v8395_v21, %s9533_s16  ;;  %4788 = vrot.lane.b32.xlu1 %v8391_v3, %s9533_s16 }
 0xa48   : > { %4798 = vrot.lane.b32.xlu0 %v8545_v57, %s5908_s25  ;;  %4796 = vrot.lane.b32.xlu1 %v8548_v26, %s5908_s25  ;;  %v4959_v57 = vmul.f32 0.5, %v4955_v19 }
 0xa4a   : > { %v4961_v34 = vmul.f32 %v4959_v57, %v4955_v19 }
 0xa4c   : > { %4806 = vrot.lane.b32.xlu0 %v8395_v21, %s5908_s25  ;;  %4804 = vrot.lane.b32.xlu1 %v8391_v3, %s5908_s25  ;;  %v5072_v21 = vmul.f32 4.0, %v8379_v23  ;;  %v4758_v23 = vmul.f32 0.5, %v4754_v24 }
 0xa4e   : > { %v8666_v13 = vadd.f32 %v5072_v21, %v4164_v49  ;;  %v4558_v49 = vmul.f32 %v4556_v16, %v4552_v20  ;;  %v5589_v21 = vadd.f32 -0.5, %v4552_v20 }
 0xa50   : > { %4984 = vrot.lane.b32.xlu0 %v8567_v32, %s9533_s16  ;;  %4982 = vrot.lane.b32.xlu1 %v8570_v0, %s9533_s16  ;;  %vm5074_vm7 = vcmp.eq.f32.partialorder %v8666_v13, 0.0 }
 0xa54   : > { %4992 = vrot.lane.b32.xlu0 %v8399_v5, %s9533_s16  ;;  %4990 = vrot.lane.b32.xlu1 %v8397_v29, %s9533_s16  ;;  %s9197_s16 = spop %5635 }
 0xa58   : > { %5000 = vrot.lane.b32.xlu0 %v8567_v32, %s5908_s25  ;;  %4998 = vrot.lane.b32.xlu1 %v8570_v0, %s5908_s25  ;;  %v5598_v0 = vadd.f32 -0.5, %v4753_v48 }
 0xa5c   : > { %5008 = vrot.lane.b32.xlu0 %v8399_v5, %s5908_s25  ;;  %5006 = vrot.lane.b32.xlu1 %v8397_v29, %s5908_s25  ;;  %v4760_v29 = vmul.f32 %v4758_v23, %v4754_v24  ;;  %v3668_v5 = vadd.f32 0.0001, %v3667_v15  ;;  %v4561_v23 = vsel %vm4553_vm8, %v4557_v51, %v5588_v8  ;;  %v9756_v24 = vmov 0   ;;  %s9199_s25 = spop %5637 }
 0xa5d   : > { %v4563_v20 = vmul.f32 %v9750_v42, %v4561_v23  ;;  %v5075_v40 = vsel %vm5074_vm7, 1, %v9756_v24  ;;  %vm5130_vm8 = vcmp.eq.f32.partialorder %v8666_v13, 2.0  ;;  %vm5102_vm7 = vcmp.eq.f32.partialorder %v8666_v13, 1.0  ;;  %s9201_s29 = spop %5639 }
 0xa5e   : > { %s9203_s10 = spop %5641 }
 0xa5f   : > { %s9205_s7 = spop %5643  ;;  %s1417_s5 = sadd.f32 %s9203_s10, %s9195_s8 }
 0xa60   : > { %s9207_s27 = spop %5645  ;;  %s1478_s20 = sadd.f32 %s9205_s7, %s9197_s16 }
 0xa61   : > { %s9209_s28 = spop %5647  ;;  %s1507_s2 = sadd.f32 %s9207_s27, %s9199_s25 }
 0xa62   : > { %s5650_s30 = spop %5649  ;;  %s1881_s8 = sadd.f32 %s9209_s28, %s9201_s29 }
 0xa63   : > { %s5652_s14 = spop %5651  ;;  %s1993_s24 = sadd.f32 %s5650_s30, %s1417_s5 }
 0xa64   : > { %s5654_s13 = spop %5653  ;;  %s2054_s0 = sadd.f32 %s5652_s14, %s1478_s20 }
 0xa65   : > { %s5656_s12 = spop %5655  ;;  %s2083_s10 = sadd.f32 %s5654_s13, %s1507_s2 }
 0xa66   : > { %s9211_s9 = spop %5665  ;;  %s2457_s25 = sadd.f32 %s5656_s12, %s1881_s8 }
 0xa67   : > { %s9213_s11 = spop %5667 }
 0xa68   : > { %s9219_s23 = spop %5669 }
 0xa69   : > { %s9221_s26 = spop %5671 }
 0xa6a   : > { %s5674_s1 = spop %5673 }
 0xa6b   : > { %s9228_s3 = spop %5675  ;;  %s3408_s29 = sadd.f32 %s5674_s1, %s9211_s9 }
 0xa6c   : > { %s3469_s2 = sadd.f32 %s9228_s3, %s9213_s11 }
 0xa72   : > { %v3951_v25 = vpop.permute.xlu0 %3950  ;;  %v3949_v35 = vpop.permute.xlu1 %3948 }
 0xa73   : > { %v3952_v12 = vsel %vm683_vm6, %v3949_v35, %v3951_v25  ;;  %v3953_v44 = vsel %vm683_vm6, %v3951_v25, %v3949_v35  ;;  %v8682_v25 = vmul.f32 %v3675_v4, %v3668_v5  ;;  %v4764_v35 = vsel %vm4756_vm4, %v4760_v29, %v5599_v30 }
 0xa74   : > { %v3954_v37 = vadd.f32 %v3952_v12, %v8415_v53  ;;  %v3955_v17 = vadd.f32 %v3953_v44, %v8417_v45  ;;  %v4562_v53 = vsel %vm4554_vm9, %v4558_v49, %v5589_v21  ;;  %v4763_v45 = vsel %vm4755_vm12, %v4759_v61, %v5598_v0 }
 0xa75   : > { %v4960_v12 = vmul.f32 0.5, %v4956_v50  ;;  %v5608_v5 = vadd.f32 -0.5, %v4955_v19  ;;  %v4564_v0 = vmul.f32 %v9753_v38, %v4562_v53  ;;  %5833 = vrcp.f32 %v8682_v25 }
 0xa76   : > { %v3959_v32 = vpop.permute.xlu0 %3958  ;;  %v3957_v3 = vpop.permute.xlu1 %3956  ;;  %v4765_v48 = vmul.f32 %v9750_v42, %v4763_v45  ;;  %v4766_v51 = vmul.f32 %v9753_v38, %v4764_v35  ;;  %v5609_v61 = vadd.f32 -0.5, %v4956_v50 }
 0xa77   : > { %v3960_v16 = vsel %vm709_vm2, %v3957_v3, %v3959_v32  ;;  %v3961_v9 = vsel %vm709_vm2, %v3959_v32, %v3957_v3  ;;  %v4962_v49 = vmul.f32 %v4960_v12, %v4956_v50  ;;  %v4965_v30 = vsel %vm4957_vm1, %v4961_v34, %v5608_v5 }
 0xa78   : > { %v3962_v18 = vadd.f32 %v3960_v16, %v3954_v37  ;;  %v3963_v15 = vadd.f32 %v3961_v9, %v3955_v17  ;;  %v5079_v9 = vrot.slane %v5075_v40, %v6009_v6  ;;  %v4767_v35 = vsel %vm842_vm14, %v4765_v48, 0.0 }
 0xa79   : > { %v4768_v34 = vsel %vm842_vm14, %v4766_v51, 0.0  ;;  %v4966_v5 = vsel %vm4958_vm3, %v4962_v49, %v5609_v61  ;;  %vm5186_vm3 = vcmp.eq.f32.partialorder %v8666_v13, 4.0 }
 0xa7a   : > { %v8688_v44 = vmul.f32 0.11111111, %v3962_v18  ;;  %v8690_v26 = vmul.f32 0.11111111, %v3963_v15  ;;  %v3987_v3 = vpop.permute.xlu0 %3986  ;;  %v3985_v32 = vpop.permute.xlu1 %3984  ;;  %v3830_v18 = vsel %vm842_vm14, %v8659_v14, 0.0  ;;  %v5083_v15 = vrot.slane %v5075_v40, %v6147_v55 }
 0xa7b   : > { %v3988_v63 = vsel %vm683_vm6, %v3985_v32, %v3987_v3  ;;  %v3989_v29 = vsel %vm683_vm6, %v3987_v3, %v3985_v32  ;;  %v4967_v14 = vmul.f32 %v9750_v42, %v4965_v30  ;;  %vm8726_vm15 = vcmp.ne.s32.totalorder %v5079_v9, 0 }
 0xa7c   : > { %v4002_v57 = vmul.f32 %v8688_v44, %v8688_v44  ;;  %v4003_v8 = vmul.f32 %v8690_v26, %v8690_v26  ;;  %v3990_v19 = vadd.f32 %v3988_v63, %v8441_v59  ;;  %v3991_v37 = vadd.f32 %v3989_v29, %v8443_v28  ;;  %vm8747_vm9 = vmand %vm291_vm10, %vm8726_vm15 }
 0xa7d   : > { %v4565_v59 = vsel %vm842_vm14, %v4563_v20, 0.0  ;;  %v4566_v28 = vsel %vm842_vm14, %v4564_v0, 0.0  ;;  %v3652_v29 = vcombine.low %v8632_v1, %v8634_v52  ;;  %vm8732_vm11 = vcmp.ne.s32.totalorder %v5083_v15, 0  ;;  %v9766_v15 = vld [vmem:[#allocation36_spill] sm:$0xff] }
 0xa7e   : > { %v3995_v21 = vpop.permute.xlu0 %3994  ;;  %v3993_v4 = vpop.permute.xlu1 %3992  ;;  %v4097_v53 = vcombine.low %v4002_v57, %v4003_v8  ;;  %v4968_v49 = vmul.f32 %v9753_v38, %v4966_v5  ;;  %v8739_v30 = vadd.f32 %v3830_v18, %v8662_v47  ;;  %v8741_v1 = vadd.f32 %v4566_v28, %v4565_v59  ;;  %v9764_v47 = vld [vmem:[#allocation9_spill] sm:$0xff] }
 0xa7f   : > { %v3996_v17 = vsel %vm709_vm2, %v3993_v4, %v3995_v21  ;;  %v3997_v16 = vsel %vm709_vm2, %v3995_v21, %v3993_v4  ;;  %vm9765_vm12 = vcmp.lt.f32.partialorder %v9764_v47, 8.0  ;;  %v5131_v18 = vsel %vm5130_vm8, 1, %v9756_v24 }
 0xa80   : > { %v3998_v23 = vadd.f32 %v3996_v17, %v3990_v19  ;;  %v3999_v45 = vadd.f32 %v3997_v16, %v3991_v37  ;;  %3489 = vadd.xlane.f32.xlu1 %v3488_v11  ;;  %v4098_v42 = vrot.slane %v4097_v53, 6  ;;  %v5834_v19 = vpop.eup %5833  ;;  %v8755_v17 = vadd.f32 %v4768_v34, %v4767_v35  ;;  %vm5087_vm4 = vmand %vm9765_vm12, %vm8732_vm11 }
 0xa81   : > { %v3653_v16 = vrot.slane %v3652_v29, 7  ;;  %v3678_v59 = vmul.f32 %v5834_v19, %v8682_v25  ;;  %v4970_v28 = vsel %vm842_vm14, %v4968_v49, 0.0  ;;  %v5088_v34 = vsel %vm8747_vm9, 1.0, %v9734_v58  ;;  %v9769_v29 = vld [vmem:[#allocation28_spill] sm:$0xff]  ;;  %vm9774_vm8 = vmmov %vm9765_vm12 }
 0xa82   : > { %v4000_v12 = vmul.f32 0.11111111, %v3998_v23  ;;  %v3628_v3 = vpop.permute.xlu0 %3627  ;;  %v3626_v32 = vpop.permute.xlu1 %3625  ;;  %v4001_v63 = vmul.f32 0.11111111, %v3999_v45  ;;  %v4969_v23 = vsel %vm842_vm14, %v4967_v14, 0.0  ;;  %v4100_v53 = vadd.f32 %v4098_v42, %v9766_v15  ;;  %v9767_v14 = vld [vmem:[#allocation38_spill] sm:$0xff] }
 0xa83   : > { %v3629_v20 = vsel %vm683_vm6, %v3626_v32, %v3628_v3  ;;  %v3630_v11 = vsel %vm683_vm6, %v3628_v3, %v3626_v32  ;;  %v5089_v5 = vsel %vm5087_vm4, 1.0, %v9734_v58  ;;  %v3679_v42 = vsub.f32 2.0, %v3678_v59 }
 0xa84   : > { %v4004_v48 = vsub.f32 %v4000_v12, %v4002_v57  ;;  %v3633_v40 = vcombine.low %v3629_v20, %v3630_v11  ;;  %v4005_v51 = vsub.f32 %v4001_v63, %v4003_v8  ;;  %v5135_v11 = vrot.slane %v5131_v18, %v6009_v6 }
 0xa85   : > { %v5091_v57 = vsel %vm842_vm14, %v5089_v5, 0.0  ;;  %vm5158_vm11 = vcmp.eq.f32.partialorder %v8666_v13, 3.0 }
 0xa86   : > { %v3634_v21 = vrot.slane %v3633_v40, 7  ;;  %v3640_v4 = vpop.permute.xlu0 %3639  ;;  %v3638_v61 = vpop.permute.xlu1 %3637  ;;  %v4104_v38 = vcombine.low %v4004_v48, %v4005_v51  ;;  %v3657_v48 = vmul.f32 %v3653_v16, %v9769_v29  ;;  %v4101_v51 = vadd.f32 0.0001, %v4100_v53 }
 0xa87   : > { %v3641_v8 = vsel %vm709_vm2, %v3638_v61, %v3640_v4  ;;  %v3642_v37 = vsel %vm709_vm2, %v3640_v4, %v3638_v61  ;;  %vm5140_vm1 = vcmp.ne.s32.totalorder %v5135_v11, 0 }
 0xa88   : > { %v3645_v9 = vcombine.low %v3641_v8, %v3642_v37  ;;  %v4105_v45 = vrot.slane %v4104_v38, 6  ;;  %v3636_v35 = vadd.f32 %v3634_v21, %v8458_v33  ;;  %v9768_v33 = vld [vmem:[#allocation25_spill] sm:$0xff]  ;;  %v5090_v21 = vsel %vm842_vm14, %v5088_v34, 0.0  ;;  %vm5142_vm15 = vmand %vm291_vm10, %vm5140_vm1 }
 0xa89   : > { %v3655_v0 = vmul.f32 %v3653_v16, %v9768_v33  ;;  %v5139_v38 = vrot.slane %v5131_v18, %v6147_v55  ;;  %v4085_v8 = vcombine.low %v8688_v44, %v8690_v26  ;;  %v3658_v26 = vadd.f32 0.0001, %v3657_v48 }
 0xa8a   : > { %v3646_v12 = vrot.slane %v3645_v9, 7  ;;  %v4061_v3 = vpop.permute.xlu0 %4060  ;;  %v4059_v32 = vpop.permute.xlu1 %4058  ;;  %v4107_v63 = vadd.f32 %v4105_v45, %v9767_v14  ;;  %v8792_v45 = vadd.f32 %v4970_v28, %v4969_v23  ;;  %v3680_v44 = vmul.f32 %v5834_v19, %v3679_v42  ;;  %v9772_v42 = vld [vmem:[#allocation43_spill] sm:$0xff] }
 0xa8b   : > { %v4062_v25 = vsel %vm683_vm6, %v4059_v32, %v4061_v3  ;;  %v4063_v20 = vsel %vm683_vm6, %v4061_v3, %v4059_v32  ;;  %v8797_v32 = vadd.f32 %v5091_v57, %v5090_v21  ;;  %v4086_v34 = vrot.slane %v4085_v8, 6 }
 0xa8c   : > { %v3648_v40 = vadd.f32 %v3646_v12, %v3636_v35  ;;  %v4066_v50 = vcombine.low %v4062_v25, %v4063_v20  ;;  %v4108_v49 = vadd.f32 0.0009, %v4107_v63  ;;  %v8795_v35 = vsel %vm5102_vm7, 1, %v9756_v24 }
 0xa8d   : > { %v8803_v23 = vsel %vm5186_vm3, 1, %v9756_v24  ;;  %v5107_v19 = vrot.slane %v8795_v35, %v6009_v6  ;;  %v5111_v33 = vrot.slane %v8795_v35, %v6147_v55  ;;  %v8832_v57 = vsel %vm5158_vm11, 1, %v9756_v24 }
 0xa8e   : > { %v3649_v4 = vmul.f32 0.11111111, %v3648_v40  ;;  %v4073_v61 = vpop.permute.xlu0 %4072  ;;  %v4109_v37 = vmul.f32 %v4108_v49, %v4101_v51  ;;  %v4067_v16 = vrot.slane %v4066_v50, 6  ;;  %v4071_v9 = vpop.permute.xlu1 %4070  ;;  %v5191_v40 = vrot.slane %v8803_v23, %v6009_v6  ;;  %v9773_v49 = vld [vmem:[#allocation35_spill] sm:$0xff] }
 0xa8f   : > { %v4074_v15 = vsel %vm709_vm2, %v4071_v9, %v4073_v61  ;;  %v4075_v53 = vsel %vm709_vm2, %v4073_v61, %v4071_v9  ;;  %vm8805_vm2 = vcmp.ne.s32.totalorder %v5139_v38, 0  ;;  %v5195_v50 = vrot.slane %v8803_v23, %v6147_v55 }
 0xa90   : > { %v3656_v59 = vsub.f32 %v3649_v4, %v3655_v0  ;;  %5835 = vrcp.f32 %v4109_v37  ;;  %v4078_v18 = vcombine.low %v4074_v15, %v4075_v53  ;;  %v4069_v5 = vadd.f32 %v4067_v16, %v8475_v27  ;;  %vm5143_vm9 = vmand %vm9774_vm8, %vm8805_vm2 }
 0xa91   : > { %v5144_v27 = vsel %vm5142_vm15, 1.0, %v9734_v58  ;;  %v4088_v51 = vmul.f32 %v4086_v34, %v9772_v42  ;;  %v4090_v21 = vmul.f32 %v4086_v34, %v9773_v49  ;;  %v5163_v34 = vrot.slane %v8832_v57, %v6009_v6 }
 0xa92   : > { %v3659_v12 = vmul.f32 2.0, %v3656_v59  ;;  %v3845_v3 = vpop.permute.xlu0 %3844  ;;  %v4079_v14 = vrot.slane %v4078_v18, 6  ;;  %v3843_v63 = vpop.permute.xlu1 %3842  ;;  %v5167_v49 = vrot.slane %v8832_v57, %v6147_v55  ;;  %vm8875_vm7 = vcmp.ne.s32.totalorder %v5107_v19, 0 }
 0xa93   : > { %v3846_v11 = vsel %vm620_vm0, %v3843_v63, %v3845_v3  ;;  %v3847_v29 = vsel %vm620_vm0, %v3845_v3, %v3843_v63  ;;  %v5145_v3 = vsel %vm5143_vm9, 1.0, %v9734_v58  ;;  %vm5114_vm15 = vmand %vm291_vm10, %vm8875_vm7  ;;  %vm9024_vm7 = vcmp.ne.s32.totalorder %v5191_v40, 0 }
 0xa94   : > { %v3660_v28 = vadd.f32 0.0009, %v3659_v12  ;;  %v4081_v20 = vadd.f32 %v4079_v14, %v4069_v5  ;;  %v3848_v8 = vsub.f32 %v3846_v11, %v8493_v41  ;;  %v3849_v15 = vsub.f32 %v3847_v29, %v8489_v10 }
 0xa95   : > { %v4091_v14 = vadd.f32 0.0001, %v4090_v21 }
 0xa96   : > { %v3661_v0 = vmul.f32 %v3660_v28, %v3658_v26  ;;  %v3853_v48 = vpop.permute.xlu0 %3852  ;;  %v4082_v4 = vmul.f32 0.11111111, %v4081_v20  ;;  %v3851_v61 = vpop.permute.xlu1 %3850 }
 0xa97   : > { %v3854_v16 = vsel %vm620_vm0, %v3851_v61, %v3853_v48  ;;  %v3855_v9 = vsel %vm620_vm0, %v3853_v48, %v3851_v61 }
 0xa98   : > { %v3681_v38 = vmul.f32 %v3680_v44, %v3661_v0  ;;  %v4089_v59 = vsub.f32 %v4082_v4, %v4088_v51  ;;  %v3856_v53 = vsub.f32 %v3854_v16, %v8505_v60  ;;  %v3857_v18 = vsub.f32 %v3855_v9, %v8501_v46 }
 0xa99   : > { %v8844_v44 = vsel %vm842_vm14, %v5144_v27, 0.0 }
 0xa9a   : > { %v3682_v26 = vsub.f32 1.0, %v3681_v38  ;;  %v3861_v12 = vpop.permute.xlu0 %3860  ;;  %v5836_v5 = vpop.eup %5835  ;;  %v4092_v63 = vmul.f32 2.0, %v4089_v59  ;;  %v3874_v28 = vsub.f32 %v3856_v53, %v3848_v8  ;;  %v3875_v25 = vsub.f32 %v3857_v18, %v3849_v15 }
 0xa9b   : > { %v3859_v20 = vpop.permute.xlu1 %3858  ;;  %v4111_v11 = vmul.f32 %v5836_v5, %v4109_v37  ;;  %v8856_v37 = vsel %vm842_vm14, %v5145_v3, 0.0 }
 0xa9c   : > { %v3683_v0 = vmul.f32 0.5, %v3682_v26  ;;  %v3862_v29 = vsel %vm683_vm6, %v3859_v20, %v3861_v12  ;;  %v3863_v48 = vsel %vm683_vm6, %v3861_v12, %v3859_v20  ;;  %v4093_v42 = vadd.f32 0.0009, %v4092_v63 }
 0xa9d   : > { %v3876_v27 = vand.u32 2147483647, %v3874_v28  ;;  %v3877_v51 = vand.u32 2147483647, %v3875_v25  ;;  %v4112_v4 = vsub.f32 2.0, %v4111_v11  ;;  %v3864_v61 = vsub.f32 %v3862_v29, %v8493_v41 }
 0xa9e   : > { %v3684_v21 = vmax.f32 %v3683_v0, 0.0  ;;  %v3869_v38 = vpop.permute.xlu0 %3868  ;;  %v4094_v8 = vmul.f32 %v4093_v42, %v4091_v14  ;;  %v3865_v59 = vsub.f32 %v3863_v48, %v8489_v10 }
 0xa9f   : > { %v3880_v16 = vmul.f32 0.5, %v3876_v27  ;;  %v3881_v9 = vmul.f32 0.5, %v3877_v51  ;;  %v3867_v15 = vpop.permute.xlu1 %3866  ;;  %v4113_v18 = vmul.f32 %v5836_v5, %v4112_v4  ;;  %vm3878_vm12 = vcmp.lt.f32.partialorder %v3876_v27, 1.0 }
 0xaa0   : > { %v3685_v53 = vmin.f32 %v3684_v21, 1.0  ;;  %v3870_v26 = vsel %vm683_vm6, %v3867_v15, %v3869_v38  ;;  %v3871_v12 = vsel %vm683_vm6, %v3869_v38, %v3867_v15  ;;  %vm3879_vm4 = vcmp.lt.f32.partialorder %v3877_v51, 1.0 }
 0xaa1   : > { %v3872_v41 = vsub.f32 %v3870_v26, %v8505_v60  ;;  %v3873_v63 = vsub.f32 %v3871_v12, %v8501_v46  ;;  %v3882_v3 = vmul.f32 %v3880_v16, %v3876_v27  ;;  %v4114_v14 = vmul.f32 %v4113_v18, %v4094_v8 }
 0xaa2   : > { %v4581_v28 = vpop.permute.xlu0 %4580  ;;  %v3883_v25 = vmul.f32 %v3881_v9, %v3877_v51  ;;  %v5578_v10 = vadd.f32 -0.5, %v3876_v27  ;;  %v5579_v0 = vadd.f32 -0.5, %v3877_v51  ;;  %v3693_v29 = vrot.slane %v3685_v53, %v9611_v56 }
 0xaa3   : > { %v3903_v20 = vsub.f32 %v3872_v41, %v3864_v61  ;;  %v3904_v11 = vsub.f32 %v3873_v63, %v3865_v59  ;;  %v4579_v5 = vpop.permute.xlu1 %4578  ;;  %v4115_v48 = vsub.f32 1.0, %v4114_v14 }
 0xaa4   : > { %v4582_v42 = vsel %vm620_vm0, %v4579_v5, %v4581_v28  ;;  %v4583_v46 = vsel %vm620_vm0, %v4581_v28, %v4579_v5  ;;  %v3886_v60 = vsel %vm3878_vm12, %v3882_v3, %v5578_v10  ;;  %v3887_v9 = vsel %vm3879_vm4, %v3883_v25, %v5579_v0 }
 0xaa5   : > { %v3905_v4 = vand.u32 2147483647, %v3903_v20  ;;  %v3906_v21 = vand.u32 2147483647, %v3904_v11  ;;  %v4584_v38 = vsub.f32 %v4582_v42, %v8526_v39  ;;  %v4585_v27 = vsub.f32 %v4583_v46, %v8523_v43  ;;  %v9777_v42 = vld [vmem:[#allocation30_spill] sm:$0xff] }
 0xaa6   : > { %v4116_v8 = vmul.f32 0.5, %v4115_v48  ;;  %v4589_v16 = vpop.permute.xlu0 %4588  ;;  %v3888_v59 = vmul.f32 %v3886_v60, %v9713_v62  ;;  %v3694_v15 = vcombine.high %v3693_v29, %v3693_v29  ;;  %v3889_v12 = vmul.f32 %v3887_v9, %v9714_v36 }
 0xaa7   : > { %v3909_v53 = vmul.f32 0.5, %v3905_v4  ;;  %v3910_v18 = vmul.f32 0.5, %v3906_v21  ;;  %v4587_v26 = vpop.permute.xlu1 %4586  ;;  %vm3907_vm1 = vcmp.lt.f32.partialorder %v3905_v4, 1.0  ;;  %vm3908_vm3 = vcmp.lt.f32.partialorder %v3906_v21, 1.0 }
 0xaa8   : > { %v4117_v41 = vmax.f32 %v4116_v8, 0.0  ;;  %v4590_v19 = vsel %vm620_vm0, %v4587_v26, %v4589_v16  ;;  %v4591_v63 = vsel %vm620_vm0, %v4589_v16, %v4587_v26  ;;  %v3890_v3 = vsel %vm842_vm14, %v3888_v59, 0.0 }
 0xaa9   : > { %v4592_v51 = vsub.f32 %v4590_v19, %v8387_v7  ;;  %v4593_v14 = vsub.f32 %v4591_v63, %v8389_v31  ;;  %v3891_v28 = vsel %vm842_vm14, %v3889_v12, 0.0  ;;  %v3701_v25 = vrot.slane %v3694_v15, %v9611_v56 }
 0xaaa   : > { %v4118_v10 = vmin.f32 %v4117_v41, 1.0  ;;  %v3892_v20 = vadd.f32 %v3891_v28, %v3890_v3  ;;  %v4597_v11 = vpop.permute.xlu0 %4596  ;;  %v3911_v5 = vmul.f32 %v3909_v53, %v3905_v4  ;;  %v3912_v60 = vmul.f32 %v3910_v18, %v3906_v21 }
 0xaab   : > { %v4610_v0 = vsub.f32 %v4592_v51, %v4584_v38  ;;  %v4611_v29 = vsub.f32 %v4593_v14, %v4585_v27  ;;  %v4595_v48 = vpop.permute.xlu1 %4594  ;;  %v3703_v46 = vmul.f32 %v3701_v25, %v9777_v42  ;;  %v5580_v9 = vadd.f32 -0.5, %v3905_v4 }
 0xaac   : > { %3893 = vadd.xlane.f32.xlu1 %v3892_v20  ;;  %v4598_v8 = vsel %vm683_vm6, %v4595_v48, %v4597_v11  ;;  %v4599_v16 = vsel %vm683_vm6, %v4597_v11, %v4595_v48  ;;  %v5581_v59 = vadd.f32 -0.5, %v3906_v21  ;;  %vm5242_vm12 = vcmp.eq.f32.partialorder %v8666_v13, 6.0 }
 0xaad   : > { %v4612_v15 = vand.u32 2147483647, %v4610_v0  ;;  %v4613_v26 = vand.u32 2147483647, %v4611_v29  ;;  %v4600_v12 = vsub.f32 %v4598_v8, %v8526_v39  ;;  %v4601_v38 = vsub.f32 %v4599_v16, %v8523_v43 }
 0xaae   : > { %v4605_v27 = vpop.permute.xlu0 %4604  ;;  %v3708_v53 = vrot.slane %v3703_v46, %v6009_v6  ;;  %v3712_v18 = vrot.slane %v3703_v46, %v6147_v55  ;;  %v3915_v41 = vsel %vm3907_vm1, %v3911_v5, %v5580_v9  ;;  %v3916_v19 = vsel %vm3908_vm3, %v3912_v60, %v5581_v59 }
 0xaaf   : > { %v4616_v63 = vmul.f32 0.5, %v4612_v15  ;;  %v4617_v3 = vmul.f32 0.5, %v4613_v26  ;;  %v4603_v51 = vpop.permute.xlu1 %4602  ;;  %v3917_v14 = vmul.f32 %v3915_v41, %v9749_v22  ;;  %v3918_v28 = vmul.f32 %v3916_v19, %v9751_v54 }
 0xab0   : > { %v4606_v39 = vsel %vm683_vm6, %v4603_v51, %v4605_v27  ;;  %v4607_v43 = vsel %vm683_vm6, %v4605_v27, %v4603_v51  ;;  %v3715_v20 = vsel %vm7585_vm5, %v3708_v53, 0.0  ;;  %v3716_v21 = vsel %vm7592_vm13, %v3712_v18, 0.0 }
 0xab1   : > { %v4608_v11 = vsub.f32 %v4606_v39, %v8387_v7  ;;  %v4609_v5 = vsub.f32 %v4607_v43, %v8389_v31  ;;  %v3717_v0 = vsel %vm842_vm14, %v3715_v20, 0.0  ;;  %v3718_v29 = vsel %vm842_vm14, %v3716_v21, 0.0  ;;  %v9781_v21 = vld [vmem:[#allocation22_spill] sm:$0xff] }
 0xab2   : > { %v3719_v48 = vadd.f32 %v3718_v29, %v3717_v0  ;;  %v4783_v46 = vpop.permute.xlu0 %4782  ;;  %v3919_v60 = vsel %vm842_vm14, %v3917_v14, 0.0  ;;  %v3920_v8 = vsel %vm842_vm14, %v3918_v28, 0.0  ;;  %v4126_v16 = vrot.slane %v4118_v10, %v9611_v56 }
 0xab3   : > { %v4639_v61 = vsub.f32 %v4608_v11, %v4600_v12  ;;  %v4640_v9 = vsub.f32 %v4609_v5, %v4601_v38  ;;  %v4781_v59 = vpop.permute.xlu1 %4780  ;;  %v3921_v27 = vadd.f32 %v3920_v8, %v3919_v60  ;;  %v8924_v7 = vsel %vm5114_vm15, 1.0, %v9734_v58  ;;  %v9780_v12 = vld [vmem:[#allocation21_spill] sm:$0xff]  ;;  %v9783_v60 = vld [vmem:[#allocation18_spill] sm:$0xff] }
 0xab4   : > { %3720 = vadd.xlane.f32.xlu0 %v3719_v48  ;;  %v4784_v31 = vsel %vm620_vm0, %v4781_v59, %v4783_v46  ;;  %v4785_v53 = vsel %vm620_vm0, %v4783_v46, %v4781_v59  ;;  %v4133_v18 = vrot.slane %v4126_v16, %v9611_v56  ;;  %vm4614_vm2 = vcmp.lt.f32.partialorder %v4612_v15, 1.0  ;;  %v9782_v48 = vld [vmem:[#allocation17_spill] sm:$0xff] }
 0xab5   : > { %v8931_v41 = vand.u32 2147483647, %v4639_v61  ;;  %v8933_v10 = vand.u32 2147483647, %v4640_v9  ;;  %v4786_v38 = vsub.f32 %v4784_v31, %v9780_v12  ;;  %vm4615_vm11 = vcmp.lt.f32.partialorder %v4613_v26, 1.0 }
 0xab6   : > { %v4791_v19 = vpop.permute.xlu0 %4790  ;;  %v4134_v51 = vcombine.high %v4133_v18, %v4133_v18  ;;  %v4618_v14 = vmul.f32 %v4616_v63, %v4612_v15  ;;  %v4619_v28 = vmul.f32 %v4617_v3, %v4613_v26  ;;  %v5590_v39 = vadd.f32 -0.5, %v4612_v15 }
 0xab7   : > { %v4645_v43 = vmul.f32 0.5, %v8931_v41  ;;  %v4646_v20 = vmul.f32 0.5, %v8933_v10  ;;  %v4787_v11 = vsub.f32 %v4785_v53, %v9781_v21  ;;  %v4789_v56 = vpop.permute.xlu1 %4788  ;;  %v5591_v5 = vadd.f32 -0.5, %v4613_v26 }
 0xab8   : > { %3832 = vadd.xlane.f32.xlu0 %v8739_v30  ;;  %v4792_v0 = vsel %vm620_vm0, %v4789_v56, %v4791_v19  ;;  %v4793_v29 = vsel %vm620_vm0, %v4791_v19, %v4789_v56  ;;  %v4136_v63 = vmul.f32 %v4134_v51, %v9777_v42  ;;  %v4622_v3 = vsel %vm4614_vm2, %v4618_v14, %v5590_v39 }
 0xab9   : > { %v4794_v46 = vsub.f32 %v4792_v0, %v9782_v48  ;;  %v4795_v8 = vsub.f32 %v4793_v29, %v9783_v60  ;;  %v4623_v16 = vsel %vm4615_vm11, %v4619_v28, %v5591_v5  ;;  %v4624_v61 = vmul.f32 %v4622_v3, %v9713_v62 }
 0xaba   : > { %v4141_v30 = vrot.slane %v4136_v63, %v6009_v6  ;;  %v4145_v9 = vrot.slane %v4136_v63, %v6147_v55  ;;  %v4799_v59 = vpop.permute.xlu0 %4798  ;;  %v4625_v31 = vmul.f32 %v4623_v16, %v9714_v36  ;;  %vm4643_vm8 = vcmp.lt.f32.partialorder %v8931_v41, 1.0 }
 0xabb   : > { %v4812_v42 = vsub.f32 %v4794_v46, %v4786_v38  ;;  %v4813_v15 = vsub.f32 %v4795_v8, %v4787_v11  ;;  %v4797_v53 = vpop.permute.xlu1 %4796  ;;  %v4626_v18 = vsel %vm842_vm14, %v4624_v61, 0.0  ;;  %vm4644_vm9 = vcmp.lt.f32.partialorder %v8933_v10, 1.0 }
 0xabc   : > { %3922 = vadd.xlane.f32.xlu0 %v3921_v27  ;;  %v4148_v26 = vsel %vm7585_vm5, %v4141_v30, 0.0  ;;  %v4149_v19 = vsel %vm7592_vm13, %v4145_v9, 0.0  ;;  %v4800_v51 = vsel %vm683_vm6, %v4797_v53, %v4799_v59  ;;  %v4801_v14 = vsel %vm683_vm6, %v4799_v59, %v4797_v53 }
 0xabd   : > { %v4814_v38 = vand.u32 2147483647, %v4812_v42  ;;  %v4815_v28 = vand.u32 2147483647, %v4813_v15  ;;  %v4150_v39 = vsel %vm842_vm14, %v4148_v26, 0.0  ;;  %v4151_v11 = vsel %vm842_vm14, %v4149_v19, 0.0 }
 0xabe   : > { %v4152_v27 = vadd.f32 %v4151_v11, %v4150_v39  ;;  %v4802_v25 = vsub.f32 %v4800_v51, %v9780_v12  ;;  %v4627_v4 = vsel %vm842_vm14, %v4625_v31, 0.0  ;;  %v4807_v56 = vpop.permute.xlu0 %4806  ;;  %v4647_v5 = vmul.f32 %v4645_v43, %v8931_v41 }
 0xabf   : > { %v4818_v0 = vmul.f32 0.5, %v4814_v38  ;;  %v4819_v29 = vmul.f32 0.5, %v4815_v28  ;;  %v4803_v63 = vsub.f32 %v4801_v14, %v9781_v21  ;;  %v4805_v3 = vpop.permute.xlu1 %4804  ;;  %v4648_v46 = vmul.f32 %v4646_v20, %v8933_v10 }
 0xac0   : > { %4153 = vadd.xlane.f32.xlu1 %v4152_v27  ;;  %4568 = vadd.xlane.f32.xlu0 %v8741_v1  ;;  %v4808_v8 = vsel %vm683_vm6, %v4805_v3, %v4807_v56  ;;  %v4809_v12 = vsel %vm683_vm6, %v4807_v56, %v4805_v3  ;;  %v5592_v16 = vadd.f32 -0.5, %v8931_v41  ;;  %v5593_v43 = vadd.f32 -0.5, %v8933_v10  ;;  %v9784_v27 = vld [vmem:[#allocation19_spill] sm:$0xff] }
 0xac1   : > { %v4628_v61 = vadd.f32 %v4627_v4, %v4626_v18  ;;  %v4810_v30 = vsub.f32 %v4808_v8, %v9782_v48  ;;  %v4811_v21 = vsub.f32 %v4809_v12, %v9783_v60  ;;  %vm4816_vm5 = vcmp.lt.f32.partialorder %v4814_v38, 1.0  ;;  %v9785_v12 = vld [vmem:[#allocation7_spill] sm:$0xff] }
 0xac2   : > { %v4651_v20 = vsel %vm4643_vm8, %v4647_v5, %v5592_v16  ;;  %v4652_v1 = vsel %vm4644_vm9, %v4648_v46, %v5593_v43  ;;  %v4985_v9 = vpop.permute.xlu0 %4984  ;;  %v4820_v59 = vmul.f32 %v4818_v0, %v4814_v38  ;;  %v4821_v31 = vmul.f32 %v4819_v29, %v4815_v28  ;;  %v9786_v43 = vld [vmem:[#allocation58_spill] sm:$0xff] }
 0xac3   : > { %v4841_v42 = vsub.f32 %v4810_v30, %v4802_v25  ;;  %v4842_v15 = vsub.f32 %v4811_v21, %v4803_v63  ;;  %v4653_v53 = vmul.f32 %v4651_v20, %v9749_v22  ;;  %v4654_v18 = vmul.f32 %v4652_v1, %v9751_v54  ;;  %v4983_v26 = vpop.permute.xlu1 %4982  ;;  %v9787_v30 = vld [vmem:[#allocation59_spill] sm:$0xff] }
 0xac4   : > { %4629 = vadd.xlane.f32.xlu1 %v4628_v61  ;;  %v4986_v48 = vsel %vm620_vm0, %v4983_v26, %v4985_v9  ;;  %vm4817_vm13 = vcmp.lt.f32.partialorder %v4815_v28, 1.0  ;;  %v5600_v41 = vadd.f32 -0.5, %v4814_v38  ;;  %v5601_v60 = vadd.f32 -0.5, %v4815_v28 }
 0xac5   : > { %v4843_v19 = vand.u32 2147483647, %v4841_v42  ;;  %v4844_v10 = vand.u32 2147483647, %v4842_v15  ;;  %v4655_v51 = vsel %vm842_vm14, %v4653_v53, 0.0  ;;  %v4656_v14 = vsel %vm842_vm14, %v4654_v18, 0.0 }
 0xac6   : > { %v4657_v39 = vadd.f32 %v4656_v14, %v4655_v51  ;;  %v4987_v11 = vsel %vm620_vm0, %v4985_v9, %v4983_v26  ;;  %v4988_v25 = vsub.f32 %v4986_v48, %v9784_v27  ;;  %v4993_v4 = vpop.permute.xlu0 %4992  ;;  %v4824_v56 = vsel %vm4816_vm5, %v4820_v59, %v5600_v41 }
 0xac7   : > { %v4847_v5 = vmul.f32 0.5, %v4843_v19  ;;  %v4848_v0 = vmul.f32 0.5, %v4844_v10  ;;  %v4991_v29 = vpop.permute.xlu1 %4990  ;;  %v4825_v63 = vsel %vm4817_vm13, %v4821_v31, %v5601_v60  ;;  %v4826_v28 = vmul.f32 %v4824_v56, %v9713_v62 }
 0xac8   : > { %4658 = vadd.xlane.f32.xlu0 %v4657_v39  ;;  %4770 = vadd.xlane.f32.xlu1 %v8755_v17  ;;  %v4994_v3 = vsel %vm620_vm0, %v4991_v29, %v4993_v4  ;;  %v4995_v46 = vsel %vm620_vm0, %v4993_v4, %v4991_v29  ;;  %v4827_v8 = vmul.f32 %v4825_v63, %v9714_v36  ;;  %v9005_v38 = vsel %vm5242_vm12, 1, %v9756_v24 }
 0xac9   : > { %v4989_v16 = vsub.f32 %v4987_v11, %v9785_v12  ;;  %v4996_v61 = vsub.f32 %v4994_v3, %v9786_v43  ;;  %v4997_v21 = vsub.f32 %v4995_v46, %v9787_v30  ;;  %v4828_v17 = vsel %vm842_vm14, %v4826_v28, 0.0 }
 0xaca   : > { %v4829_v20 = vsel %vm842_vm14, %v4827_v8, 0.0  ;;  %v5001_v1 = vpop.permute.xlu0 %5000  ;;  %v4849_v9 = vmul.f32 %v4847_v5, %v4843_v19  ;;  %v4850_v59 = vmul.f32 %v4848_v0, %v4844_v10  ;;  %v5602_v31 = vadd.f32 -0.5, %v4843_v19 }
 0xacb   : > { %v5014_v42 = vsub.f32 %v4996_v61, %v4988_v25  ;;  %v5015_v15 = vsub.f32 %v4997_v21, %v4989_v16  ;;  %v4830_v53 = vadd.f32 %v4829_v20, %v4828_v17  ;;  %v4999_v18 = vpop.permute.xlu1 %4998  ;;  %vm4845_vm0 = vcmp.lt.f32.partialorder %v4843_v19, 1.0 }
 0xacc   : > { %vm9015_vm4 = vcmp.ne.s32.totalorder %v5111_v33, 0  ;;  %v5002_v48 = vsel %vm683_vm6, %v4999_v18, %v5001_v1  ;;  %v5603_v41 = vadd.f32 -0.5, %v4844_v10  ;;  %v4853_v60 = vsel %vm4845_vm0, %v4849_v9, %v5602_v31  ;;  %vm9093_vm0 = vmand %vm291_vm10, %vm9024_vm7 }
 0xacd   : > { %v5016_v19 = vand.u32 2147483647, %v5014_v42  ;;  %v5017_v14 = vand.u32 2147483647, %v5015_v15  ;;  %4831 = vadd.xlane.f32.xlu0 %v4830_v53  ;;  %v5003_v35 = vsel %vm683_vm6, %v5001_v1, %v4999_v18  ;;  %vm4846_vm1 = vcmp.lt.f32.partialorder %v4844_v10, 1.0 }
 0xace   : > { %vm9033_vm3 = vcmp.ne.s32.totalorder %v5195_v50, 0  ;;  %v5009_v39 = vpop.permute.xlu0 %5008  ;;  %v4854_v11 = vsel %vm4846_vm1, %v4850_v59, %v5603_v41  ;;  %v4855_v40 = vmul.f32 %v4853_v60, %v9749_v22  ;;  %v5247_v25 = vrot.slane %v9005_v38, %v6009_v6 }
 0xacf   : > { %vm5214_vm15 = vcmp.eq.f32.partialorder %v8666_v13, 5.0  ;;  %v5020_v4 = vmul.f32 0.5, %v5016_v19  ;;  %v5021_v56 = vmul.f32 0.5, %v5017_v14  ;;  %v5004_v10 = vsub.f32 %v5002_v48, %v9784_v27  ;;  %v5007_v5 = vpop.permute.xlu1 %5006 }
 0xad0   : > { %v4856_v23 = vmul.f32 %v4854_v11, %v9751_v54  ;;  %v5005_v50 = vsub.f32 %v5003_v35, %v9785_v12  ;;  %v5010_v0 = vsel %vm683_vm6, %v5007_v5, %v5009_v39  ;;  %v5011_v29 = vsel %vm683_vm6, %v5009_v39, %v5007_v5 }
 0xad1   : > { %v4857_v63 = vsel %vm842_vm14, %v4855_v40, 0.0  ;;  %4972 = vadd.xlane.f32.xlu0 %v8792_v45  ;;  %v5012_v28 = vsub.f32 %v5010_v0, %v9786_v43  ;;  %v5013_v3 = vsub.f32 %v5011_v29, %v9787_v30  ;;  %v5022_v46 = vmul.f32 %v5020_v4, %v5016_v19 }
 0xad2   : > { %v4858_v27 = vsel %vm842_vm14, %v4856_v23, 0.0  ;;  %v5023_v16 = vmul.f32 %v5021_v56, %v5017_v14  ;;  %v5610_v12 = vadd.f32 -0.5, %v5016_v19  ;;  %v5611_v61 = vadd.f32 -0.5, %v5017_v14 }
 0xad3   : > { %v4859_v8 = vadd.f32 %v4858_v27, %v4857_v63  ;;  %v5043_v21 = vsub.f32 %v5012_v28, %v5004_v10  ;;  %v5044_v17 = vsub.f32 %v5013_v3, %v5005_v50  ;;  %vm5018_vm2 = vcmp.lt.f32.partialorder %v5016_v19, 1.0 }
 0xad4   : > { %vm5019_vm11 = vcmp.lt.f32.partialorder %v5017_v14, 1.0  ;;  %v5026_v20 = vsel %vm5018_vm2, %v5022_v46, %v5610_v12  ;;  %v5215_v45 = vsel %vm5214_vm15, 1, %v9756_v24  ;;  %vm5270_vm6 = vcmp.eq.f32.partialorder %v8666_v13, 7.0 }
 0xad5   : > { %4860 = vadd.xlane.f32.xlu1 %v4859_v8  ;;  %v5027_v1 = vsel %vm5019_vm11, %v5023_v16, %v5611_v61  ;;  %v5045_v43 = vand.u32 2147483647, %v5043_v21  ;;  %v5046_v30 = vand.u32 2147483647, %v5044_v17  ;;  %v5028_v9 = vmul.f32 %v5026_v20, %v9713_v62 }
 0xad6   : > { %v5029_v59 = vmul.f32 %v5027_v1, %v9714_v36  ;;  %vm9794_vm8 = vcmp.lt.f32.partialorder %v9764_v47, 8.0  ;;  %vm9070_vm12 = vcmp.ne.s32.totalorder %v5163_v34, 0  ;;  %vm9077_vm5 = vcmp.ne.s32.totalorder %v5167_v49, 0 }
 0xad7   : > { %vm9063_vm9 = vmand %vm9794_vm8, %vm9015_vm4  ;;  %v5251_v36 = vrot.slane %v9005_v38, %v6147_v55  ;;  %vm9083_vm13 = vcmp.ne.s32.totalorder %v5247_v25, 0  ;;  %v5049_v53 = vmul.f32 0.5, %v5045_v43  ;;  %v5050_v18 = vmul.f32 0.5, %v5046_v30 }
 0xad8   : > { %v5030_v34 = vsel %vm842_vm14, %v5028_v9, 0.0  ;;  %v5031_v26 = vsel %vm842_vm14, %v5029_v59, 0.0  ;;  %vm9805_vm4 = vmmov %vm9794_vm8  ;;  %v5219_v48 = vrot.slane %v5215_v45, %v6009_v6  ;;  %v5223_v41 = vrot.slane %v5215_v45, %v6147_v55 }
 0xad9   : > { %v5032_v49 = vadd.f32 %v5031_v26, %v5030_v34  ;;  %vm9101_vm1 = vmand %vm9805_vm4, %vm9033_vm3  ;;  %v5271_v60 = vsel %vm5270_vm6, 1, %v9756_v24  ;;  %v5051_v51 = vmul.f32 %v5049_v53, %v5045_v43  ;;  %v5052_v19 = vmul.f32 %v5050_v18, %v5046_v30 }
 0xada   : > { %v5612_v14 = vadd.f32 -0.5, %v5045_v43  ;;  %v5613_v35 = vadd.f32 -0.5, %v5046_v30  ;;  %vm5047_vm7 = vcmp.lt.f32.partialorder %v5045_v43, 1.0  ;;  %vm5048_vm15 = vcmp.lt.f32.partialorder %v5046_v30, 1.0  ;;  %vm9117_vm3 = vmand %vm291_vm10, %vm9070_vm12 }
 0xadb   : > { %5033 = vadd.xlane.f32.xlu1 %v5032_v49  ;;  %v5117_v33 = vsel %vm9063_vm9, 1.0, %v9734_v58  ;;  %vm5253_vm2 = vcmp.ne.s32.totalorder %v5251_v36, 0  ;;  %v5200_v11 = vsel %vm9093_vm0, 1.0, %v9734_v58  ;;  %v5201_v40 = vsel %vm9101_vm1, 1.0, %v9734_v58  ;;  %vm9810_vm11 = vmmov %vm9805_vm4 }
 0xadc   : > { %v5055_v13 = vsel %vm5047_vm7, %v5051_v51, %v5612_v14  ;;  %v5056_v24 = vsel %vm5048_vm15, %v5052_v19, %v5613_v35  ;;  %vm9131_vm6 = vmand %vm9810_vm11, %vm9077_vm5  ;;  %vm9145_vm9 = vcmp.ne.s32.totalorder %v5219_v48, 0  ;;  %v5275_v23 = vrot.slane %v5271_v60, %v6009_v6 }
 0xadd   : > { %v5057_v4 = vmul.f32 %v5055_v13, %v9749_v22  ;;  %v5058_v56 = vmul.f32 %v5056_v24, %v9751_v54  ;;  %vm9141_vm8 = vmand %vm291_vm10, %vm9083_vm13  ;;  %v5148_v50 = vadd.f32 %v8856_v37, %v8844_v44  ;;  %v5118_v22 = vsel %vm842_vm14, %v8924_v7, 0.0 }
 0xade   : > { %vm9817_vm12 = vmmov %vm9805_vm4  ;;  %vm5225_vm0 = vcmp.ne.s32.totalorder %v5223_v41, 0  ;;  %v5279_v54 = vrot.slane %v5271_v60, %v6147_v55  ;;  %v5119_v6 = vsel %vm842_vm14, %v5117_v33, 0.0  ;;  %v5202_v63 = vsel %vm842_vm14, %v5200_v11, 0.0 }
 0xadf   : > { %vm5255_vm5 = vmand %vm9817_vm12, %vm5253_vm2  ;;  %5093 = vadd.xlane.f32.xlu1 %v8797_v32  ;;  %v5059_v0 = vsel %vm842_vm14, %v5057_v4, 0.0  ;;  %v5060_v29 = vsel %vm842_vm14, %v5058_v56, 0.0  ;;  %v5203_v37 = vsel %vm842_vm14, %v5201_v40, 0.0  ;;  %v5172_v7 = vsel %vm9117_vm3, 1.0, %v9734_v58 }
 0xae0   : > { %v5061_v44 = vadd.f32 %v5060_v29, %v5059_v0  ;;  %v5173_v55 = vsel %vm9131_vm6, 1.0, %v9734_v58  ;;  %vm5226_vm13 = vmand %vm291_vm10, %vm9145_vm9  ;;  %v5256_v32 = vsel %vm9141_vm8, 1.0, %v9734_v58  ;;  %v5257_v28 = vsel %vm5255_vm5, 1.0, %v9734_v58 }
 0xae1   : > { %vm5227_vm1 = vmand %vm9805_vm4, %vm5225_vm0  ;;  %vm5280_vm7 = vcmp.ne.s32.totalorder %v5275_v23, 0  ;;  %v5120_v3 = vadd.f32 %v5119_v6, %v5118_v22  ;;  %vm5281_vm15 = vcmp.ne.s32.totalorder %v5279_v54, 0  ;;  %v5204_v27 = vadd.f32 %v5203_v37, %v5202_v63 }
 0xae2   : > { %5062 = vadd.xlane.f32.xlu0 %v5061_v44  ;;  %v5174_v46 = vsel %vm842_vm14, %v5172_v7, 0.0  ;;  %v5175_v8 = vsel %vm842_vm14, %v5173_v55, 0.0  ;;  %v5258_v16 = vsel %vm842_vm14, %v5256_v32, 0.0  ;;  %v5259_v12 = vsel %vm842_vm14, %v5257_v28, 0.0  ;;  %vm5282_vm3 = vmand %vm291_vm10, %vm5280_vm7 }
 0xae3   : > { %5149 = vadd.xlane.f32.xlu1 %v5148_v50  ;;  %v5228_v61 = vsel %vm5226_vm13, 1.0, %v9734_v58  ;;  %v5229_v21 = vsel %vm5227_vm1, 1.0, %v9734_v58  ;;  %vm9818_vm2 = vmmov %vm9805_vm4  ;;  %v5176_v17 = vadd.f32 %v5175_v8, %v5174_v46  ;;  %v5260_v20 = vadd.f32 %v5259_v12, %v5258_v16 }
 0xae4   : > { %vm5283_vm11 = vmand %vm9818_vm2, %vm5281_vm15  ;;  %v5230_v1 = vsel %vm842_vm14, %v5228_v61, 0.0  ;;  %v5231_v45 = vsel %vm842_vm14, %v5229_v21, 0.0  ;;  %v5284_v43 = vsel %vm5282_vm3, 1.0, %v9734_v58  ;;  %vm5319_vm13 = vcmp.eq.s32.totalorder %v6000_v2, 1 }
 0xae5   : > { %v5285_v30 = vsel %vm5283_vm11, 1.0, %v9734_v58  ;;  %v5232_v9 = vadd.f32 %v5231_v45, %v5230_v1  ;;  %v5286_v52 = vsel %vm842_vm14, %v5284_v43, 0.0  ;;  %vm5336_vm3 = vcmp.eq.s32.totalorder %v6000_v2, 2 }
 0xae6   : > { %5121 = vadd.xlane.f32.xlu0 %v5120_v3  ;;  %v5287_v47 = vsel %vm842_vm14, %v5285_v30, 0.0  ;;  %vm5299_vm14 = vcmp.eq.s32.totalorder %v6000_v2, 0 }
 0xae7   : > { %5205 = vadd.xlane.f32.xlu1 %v5204_v27  ;;  %v5288_v59 = vadd.f32 %v5287_v47, %v5286_v52 }
 0xaea   : > { %5177 = vadd.xlane.f32.xlu0 %v5176_v17 }
 0xaeb   : > { %5261 = vadd.xlane.f32.xlu1 %v5260_v20 }
 0xaee   : > { %5233 = vadd.xlane.f32.xlu0 %v5232_v9 }
 0xaf2   : > { %5289 = vadd.xlane.f32.xlu0 %v5288_v59 }
 0xb0d   : > { %v3490_v31 = vpop.xlane.xlu1 %3489 }
 0xb0e   : > { %v3491_v42 = vrot.slane %v3490_v31, 4 }
 0xb10   : > { %v3492_v62 = vadd.f32 %v3491_v42, %v3490_v31 }
 0xb12   : > { %v3493_v36 = vrot.slane %v3492_v62, 2 }
 0xb14   : > { %v3494_v15 = vadd.f32 %v3493_v36, %v3492_v62 }
 0xb16   : > { %v3495_v53 = vrot.slane %v3494_v15, 1 }
 0xb18   : > { %v3496_v18 = vadd.f32 %v3495_v53, %v3494_v15 }
 0xb1a   : > { %5677 = vpush %v3496_v18 }
 0xb39   : > { %v3894_v34 = vpop.xlane.xlu1 %3893 }
 0xb3a   : > { %v3895_v58 = vrot.slane %v3894_v34, 4 }
 0xb3c   : > { %v3896_v26 = vadd.f32 %v3895_v58, %v3894_v34 }
 0xb3e   : > { %v3897_v48 = vrot.slane %v3896_v26, 2 }
 0xb40   : > { %v3898_v33 = vadd.f32 %v3897_v48, %v3896_v26 }
 0xb41   : > { %v3721_v57 = vpop.xlane.xlu0 %3720 }
 0xb42   : > { %v3722_v49 = vrot.slane %v3721_v57, 4  ;;  %v3899_v10 = vrot.slane %v3898_v33, 1 }
 0xb44   : > { %v3723_v38 = vadd.f32 %v3722_v49, %v3721_v57  ;;  %v3900_v44 = vadd.f32 %v3899_v10, %v3898_v33 }
 0xb45   : > { %v3833_v41 = vpop.xlane.xlu0 %3832 }
 0xb46   : > { %v3724_v60 = vrot.slane %v3723_v38, 2  ;;  %v3834_v51 = vrot.slane %v3833_v41, 4 }
 0xb48   : > { %v3835_v19 = vadd.f32 %v3834_v51, %v3833_v41  ;;  %v3725_v14 = vadd.f32 %v3724_v60, %v3723_v38 }
 0xb49   : > { %v3923_v35 = vpop.xlane.xlu0 %3922 }
 0xb4a   : > { %v3836_v39 = vrot.slane %v3835_v19, 2  ;;  %v3924_v13 = vrot.slane %v3923_v35, 4  ;;  %v3726_v24 = vrot.slane %v3725_v14, 1 }
 0xb4b   : > { %s9236_s16 = spop %5677 }
 0xb4c   : > { %v3925_v11 = vadd.f32 %v3924_v13, %v3923_v35  ;;  %v3727_v40 = vadd.f32 %v3726_v24, %v3725_v14  ;;  %v3837_v25 = vadd.f32 %v3836_v39, %v3835_v19  ;;  %s3498_s13 = sadd.f32 %s9236_s16, %s9219_s23 }
 0xb4d   : > { %v4154_v4 = vpop.xlane.xlu1 %4153  ;;  %v4569_v56 = vpop.xlane.xlu0 %4568 }
 0xb4e   : > { %v3926_v5 = vrot.slane %v3925_v11, 2  ;;  %v4155_v23 = vrot.slane %v4154_v4, 4  ;;  %v4570_v50 = vrot.slane %v4569_v56, 4  ;;  %5679 = vpush %v3727_v40  ;;  %v3838_v22 = vrot.slane %v3837_v25, 1 }
 0xb50   : > { %v4156_v54 = vadd.f32 %v4155_v23, %v4154_v4  ;;  %v4571_v0 = vadd.f32 %v4570_v50, %v4569_v56  ;;  %v3839_v29 = vadd.f32 %v3838_v22, %v3837_v25  ;;  %v3927_v6 = vadd.f32 %v3926_v5, %v3925_v11 }
 0xb51   : > { %v4630_v63 = vpop.xlane.xlu1 %4629 }
 0xb52   : > { %v4157_v37 = vrot.slane %v4156_v54, 2  ;;  %v4572_v7 = vrot.slane %v4571_v0, 2  ;;  %v4631_v55 = vrot.slane %v4630_v63, 4  ;;  %5681 = vpush %v3839_v29  ;;  %v3928_v32 = vrot.slane %v3927_v6, 1 }
 0xb53   : > { %5683 = vpush %v3900_v44 }
 0xb54   : > { %v4632_v28 = vadd.f32 %v4631_v55, %v4630_v63  ;;  %v3929_v3 = vadd.f32 %v3928_v32, %v3927_v6  ;;  %v4158_v27 = vadd.f32 %v4157_v37, %v4156_v54  ;;  %v4573_v46 = vadd.f32 %v4572_v7, %v4571_v0 }
 0xb55   : > { %v4659_v8 = vpop.xlane.xlu0 %4658  ;;  %v4771_v16 = vpop.xlane.xlu1 %4770 }
 0xb56   : > { %v4633_v12 = vrot.slane %v4632_v28, 2  ;;  %v4660_v61 = vrot.slane %v4659_v8, 4  ;;  %v4772_v21 = vrot.slane %v4771_v16, 4  ;;  %5685 = vpush %v3929_v3  ;;  %v4159_v17 = vrot.slane %v4158_v27, 1 }
 0xb57   : > { %v4574_v20 = vrot.slane %v4573_v46, 1 }
 0xb58   : > { %v4661_v1 = vadd.f32 %v4660_v61, %v4659_v8  ;;  %v4773_v45 = vadd.f32 %v4772_v21, %v4771_v16  ;;  %v4160_v43 = vadd.f32 %v4159_v17, %v4158_v27  ;;  %v4634_v30 = vadd.f32 %v4633_v12, %v4632_v28 }
 0xb59   : > { %v4575_v9 = vadd.f32 %v4574_v20, %v4573_v46 }
 0xb5a   : > { %v4662_v52 = vrot.slane %v4661_v1, 2  ;;  %v4774_v47 = vrot.slane %v4773_v45, 2  ;;  %5687 = vpush %v4160_v43  ;;  %v4832_v59 = vpop.xlane.xlu0 %4831  ;;  %v4635_v31 = vrot.slane %v4634_v30, 1 }
 0xb5b   : > { %v4833_v42 = vrot.slane %v4832_v59, 4  ;;  %5697 = vpush %v4575_v9 }
 0xb5c   : > { %v4636_v62 = vadd.f32 %v4635_v31, %v4634_v30  ;;  %v4663_v36 = vadd.f32 %v4662_v52, %v4661_v1  ;;  %v4775_v15 = vadd.f32 %v4774_v47, %v4773_v45 }
 0xb5d   : > { %v4834_v53 = vadd.f32 %v4833_v42, %v4832_v59 }
 0xb5e   : > { %5699 = vpush %v4636_v62  ;;  %v4973_v18 = vpop.xlane.xlu0 %4972  ;;  %v4664_v34 = vrot.slane %v4663_v36, 1  ;;  %v4776_v58 = vrot.slane %v4775_v15, 1 }
 0xb5f   : > { %v4835_v26 = vrot.slane %v4834_v53, 2  ;;  %v4974_v57 = vrot.slane %v4973_v18, 4 }
 0xb60   : > { %v4665_v49 = vadd.f32 %v4664_v34, %v4663_v36  ;;  %v4777_v38 = vadd.f32 %v4776_v58, %v4775_v15 }
 0xb61   : > { %v4975_v48 = vadd.f32 %v4974_v57, %v4973_v18  ;;  %v4836_v60 = vadd.f32 %v4835_v26, %v4834_v53 }
 0xb62   : > { %v4861_v41 = vpop.xlane.xlu1 %4860  ;;  %5701 = vpush %v4665_v49 }
 0xb63   : > { %v4862_v51 = vrot.slane %v4861_v41, 4  ;;  %v4976_v19 = vrot.slane %v4975_v48, 2  ;;  %5703 = vpush %v4777_v38  ;;  %v4837_v14 = vrot.slane %v4836_v60, 1 }
 0xb65   : > { %v4863_v35 = vadd.f32 %v4862_v51, %v4861_v41  ;;  %v4838_v33 = vadd.f32 %v4837_v14, %v4836_v60  ;;  %v4977_v39 = vadd.f32 %v4976_v19, %v4975_v48 }
 0xb67   : > { %v4864_v13 = vrot.slane %v4863_v35, 2  ;;  %5705 = vpush %v4838_v33  ;;  %v4978_v25 = vrot.slane %v4977_v39, 1 }
 0xb68   : > { %v5034_v24 = vpop.xlane.xlu1 %5033 }
 0xb69   : > { %v5035_v11 = vrot.slane %v5034_v24, 4  ;;  %v4865_v40 = vadd.f32 %v4864_v13, %v4863_v35  ;;  %v4979_v22 = vadd.f32 %v4978_v25, %v4977_v39 }
 0xb6b   : > { %v5036_v4 = vadd.f32 %v5035_v11, %v5034_v24  ;;  %v4866_v56 = vrot.slane %v4865_v40, 1 }
 0xb6c   : > { %v5094_v10 = vpop.xlane.xlu1 %5093 }
 0xb6d   : > { %v5037_v5 = vrot.slane %v5036_v4, 2  ;;  %v4867_v23 = vadd.f32 %v4866_v56, %v4865_v40  ;;  %v5095_v50 = vrot.slane %v5094_v10, 4 }
 0xb6f   : > { %5707 = vpush %v4867_v23  ;;  %v5096_v54 = vadd.f32 %v5095_v50, %v5094_v10  ;;  %v5063_v0 = vpop.xlane.xlu0 %5062  ;;  %v5038_v29 = vadd.f32 %v5037_v5, %v5036_v4 }
 0xb70   : > { %5709 = vpush %v4979_v22  ;;  %v5064_v6 = vrot.slane %v5063_v0, 4  ;;  %v5150_v63 = vpop.xlane.xlu1 %5149 }
 0xb71   : > { %v5097_v44 = vrot.slane %v5096_v54, 2  ;;  %v5151_v37 = vrot.slane %v5150_v63, 4  ;;  %v5039_v7 = vrot.slane %v5038_v29, 1 }
 0xb72   : > { %v5065_v55 = vadd.f32 %v5064_v6, %v5063_v0  ;;  %v9819_v0 = vld [vmem:[#allocation5_spill] sm:$0xff]  ;;  %v5306_v6 = vstv %s2054_s0 }
 0xb73   : > { %v5152_v32 = vadd.f32 %v5151_v37, %v5150_v63  ;;  %v5122_v28 = vpop.xlane.xlu0 %5121  ;;  %v5040_v3 = vadd.f32 %v5039_v7, %v5038_v29  ;;  %v5098_v27 = vadd.f32 %v5097_v44, %v5096_v54  ;;  %vm5298_vm10 = vcmp.eq.s32.totalorder %v9819_v0, 0 }
 0xb74   : > { %v5066_v46 = vrot.slane %v5065_v55, 2  ;;  %v5123_v8 = vrot.slane %v5122_v28, 4  ;;  %v5206_v16 = vpop.xlane.xlu1 %5205  ;;  %vm5304_vm6 = vcmp.eq.s32.totalorder %v9819_v0, 1  ;;  %vm5300_vm8 = vmand %vm5298_vm10, %vm5299_vm14  ;;  %v5301_v29 = vstv %s1993_s24 }
 0xb75   : > { %v5153_v12 = vrot.slane %v5152_v32, 2  ;;  %5711 = vpush %v5040_v3  ;;  %v5207_v61 = vrot.slane %v5206_v16, 4  ;;  %v5099_v45 = vrot.slane %v5098_v27, 1  ;;  %vm5305_vm9 = vmand %vm5304_vm6, %vm5299_vm14  ;;  %vm5309_vm12 = vcmp.eq.s32.totalorder %v9819_v0, 2 }
 0xb76   : > { %v5124_v21 = vadd.f32 %v5123_v8, %v5122_v28  ;;  %v5067_v17 = vadd.f32 %v5066_v46, %v5065_v55  ;;  %v5302_v63 = vsel %vm5300_vm8, %v5301_v29, 0.0  ;;  %v5307_v44 = vsel %vm5305_vm9, %v5306_v6, 0.0  ;;  %vm5310_vm0 = vmand %vm5309_vm12, %vm5299_vm14 }
 0xb77   : > { %v5208_v20 = vadd.f32 %v5207_v61, %v5206_v16  ;;  %v5178_v1 = vpop.xlane.xlu0 %5177  ;;  %v5154_v43 = vadd.f32 %v5153_v12, %v5152_v32  ;;  %v5100_v18 = vadd.f32 %v5099_v45, %v5098_v27  ;;  %vm5314_vm5 = vcmp.eq.s32.totalorder %v9819_v0, 3  ;;  %vm5320_vm1 = vmand %vm5298_vm10, %vm5319_vm13 }
 0xb78   : > { %v5125_v30 = vrot.slane %v5124_v21, 2  ;;  %v5179_v9 = vrot.slane %v5178_v1, 4  ;;  %v5262_v52 = vpop.xlane.xlu1 %5261  ;;  %v5068_v47 = vrot.slane %v5067_v17, 1  ;;  %v5308_v37 = vadd.f32 %v5307_v44, %v5302_v63  ;;  %vm5315_vm4 = vmand %vm5314_vm5, %vm5299_vm14 }
 0xb79   : > { %v5209_v59 = vrot.slane %v5208_v20, 2  ;;  %v5263_v31 = vrot.slane %v5262_v52, 4  ;;  %v5155_v34 = vrot.slane %v5154_v43, 1  ;;  %v5311_v7 = vstv %s2083_s10  ;;  %vm5324_vm7 = vmand %vm5304_vm6, %vm5319_vm13 }
 0xb7a   : > { %v5180_v42 = vadd.f32 %v5179_v9, %v5178_v1  ;;  %v5069_v62 = vadd.f32 %v5068_v47, %v5067_v17  ;;  %v5126_v36 = vadd.f32 %v5125_v30, %v5124_v21  ;;  %v5316_v55 = vstv %s2457_s25  ;;  %vm5328_vm15 = vmand %vm5309_vm12, %vm5319_vm13 }
 0xb7b   : > { %v5264_v15 = vadd.f32 %v5263_v31, %v5262_v52  ;;  %v5234_v53 = vpop.xlane.xlu0 %5233  ;;  %v5210_v58 = vadd.f32 %v5209_v59, %v5208_v20  ;;  %v5156_v14 = vadd.f32 %v5155_v34, %v5154_v43  ;;  %v5312_v28 = vsel %vm5310_vm0, %v5311_v7, 0.0  ;;  %vm5332_vm2 = vmand %vm5314_vm5, %vm5319_vm13 }
 0xb7c   : > { %v5181_v26 = vrot.slane %v5180_v42, 2  ;;  %v5235_v57 = vrot.slane %v5234_v53, 4  ;;  %5713 = vpush %v5069_v62  ;;  %v5127_v49 = vrot.slane %v5126_v36, 1  ;;  %v5317_v3 = vsel %vm5315_vm4, %v5316_v55, 0.0  ;;  %vm5337_vm11 = vmand %vm5298_vm10, %vm5336_vm3 }
 0xb7d   : > { %v5265_v38 = vrot.slane %v5264_v15, 2  ;;  %5715 = vpush %v5100_v18  ;;  %v5211_v35 = vrot.slane %v5210_v58, 1  ;;  %v5313_v27 = vadd.f32 %v5312_v28, %v5308_v37  ;;  %vm5341_vm8 = vmand %vm5304_vm6, %vm5336_vm3  ;;  %vm5350_vm9 = vcmp.eq.s32.totalorder %v9819_v0, 4 }
 0xb7e   : > { %v5236_v48 = vadd.f32 %v5235_v57, %v5234_v53  ;;  %v5128_v41 = vadd.f32 %v5127_v49, %v5126_v36  ;;  %v5182_v60 = vadd.f32 %v5181_v26, %v5180_v42  ;;  %vm5345_vm10 = vmand %vm5309_vm12, %vm5336_vm3  ;;  %vm5363_vm12 = vcmp.eq.s32.totalorder %v6000_v2, 3 }
 0xb7f   : > { %v5266_v51 = vadd.f32 %v5265_v38, %v5264_v15  ;;  %v5290_v19 = vpop.xlane.xlu0 %5289  ;;  %v5212_v25 = vadd.f32 %v5211_v35, %v5210_v58  ;;  %s9242_s7 = spop %5679  ;;  %v5318_v8 = vadd.f32 %v5317_v3, %v5313_v27  ;;  %vm5351_vm6 = vmand %vm5350_vm9, %vm5299_vm14  ;;  %vm5368_vm0 = vcmp.eq.s32.totalorder %v6000_v2, 4 }
 0xb80   : > { %v5237_v33 = vrot.slane %v5236_v48, 2  ;;  %v5291_v39 = vrot.slane %v5290_v19, 4  ;;  %5717 = vpush %v5128_v41  ;;  %v5183_v13 = vrot.slane %v5182_v60, 1  ;;  %s3729_s11 = sadd.f32 %s9242_s7, %s9221_s26  ;;  %vm5355_vm5 = vmand %vm5350_vm9, %vm5319_vm13  ;;  %vm5373_vm4 = vcmp.eq.s32.totalorder %v6000_v2, 5 }
 0xb81   : > { %5719 = vpush %v5156_v14  ;;  %v5267_v4 = vrot.slane %v5266_v51, 1  ;;  %vm5359_vm14 = vmand %vm5350_vm9, %vm5336_vm3  ;;  %vm5383_vm3 = vcmp.eq.s32.totalorder %v6000_v2, 7 }
 0xb82   : > { %v5292_v24 = vadd.f32 %v5291_v39, %v5290_v19  ;;  %v5184_v11 = vadd.f32 %v5183_v13, %v5182_v60  ;;  %v5238_v40 = vadd.f32 %v5237_v33, %v5236_v48  ;;  %vm5364_vm13 = vmand %vm5350_vm9, %vm5363_vm12 }
 0xb83   : > { %v5268_v50 = vadd.f32 %v5267_v4, %v5266_v51  ;;  %s5682_s27 = spop %5681 }
 0xb84   : > { %v5293_v56 = vrot.slane %v5292_v24, 2  ;;  %5721 = vpush %v5184_v11  ;;  %v5239_v10 = vrot.slane %v5238_v40, 1  ;;  %s5684_s28 = spop %5683  ;;  %s3841_s30 = sadd.f32 %s5682_s27, %s3408_s29 }
 0xb85   : > { %5723 = vpush %v5212_v25  ;;  %s3902_s9 = sadd.f32 %s5684_s28, %s3469_s2 }
 0xb86   : > { %v5294_v5 = vadd.f32 %v5293_v56, %v5292_v24  ;;  %v5240_v23 = vadd.f32 %v5239_v10, %v5238_v40  ;;  %v5321_v32 = vstv %s3841_s30 }
 0xb87   : > { %s5686_s14 = spop %5685  ;;  %v5322_v46 = vsel %vm5320_vm1, %v5321_v32, 0.0  ;;  %v5325_v12 = vstv %s3902_s9  ;;  %vm5369_vm1 = vmand %vm5350_vm9, %vm5368_vm0 }
 0xb88   : > { %5725 = vpush %v5240_v23  ;;  %v5295_v22 = vrot.slane %v5294_v5, 1  ;;  %s3931_s20 = sadd.f32 %s5686_s14, %s3498_s13  ;;  %v5323_v16 = vadd.f32 %v5322_v46, %v5318_v8  ;;  %v5326_v21 = vsel %vm5324_vm7, %v5325_v12, 0.0  ;;  %vm5378_vm7 = vcmp.eq.s32.totalorder %v6000_v2, 6 }
 0xb89   : > { %5727 = vpush %v5268_v50 }
 0xb8a   : > { %v5296_v54 = vadd.f32 %v5295_v22, %v5294_v5  ;;  %v5329_v61 = vstv %s3931_s20  ;;  %v5327_v17 = vadd.f32 %v5326_v21, %v5323_v16 }
 0xb8b   : > { %s5688_s0 = spop %5687  ;;  %v5330_v20 = vsel %vm5328_vm15, %v5329_v61, 0.0  ;;  %vm5374_vm15 = vmand %vm5350_vm9, %vm5373_vm4 }
 0xb8c   : > { %5729 = vpush %v5296_v54  ;;  %s9256_s1 = spop %5697  ;;  %s4162_s8 = sadd.f32 %s5688_s0, %s3729_s11  ;;  %v5331_v45 = vadd.f32 %v5330_v20, %v5327_v17 }
 0xb8e   : > { %v5333_v1 = vstv %s4162_s8 }
 0xb8f   : > { %s9266_s12 = spop %5699  ;;  %v5334_v30 = vsel %vm5332_vm2, %v5333_v1, 0.0  ;;  %vm5379_vm2 = vmand %vm5350_vm9, %vm5378_vm7 }
 0xb90   : > { %v5335_v47 = vadd.f32 %v5334_v30, %v5331_v45 }
 0xb93   : > { %s9268_s5 = spop %5701 }
 0xb94   : > { %s5704_s3 = spop %5703 }
 0xb95   : > { %s4779_s10 = sadd.f32 %s5704_s3, %s9256_s1 }
 0xb98   : > { %s5706_s24 = spop %5705 }
 0xb99   : > { %s4840_s7 = sadd.f32 %s5706_s24, %s9266_s12  ;;  %s5518_s12 = sshll.u32 %s5996_s6, 1 }
 0xb9a   : > { %s266_s20 = sadd.s32 %s5518_s12, %s9831_s15 }
 0xb9b   : > { %s5519_s3 = sshll.u32 %s266_s20, 3 }
 0xb9c   : > { %s268_s15 = scalar_lea.vmem %s9356_s4, %s5519_s3 }
 0xba0   : > { %s9276_s23 = spop %5707 }
 0xba1   : > { %s5710_s16 = spop %5709  ;;  %s4869_s29 = sadd.f32 %s9276_s23, %s9268_s5 }
 0xba2   : > { %s4981_s26 = sadd.f32 %s5710_s16, %s4779_s10 }
 0xba4   : > { %v5338_v43 = vstv %s4981_s26 }
 0xba5   : > { %v5339_v52 = vsel %vm5337_vm11, %v5338_v43, 0.0  ;;  %vm5384_vm11 = vmand %vm5350_vm9, %vm5383_vm3 }
 0xba6   : > { %s5712_s25 = spop %5711  ;;  %v5340_v31 = vadd.f32 %v5339_v52, %v5335_v47 }
 0xba7   : > { %s5042_s27 = sadd.f32 %s5712_s25, %s4840_s7 }
 0xba9   : > { %v5342_v9 = vstv %s5042_s27 }
 0xbaa   : > { %v5343_v59 = vsel %vm5341_vm8, %v5342_v9, 0.0 }
 0xbab   : > { %v5344_v42 = vadd.f32 %v5343_v59, %v5340_v31 }
 0xbad   : > { %s5714_s28 = spop %5713 }
 0xbae   : > { %s5071_s30 = sadd.f32 %s5714_s28, %s4869_s29  ;;  %s5716_s14 = spop %5715 }
 0xbaf   : > { %v5352_v36 = vstv %s5716_s14 }
 0xbb0   : > { %v5346_v62 = vstv %s5071_s30  ;;  %v5353_v34 = vsel %vm5351_vm6, %v5352_v36, 0.0 }
 0xbb1   : > { %v5347_v15 = vsel %vm5345_vm10, %v5346_v62, 0.0  ;;  %s5718_s0 = spop %5717 }
 0xbb2   : > { %v5348_v53 = vadd.f32 %v5347_v15, %v5344_v42  ;;  %v5356_v18 = vstv %s5718_s0  ;;  %s5720_s1 = spop %5719 }
 0xbb3   : > { %v5360_v26 = vstv %s5720_s1  ;;  %v5357_v57 = vsel %vm5355_vm5, %v5356_v18, 0.0 }
 0xbb4   : > { %v5354_v58 = vadd.f32 %v5353_v34, %v5348_v53  ;;  %v5361_v48 = vsel %vm5359_vm14, %v5360_v26, 0.0 }
 0xbb5   : > { %s5722_s2 = spop %5721 }
 0xbb6   : > { %v5358_v49 = vadd.f32 %v5357_v57, %v5354_v58  ;;  %v5365_v38 = vstv %s5722_s2  ;;  %s5724_s13 = spop %5723 }
 0xbb7   : > { %v5370_v60 = vstv %s5724_s13  ;;  %v5366_v51 = vsel %vm5364_vm13, %v5365_v38, 0.0 }
 0xbb8   : > { %v5362_v41 = vadd.f32 %v5361_v48, %v5358_v49  ;;  %v5371_v35 = vsel %vm5369_vm1, %v5370_v60, 0.0 }
 0xbb9   : > { %s5726_s9 = spop %5725 }
 0xbba   : > { %v5367_v19 = vadd.f32 %v5366_v51, %v5362_v41  ;;  %v5375_v14 = vstv %s5726_s9  ;;  %s5728_s5 = spop %5727 }
 0xbbb   : > { %v5380_v39 = vstv %s5728_s5  ;;  %v5376_v13 = vsel %vm5374_vm15, %v5375_v14, 0.0 }
 0xbbc   : > { %v5372_v33 = vadd.f32 %v5371_v35, %v5367_v19  ;;  %v5381_v40 = vsel %vm5379_vm2, %v5380_v39, 0.0 }
 0xbbd   : > { %s5730_s6 = spop %5729 }
 0xbbe   : > { %v5377_v24 = vadd.f32 %v5376_v13, %v5372_v33  ;;  %v5385_v11 = vstv %s5730_s6 }
 0xbbf   : > { %v5386_v2 = vsel %vm5384_vm11, %v5385_v11, 0.0 }
 0xbc0   : > { %v5382_v25 = vadd.f32 %v5381_v40, %v5377_v24 }
 0xbc2   : > { %v5387_v4 = vadd.f32 %v5386_v2, %v5382_v25 }
 0xbc4   : > { %5388 = vst [vmem:[%s268_s15] sm:$0xff] %v5387_v4 }
 0xbc5 PF: > { %s15_s19 = sadd.s32 1, %s5899_s19   ;;  %s9820_s15 = smov %s5891_s17 }
 0xbc6   : > { %p12_p4 = scmp.ge.s32.totalorder %s15_s19, 6   ;;  %s9821_s16 = smov %s5895_s18 }
 0xbc7   : > { %s9822_s17 = smov %s9825_s21  ;;  %s9823_s18 = smov %s9829_s22 }
 0xbc8   :  { %14 = sbr.rel (!%p12_p4) target bundleno = 8 (0x8), region = 81 }
 0xbcf   :  { %5416 = vsyncpa [#allocation3], 1 }
 0xbd0   :  { %5418 = vsyncpa [#allocation3 + $0x1], 1 }

</bundles_post_ra>
